<compile_context>
chip_gen: v7x
topology: tpu7x:2x2x1
jax: 0.10.0
libtpu: 0.0.40
codegen_flags: <defaults>
</compile_context>

<pallas_src>
import functools

import jax
import jax.numpy as jnp
from jax.experimental import pallas as pl
from jax.experimental.pallas import tpu as pltpu


# ----------------------------------------------------------------------------
# Fused Pallas kernel:
#   stage 1: (3x3 conv + folded BN)  -- one MXU matmul over im2col patches
#   stage 2: (3x3 conv + BN + 1x1 conv + bias) folded to a 3x3 C->1 conv -- VPU
# One grid step = one batch image.  Rows (sublanes) = H2*W2 pixels, lanes = channels.
# ----------------------------------------------------------------------------
def _agg_lp2_kernel(xcol_ref, w1_ref, b1_ref, v2_ref, c2_ref, o_ref, ypad_ref,
                    *, C, H2, W2):
    HW = H2 * W2

    # ---- stage 1: conv_upsample1 (3x3, pad=1) + folded BN (no ReLU in BasicConv2d) ----
    # Single matmul with full K = 9*C contraction (im2col patches built by XLA glue).
    y1 = jnp.dot(xcol_ref[...], w1_ref[...], preferred_element_type=jnp.float32)
    y1 = y1 + b1_ref[...]                                         # (HW,C) + (1,C)

    # Zero-padded intermediate kept entirely in VMEM.  Re-zeroed every step so the
    # border is valid even when the batch axis is sharded across TensorCores.
    ypad_ref[...] = jnp.zeros_like(ypad_ref)
    ypad_ref[1:1 + H2, 1:1 + W2, :] = y1.reshape(H2, W2, C)

    # ---- stage 2: conv4 (3x3 + BN) and conv5 (1x1 + bias) folded into one 3x3 C->1
    # conv, evaluated on the VPU (9 broadcast FMAs in f32) + one cross-lane reduce.
    v2 = v2_ref[...]                                              # (9, C) f32 tap rows
    acc = jnp.zeros((HW, C), jnp.float32)
    for t in range(9):
        dy, dx = divmod(t, 3)
        tap = ypad_ref[dy:dy + H2, dx:dx + W2, :].reshape(HW, C)  # f32 shifted tap
        acc = acc + tap * v2[t:t + 1, :]
    out = jnp.sum(acc, axis=-1, keepdims=True) + c2_ref[...]      # (HW,1) + (1,1)
    o_ref[...] = out


# ----------------------------------------------------------------------------
# JAX glue: bilinear 2x upsample, align_corners=True (matches nn.Upsample)
# ----------------------------------------------------------------------------
def _bilinear_up2_align_corners(x):
    n, c, h, w = x.shape
    oh, ow = 2 * h, 2 * w
    ys = jnp.linspace(0.0, h - 1.0, oh)
    xs = jnp.linspace(0.0, w - 1.0, ow)
    y0 = jnp.floor(ys).astype(jnp.int32)
    x0 = jnp.floor(xs).astype(jnp.int32)
    y1 = jnp.minimum(y0 + 1, h - 1)
    x1 = jnp.minimum(x0 + 1, w - 1)
    wy = (ys - y0.astype(ys.dtype))[None, None, :, None]
    wx = (xs - x0.astype(xs.dtype))[None, None, None, :]
    top = x[:, :, y0, :]
    bot = x[:, :, y1, :]
    v = top * (1.0 - wy) + bot * wy
    return v[:, :, :, x0] * (1.0 - wx) + v[:, :, :, x1] * wx


# ----------------------------------------------------------------------------
# Forward pass (jitted: upsample + im2col glue + single fused pallas_call)
# ----------------------------------------------------------------------------
@jax.jit
def aggregation_lp2_forward(params, x1):
    n, c, h, w = x1.shape
    h2, w2 = 2 * h, 2 * w
    hw = h2 * w2

    xu = _bilinear_up2_align_corners(x1)                          # (N,C,H2,W2) f32
    xnhwc = jnp.transpose(xu, (0, 2, 3, 1))                       # single layout change
    xpad = jnp.pad(xnhwc, ((0, 0), (1, 1), (1, 1), (0, 0)))
    # XLA-side im2col: 9 shifted taps concatenated on the channel axis so the in-kernel
    # conv1 is one MXU matmul with a full (9*C) contraction dim.
    taps = [xpad[:, dy:dy + h2, dx:dx + w2, :] for dy in range(3) for dx in range(3)]
    xcol = jnp.concatenate(taps, axis=-1).reshape(n, hw, 9 * c).astype(jnp.bfloat16)

    kernel = functools.partial(_agg_lp2_kernel, C=c, H2=h2, W2=w2)
    out = pl.pallas_call(
        kernel,
        out_shape=jax.ShapeDtypeStruct((n, hw, 1), jnp.float32),
        grid_spec=pltpu.PrefetchScalarGridSpec(
            num_scalar_prefetch=0,
            grid=(n,),
            in_specs=[
                pl.BlockSpec((None, hw, 9 * c), lambda b: (b, 0, 0)),  # im2col patches
                pl.BlockSpec((9 * c, c), lambda b: (0, 0)),            # conv1 weight (BN folded)
                pl.BlockSpec((1, c), lambda b: (0, 0)),                # conv1 bias (BN folded)
                pl.BlockSpec((9, c), lambda b: (0, 0)),                # folded conv4+BN4+conv5 taps
                pl.BlockSpec((1, 1), lambda b: (0, 0)),                # folded output bias
            ],
            out_specs=pl.BlockSpec((None, hw, 1), lambda b: (b, 0, 0)),
            scratch_shapes=[pltpu.VMEM((h2 + 2, w2 + 2, c), jnp.float32)],
        ),
        compiler_params=pltpu.CompilerParams(
            dimension_semantics=("parallel",)),
    )(xcol, params['w1'], params['b1'], params['v2'], params['c2'])

    return out.reshape(n, h2, w2, 1).transpose(0, 3, 1, 2)        # NCHW (N,1,2H,2W)


# ----------------------------------------------------------------------------
# Deterministic parameter construction (conv weights + folded BatchNorm / conv5)
# ----------------------------------------------------------------------------
def _fold_bn(gamma, beta, mean, var, eps=1e-5):
    scale = gamma / jnp.sqrt(var + eps)
    bias = beta - mean * scale
    return scale, bias


def _make_basic_conv(key, cin, cout, ksz):
    k1, k2, k3, k4, k5 = jax.random.split(key, 5)
    fan_in = cin * ksz * ksz
    w = jax.random.normal(k1, (cout, cin, ksz, ksz), jnp.float32) * jnp.sqrt(2.0 / fan_in)
    gamma = 1.0 + 0.1 * jax.random.normal(k2, (cout,), jnp.float32)
    beta = 0.1 * jax.random.normal(k3, (cout,), jnp.float32)
    mean = 0.05 * jax.random.normal(k4, (cout,), jnp.float32)
    var = 1.0 + 0.1 * jax.random.uniform(k5, (cout,), jnp.float32)
    scale, bias = _fold_bn(gamma, beta, mean, var)
    return w, scale, bias


def make_aggregation_lp2_params(key, channel):
    k1, k2, k3, k4 = jax.random.split(key, 4)
    w1, s1, b1 = _make_basic_conv(k1, channel, channel, 3)
    w4, s4, b4 = _make_basic_conv(k2, channel, channel, 3)
    w5 = jax.random.normal(k3, (1, channel, 1, 1), jnp.float32) / jnp.sqrt(channel)
    b5 = 0.01 * jax.random.normal(k4, (1,), jnp.float32)

    # stage 1 packing: (Cout,Cin,3,3) -> (9*Cin, Cout), BN scale folded in (f32), then bf16.
    w1_packed = jnp.transpose(w1, (2, 3, 1, 0)).reshape(9 * channel, channel)
    w1_packed = (w1_packed * s1[None, :]).astype(jnp.bfloat16)

    # stage 2 folding: conv5(bn4(conv4(y))) == sum_t tap_t(y) @ v2[t] + c2 with
    #   v2[t, ci] = sum_co W4[co,ci,dy,dx] * s4[co] * w5[co],  c2 = <b4, w5> + b5.
    w5_vec = w5.reshape(channel)
    u = s4 * w5_vec
    v2 = jnp.einsum('oiyx,o->yxi', w4, u).reshape(9, channel)
    c2 = jnp.sum(b4 * w5_vec) + b5[0]

    return dict(
        # kernel-packed parameters (folded / cast once at construction time)
        w1=w1_packed,
        b1=b1.reshape(1, -1),
        v2=v2,
        c2=c2.reshape(1, 1),
        # raw f32 copies, used only by the pure-JAX reference check
        raw=dict(w1=w1, s1=s1, b1=b1, w4=w4, s4=s4, b4=b4, w5=w5, b5=b5),
    )


# ----------------------------------------------------------------------------
# Pure-JAX f32 reference (unfused weights, for a numerical sanity check)
# ----------------------------------------------------------------------------
def _ref_conv(x, w, padding):
    return jax.lax.conv_general_dilated(
        x, w, window_strides=(1, 1),
        padding=((padding, padding), (padding, padding)),
        dimension_numbers=('NCHW', 'OIHW', 'NCHW'),
        precision=jax.lax.Precision.HIGHEST)


@jax.jit
def reference_forward(params, x1):
    r = params['raw']
    xu = _bilinear_up2_align_corners(x1)
    y1 = _ref_conv(xu, r['w1'], 1) * r['s1'][None, :, None, None] + r['b1'][None, :, None, None]
    y4 = _ref_conv(y1, r['w4'], 1) * r['s4'][None, :, None, None] + r['b4'][None, :, None, None]
    return _ref_conv(y4, r['w5'], 0) + r['b5'][None, :, None, None]


if __name__ == "__main__":
    root = jax.random.PRNGKey(0)
    pkey, xkey = jax.random.split(root)
    channel = 32
    params = make_aggregation_lp2_params(pkey, channel)
    x1 = jax.random.normal(xkey, (2, channel, 16, 16), jnp.float32)   # NCHW

    out = aggregation_lp2_forward(params, x1)
    jax.block_until_ready(out)
    assert out.shape == (2, 1, 32, 32), out.shape
    assert bool(jnp.all(jnp.isfinite(out)))

    # Check vs. f32 reference (stage-1 matmul uses bf16 operands / f32 accumulation).
    ref = reference_forward(params, x1)
    max_err = float(jnp.max(jnp.abs(out - ref)))
    assert max_err < 0.5, f"max abs err vs reference: {max_err}"

    print("KERNEL_OK")
</pallas_src>

<mosaic_0001>
module attributes {stable_mosaic.version = 11 : i64} {
  func.func @_agg_lp2_kernel(%arg0: i32, %arg1: memref<1x1024x288xbf16, #tpu.memory_space<vmem>>, %arg2: memref<288x32xbf16, #tpu.memory_space<vmem>>, %arg3: memref<1x32xf32, #tpu.memory_space<vmem>>, %arg4: memref<9x32xf32, #tpu.memory_space<vmem>>, %arg5: memref<1x1xf32, #tpu.memory_space<vmem>>, %arg6: memref<1x1024x1xf32, #tpu.memory_space<vmem>>, %arg7: memref<34x34x32xf32, #tpu.memory_space<vmem>>) attributes {dimension_semantics = [#tpu.dimension_semantics<parallel>], iteration_bounds = array<i64: 2>, scalar_prefetch = 0 : i64, scratch_operands = 1 : i64, tpu.core_type = #tpu.core_type<tc>, window_params = [{transform_indices = @transform_0, window_bounds = array<i64: 1, 1024, 288>}, {pipeline_mode = #tpu.pipeline_mode<synchronous>, transform_indices = @transform_1, window_bounds = array<i64: 288, 32>}, {pipeline_mode = #tpu.pipeline_mode<synchronous>, transform_indices = @transform_2, window_bounds = array<i64: 1, 32>}, {pipeline_mode = #tpu.pipeline_mode<synchronous>, transform_indices = @transform_3, window_bounds = array<i64: 9, 32>}, {pipeline_mode = #tpu.pipeline_mode<synchronous>, transform_indices = @transform_4, window_bounds = array<i64: 1, 1>}, {transform_indices = @transform_5, window_bounds = array<i64: 1, 1024, 1>}]} {
    %c0 = arith.constant 0 : index
    %c0_0 = arith.constant 0 : index
    %c0_1 = arith.constant 0 : index
    %0 = vector.load %arg1[%c0, %c0_0, %c0_1] : memref<1x1024x288xbf16, #tpu.memory_space<vmem>>, vector<1x1024x288xbf16>
    %1 = vector.shape_cast %0 : vector<1x1024x288xbf16> to vector<1024x288xbf16>
    %c0_2 = arith.constant 0 : index
    %c0_3 = arith.constant 0 : index
    %2 = vector.load %arg2[%c0_2, %c0_3] : memref<288x32xbf16, #tpu.memory_space<vmem>>, vector<288x32xbf16>
    %cst = arith.constant dense<0.000000e+00> : vector<1024x32xf32>
    %3 = tpu.matmul %1, %2, %cst {dimension_numbers = #tpu.dot_dimension_numbers<[1], [0], [0], [1], [0, 0, 1, 1], [], []>} : vector<1024x288xbf16>, vector<288x32xbf16>, vector<1024x32xf32> -> vector<1024x32xf32>
    %c0_4 = arith.constant 0 : index
    %c0_5 = arith.constant 0 : index
    %4 = vector.load %arg3[%c0_4, %c0_5] : memref<1x32xf32, #tpu.memory_space<vmem>>, vector<1x32xf32>
    %5 = vector.broadcast %4 : vector<1x32xf32> to vector<1024x32xf32>
    %6 = arith.addf %3, %5 : vector<1024x32xf32>
    %cst_6 = arith.constant 0.000000e+00 : f32
    %7 = vector.broadcast %cst_6 : f32 to vector<34x34x32xf32>
    %c0_7 = arith.constant 0 : index
    %c0_8 = arith.constant 0 : index
    %c0_9 = arith.constant 0 : index
    %8 = vector.load %arg7[%c0_7, %c0_8, %c0_9] : memref<34x34x32xf32, #tpu.memory_space<vmem>>, vector<34x34x32xf32>
    tpu.vector_store %arg7[%c0_7, %c0_8, %c0_9], %7 {strides = array<i32>} : memref<34x34x32xf32, #tpu.memory_space<vmem>>, vector<34x34x32xf32>,
    %9 = vector.shape_cast %6 : vector<1024x32xf32> to vector<32x32x32xf32>
    %c1 = arith.constant 1 : index
    %c1_10 = arith.constant 1 : index
    %c0_11 = arith.constant 0 : index
    %10 = vector.load %arg7[%c1, %c1_10, %c0_11] : memref<34x34x32xf32, #tpu.memory_space<vmem>>, vector<32x32x32xf32>
    tpu.vector_store %arg7[%c1, %c1_10, %c0_11], %9 {strides = array<i32>} : memref<34x34x32xf32, #tpu.memory_space<vmem>>, vector<32x32x32xf32>,
    %c0_12 = arith.constant 0 : index
    %c0_13 = arith.constant 0 : index
    %11 = vector.load %arg4[%c0_12, %c0_13] : memref<9x32xf32, #tpu.memory_space<vmem>>, vector<9x32xf32>
    %cst_14 = arith.constant 0.000000e+00 : f32
    %12 = vector.broadcast %cst_14 : f32 to vector<1024x32xf32>
    %c0_15 = arith.constant 0 : index
    %c0_16 = arith.constant 0 : index
    %c0_17 = arith.constant 0 : index
    %13 = vector.load %arg7[%c0_15, %c0_16, %c0_17] : memref<34x34x32xf32, #tpu.memory_space<vmem>>, vector<32x32x32xf32>
    %14 = vector.shape_cast %13 : vector<32x32x32xf32> to vector<1024x32xf32>
    %15 = vector.extract_strided_slice %11 {offsets = [0, 0], sizes = [1, 32], strides = [1, 1]} : vector<9x32xf32> to vector<1x32xf32>
    %16 = vector.broadcast %15 : vector<1x32xf32> to vector<1024x32xf32>
    %17 = arith.mulf %14, %16 : vector<1024x32xf32>
    %18 = arith.addf %12, %17 : vector<1024x32xf32>
    %c0_18 = arith.constant 0 : index
    %c1_19 = arith.constant 1 : index
    %c0_20 = arith.constant 0 : index
    %19 = vector.load %arg7[%c0_18, %c1_19, %c0_20] : memref<34x34x32xf32, #tpu.memory_space<vmem>>, vector<32x32x32xf32>
    %20 = vector.shape_cast %19 : vector<32x32x32xf32> to vector<1024x32xf32>
    %21 = vector.extract_strided_slice %11 {offsets = [1, 0], sizes = [1, 32], strides = [1, 1]} : vector<9x32xf32> to vector<1x32xf32>
    %22 = vector.broadcast %21 : vector<1x32xf32> to vector<1024x32xf32>
    %23 = arith.mulf %20, %22 : vector<1024x32xf32>
    %24 = arith.addf %18, %23 : vector<1024x32xf32>
    %c0_21 = arith.constant 0 : index
    %c2 = arith.constant 2 : index
    %c0_22 = arith.constant 0 : index
    %25 = vector.load %arg7[%c0_21, %c2, %c0_22] : memref<34x34x32xf32, #tpu.memory_space<vmem>>, vector<32x32x32xf32>
    %26 = vector.shape_cast %25 : vector<32x32x32xf32> to vector<1024x32xf32>
    %27 = vector.extract_strided_slice %11 {offsets = [2, 0], sizes = [1, 32], strides = [1, 1]} : vector<9x32xf32> to vector<1x32xf32>
    %28 = vector.broadcast %27 : vector<1x32xf32> to vector<1024x32xf32>
    %29 = arith.mulf %26, %28 : vector<1024x32xf32>
    %30 = arith.addf %24, %29 : vector<1024x32xf32>
    %c1_23 = arith.constant 1 : index
    %c0_24 = arith.constant 0 : index
    %c0_25 = arith.constant 0 : index
    %31 = vector.load %arg7[%c1_23, %c0_24, %c0_25] : memref<34x34x32xf32, #tpu.memory_space<vmem>>, vector<32x32x32xf32>
    %32 = vector.shape_cast %31 : vector<32x32x32xf32> to vector<1024x32xf32>
    %33 = vector.extract_strided_slice %11 {offsets = [3, 0], sizes = [1, 32], strides = [1, 1]} : vector<9x32xf32> to vector<1x32xf32>
    %34 = vector.broadcast %33 : vector<1x32xf32> to vector<1024x32xf32>
    %35 = arith.mulf %32, %34 : vector<1024x32xf32>
    %36 = arith.addf %30, %35 : vector<1024x32xf32>
    %c1_26 = arith.constant 1 : index
    %c1_27 = arith.constant 1 : index
    %c0_28 = arith.constant 0 : index
    %37 = vector.load %arg7[%c1_26, %c1_27, %c0_28] : memref<34x34x32xf32, #tpu.memory_space<vmem>>, vector<32x32x32xf32>
    %38 = vector.shape_cast %37 : vector<32x32x32xf32> to vector<1024x32xf32>
    %39 = vector.extract_strided_slice %11 {offsets = [4, 0], sizes = [1, 32], strides = [1, 1]} : vector<9x32xf32> to vector<1x32xf32>
    %40 = vector.broadcast %39 : vector<1x32xf32> to vector<1024x32xf32>
    %41 = arith.mulf %38, %40 : vector<1024x32xf32>
    %42 = arith.addf %36, %41 : vector<1024x32xf32>
    %c1_29 = arith.constant 1 : index
    %c2_30 = arith.constant 2 : index
    %c0_31 = arith.constant 0 : index
    %43 = vector.load %arg7[%c1_29, %c2_30, %c0_31] : memref<34x34x32xf32, #tpu.memory_space<vmem>>, vector<32x32x32xf32>
    %44 = vector.shape_cast %43 : vector<32x32x32xf32> to vector<1024x32xf32>
    %45 = vector.extract_strided_slice %11 {offsets = [5, 0], sizes = [1, 32], strides = [1, 1]} : vector<9x32xf32> to vector<1x32xf32>
    %46 = vector.broadcast %45 : vector<1x32xf32> to vector<1024x32xf32>
    %47 = arith.mulf %44, %46 : vector<1024x32xf32>
    %48 = arith.addf %42, %47 : vector<1024x32xf32>
    %c2_32 = arith.constant 2 : index
    %c0_33 = arith.constant 0 : index
    %c0_34 = arith.constant 0 : index
    %49 = vector.load %arg7[%c2_32, %c0_33, %c0_34] : memref<34x34x32xf32, #tpu.memory_space<vmem>>, vector<32x32x32xf32>
    %50 = vector.shape_cast %49 : vector<32x32x32xf32> to vector<1024x32xf32>
    %51 = vector.extract_strided_slice %11 {offsets = [6, 0], sizes = [1, 32], strides = [1, 1]} : vector<9x32xf32> to vector<1x32xf32>
    %52 = vector.broadcast %51 : vector<1x32xf32> to vector<1024x32xf32>
    %53 = arith.mulf %50, %52 : vector<1024x32xf32>
    %54 = arith.addf %48, %53 : vector<1024x32xf32>
    %c2_35 = arith.constant 2 : index
    %c1_36 = arith.constant 1 : index
    %c0_37 = arith.constant 0 : index
    %55 = vector.load %arg7[%c2_35, %c1_36, %c0_37] : memref<34x34x32xf32, #tpu.memory_space<vmem>>, vector<32x32x32xf32>
    %56 = vector.shape_cast %55 : vector<32x32x32xf32> to vector<1024x32xf32>
    %57 = vector.extract_strided_slice %11 {offsets = [7, 0], sizes = [1, 32], strides = [1, 1]} : vector<9x32xf32> to vector<1x32xf32>
    %58 = vector.broadcast %57 : vector<1x32xf32> to vector<1024x32xf32>
    %59 = arith.mulf %56, %58 : vector<1024x32xf32>
    %60 = arith.addf %54, %59 : vector<1024x32xf32>
    %c2_38 = arith.constant 2 : index
    %c2_39 = arith.constant 2 : index
    %c0_40 = arith.constant 0 : index
    %61 = vector.load %arg7[%c2_38, %c2_39, %c0_40] : memref<34x34x32xf32, #tpu.memory_space<vmem>>, vector<32x32x32xf32>
    %62 = vector.shape_cast %61 : vector<32x32x32xf32> to vector<1024x32xf32>
    %63 = vector.extract_strided_slice %11 {offsets = [8, 0], sizes = [1, 32], strides = [1, 1]} : vector<9x32xf32> to vector<1x32xf32>
    %64 = vector.broadcast %63 : vector<1x32xf32> to vector<1024x32xf32>
    %65 = arith.mulf %62, %64 : vector<1024x32xf32>
    %66 = arith.addf %60, %65 : vector<1024x32xf32>
    %cst_41 = arith.constant dense<0.000000e+00> : vector<1024xf32>
    %67 = vector.multi_reduction <add>, %66, %cst_41 [1] : vector<1024x32xf32> to vector<1024xf32>
    %68 = vector.shape_cast %67 : vector<1024xf32> to vector<1024x1xf32>
    %c0_42 = arith.constant 0 : index
    %c0_43 = arith.constant 0 : index
    %69 = vector.load %arg5[%c0_42, %c0_43] : memref<1x1xf32, #tpu.memory_space<vmem>>, vector<1x1xf32>
    %70 = vector.broadcast %69 : vector<1x1xf32> to vector<1024x1xf32>
    %71 = arith.addf %68, %70 : vector<1024x1xf32>
    %c0_44 = arith.constant 0 : index
    %c0_45 = arith.constant 0 : index
    %c0_46 = arith.constant 0 : index
    %72 = vector.load %arg6[%c0_44, %c0_45, %c0_46] : memref<1x1024x1xf32, #tpu.memory_space<vmem>>, vector<1x1024x1xf32>
    %73 = vector.shape_cast %72 : vector<1x1024x1xf32> to vector<1024x1xf32>
    %74 = vector.shape_cast %71 : vector<1024x1xf32> to vector<1x1024x1xf32>
    tpu.vector_store %arg6[%c0_44, %c0_45, %c0_46], %74 {strides = array<i32>} : memref<1x1024x1xf32, #tpu.memory_space<vmem>>, vector<1x1024x1xf32>,
    return
  }
  func.func @transform_0(%arg0: i32) -> (i32, i32, i32) {
    %c0_i32 = arith.constant 0 : i32
    %c0_i32_0 = arith.constant 0 : i32
    %c0_i32_1 = arith.constant 0 : i32
    return %arg0, %c0_i32, %c0_i32_0 : i32, i32, i32
  }
  func.func @transform_1(%arg0: i32) -> (i32, i32) {
    %c0_i32 = arith.constant 0 : i32
    %c0_i32_0 = arith.constant 0 : i32
    %c0_i32_1 = arith.constant 0 : i32
    return %c0_i32, %c0_i32_0 : i32, i32
  }
  func.func @transform_2(%arg0: i32) -> (i32, i32) {
    %c0_i32 = arith.constant 0 : i32
    %c0_i32_0 = arith.constant 0 : i32
    %c0_i32_1 = arith.constant 0 : i32
    return %c0_i32, %c0_i32_0 : i32, i32
  }
  func.func @transform_3(%arg0: i32) -> (i32, i32) {
    %c0_i32 = arith.constant 0 : i32
    %c0_i32_0 = arith.constant 0 : i32
    %c0_i32_1 = arith.constant 0 : i32
    return %c0_i32, %c0_i32_0 : i32, i32
  }
  func.func @transform_4(%arg0: i32) -> (i32, i32) {
    %c0_i32 = arith.constant 0 : i32
    %c0_i32_0 = arith.constant 0 : i32
    %c0_i32_1 = arith.constant 0 : i32
    return %c0_i32, %c0_i32_0 : i32, i32
  }
  func.func @transform_5(%arg0: i32) -> (i32, i32, i32) {
    %c0_i32 = arith.constant 0 : i32
    %c0_i32_0 = arith.constant 0 : i32
    %c0_i32_1 = arith.constant 0 : i32
    return %arg0, %c0_i32, %c0_i32_0 : i32, i32, i32
  }
}

</mosaic_0001>

<bundles_post_ra>
// kernel: aggregation_lp2_forward.1
= control target key start
LH: loop header
LB: loop body
LE: loop exit
PB: predicated region body
PF: predicated region fallthrough
CT: control target
= control target key end

     0   :  { %s8236_s20 = smov 0   ;;  %s14308_s0 = inlined_call_operand.vmem [shape: bf16[2,1024,288], index: 0, kind: input, shape index: {}]   ;;  %s14309_s1 = inlined_call_operand.vmem [shape: bf16[288,32], index: 1, kind: input, shape index: {}]   ;;  %s14310_s2 = inlined_call_operand.vmem [shape: f32[1,32], index: 2, kind: input, shape index: {}]   ;;  %s14311_s3 = inlined_call_operand.vmem [shape: f32[9,32], index: 3, kind: input, shape index: {}]   ;;  %s14312_s4 = inlined_call_operand.<no memory space> [shape: f32[1,1], index: 4, kind: input, shape index: {}]   ;;  %s14313_s5 = inlined_call_operand.vmem [shape: f32[2,1024,1], index: 5, kind: output, shape index: {}]  }
   0x1   :  { %v10_v0 = vstv %s14312_s4 }
   0x2   :  { %11 = vst [vmem:[#allocation3] sm:$0x1] %v10_v0 }
   0x3 LB: > { %s7376_s21 = sadd.s32 4294967295, %s8199_s20   ;;  %p7380_p0 = scmp.ge.s32.totalorder %s8199_s20, 1  ;;  %s8199_s20 = sphi %s8236_s20, %s17_s20  }
   0x4   : > { %p189_p1 = scmp.lt.s32.totalorder %s8199_s20, 3 }
   0x6   : > { %p190_p2 = pnand %p7380_p0, %p189_p1 }
   0x8   : > { %193 = sbr.rel (%p190_p2) target bundleno = 1254 (0x4e6), region = 40 }
   0xf   : > { %v7905_v1 = vld [vmem:[%s14309_s1] sm:$0xff]   ;;  %v8201_v2 = vmov 0   ;;  %v7906_v3 = vld [vmem:[%s14309_s1 + $0x8] sm:$0xff]   ;;  %p217_p3 = scmp.lt.s32.totalorder %s7376_s21, 1  ;;  %v7907_v4 = vld [vmem:[%s14309_s1 + $0x10] sm:$0xff]   ;;  %vm1595_vm0 = vcmask 261120  }
  0x10   : > { %1788 = vmatprep.subr.bf16.mxu0 %v8201_v2  ;;  %7862 = vmatprep.subr.bf16.mxu1 %v8201_v2  ;;  %v7908_v5 = vld [vmem:[%s14309_s1 + $0x18] sm:$0xff]   ;;  %v7909_v6 = vld [vmem:[%s14309_s1 + $0x20] sm:$0xff]   ;;  %v7910_v8 = vld [vmem:[%s14309_s1 + $0x28] sm:$0xff]   ;;  %vm2882_vm1 = vcmask 254976   ;;  %vm7192_vm2 = vcmask 7168  }
  0x11   : > { %1789 = vmatpush1.bf16.msra.mxu0 %v7905_v1  ;;  %7878 = vmatpush1.bf16.msra.mxu1 %v7905_v1  ;;  %s15183_s21 = smov (!%p217_p3, %s7376_s21), 1  ;;  %v7911_v10 = vld [vmem:[%s14309_s1 + $0x30] sm:$0xff]   ;;  %v7912_v11 = vld [vmem:[%s14309_s1 + $0x38] sm:$0xff]   ;;  %v7913_v12 = vld [vmem:[%s14309_s1 + $0x40] sm:$0xff]  }
  0x12   : > { %1790 = vmatprep.subr.bf16.mxu0 %v8201_v2  ;;  %7863 = vmatprep.subr.bf16.mxu1 %v8201_v2  ;;  %s7894_s29 = smul.u32 1536, %s15183_s21  ;;  %v7914_v13 = vld [vmem:[%s14309_s1 + $0x48] sm:$0xff]   ;;  %v7915_v14 = vld [vmem:[%s14309_s1 + $0x50] sm:$0xff]   ;;  %v7916_v15 = vld [vmem:[%s14309_s1 + $0x58] sm:$0xff]   ;;  %s7663_s6 = sshll.u32 %s15183_s21, 10 }
  0x13   : > { %v7917_v16 = vld [vmem:[%s14309_s1 + $0x60] sm:$0xff]   ;;  %v7918_v17 = vld [vmem:[%s14309_s1 + $0x68] sm:$0xff]   ;;  %v7919_v18 = vld [vmem:[%s14309_s1 + $0x70] sm:$0xff]   ;;  %s11877_s8 = scalar_lea.vmem %s14313_s5, %s7663_s6 }
  0x14   : > { %s8273_s9 = scalar_lea.vmem %s14308_s0, %s7894_s29  ;;  %v7920_v19 = vld [vmem:[%s14309_s1 + $0x78] sm:$0xff]   ;;  %v7927_v20 = vld [vmem:[%s14309_s1 + $0x80] sm:$0xff]   ;;  %v7976_v25 = vld [vmem:[%s14309_s1 + $0x88] sm:$0xff]  }
  0x15   : > { %1791 = vmatpush1.bf16.msra.mxu0 %v7906_v3  ;;  %7879 = vmatpush1.bf16.msra.mxu1 %v7906_v3  ;;  %v7923_v7 = vld [vmem:[%s8273_s9 + $0x4] ss:$12 sps:$4 sm:$0xff]   ;;  %v7921_v21 = vld [vmem:[%s8273_s9] ss:$12 sps:$4 sm:$0xff]   ;;  %v7928_v23 = vld [vmem:[%s8273_s9 + $0x1c] ss:$12 sps:$4 sm:$0xff]  }
  0x16   : > { %1792 = vmatprep.subr.bf16.mxu0 %v8201_v2  ;;  %7864 = vmatprep.subr.bf16.mxu1 %v8201_v2  ;;  %v7926_v9 = vld [vmem:[%s8273_s9 + $0x484] ss:$12 sps:$4 sm:$0xff]   ;;  %v7924_v22 = vld [vmem:[%s8273_s9 + $0x480] ss:$12 sps:$4 sm:$0xff]   ;;  %v7930_v24 = vld [vmem:[%s8273_s9 + $0x49c] ss:$12 sps:$4 sm:$0xff]  }
  0x17   : > { %1820 = vmatprep.mubr.bf16.mxu0 %v7923_v7  ;;  %2204 = vmatprep.mubr.bf16.mxu1 %v7926_v9  ;;  %v7932_v26 = vld [vmem:[%s8273_s9 + $0x18] ss:$12 sps:$4 sm:$0xff]   ;;  %v7934_v28 = vld [vmem:[%s8273_s9 + $0x34] ss:$12 sps:$4 sm:$0xff]   ;;  %v7938_v30 = vld [vmem:[%s8273_s9 + $0x30] ss:$12 sps:$4 sm:$0xff]  }
  0x18   : > { %v7933_v27 = vld [vmem:[%s8273_s9 + $0x498] ss:$12 sps:$4 sm:$0xff]   ;;  %v7936_v29 = vld [vmem:[%s8273_s9 + $0x4b4] ss:$12 sps:$4 sm:$0xff]   ;;  %v7939_v31 = vld [vmem:[%s8273_s9 + $0x4b0] ss:$12 sps:$4 sm:$0xff]  }
  0x19   : > { %1793 = vmatpush1.bf16.msra.mxu0 %v7907_v4  ;;  %7880 = vmatpush1.bf16.msra.mxu1 %v7907_v4  ;;  %v7940_v32 = vld [vmem:[%s8273_s9 + $0x4c] ss:$12 sps:$4 sm:$0xff]   ;;  %v7944_v34 = vld [vmem:[%s8273_s9 + $0x48] ss:$12 sps:$4 sm:$0xff]   ;;  %v7946_v36 = vld [vmem:[%s8273_s9 + $0x64] ss:$12 sps:$4 sm:$0xff]  }
  0x1a   : > { %1794 = vmatprep.subr.bf16.mxu0 %v8201_v2  ;;  %7865 = vmatprep.subr.bf16.mxu1 %v8201_v2  ;;  %v7942_v33 = vld [vmem:[%s8273_s9 + $0x4cc] ss:$12 sps:$4 sm:$0xff]   ;;  %v7945_v35 = vld [vmem:[%s8273_s9 + $0x4c8] ss:$12 sps:$4 sm:$0xff]   ;;  %v7948_v37 = vld [vmem:[%s8273_s9 + $0x4e4] ss:$12 sps:$4 sm:$0xff]  }
  0x1b   : > { %v7950_v38 = vld [vmem:[%s8273_s9 + $0x60] ss:$12 sps:$4 sm:$0xff]   ;;  %v7952_v40 = vld [vmem:[%s8273_s9 + $0x7c] ss:$12 sps:$4 sm:$0xff]   ;;  %v7956_v42 = vld [vmem:[%s8273_s9 + $0x78] ss:$12 sps:$4 sm:$0xff]  }
  0x1c   : > { %v7951_v39 = vld [vmem:[%s8273_s9 + $0x4e0] ss:$12 sps:$4 sm:$0xff]   ;;  %v7954_v41 = vld [vmem:[%s8273_s9 + $0x4fc] ss:$12 sps:$4 sm:$0xff]   ;;  %v7957_v43 = vld [vmem:[%s8273_s9 + $0x4f8] ss:$12 sps:$4 sm:$0xff]  }
  0x1d   : > { %1795 = vmatpush1.bf16.msra.mxu0 %v7908_v5  ;;  %7881 = vmatpush1.bf16.msra.mxu1 %v7908_v5  ;;  %v7958_v44 = vld [vmem:[%s8273_s9 + $0x94] ss:$12 sps:$4 sm:$0xff]   ;;  %v7962_v46 = vld [vmem:[%s8273_s9 + $0x90] ss:$12 sps:$4 sm:$0xff]   ;;  %v7964_v48 = vld [vmem:[%s8273_s9 + $0xac] ss:$12 sps:$4 sm:$0xff]  }
  0x1e   : > { %1796 = vmatprep.subr.bf16.mxu0 %v8201_v2  ;;  %7866 = vmatprep.subr.bf16.mxu1 %v8201_v2  ;;  %v7960_v45 = vld [vmem:[%s8273_s9 + $0x514] ss:$12 sps:$4 sm:$0xff]   ;;  %v7963_v47 = vld [vmem:[%s8273_s9 + $0x510] ss:$12 sps:$4 sm:$0xff]   ;;  %v7966_v49 = vld [vmem:[%s8273_s9 + $0x52c] ss:$12 sps:$4 sm:$0xff]  }
  0x1f   : > { %v7968_v50 = vld [vmem:[%s8273_s9 + $0xa8] ss:$12 sps:$4 sm:$0xff]   ;;  %v7970_v52 = vld [vmem:[%s8273_s9 + $0xc4] ss:$12 sps:$4 sm:$0xff]   ;;  %v7974_v54 = vld [vmem:[%s8273_s9 + $0xc0] ss:$12 sps:$4 sm:$0xff]  }
  0x20   : > { %v7969_v51 = vld [vmem:[%s8273_s9 + $0x528] ss:$12 sps:$4 sm:$0xff]   ;;  %v7972_v53 = vld [vmem:[%s8273_s9 + $0x544] ss:$12 sps:$4 sm:$0xff]   ;;  %v7975_v55 = vld [vmem:[%s8273_s9 + $0x540] ss:$12 sps:$4 sm:$0xff]  }
  0x21   : > { %1797 = vmatpush1.bf16.msra.mxu0 %v7909_v6  ;;  %7882 = vmatpush1.bf16.msra.mxu1 %v7909_v6  ;;  %v7977_v56 = vld [vmem:[%s8273_s9 + $0xdc] ss:$12 sps:$4 sm:$0xff]   ;;  %v7981_v58 = vld [vmem:[%s8273_s9 + $0xd8] ss:$12 sps:$4 sm:$0xff]   ;;  %v7983_v60 = vld [vmem:[%s8273_s9 + $0xf4] ss:$12 sps:$4 sm:$0xff]  }
  0x22   : > { %1798 = vmatprep.subr.bf16.mxu0 %v8201_v2  ;;  %7867 = vmatprep.subr.bf16.mxu1 %v8201_v2  ;;  %v7979_v57 = vld [vmem:[%s8273_s9 + $0x55c] ss:$12 sps:$4 sm:$0xff]   ;;  %v7982_v59 = vld [vmem:[%s8273_s9 + $0x558] ss:$12 sps:$4 sm:$0xff]   ;;  %v7985_v61 = vld [vmem:[%s8273_s9 + $0x574] ss:$12 sps:$4 sm:$0xff]  }
  0x23   : > { %v7987_v62 = vld [vmem:[%s8273_s9 + $0xf0] ss:$12 sps:$4 sm:$0xff]   ;;  %v7989_v0 = vld [vmem:[%s8273_s9 + $0x10c] ss:$12 sps:$4 sm:$0xff]   ;;  %v7994_v3 = vld [vmem:[%s8273_s9 + $0x588] ss:$12 sps:$4 sm:$0xff]  }
  0x24   : > { %v7988_v63 = vld [vmem:[%s8273_s9 + $0x570] ss:$12 sps:$4 sm:$0xff]   ;;  %v7991_v1 = vld [vmem:[%s8273_s9 + $0x58c] ss:$12 sps:$4 sm:$0xff]  }
  0x25   : > { %1799 = vmatpush1.bf16.msra.mxu0 %v7910_v8  ;;  %7883 = vmatpush1.bf16.msra.mxu1 %v7910_v8  ;;  %v7995_v4 = vld [vmem:[%s8273_s9 + $0x124] ss:$12 sps:$4 sm:$0xff]   ;;  %v7999_v6 = vld [vmem:[%s8273_s9 + $0x120] ss:$12 sps:$4 sm:$0xff]   ;;  %v8001_v8 = vld [vmem:[%s8273_s9 + $0x13c] ss:$12 sps:$4 sm:$0xff]  }
  0x26   : > { %1800 = vmatprep.subr.bf16.mxu0 %v8201_v2  ;;  %7868 = vmatprep.subr.bf16.mxu1 %v8201_v2  ;;  %v7997_v5 = vld [vmem:[%s8273_s9 + $0x5a4] ss:$12 sps:$4 sm:$0xff]   ;;  %v8000_v7 = vld [vmem:[%s8273_s9 + $0x5a0] ss:$12 sps:$4 sm:$0xff]   ;;  %v8003_v9 = vld [vmem:[%s8273_s9 + $0x5bc] ss:$12 sps:$4 sm:$0xff]  }
  0x29   : > { %1801 = vmatpush1.bf16.msra.mxu0 %v7911_v10  ;;  %7884 = vmatpush1.bf16.msra.mxu1 %v7911_v10  ;;  %v8005_v10 = vld [vmem:[%s8273_s9 + $0x138] ss:$12 sps:$4 sm:$0xff]  }
  0x2a   : > { %1802 = vmatprep.subr.bf16.mxu0 %v8201_v2  ;;  %7869 = vmatprep.subr.bf16.mxu1 %v8201_v2 }
  0x2d   : > { %1803 = vmatpush1.bf16.msra.mxu0 %v7912_v11  ;;  %7885 = vmatpush1.bf16.msra.mxu1 %v7912_v11  ;;  %v8006_v11 = vld [vmem:[%s8273_s9 + $0x5b8] ss:$12 sps:$4 sm:$0xff]  }
  0x2e   : > { %1804 = vmatprep.subr.bf16.mxu0 %v8201_v2  ;;  %7870 = vmatprep.subr.bf16.mxu1 %v8201_v2 }
  0x31   : > { %1805 = vmatpush1.bf16.msra.mxu0 %v7913_v12  ;;  %7886 = vmatpush1.bf16.msra.mxu1 %v7913_v12  ;;  %v8007_v12 = vld [vmem:[%s8273_s9 + $0x154] ss:$12 sps:$4 sm:$0xff]  }
  0x32   : > { %1806 = vmatprep.subr.bf16.mxu0 %v8201_v2  ;;  %7871 = vmatprep.subr.bf16.mxu1 %v8201_v2 }
  0x35   : > { %1807 = vmatpush1.bf16.msra.mxu0 %v7914_v13  ;;  %7887 = vmatpush1.bf16.msra.mxu1 %v7914_v13  ;;  %v8009_v13 = vld [vmem:[%s8273_s9 + $0x5d4] ss:$12 sps:$4 sm:$0xff]  }
  0x36   : > { %1808 = vmatprep.subr.bf16.mxu0 %v8201_v2  ;;  %7872 = vmatprep.subr.bf16.mxu1 %v8201_v2 }
  0x39   : > { %1809 = vmatpush1.bf16.msra.mxu0 %v7915_v14  ;;  %7888 = vmatpush1.bf16.msra.mxu1 %v7915_v14  ;;  %v8011_v14 = vld [vmem:[%s8273_s9 + $0x150] ss:$12 sps:$4 sm:$0xff]  }
  0x3a   : > { %1810 = vmatprep.subr.bf16.mxu0 %v8201_v2  ;;  %7873 = vmatprep.subr.bf16.mxu1 %v8201_v2 }
  0x3d   : > { %1811 = vmatpush1.bf16.msra.mxu0 %v7916_v15  ;;  %7889 = vmatpush1.bf16.msra.mxu1 %v7916_v15  ;;  %v8012_v15 = vld [vmem:[%s8273_s9 + $0x5d0] ss:$12 sps:$4 sm:$0xff]  }
  0x3e   : > { %1812 = vmatprep.subr.bf16.mxu0 %v8201_v2  ;;  %7874 = vmatprep.subr.bf16.mxu1 %v8201_v2 }
  0x41   : > { %1813 = vmatpush1.bf16.msra.mxu0 %v7917_v16  ;;  %7890 = vmatpush1.bf16.msra.mxu1 %v7917_v16  ;;  %v8013_v16 = vld [vmem:[%s8273_s9 + $0x16c] ss:$12 sps:$4 sm:$0xff]  }
  0x42   : > { %1814 = vmatprep.subr.bf16.mxu0 %v8201_v2  ;;  %7875 = vmatprep.subr.bf16.mxu1 %v8201_v2 }
  0x45   : > { %1815 = vmatpush1.bf16.msra.mxu0 %v7918_v17  ;;  %7891 = vmatpush1.bf16.msra.mxu1 %v7918_v17  ;;  %v8015_v17 = vld [vmem:[%s8273_s9 + $0x5ec] ss:$12 sps:$4 sm:$0xff]  }
  0x46   : > { %1816 = vmatprep.subr.bf16.mxu0 %v8201_v2  ;;  %7876 = vmatprep.subr.bf16.mxu1 %v8201_v2 }
  0x49   : > { %1817 = vmatpush1.bf16.msra.mxu0 %v7919_v18  ;;  %7892 = vmatpush1.bf16.msra.mxu1 %v7919_v18  ;;  %v8017_v18 = vld [vmem:[%s8273_s9 + $0x168] ss:$12 sps:$4 sm:$0xff]  }
  0x4a   : > { %1818 = vmatprep.subr.bf16.mxu0 %v8201_v2  ;;  %7877 = vmatprep.subr.bf16.mxu1 %v8201_v2  ;;  %v7993_v2 = vld [vmem:[%s8273_s9 + $0x108] ss:$12 sps:$4 sm:$0xff]  }
  0x4d   : > { %1819 = vmatpush1.bf16.msra.mxu0 %v7920_v19  ;;  %7893 = vmatpush1.bf16.msra.mxu1 %v7920_v19  ;;  %v8018_v19 = vld [vmem:[%s8273_s9 + $0x5e8] ss:$12 sps:$4 sm:$0xff]  }
  0x4e   : > { %7730 = vmatprep.subr.bf16.mxu1 %v7927_v20 }
  0x50   : > { %1821 = vmatmul.mubr.bf16.vlgmr.msra.gmra.mrb[0].mxu0 %v7921_v21  ;;  %2205 = vmatmul.mubr.bf16.vlgmr.msra.gmra.mrb[0].mxu1 %v7924_v22  ;;  %v8021_v21 = vld [vmem:[%s8273_s9 + $0x8] ss:$12 sps:$4 sm:$0xff]   ;;  %v8022_v22 = vld [vmem:[%s8273_s9 + $0x180] ss:$12 sps:$4 sm:$0xff]  }
  0x51   : > { %7731 = vmatpush3.bf16.msra.mxu1 %v7927_v20  ;;  %1828 = vmatprep.mubr.bf16.mxu0 %v7928_v23  ;;  %v8019_v20 = vld [vmem:[%s8273_s9 + $0x184] ss:$12 sps:$4 sm:$0xff]   ;;  %v8023_v23 = vld [vmem:[%s8273_s9 + $0x20] ss:$12 sps:$4 sm:$0xff]  }
  0x52   : > { %2212 = vmatprep.mubr.bf16.mxu1 %v7930_v24  ;;  %7732 = vmatprep.subr.bf16.mxu1 %v7976_v25  ;;  %v8024_v24 = vld [vmem:[%s8273_s9 + $0x19c] ss:$12 sps:$4 sm:$0xff]  }
  0x55   : > { %7733 = vmatpush3.bf16.msra.mxu1 %v7976_v25  ;;  %v8026_v25 = vld [vmem:[%s8273_s9 + $0x38] ss:$12 sps:$4 sm:$0xff]  }
  0x58   : > { %1829 = vmatmul.mubr.bf16.gmra.mrb[4].mxu0 %v7932_v26  ;;  %2213 = vmatmul.mubr.bf16.gmra.mrb[4].mxu1 %v7933_v27  ;;  %v8027_v26 = vld [vmem:[%s8273_s9 + $0x198] ss:$12 sps:$4 sm:$0xff]   ;;  %v8028_v27 = vld [vmem:[%s8273_s9 + $0x50] ss:$12 sps:$4 sm:$0xff]  }
  0x59   : > { %1836 = vmatprep.mubr.bf16.mxu0 %v7934_v28  ;;  %2220 = vmatprep.mubr.bf16.mxu1 %v7936_v29  ;;  %v8029_v28 = vld [vmem:[%s8273_s9 + $0x1b4] ss:$12 sps:$4 sm:$0xff]  }
  0x5a   : > { %v8031_v29 = vld [vmem:[%s8273_s9 + $0x68] ss:$12 sps:$4 sm:$0xff]  }
  0x60   : > { %1837 = vmatmul.mubr.bf16.gmra.mrb[8].mxu0 %v7938_v30  ;;  %2221 = vmatmul.mubr.bf16.gmra.mrb[8].mxu1 %v7939_v31  ;;  %v8032_v30 = vld [vmem:[%s8273_s9 + $0x1b0] ss:$12 sps:$4 sm:$0xff]   ;;  %v8033_v31 = vld [vmem:[%s8273_s9 + $0x80] ss:$12 sps:$4 sm:$0xff]  }
  0x61   : > { %1844 = vmatprep.mubr.bf16.mxu0 %v7940_v32  ;;  %2228 = vmatprep.mubr.bf16.mxu1 %v7942_v33  ;;  %v8034_v32 = vld [vmem:[%s8273_s9 + $0x1cc] ss:$12 sps:$4 sm:$0xff]  }
  0x62   : > { %v8036_v33 = vld [vmem:[%s8273_s9 + $0x98] ss:$12 sps:$4 sm:$0xff]  }
  0x68   : > { %1845 = vmatmul.mubr.bf16.gmra.mrb[12].mxu0 %v7944_v34  ;;  %2229 = vmatmul.mubr.bf16.gmra.mrb[12].mxu1 %v7945_v35  ;;  %v8037_v34 = vld [vmem:[%s8273_s9 + $0x1c8] ss:$12 sps:$4 sm:$0xff]   ;;  %v8038_v35 = vld [vmem:[%s8273_s9 + $0xb0] ss:$12 sps:$4 sm:$0xff]  }
  0x69   : > { %1852 = vmatprep.mubr.bf16.mxu0 %v7946_v36  ;;  %2236 = vmatprep.mubr.bf16.mxu1 %v7948_v37  ;;  %v8039_v36 = vld [vmem:[%s8273_s9 + $0x1e4] ss:$12 sps:$4 sm:$0xff]   ;;  %v8041_v37 = vld [vmem:[%s8273_s9 + $0xc8] ss:$12 sps:$4 sm:$0xff]  }
  0x70   : > { %1853 = vmatmul.mubr.bf16.gmra.mrb[16].mxu0 %v7950_v38  ;;  %2237 = vmatmul.mubr.bf16.gmra.mrb[16].mxu1 %v7951_v39  ;;  %v8042_v38 = vld [vmem:[%s8273_s9 + $0x1e0] ss:$12 sps:$4 sm:$0xff]  }
  0x71   : > { %1860 = vmatprep.mubr.bf16.mxu0 %v7952_v40  ;;  %2244 = vmatprep.mubr.bf16.mxu1 %v7954_v41  ;;  %v8043_v39 = vld [vmem:[%s8273_s9 + $0xe0] ss:$12 sps:$4 sm:$0xff]   ;;  %v8044_v40 = vld [vmem:[%s8273_s9 + $0x1fc] ss:$12 sps:$4 sm:$0xff]   ;;  %v8046_v41 = vld [vmem:[%s8273_s9 + $0xf8] ss:$12 sps:$4 sm:$0xff]  }
  0x78   : > { %1861 = vmatmul.mubr.bf16.gmra.mrb[20].mxu0 %v7956_v42  ;;  %2245 = vmatmul.mubr.bf16.gmra.mrb[20].mxu1 %v7957_v43  ;;  %v8047_v42 = vld [vmem:[%s8273_s9 + $0x1f8] ss:$12 sps:$4 sm:$0xff]   ;;  %v8048_v43 = vld [vmem:[%s8273_s9 + $0x110] ss:$12 sps:$4 sm:$0xff]  }
  0x79   : > { %1868 = vmatprep.mubr.bf16.mxu0 %v7958_v44  ;;  %2252 = vmatprep.mubr.bf16.mxu1 %v7960_v45  ;;  %v8049_v44 = vld [vmem:[%s8273_s9 + $0x214] ss:$12 sps:$4 sm:$0xff]  }
  0x7a   : > { %v8051_v45 = vld [vmem:[%s8273_s9 + $0x128] ss:$12 sps:$4 sm:$0xff]  }
  0x80   : > { %1869 = vmatmul.mubr.bf16.gmra.mrb[24].mxu0 %v7962_v46  ;;  %2253 = vmatmul.mubr.bf16.gmra.mrb[24].mxu1 %v7963_v47  ;;  %v8052_v46 = vld [vmem:[%s8273_s9 + $0x210] ss:$12 sps:$4 sm:$0xff]   ;;  %v8053_v47 = vld [vmem:[%s8273_s9 + $0x140] ss:$12 sps:$4 sm:$0xff]  }
  0x81   : > { %1876 = vmatprep.mubr.bf16.mxu0 %v7964_v48  ;;  %2260 = vmatprep.mubr.bf16.mxu1 %v7966_v49  ;;  %v8054_v48 = vld [vmem:[%s8273_s9 + $0x22c] ss:$12 sps:$4 sm:$0xff]  }
  0x82   : > { %v8056_v49 = vld [vmem:[%s8273_s9 + $0x158] ss:$12 sps:$4 sm:$0xff]  }
  0x88   : > { %1877 = vmatmul.mubr.bf16.gmra.mrb[28].mxu0 %v7968_v50  ;;  %2261 = vmatmul.mubr.bf16.gmra.mrb[28].mxu1 %v7969_v51  ;;  %v8057_v50 = vld [vmem:[%s8273_s9 + $0x228] ss:$12 sps:$4 sm:$0xff]   ;;  %v8058_v51 = vld [vmem:[%s8273_s9 + $0x170] ss:$12 sps:$4 sm:$0xff]  }
  0x89   : > { %1884 = vmatprep.mubr.bf16.mxu0 %v7970_v52  ;;  %2268 = vmatprep.mubr.bf16.mxu1 %v7972_v53  ;;  %v8059_v52 = vld [vmem:[%s8273_s9 + $0x244] ss:$12 sps:$4 sm:$0xff]   ;;  %v8061_v53 = vld [vmem:[%s8273_s9 + $0x188] ss:$12 sps:$4 sm:$0xff]  }
  0x90   : > { %1885 = vmatmul.mubr.bf16.gmra.mrb[32].mxu0 %v7974_v54  ;;  %2269 = vmatmul.mubr.bf16.gmra.mrb[32].mxu1 %v7975_v55  ;;  %v8062_v54 = vld [vmem:[%s8273_s9 + $0x240] ss:$12 sps:$4 sm:$0xff]  }
  0x91   : > { %1892 = vmatprep.mubr.bf16.mxu0 %v7977_v56  ;;  %2276 = vmatprep.mubr.bf16.mxu1 %v7979_v57  ;;  %v8063_v55 = vld [vmem:[%s8273_s9 + $0x1a0] ss:$12 sps:$4 sm:$0xff]   ;;  %v8064_v56 = vld [vmem:[%s8273_s9 + $0x25c] ss:$12 sps:$4 sm:$0xff]   ;;  %v8066_v57 = vld [vmem:[%s8273_s9 + $0x1b8] ss:$12 sps:$4 sm:$0xff]  }
  0x98   : > { %1893 = vmatmul.mubr.bf16.gmra.mrb[36].mxu0 %v7981_v58  ;;  %2277 = vmatmul.mubr.bf16.gmra.mrb[36].mxu1 %v7982_v59  ;;  %v8067_v58 = vld [vmem:[%s8273_s9 + $0x258] ss:$12 sps:$4 sm:$0xff]   ;;  %v8068_v59 = vld [vmem:[%s8273_s9 + $0x1d0] ss:$12 sps:$4 sm:$0xff]  }
  0x99   : > { %1900 = vmatprep.mubr.bf16.mxu0 %v7983_v60  ;;  %2284 = vmatprep.mubr.bf16.mxu1 %v7985_v61  ;;  %v8069_v60 = vld [vmem:[%s8273_s9 + $0x274] ss:$12 sps:$4 sm:$0xff]  }
  0x9a   : > { %v8071_v61 = vld [vmem:[%s8273_s9 + $0x1e8] ss:$12 sps:$4 sm:$0xff]  }
  0xa0   : > { %1901 = vmatmul.mubr.bf16.gmra.mrb[40].mxu0 %v7987_v62  ;;  %2285 = vmatmul.mubr.bf16.gmra.mrb[40].mxu1 %v7988_v63  ;;  %v8072_v62 = vld [vmem:[%s8273_s9 + $0x270] ss:$12 sps:$4 sm:$0xff]   ;;  %v8073_v63 = vld [vmem:[%s8273_s9 + $0x200] ss:$12 sps:$4 sm:$0xff]  }
  0xa1   : > { %1908 = vmatprep.mubr.bf16.mxu0 %v7989_v0  ;;  %2292 = vmatprep.mubr.bf16.mxu1 %v7991_v1  ;;  %v8074_v0 = vld [vmem:[%s8273_s9 + $0x28c] ss:$12 sps:$4 sm:$0xff]  }
  0xa2   : > { %v8076_v1 = vld [vmem:[%s8273_s9 + $0x218] ss:$12 sps:$4 sm:$0xff]  }
  0xa8   : > { %1909 = vmatmul.mubr.bf16.gmra.mrb[44].mxu0 %v7993_v2  ;;  %2293 = vmatmul.mubr.bf16.gmra.mrb[44].mxu1 %v7994_v3 }
  0xa9   : > { %1916 = vmatprep.mubr.bf16.mxu0 %v7995_v4  ;;  %2300 = vmatprep.mubr.bf16.mxu1 %v7997_v5  ;;  %v8202_v4 = vmov 0.0  }
  0xaa   : > { %2886 = vst.msk [vmem:[#allocation2 + $0x38] sm:$0xff] %vm1595_vm0, %v8202_v4  ;;  %2887 = vst.msk [vmem:[#allocation2 + $0x40] sm:$0xff] %vm1595_vm0, %v8202_v4 }
  0xab   : > { %2878 = vst.msk [vmem:[#allocation2] sm:$0xff] %vm1595_vm0, %v8202_v4  ;;  %2879 = vst.msk [vmem:[#allocation2 + $0x8] sm:$0xff] %vm1595_vm0, %v8202_v4 }
  0xac   : > { %2880 = vst.msk [vmem:[#allocation2 + $0x10] sm:$0xff] %vm1595_vm0, %v8202_v4  ;;  %2881 = vst.msk [vmem:[#allocation2 + $0x18] sm:$0xff] %vm1595_vm0, %v8202_v4 }
  0xad   : > { %2884 = vst.msk [vmem:[#allocation2 + $0x28] sm:$0xff] %vm1595_vm0, %v8202_v4  ;;  %2885 = vst.msk [vmem:[#allocation2 + $0x30] sm:$0xff] %vm1595_vm0, %v8202_v4 }
  0xae   : > { %2889 = vst.msk [vmem:[#allocation2 + $0x50] sm:$0xff] %vm1595_vm0, %v8202_v4  ;;  %2890 = vst.msk [vmem:[#allocation2 + $0x58] sm:$0xff] %vm1595_vm0, %v8202_v4 }
  0xaf   : > { %2891 = vst.msk [vmem:[#allocation2 + $0x60] sm:$0xff] %vm1595_vm0, %v8202_v4  ;;  %2892 = vst.msk [vmem:[#allocation2 + $0x68] sm:$0xff] %vm1595_vm0, %v8202_v4 }
  0xb0   : > { %1917 = vmatmul.mubr.bf16.gmra.mrb[48].mxu0 %v7999_v6  ;;  %2301 = vmatmul.mubr.bf16.gmra.mrb[48].mxu1 %v8000_v7  ;;  %2894 = vst.msk [vmem:[#allocation2 + $0x78] sm:$0xff] %vm1595_vm0, %v8202_v4  ;;  %2895 = vst.msk [vmem:[#allocation2 + $0x80] sm:$0xff] %vm1595_vm0, %v8202_v4  ;;  %v8077_v7 = vld [vmem:[%s8273_s9 + $0x288] ss:$12 sps:$4 sm:$0xff]  }
  0xb1   : > { %1924 = vmatprep.mubr.bf16.mxu0 %v8001_v8  ;;  %2308 = vmatprep.mubr.bf16.mxu1 %v8003_v9  ;;  %2896 = vst.msk [vmem:[#allocation2 + $0x88] sm:$0xff] %vm1595_vm0, %v8202_v4  ;;  %2897 = vst.msk [vmem:[#allocation2 + $0x90] sm:$0xff] %vm1595_vm0, %v8202_v4  ;;  %v8078_v8 = vld [vmem:[%s8273_s9 + $0x230] ss:$12 sps:$4 sm:$0xff]  }
  0xb2   : > { %2899 = vst.msk [vmem:[#allocation2 + $0xa0] sm:$0xff] %vm1595_vm0, %v8202_v4  ;;  %2900 = vst.msk [vmem:[#allocation2 + $0xa8] sm:$0xff] %vm1595_vm0, %v8202_v4 }
  0xb3   : > { %2901 = vst.msk [vmem:[#allocation2 + $0xb0] sm:$0xff] %vm1595_vm0, %v8202_v4  ;;  %2902 = vst.msk [vmem:[#allocation2 + $0xb8] sm:$0xff] %vm1595_vm0, %v8202_v4 }
  0xb4   : > { %2904 = vst.msk [vmem:[#allocation2 + $0xc8] sm:$0xff] %vm1595_vm0, %v8202_v4  ;;  %2905 = vst.msk [vmem:[#allocation2 + $0xd0] sm:$0xff] %vm1595_vm0, %v8202_v4 }
  0xb5   : > { %2906 = vst.msk [vmem:[#allocation2 + $0xd8] sm:$0xff] %vm1595_vm0, %v8202_v4  ;;  %2907 = vst.msk [vmem:[#allocation2 + $0xe0] sm:$0xff] %vm1595_vm0, %v8202_v4 }
  0xb6   : > { %2909 = vst.msk [vmem:[#allocation2 + $0xf0] sm:$0xff] %vm1595_vm0, %v8202_v4  ;;  %2910 = vst.msk [vmem:[#allocation2 + $0xf8] sm:$0xff] %vm1595_vm0, %v8202_v4 }
  0xb7   : > { %2911 = vst.msk [vmem:[#allocation2 + $0x100] sm:$0xff] %vm1595_vm0, %v8202_v4  ;;  %2912 = vst.msk [vmem:[#allocation2 + $0x108] sm:$0xff] %vm1595_vm0, %v8202_v4 }
  0xb8   : > { %1925 = vmatmul.mubr.bf16.gmra.mrb[52].mxu0 %v8005_v10  ;;  %2309 = vmatmul.mubr.bf16.gmra.mrb[52].mxu1 %v8006_v11  ;;  %2914 = vst.msk [vmem:[#allocation2 + $0x118] sm:$0xff] %vm1595_vm0, %v8202_v4  ;;  %2915 = vst.msk [vmem:[#allocation2 + $0x120] sm:$0xff] %vm1595_vm0, %v8202_v4  ;;  %v8079_v11 = vld [vmem:[%s8273_s9 + $0x2a4] ss:$12 sps:$4 sm:$0xff]  }
  0xb9   : > { %1932 = vmatprep.mubr.bf16.mxu0 %v8007_v12  ;;  %2316 = vmatprep.mubr.bf16.mxu1 %v8009_v13  ;;  %2916 = vst.msk [vmem:[#allocation2 + $0x128] sm:$0xff] %vm1595_vm0, %v8202_v4  ;;  %2917 = vst.msk [vmem:[#allocation2 + $0x130] sm:$0xff] %vm1595_vm0, %v8202_v4  ;;  %v8081_v12 = vld [vmem:[%s8273_s9 + $0x248] ss:$12 sps:$4 sm:$0xff]  }
  0xba   : > { %2919 = vst.msk [vmem:[#allocation2 + $0x140] sm:$0xff] %vm1595_vm0, %v8202_v4  ;;  %2920 = vst.msk [vmem:[#allocation2 + $0x148] sm:$0xff] %vm1595_vm0, %v8202_v4 }
  0xbb   : > { %2921 = vst.msk [vmem:[#allocation2 + $0x150] sm:$0xff] %vm1595_vm0, %v8202_v4  ;;  %2922 = vst.msk [vmem:[#allocation2 + $0x158] sm:$0xff] %vm1595_vm0, %v8202_v4 }
  0xbc   : > { %2924 = vst.msk [vmem:[#allocation2 + $0x168] sm:$0xff] %vm1595_vm0, %v8202_v4  ;;  %2925 = vst.msk [vmem:[#allocation2 + $0x170] sm:$0xff] %vm1595_vm0, %v8202_v4 }
  0xbd   : > { %2926 = vst.msk [vmem:[#allocation2 + $0x178] sm:$0xff] %vm1595_vm0, %v8202_v4  ;;  %2927 = vst.msk [vmem:[#allocation2 + $0x180] sm:$0xff] %vm1595_vm0, %v8202_v4 }
  0xbe   : > { %2929 = vst.msk [vmem:[#allocation2 + $0x190] sm:$0xff] %vm1595_vm0, %v8202_v4  ;;  %2930 = vst.msk [vmem:[#allocation2 + $0x198] sm:$0xff] %vm1595_vm0, %v8202_v4 }
  0xbf   : > { %2931 = vst.msk [vmem:[#allocation2 + $0x1a0] sm:$0xff] %vm1595_vm0, %v8202_v4  ;;  %2932 = vst.msk [vmem:[#allocation2 + $0x1a8] sm:$0xff] %vm1595_vm0, %v8202_v4 }
  0xc0   : > { %1933 = vmatmul.mubr.bf16.gmra.mrb[56].mxu0 %v8011_v14  ;;  %2317 = vmatmul.mubr.bf16.gmra.mrb[56].mxu1 %v8012_v15  ;;  %2934 = vst.msk [vmem:[#allocation2 + $0x1b8] sm:$0xff] %vm1595_vm0, %v8202_v4  ;;  %2935 = vst.msk [vmem:[#allocation2 + $0x1c0] sm:$0xff] %vm1595_vm0, %v8202_v4 }
  0xc1   : > { %1940 = vmatprep.mubr.bf16.mxu0 %v8013_v16  ;;  %2324 = vmatprep.mubr.bf16.mxu1 %v8015_v17  ;;  %2936 = vst.msk [vmem:[#allocation2 + $0x1c8] sm:$0xff] %vm1595_vm0, %v8202_v4  ;;  %2937 = vst.msk [vmem:[#allocation2 + $0x1d0] sm:$0xff] %vm1595_vm0, %v8202_v4 }
  0xc2   : > { %2939 = vst.msk [vmem:[#allocation2 + $0x1e0] sm:$0xff] %vm1595_vm0, %v8202_v4  ;;  %2940 = vst.msk [vmem:[#allocation2 + $0x1e8] sm:$0xff] %vm1595_vm0, %v8202_v4 }
  0xc3   : > { %2941 = vst.msk [vmem:[#allocation2 + $0x1f0] sm:$0xff] %vm1595_vm0, %v8202_v4  ;;  %2942 = vst.msk [vmem:[#allocation2 + $0x1f8] sm:$0xff] %vm1595_vm0, %v8202_v4 }
  0xc4   : > { %2944 = vst.msk [vmem:[#allocation2 + $0x208] sm:$0xff] %vm1595_vm0, %v8202_v4  ;;  %2945 = vst.msk [vmem:[#allocation2 + $0x210] sm:$0xff] %vm1595_vm0, %v8202_v4 }
  0xc5   : > { %2946 = vst.msk [vmem:[#allocation2 + $0x218] sm:$0xff] %vm1595_vm0, %v8202_v4  ;;  %2947 = vst.msk [vmem:[#allocation2 + $0x220] sm:$0xff] %vm1595_vm0, %v8202_v4 }
  0xc6   : > { %2949 = vst.msk [vmem:[#allocation2 + $0x230] sm:$0xff] %vm1595_vm0, %v8202_v4  ;;  %2950 = vst.msk [vmem:[#allocation2 + $0x238] sm:$0xff] %vm1595_vm0, %v8202_v4 }
  0xc7   : > { %2951 = vst.msk [vmem:[#allocation2 + $0x240] sm:$0xff] %vm1595_vm0, %v8202_v4  ;;  %2952 = vst.msk [vmem:[#allocation2 + $0x248] sm:$0xff] %vm1595_vm0, %v8202_v4 }
  0xc8   : > { %1941 = vmatmul.mubr.bf16.gmra.mrb[60].mxu0 %v8017_v18  ;;  %2325 = vmatmul.mubr.bf16.gmra.mrb[60].mxu1 %v8018_v19  ;;  %2954 = vst.msk [vmem:[#allocation2 + $0x258] sm:$0xff] %vm1595_vm0, %v8202_v4  ;;  %2955 = vst.msk [vmem:[#allocation2 + $0x260] sm:$0xff] %vm1595_vm0, %v8202_v4  ;;  %v8082_v19 = vld [vmem:[%s8273_s9 + $0x2a0] ss:$12 sps:$4 sm:$0xff]  }
  0xc9   : > { %1948 = vmatprep.mubr.bf16.mxu0 %v8019_v20  ;;  %7734 = vmatprep.mubr.msk.bf16.mxu1 %vm1595_vm0, %v8021_v21  ;;  %2956 = vst.msk [vmem:[#allocation2 + $0x268] sm:$0xff] %vm1595_vm0, %v8202_v4  ;;  %2957 = vst.msk [vmem:[#allocation2 + $0x270] sm:$0xff] %vm1595_vm0, %v8202_v4  ;;  %v8083_v20 = vld [vmem:[%s8273_s9 + $0x260] ss:$12 sps:$4 sm:$0xff]  }
  0xca   : > { %2959 = vst.msk [vmem:[#allocation2 + $0x280] sm:$0xff] %vm1595_vm0, %v8202_v4  ;;  %2960 = vst.msk [vmem:[#allocation2 + $0x288] sm:$0xff] %vm1595_vm0, %v8202_v4 }
  0xcb   : > { %2961 = vst.msk [vmem:[#allocation2 + $0x290] sm:$0xff] %vm1595_vm0, %v8202_v4  ;;  %2962 = vst.msk [vmem:[#allocation2 + $0x298] sm:$0xff] %vm1595_vm0, %v8202_v4 }
  0xcc   : > { %2964 = vst.msk [vmem:[#allocation2 + $0x2a8] sm:$0xff] %vm1595_vm0, %v8202_v4  ;;  %2965 = vst.msk [vmem:[#allocation2 + $0x2b0] sm:$0xff] %vm1595_vm0, %v8202_v4 }
  0xcd   : > { %2966 = vst.msk [vmem:[#allocation2 + $0x2b8] sm:$0xff] %vm1595_vm0, %v8202_v4  ;;  %2967 = vst.msk [vmem:[#allocation2 + $0x2c0] sm:$0xff] %vm1595_vm0, %v8202_v4 }
  0xce   : > { %2969 = vst.msk [vmem:[#allocation2 + $0x2d0] sm:$0xff] %vm1595_vm0, %v8202_v4  ;;  %2970 = vst.msk [vmem:[#allocation2 + $0x2d8] sm:$0xff] %vm1595_vm0, %v8202_v4 }
  0xcf   : > { %2971 = vst.msk [vmem:[#allocation2 + $0x2e0] sm:$0xff] %vm1595_vm0, %v8202_v4  ;;  %2972 = vst.msk [vmem:[#allocation2 + $0x2e8] sm:$0xff] %vm1595_vm0, %v8202_v4 }
  0xd0   : > { %1949 = vmatmul.mubr.bf16.gmra.mrb[64].mxu0 %v8022_v22  ;;  %7735 = vmatmul.mubr.msk.bf16.vlgmr.msra.gmra.mrb[64].mxu1 %vm1595_vm0, %v8023_v23  ;;  %2974 = vst.msk [vmem:[#allocation2 + $0x2f8] sm:$0xff] %vm1595_vm0, %v8202_v4  ;;  %2975 = vst.msk [vmem:[#allocation2 + $0x300] sm:$0xff] %vm1595_vm0, %v8202_v4  ;;  %v8084_v23 = vld [vmem:[%s8273_s9 + $0x2bc] ss:$12 sps:$4 sm:$0xff]  }
  0xd1   : > { %1956 = vmatprep.mubr.bf16.mxu0 %v8024_v24  ;;  %7738 = vmatprep.mubr.msk.bf16.mxu1 %vm1595_vm0, %v8026_v25  ;;  %2976 = vst.msk [vmem:[#allocation2 + $0x308] sm:$0xff] %vm1595_vm0, %v8202_v4  ;;  %2977 = vst.msk [vmem:[#allocation2 + $0x310] sm:$0xff] %vm1595_vm0, %v8202_v4  ;;  %v8086_v24 = vld [vmem:[%s8273_s9 + $0x278] ss:$12 sps:$4 sm:$0xff]  }
  0xd2   : > { %2979 = vst.msk [vmem:[#allocation2 + $0x320] sm:$0xff] %vm1595_vm0, %v8202_v4  ;;  %2980 = vst.msk [vmem:[#allocation2 + $0x328] sm:$0xff] %vm1595_vm0, %v8202_v4 }
  0xd3   : > { %2981 = vst.msk [vmem:[#allocation2 + $0x330] sm:$0xff] %vm1595_vm0, %v8202_v4  ;;  %2982 = vst.msk [vmem:[#allocation2 + $0x338] sm:$0xff] %vm1595_vm0, %v8202_v4 }
  0xd4   : > { %2984 = vst.msk [vmem:[#allocation2 + $0x348] sm:$0xff] %vm1595_vm0, %v8202_v4  ;;  %2985 = vst.msk [vmem:[#allocation2 + $0x350] sm:$0xff] %vm1595_vm0, %v8202_v4 }
  0xd5   : > { %2986 = vst.msk [vmem:[#allocation2 + $0x358] sm:$0xff] %vm1595_vm0, %v8202_v4  ;;  %2987 = vst.msk [vmem:[#allocation2 + $0x360] sm:$0xff] %vm1595_vm0, %v8202_v4 }
  0xd6   : > { %2989 = vst.msk [vmem:[#allocation2 + $0x370] sm:$0xff] %vm1595_vm0, %v8202_v4  ;;  %2990 = vst.msk [vmem:[#allocation2 + $0x378] sm:$0xff] %vm1595_vm0, %v8202_v4 }
  0xd7   : > { %2991 = vst.msk [vmem:[#allocation2 + $0x380] sm:$0xff] %vm1595_vm0, %v8202_v4  ;;  %2992 = vst.msk [vmem:[#allocation2 + $0x388] sm:$0xff] %vm1595_vm0, %v8202_v4 }
  0xd8   : > { %1957 = vmatmul.mubr.bf16.gmra.mrb[68].mxu0 %v8027_v26  ;;  %7739 = vmatmul.mubr.msk.bf16.gmra.mrb[68].mxu1 %vm1595_vm0, %v8028_v27  ;;  %2994 = vst.msk [vmem:[#allocation2 + $0x398] sm:$0xff] %vm1595_vm0, %v8202_v4  ;;  %2995 = vst.msk [vmem:[#allocation2 + $0x3a0] sm:$0xff] %vm1595_vm0, %v8202_v4 }
  0xd9   : > { %1964 = vmatprep.mubr.bf16.mxu0 %v8029_v28  ;;  %7742 = vmatprep.mubr.msk.bf16.mxu1 %vm1595_vm0, %v8031_v29  ;;  %2996 = vst.msk [vmem:[#allocation2 + $0x3a8] sm:$0xff] %vm1595_vm0, %v8202_v4  ;;  %2997 = vst.msk [vmem:[#allocation2 + $0x3b0] sm:$0xff] %vm1595_vm0, %v8202_v4 }
  0xda   : > { %2999 = vst.msk [vmem:[#allocation2 + $0x3c0] sm:$0xff] %vm1595_vm0, %v8202_v4  ;;  %3000 = vst.msk [vmem:[#allocation2 + $0x3c8] sm:$0xff] %vm1595_vm0, %v8202_v4 }
  0xdb   : > { %3001 = vst.msk [vmem:[#allocation2 + $0x3d0] sm:$0xff] %vm1595_vm0, %v8202_v4  ;;  %3002 = vst.msk [vmem:[#allocation2 + $0x3d8] sm:$0xff] %vm1595_vm0, %v8202_v4 }
  0xdc   : > { %3004 = vst.msk [vmem:[#allocation2 + $0x3e8] sm:$0xff] %vm1595_vm0, %v8202_v4  ;;  %3005 = vst.msk [vmem:[#allocation2 + $0x3f0] sm:$0xff] %vm1595_vm0, %v8202_v4 }
  0xdd   : > { %3006 = vst.msk [vmem:[#allocation2 + $0x3f8] sm:$0xff] %vm1595_vm0, %v8202_v4  ;;  %3007 = vst.msk [vmem:[#allocation2 + $0x400] sm:$0xff] %vm1595_vm0, %v8202_v4 }
  0xde   : > { %3009 = vst.msk [vmem:[#allocation2 + $0x410] sm:$0xff] %vm1595_vm0, %v8202_v4  ;;  %3010 = vst.msk [vmem:[#allocation2 + $0x418] sm:$0xff] %vm1595_vm0, %v8202_v4 }
  0xdf   : > { %3011 = vst.msk [vmem:[#allocation2 + $0x420] sm:$0xff] %vm1595_vm0, %v8202_v4  ;;  %3012 = vst.msk [vmem:[#allocation2 + $0x428] sm:$0xff] %vm1595_vm0, %v8202_v4 }
  0xe0   : > { %1965 = vmatmul.mubr.bf16.gmra.mrb[72].mxu0 %v8032_v30  ;;  %7743 = vmatmul.mubr.msk.bf16.gmra.mrb[72].mxu1 %vm1595_vm0, %v8033_v31  ;;  %3014 = vst.msk [vmem:[#allocation2 + $0x438] sm:$0xff] %vm1595_vm0, %v8202_v4  ;;  %3015 = vst.msk [vmem:[#allocation2 + $0x440] sm:$0xff] %vm1595_vm0, %v8202_v4  ;;  %v8087_v31 = vld [vmem:[%s8273_s9 + $0x2b8] ss:$12 sps:$4 sm:$0xff]  }
  0xe1   : > { %1972 = vmatprep.mubr.bf16.mxu0 %v8034_v32  ;;  %7746 = vmatprep.mubr.msk.bf16.mxu1 %vm1595_vm0, %v8036_v33  ;;  %3016 = vst.msk [vmem:[#allocation2 + $0x448] sm:$0xff] %vm1595_vm0, %v8202_v4  ;;  %3017 = vst.msk [vmem:[#allocation2 + $0x450] sm:$0xff] %vm1595_vm0, %v8202_v4  ;;  %v8088_v32 = vld [vmem:[%s8273_s9 + $0x290] ss:$12 sps:$4 sm:$0xff]  }
  0xe2   : > { %3019 = vst.msk [vmem:[#allocation2 + $0x460] sm:$0xff] %vm1595_vm0, %v8202_v4  ;;  %3020 = vst.msk [vmem:[#allocation2 + $0x468] sm:$0xff] %vm1595_vm0, %v8202_v4 }
  0xe3   : > { %3021 = vst.msk [vmem:[#allocation2 + $0x470] sm:$0xff] %vm1595_vm0, %v8202_v4  ;;  %3022 = vst.msk [vmem:[#allocation2 + $0x478] sm:$0xff] %vm1595_vm0, %v8202_v4 }
  0xe4   : > { %3024 = vst.msk [vmem:[#allocation2 + $0x488] sm:$0xff] %vm1595_vm0, %v8202_v4  ;;  %3025 = vst.msk [vmem:[#allocation2 + $0x490] sm:$0xff] %vm1595_vm0, %v8202_v4 }
  0xe5   : > { %3026 = vst.msk [vmem:[#allocation2 + $0x498] sm:$0xff] %vm1595_vm0, %v8202_v4  ;;  %3027 = vst.msk [vmem:[#allocation2 + $0x4a0] sm:$0xff] %vm1595_vm0, %v8202_v4 }
  0xe6   : > { %3029 = vst.msk [vmem:[#allocation2 + $0x4b0] sm:$0xff] %vm1595_vm0, %v8202_v4  ;;  %3030 = vst.msk [vmem:[#allocation2 + $0x4b8] sm:$0xff] %vm1595_vm0, %v8202_v4 }
  0xe7   : > { %3031 = vst.msk [vmem:[#allocation2 + $0x4c0] sm:$0xff] %vm1595_vm0, %v8202_v4  ;;  %3032 = vst.msk [vmem:[#allocation2 + $0x4c8] sm:$0xff] %vm1595_vm0, %v8202_v4 }
  0xe8   : > { %1973 = vmatmul.mubr.bf16.gmra.mrb[76].mxu0 %v8037_v34  ;;  %7747 = vmatmul.mubr.msk.bf16.gmra.mrb[76].mxu1 %vm1595_vm0, %v8038_v35  ;;  %3034 = vst.msk [vmem:[#allocation2 + $0x4d8] sm:$0xff] %vm1595_vm0, %v8202_v4  ;;  %3035 = vst.msk [vmem:[#allocation2 + $0x4e0] sm:$0xff] %vm1595_vm0, %v8202_v4  ;;  %v8089_v35 = vld [vmem:[%s8273_s9 + $0x2d4] ss:$12 sps:$4 sm:$0xff]  }
  0xe9   : > { %1980 = vmatprep.mubr.bf16.mxu0 %v8039_v36  ;;  %7750 = vmatprep.mubr.msk.bf16.mxu1 %vm1595_vm0, %v8041_v37  ;;  %3036 = vst.msk [vmem:[#allocation2 + $0x4e8] sm:$0xff] %vm1595_vm0, %v8202_v4  ;;  %3037 = vst.msk [vmem:[#allocation2 + $0x4f0] sm:$0xff] %vm1595_vm0, %v8202_v4  ;;  %v8091_v36 = vld [vmem:[%s8273_s9 + $0x2a8] ss:$12 sps:$4 sm:$0xff]  }
  0xea   : > { %3039 = vst.msk [vmem:[#allocation2 + $0x500] sm:$0xff] %vm1595_vm0, %v8202_v4  ;;  %3040 = vst.msk [vmem:[#allocation2 + $0x508] sm:$0xff] %vm1595_vm0, %v8202_v4 }
  0xeb   : > { %3041 = vst.msk [vmem:[#allocation2 + $0x510] sm:$0xff] %vm1595_vm0, %v8202_v4  ;;  %3042 = vst.msk [vmem:[#allocation2 + $0x518] sm:$0xff] %vm1595_vm0, %v8202_v4 }
  0xec   : > { %3044 = vst.msk [vmem:[#allocation2 + $0x528] sm:$0xff] %vm1595_vm0, %v8202_v4  ;;  %3045 = vst.msk [vmem:[#allocation2 + $0x530] sm:$0xff] %vm1595_vm0, %v8202_v4 }
  0xed   : > { %3046 = vst.msk [vmem:[#allocation2 + $0x538] sm:$0xff] %vm1595_vm0, %v8202_v4  ;;  %3047 = vst.msk [vmem:[#allocation2 + $0x540] sm:$0xff] %vm1595_vm0, %v8202_v4 }
  0xee   : > { %2888 = vst.msk [vmem:[#allocation2 + $0x48] sm:$0x3] %vm2882_vm1, %v8202_v4  ;;  %2883 = vst.msk [vmem:[#allocation2 + $0x20] sm:$0x3] %vm2882_vm1, %v8202_v4 }
  0xef   : > { %2893 = vst.msk [vmem:[#allocation2 + $0x70] sm:$0x3] %vm2882_vm1, %v8202_v4  ;;  %2898 = vst.msk [vmem:[#allocation2 + $0x98] sm:$0x3] %vm2882_vm1, %v8202_v4 }
  0xf0   : > { %1981 = vmatmul.mubr.bf16.gmra.mrb[80].mxu0 %v8042_v38  ;;  %7751 = vmatmul.mubr.msk.bf16.gmra.mrb[80].mxu1 %vm1595_vm0, %v8043_v39  ;;  %2903 = vst.msk [vmem:[#allocation2 + $0xc0] sm:$0x3] %vm2882_vm1, %v8202_v4  ;;  %2908 = vst.msk [vmem:[#allocation2 + $0xe8] sm:$0x3] %vm2882_vm1, %v8202_v4 }
  0xf1   : > { %1988 = vmatprep.mubr.bf16.mxu0 %v8044_v40  ;;  %7754 = vmatprep.mubr.msk.bf16.mxu1 %vm1595_vm0, %v8046_v41  ;;  %2913 = vst.msk [vmem:[#allocation2 + $0x110] sm:$0x3] %vm2882_vm1, %v8202_v4  ;;  %2918 = vst.msk [vmem:[#allocation2 + $0x138] sm:$0x3] %vm2882_vm1, %v8202_v4 }
  0xf2   : > { %2923 = vst.msk [vmem:[#allocation2 + $0x160] sm:$0x3] %vm2882_vm1, %v8202_v4  ;;  %2928 = vst.msk [vmem:[#allocation2 + $0x188] sm:$0x3] %vm2882_vm1, %v8202_v4 }
  0xf3   : > { %2933 = vst.msk [vmem:[#allocation2 + $0x1b0] sm:$0x3] %vm2882_vm1, %v8202_v4  ;;  %2938 = vst.msk [vmem:[#allocation2 + $0x1d8] sm:$0x3] %vm2882_vm1, %v8202_v4 }
  0xf4   : > { %2943 = vst.msk [vmem:[#allocation2 + $0x200] sm:$0x3] %vm2882_vm1, %v8202_v4  ;;  %2948 = vst.msk [vmem:[#allocation2 + $0x228] sm:$0x3] %vm2882_vm1, %v8202_v4 }
  0xf5   : > { %2953 = vst.msk [vmem:[#allocation2 + $0x250] sm:$0x3] %vm2882_vm1, %v8202_v4  ;;  %2958 = vst.msk [vmem:[#allocation2 + $0x278] sm:$0x3] %vm2882_vm1, %v8202_v4 }
  0xf6   : > { %2963 = vst.msk [vmem:[#allocation2 + $0x2a0] sm:$0x3] %vm2882_vm1, %v8202_v4  ;;  %2968 = vst.msk [vmem:[#allocation2 + $0x2c8] sm:$0x3] %vm2882_vm1, %v8202_v4 }
  0xf7   : > { %2973 = vst.msk [vmem:[#allocation2 + $0x2f0] sm:$0x3] %vm2882_vm1, %v8202_v4  ;;  %2978 = vst.msk [vmem:[#allocation2 + $0x318] sm:$0x3] %vm2882_vm1, %v8202_v4 }
  0xf8   : > { %1989 = vmatmul.mubr.bf16.gmra.mrb[84].mxu0 %v8047_v42  ;;  %7755 = vmatmul.mubr.msk.bf16.gmra.mrb[84].mxu1 %vm1595_vm0, %v8048_v43  ;;  %2983 = vst.msk [vmem:[#allocation2 + $0x340] sm:$0x3] %vm2882_vm1, %v8202_v4  ;;  %2988 = vst.msk [vmem:[#allocation2 + $0x368] sm:$0x3] %vm2882_vm1, %v8202_v4  ;;  %v8092_v43 = vld [vmem:[%s8273_s9 + $0x2d0] ss:$12 sps:$4 sm:$0xff]  }
  0xf9   : > { %1996 = vmatprep.mubr.bf16.mxu0 %v8049_v44  ;;  %7758 = vmatprep.mubr.msk.bf16.mxu1 %vm1595_vm0, %v8051_v45  ;;  %2993 = vst.msk [vmem:[#allocation2 + $0x390] sm:$0x3] %vm2882_vm1, %v8202_v4  ;;  %2998 = vst.msk [vmem:[#allocation2 + $0x3b8] sm:$0x3] %vm2882_vm1, %v8202_v4  ;;  %v8093_v44 = vld [vmem:[%s8273_s9 + $0x2c0] ss:$12 sps:$4 sm:$0xff]  }
  0xfa   : > { %3003 = vst.msk [vmem:[#allocation2 + $0x3e0] sm:$0x3] %vm2882_vm1, %v8202_v4  ;;  %3008 = vst.msk [vmem:[#allocation2 + $0x408] sm:$0x3] %vm2882_vm1, %v8202_v4 }
  0xfb   : > { %3013 = vst.msk [vmem:[#allocation2 + $0x430] sm:$0x3] %vm2882_vm1, %v8202_v4  ;;  %3018 = vst.msk [vmem:[#allocation2 + $0x458] sm:$0x3] %vm2882_vm1, %v8202_v4 }
  0xfc   : > { %3023 = vst.msk [vmem:[#allocation2 + $0x480] sm:$0x3] %vm2882_vm1, %v8202_v4  ;;  %3028 = vst.msk [vmem:[#allocation2 + $0x4a8] sm:$0x3] %vm2882_vm1, %v8202_v4 }
  0xfd   : > { %3033 = vst.msk [vmem:[#allocation2 + $0x4d0] sm:$0x3] %vm2882_vm1, %v8202_v4  ;;  %3038 = vst.msk [vmem:[#allocation2 + $0x4f8] sm:$0x3] %vm2882_vm1, %v8202_v4 }
  0xfe   : > { %3043 = vst.msk [vmem:[#allocation2 + $0x520] sm:$0x3] %vm2882_vm1, %v8202_v4  ;;  %3048 = vst.msk [vmem:[#allocation2 + $0x548] sm:$0x3] %vm2882_vm1, %v8202_v4 }
 0x100   : > { %1997 = vmatmul.mubr.bf16.gmra.mrb[88].mxu0 %v8052_v46  ;;  %7759 = vmatmul.mubr.msk.bf16.gmra.mrb[88].mxu1 %vm1595_vm0, %v8053_v47  ;;  %v8094_v47 = vld [vmem:[%s8273_s9 + $0x2ec] ss:$12 sps:$4 sm:$0xff]  }
 0x101   : > { %2004 = vmatprep.mubr.bf16.mxu0 %v8054_v48  ;;  %7762 = vmatprep.mubr.msk.bf16.mxu1 %vm1595_vm0, %v8056_v49  ;;  %v8096_v48 = vld [vmem:[%s8273_s9 + $0x2d8] ss:$12 sps:$4 sm:$0xff]  }
 0x108   : > { %2005 = vmatmul.mubr.bf16.gmra.mrb[92].mxu0 %v8057_v50  ;;  %7763 = vmatmul.mubr.msk.bf16.gmra.mrb[92].mxu1 %vm1595_vm0, %v8058_v51 }
 0x109   : > { %2012 = vmatprep.mubr.bf16.mxu0 %v8059_v52  ;;  %7766 = vmatprep.mubr.msk.bf16.mxu1 %vm1595_vm0, %v8061_v53 }
 0x110   : > { %2013 = vmatmul.mubr.bf16.gmra.mrb[96].mxu0 %v8062_v54  ;;  %7767 = vmatmul.mubr.msk.bf16.gmra.mrb[96].mxu1 %vm1595_vm0, %v8063_v55  ;;  %v8097_v55 = vld [vmem:[%s8273_s9 + $0x2e8] ss:$12 sps:$4 sm:$0xff]  }
 0x111   : > { %2020 = vmatprep.mubr.bf16.mxu0 %v8064_v56  ;;  %7770 = vmatprep.mubr.msk.bf16.mxu1 %vm1595_vm0, %v8066_v57  ;;  %v8098_v56 = vld [vmem:[%s8273_s9 + $0x2f0] ss:$12 sps:$4 sm:$0xff]  }
 0x118   : > { %2021 = vmatmul.mubr.bf16.gmra.mrb[100].mxu0 %v8067_v58  ;;  %7771 = vmatmul.mubr.msk.bf16.gmra.mrb[100].mxu1 %vm1595_vm0, %v8068_v59  ;;  %v8099_v59 = vld [vmem:[%s8273_s9 + $0x304] ss:$12 sps:$4 sm:$0xff]  }
 0x119   : > { %2028 = vmatprep.mubr.bf16.mxu0 %v8069_v60  ;;  %7774 = vmatprep.mubr.msk.bf16.mxu1 %vm1595_vm0, %v8071_v61  ;;  %v8101_v60 = vld [vmem:[%s8273_s9 + $0x308] ss:$12 sps:$4 sm:$0xff]  }
 0x120   : > { %2029 = vmatmul.mubr.bf16.gmra.mrb[104].mxu0 %v8072_v62  ;;  %7775 = vmatmul.mubr.msk.bf16.gmra.mrb[104].mxu1 %vm1595_vm0, %v8073_v63 }
 0x121   : > { %2036 = vmatprep.mubr.bf16.mxu0 %v8074_v0  ;;  %7778 = vmatprep.mubr.msk.bf16.mxu1 %vm1595_vm0, %v8076_v1 }
 0x123   : > { %v8471_v2 = vpop.f32.mrb[0].mxu0  ;;  %v8473_v3 = vpop.f32.mrb[0].mxu1 }
 0x124   : > { %v1824_v5 = vpop.f32.mrb[1].mxu0  ;;  %v2208_v6 = vpop.f32.mrb[1].mxu1 }
 0x125   : > { %v8817_v9 = vpop.f32.mrb[2].mxu0  ;;  %v8819_v10 = vpop.f32.mrb[2].mxu1  ;;  %v8102_v5 = vld [vmem:[%s8273_s9 + $0x300] ss:$12 sps:$4 sm:$0xff]  }
 0x126   : > { %v1827_v13 = vpop.f32.mrb[3].mxu0  ;;  %v2211_v14 = vpop.f32.mrb[3].mxu1  ;;  %v8103_v6 = vld [vmem:[%s8273_s9 + $0x320] ss:$12 sps:$4 sm:$0xff]  }
 0x128   : > { %2037 = vmatmul.mubr.bf16.gmra.mrb[108].mxu0 %v8077_v7  ;;  %7779 = vmatmul.mubr.msk.bf16.gmra.mrb[108].mxu1 %vm1595_vm0, %v8078_v8 }
 0x129   : > { %2044 = vmatprep.mubr.bf16.mxu0 %v8079_v11  ;;  %7782 = vmatprep.mubr.msk.bf16.mxu1 %vm1595_vm0, %v8081_v12  ;;  %v8104_v11 = vld [vmem:[%s8273_s9 + $0x31c] ss:$12 sps:$4 sm:$0xff]   ;;  %v8106_v12 = vld [vmem:[%s8273_s9 + $0x338] ss:$12 sps:$4 sm:$0xff]  }
 0x12b   : > { %v8825_v15 = vpop.f32.mrb[4].mxu0  ;;  %v8827_v16 = vpop.f32.mrb[4].mxu1 }
 0x12c   : > { %v1832_v17 = vpop.f32.mrb[5].mxu0  ;;  %v2216_v18 = vpop.f32.mrb[5].mxu1 }
 0x12d   : > { %v8831_v21 = vpop.f32.mrb[6].mxu0  ;;  %v8833_v22 = vpop.f32.mrb[6].mxu1 }
 0x12e   : > { %v1835_v25 = vpop.f32.mrb[7].mxu0  ;;  %v2219_v26 = vpop.f32.mrb[7].mxu1 }
 0x130   : > { %2045 = vmatmul.mubr.bf16.gmra.mrb[112].mxu0 %v8082_v19  ;;  %7783 = vmatmul.mubr.msk.bf16.gmra.mrb[112].mxu1 %vm1595_vm0, %v8083_v20 }
 0x131   : > { %2052 = vmatprep.mubr.bf16.mxu0 %v8084_v23  ;;  %7786 = vmatprep.mubr.msk.bf16.mxu1 %vm1595_vm0, %v8086_v24  ;;  %v8107_v23 = vld [vmem:[%s8273_s9 + $0x318] ss:$12 sps:$4 sm:$0xff]   ;;  %v8108_v24 = vld [vmem:[%s8273_s9 + $0x350] ss:$12 sps:$4 sm:$0xff]  }
 0x133   : > { %v8839_v27 = vpop.f32.mrb[8].mxu0  ;;  %v8841_v28 = vpop.f32.mrb[8].mxu1 }
 0x134   : > { %v1840_v29 = vpop.f32.mrb[9].mxu0  ;;  %v2224_v30 = vpop.f32.mrb[9].mxu1 }
 0x135   : > { %v8845_v33 = vpop.f32.mrb[10].mxu0  ;;  %v8847_v34 = vpop.f32.mrb[10].mxu1  ;;  %v8109_v29 = vld [vmem:[%s8273_s9 + $0x334] ss:$12 sps:$4 sm:$0xff]  }
 0x136   : > { %v1843_v37 = vpop.f32.mrb[11].mxu0  ;;  %v2227_v38 = vpop.f32.mrb[11].mxu1  ;;  %v8111_v30 = vld [vmem:[%s8273_s9 + $0x368] ss:$12 sps:$4 sm:$0xff]  }
 0x138   : > { %2053 = vmatmul.mubr.bf16.gmra.mrb[116].mxu0 %v8087_v31  ;;  %7787 = vmatmul.mubr.msk.bf16.gmra.mrb[116].mxu1 %vm1595_vm0, %v8088_v32 }
 0x139   : > { %2060 = vmatprep.mubr.bf16.mxu0 %v8089_v35  ;;  %7790 = vmatprep.mubr.msk.bf16.mxu1 %vm1595_vm0, %v8091_v36 }
 0x13b   : > { %v8853_v39 = vpop.f32.mrb[12].mxu0  ;;  %v8855_v40 = vpop.f32.mrb[12].mxu1 }
 0x13c   : > { %v1848_v41 = vpop.f32.mrb[13].mxu0  ;;  %v2232_v42 = vpop.f32.mrb[13].mxu1 }
 0x13d   : > { %v8859_v45 = vpop.f32.mrb[14].mxu0  ;;  %v8861_v46 = vpop.f32.mrb[14].mxu1  ;;  %v8112_v41 = vld [vmem:[%s8273_s9 + $0x330] ss:$12 sps:$4 sm:$0xff]   ;;  %v8113_v42 = vld [vmem:[%s8273_s9 + $0x380] ss:$12 sps:$4 sm:$0xff]  }
 0x13e   : > { %v1851_v49 = vpop.f32.mrb[15].mxu0  ;;  %v2235_v50 = vpop.f32.mrb[15].mxu1 }
 0x140   : > { %2061 = vmatmul.mubr.bf16.gmra.mrb[120].mxu0 %v8092_v43  ;;  %7791 = vmatmul.mubr.msk.bf16.gmra.mrb[120].mxu1 %vm1595_vm0, %v8093_v44 }
 0x141   : > { %2068 = vmatprep.mubr.bf16.mxu0 %v8094_v47  ;;  %7794 = vmatprep.mubr.msk.bf16.mxu1 %vm1595_vm0, %v8096_v48  ;;  %v8114_v47 = vld [vmem:[%s8273_s9 + $0x34c] ss:$12 sps:$4 sm:$0xff]  }
 0x142   : > { %v8116_v48 = vld [vmem:[%s8273_s9 + $0x398] ss:$12 sps:$4 sm:$0xff]  }
 0x143   : > { %v8867_v51 = vpop.f32.mrb[16].mxu0  ;;  %v8869_v52 = vpop.f32.mrb[16].mxu1 }
 0x144   : > { %v1856_v53 = vpop.f32.mrb[17].mxu0  ;;  %v2240_v54 = vpop.f32.mrb[17].mxu1 }
 0x145   : > { %v8873_v57 = vpop.f32.mrb[18].mxu0  ;;  %v8875_v58 = vpop.f32.mrb[18].mxu1 }
 0x146   : > { %v1859_v61 = vpop.f32.mrb[19].mxu0  ;;  %v2243_v62 = vpop.f32.mrb[19].mxu1 }
 0x148   : > { %2069 = vmatmul.mubr.bf16.gmra.mrb[124].mxu0 %v8097_v55  ;;  %7795 = vmatmul.mubr.msk.bf16.gmra.mrb[124].mxu1 %vm1595_vm0, %v8098_v56 }
 0x149   : > { %2076 = vmatprep.mubr.bf16.mxu0 %v8099_v59  ;;  %7798 = vmatprep.mubr.msk.bf16.mxu1 %vm1595_vm0, %v8101_v60  ;;  %v8117_v59 = vld [vmem:[%s8273_s9 + $0x348] ss:$12 sps:$4 sm:$0xff]   ;;  %v8118_v60 = vld [vmem:[%s8273_s9 + $0x3b0] ss:$12 sps:$4 sm:$0xff]  }
 0x14b   : > { %v8881_v63 = vpop.f32.mrb[20].mxu0  ;;  %v8883_v0 = vpop.f32.mrb[20].mxu1 }
 0x14c   : > { %v1864_v1 = vpop.f32.mrb[21].mxu0  ;;  %v2248_v4 = vpop.f32.mrb[21].mxu1 }
 0x14d   : > { %v8887_v7 = vpop.f32.mrb[22].mxu0  ;;  %v8889_v8 = vpop.f32.mrb[22].mxu1  ;;  %v8119_v1 = vld [vmem:[%s8273_s9 + $0x364] ss:$12 sps:$4 sm:$0xff]   ;;  %v8121_v4 = vld [vmem:[%s8273_s9 + $0x3c8] ss:$12 sps:$4 sm:$0xff]  }
 0x14e   : > { %v1867_v13 = vpop.f32.mrb[23].mxu0  ;;  %v2251_v14 = vpop.f32.mrb[23].mxu1 }
 0x150   : > { %2077 = vmatmul.mubr.bf16.gmra.mrb[128].mxu0 %v8102_v5  ;;  %7799 = vmatmul.mubr.msk.bf16.gmra.mrb[128].mxu1 %vm1595_vm0, %v8103_v6 }
 0x151   : > { %2084 = vmatprep.mubr.bf16.mxu0 %v8104_v11  ;;  %7802 = vmatprep.mubr.msk.bf16.mxu1 %vm1595_vm0, %v8106_v12 }
 0x153   : > { %v8895_v17 = vpop.f32.mrb[24].mxu0  ;;  %v8897_v18 = vpop.f32.mrb[24].mxu1 }
 0x154   : > { %v1872_v19 = vpop.f32.mrb[25].mxu0  ;;  %v2256_v20 = vpop.f32.mrb[25].mxu1 }
 0x155   : > { %v8901_v25 = vpop.f32.mrb[26].mxu0  ;;  %v8903_v26 = vpop.f32.mrb[26].mxu1  ;;  %v8122_v19 = vld [vmem:[%s8273_s9 + $0x360] ss:$12 sps:$4 sm:$0xff]  }
 0x156   : > { %v1875_v31 = vpop.f32.mrb[27].mxu0  ;;  %v2259_v32 = vpop.f32.mrb[27].mxu1  ;;  %v8123_v20 = vld [vmem:[%s8273_s9 + $0x3e0] ss:$12 sps:$4 sm:$0xff]  }
 0x158   : > { %2085 = vmatmul.mubr.bf16.gmra.mrb[132].mxu0 %v8107_v23  ;;  %7803 = vmatmul.mubr.msk.bf16.gmra.mrb[132].mxu1 %vm1595_vm0, %v8108_v24 }
 0x159   : > { %2092 = vmatprep.mubr.bf16.mxu0 %v8109_v29  ;;  %7806 = vmatprep.mubr.msk.bf16.mxu1 %vm1595_vm0, %v8111_v30  ;;  %v8124_v29 = vld [vmem:[%s8273_s9 + $0x37c] ss:$12 sps:$4 sm:$0xff]   ;;  %v8126_v30 = vld [vmem:[%s8273_s9 + $0x3f8] ss:$12 sps:$4 sm:$0xff]  }
 0x15b   : > { %v8909_v35 = vpop.f32.mrb[28].mxu0  ;;  %v8911_v36 = vpop.f32.mrb[28].mxu1 }
 0x15c   : > { %v1880_v37 = vpop.f32.mrb[29].mxu0  ;;  %v2264_v38 = vpop.f32.mrb[29].mxu1 }
 0x15d   : > { %v8915_v43 = vpop.f32.mrb[30].mxu0  ;;  %v8917_v44 = vpop.f32.mrb[30].mxu1 }
 0x15e   : > { %v1883_v49 = vpop.f32.mrb[31].mxu0  ;;  %v2267_v50 = vpop.f32.mrb[31].mxu1 }
 0x160   : > { %2093 = vmatmul.mubr.bf16.gmra.mrb[136].mxu0 %v8112_v41  ;;  %7807 = vmatmul.mubr.msk.bf16.gmra.mrb[136].mxu1 %vm1595_vm0, %v8113_v42 }
 0x161   : > { %2100 = vmatprep.mubr.bf16.mxu0 %v8114_v47  ;;  %7810 = vmatprep.mubr.msk.bf16.mxu1 %vm1595_vm0, %v8116_v48  ;;  %v8127_v47 = vld [vmem:[%s8273_s9 + $0x378] ss:$12 sps:$4 sm:$0xff]   ;;  %v8128_v48 = vld [vmem:[%s8273_s9 + $0x410] ss:$12 sps:$4 sm:$0xff]  }
 0x163   : > { %v8923_v53 = vpop.f32.mrb[32].mxu0  ;;  %v8925_v54 = vpop.f32.mrb[32].mxu1 }
 0x164   : > { %v1888_v55 = vpop.f32.mrb[33].mxu0  ;;  %v2272_v56 = vpop.f32.mrb[33].mxu1 }
 0x165   : > { %v8929_v61 = vpop.f32.mrb[34].mxu0  ;;  %v8931_v62 = vpop.f32.mrb[34].mxu1  ;;  %v8129_v55 = vld [vmem:[%s8273_s9 + $0x394] ss:$12 sps:$4 sm:$0xff]  }
 0x166   : > { %14465 = vst [vmem:[#allocation4_spill] sm:$0xff] %v8931_v62  ;;  %v1891_v5 = vpop.f32.mrb[35].mxu0  ;;  %v2275_v6 = vpop.f32.mrb[35].mxu1  ;;  %v8131_v56 = vld [vmem:[%s8273_s9 + $0x428] ss:$12 sps:$4 sm:$0xff]  }
 0x168   : > { %2101 = vmatmul.mubr.bf16.gmra.mrb[140].mxu0 %v8117_v59  ;;  %7811 = vmatmul.mubr.msk.bf16.gmra.mrb[140].mxu1 %vm1595_vm0, %v8118_v60 }
 0x169   : > { %2108 = vmatprep.mubr.bf16.mxu0 %v8119_v1  ;;  %7814 = vmatprep.mubr.msk.bf16.mxu1 %vm1595_vm0, %v8121_v4 }
 0x16b   : > { %v8937_v11 = vpop.f32.mrb[36].mxu0  ;;  %v8939_v12 = vpop.f32.mrb[36].mxu1 }
 0x16c   : > { %14466 = vst [vmem:[#allocation5_spill] sm:$0xff] %v8937_v11  ;;  %14467 = vst [vmem:[#allocation6_spill] sm:$0xff] %v8939_v12  ;;  %v1896_v13 = vpop.f32.mrb[37].mxu0  ;;  %v2280_v14 = vpop.f32.mrb[37].mxu1 }
 0x16d   : > { %v8943_v23 = vpop.f32.mrb[38].mxu0  ;;  %v8945_v24 = vpop.f32.mrb[38].mxu1  ;;  %v8132_v13 = vld [vmem:[%s8273_s9 + $0x390] ss:$12 sps:$4 sm:$0xff]   ;;  %v8133_v14 = vld [vmem:[%s8273_s9 + $0x440] ss:$12 sps:$4 sm:$0xff]  }
 0x16e   : > { %14468 = vst [vmem:[#allocation7_spill] sm:$0xff] %v8943_v23  ;;  %14469 = vst [vmem:[#allocation8_spill] sm:$0xff] %v8945_v24  ;;  %v1899_v31 = vpop.f32.mrb[39].mxu0  ;;  %v2283_v32 = vpop.f32.mrb[39].mxu1  ;;  %v8149_v24 = vld [vmem:[%s8273_s9 + $0x3f4] ss:$12 sps:$4 sm:$0xff]  }
 0x16f   : > { %v3956_v23 = vld [vmem:[#allocation2 + $0x2] sm:$0xff] }
 0x170   : > { %2109 = vmatmul.mubr.bf16.gmra.mrb[144].mxu0 %v8122_v19  ;;  %7815 = vmatmul.mubr.msk.bf16.gmra.mrb[144].mxu1 %vm1595_vm0, %v8123_v20 }
 0x171   : > { %2116 = vmatprep.mubr.bf16.mxu0 %v8124_v29  ;;  %7818 = vmatprep.mubr.msk.bf16.mxu1 %vm1595_vm0, %v8126_v30  ;;  %v8134_v29 = vld [vmem:[%s8273_s9 + $0x3ac] ss:$12 sps:$4 sm:$0xff]  }
 0x172   : > { %v8136_v30 = vld [vmem:[%s8273_s9 + $0x458] ss:$12 sps:$4 sm:$0xff]  }
 0x173   : > { %v8951_v37 = vpop.f32.mrb[40].mxu0  ;;  %v8953_v38 = vpop.f32.mrb[40].mxu1 }
 0x174   : > { %14470 = vst [vmem:[#allocation9_spill] sm:$0xff] %v8951_v37  ;;  %14471 = vst [vmem:[#allocation10_spill] sm:$0xff] %v8953_v38  ;;  %v1904_v41 = vpop.f32.mrb[41].mxu0  ;;  %v2288_v42 = vpop.f32.mrb[41].mxu1 }
 0x175   : > { %v8957_v49 = vpop.f32.mrb[42].mxu0  ;;  %v8959_v50 = vpop.f32.mrb[42].mxu1 }
 0x176   : > { %14472 = vst [vmem:[#allocation11_spill] sm:$0xff] %v8957_v49  ;;  %14473 = vst [vmem:[#allocation12_spill] sm:$0xff] %v8959_v50  ;;  %v1907_v59 = vpop.f32.mrb[43].mxu0  ;;  %v2291_v60 = vpop.f32.mrb[43].mxu1  ;;  %v8148_v50 = vld [vmem:[%s8273_s9 + $0x4d0] ss:$12 sps:$4 sm:$0xff]  }
 0x177   : > { %v8138_v59 = vld [vmem:[%s8273_s9 + $0x470] ss:$12 sps:$4 sm:$0xff]  }
 0x178   : > { %2117 = vmatmul.mubr.bf16.gmra.mrb[148].mxu0 %v8127_v47  ;;  %7819 = vmatmul.mubr.msk.bf16.gmra.mrb[148].mxu1 %vm1595_vm0, %v8128_v48  ;;  %v3308_v47 = vlaneseq }
 0x179   : > { %2124 = vmatprep.mubr.bf16.mxu0 %v8129_v55  ;;  %7822 = vmatprep.mubr.msk.bf16.mxu1 %vm1595_vm0, %v8131_v56  ;;  %v8137_v56 = vld [vmem:[%s8273_s9 + $0x3a8] ss:$12 sps:$4 sm:$0xff]  }
 0x17b   : > { %v8965_v1 = vpop.f32.mrb[44].mxu0  ;;  %v8967_v4 = vpop.f32.mrb[44].mxu1 }
 0x17c   : > { %14474 = vst [vmem:[#allocation13_spill] sm:$0xff] %v8965_v1  ;;  %14475 = vst [vmem:[#allocation14_spill] sm:$0xff] %v8967_v4  ;;  %v1912_v5 = vpop.f32.mrb[45].mxu0  ;;  %v2296_v6 = vpop.f32.mrb[45].mxu1  ;;  %v8147_v1 = vld [vmem:[%s8273_s9 + $0x3d8] ss:$12 sps:$4 sm:$0xff]  }
 0x17d   : > { %v8971_v19 = vpop.f32.mrb[46].mxu0  ;;  %v8973_v20 = vpop.f32.mrb[46].mxu1  ;;  %v8139_v6 = vld [vmem:[%s8273_s9 + $0x3c4] ss:$12 sps:$4 sm:$0xff]  }
 0x17e   : > { %14476 = vst [vmem:[#allocation15_spill] sm:$0xff] %v8971_v19  ;;  %14477 = vst [vmem:[#allocation16_spill] sm:$0xff] %v8973_v20  ;;  %v1915_v31 = vpop.f32.mrb[47].mxu0  ;;  %v2299_v32 = vpop.f32.mrb[47].mxu1  ;;  %v3571_v20 = vld [vmem:[#allocation2 + $0x19] sm:$0xff]  ;;  %v3570_v19 = vld [vmem:[#allocation2 + $0x11] sm:$0xff] }
 0x180   : > { %2125 = vmatmul.mubr.bf16.gmra.mrb[152].mxu0 %v8132_v13  ;;  %7823 = vmatmul.mubr.msk.bf16.gmra.mrb[152].mxu1 %vm1595_vm0, %v8133_v14  ;;  %v8141_v13 = vld [vmem:[%s8273_s9 + $0x488] ss:$12 sps:$4 sm:$0xff]  }
 0x181   : > { %2132 = vmatprep.mubr.bf16.mxu0 %v8134_v29  ;;  %7826 = vmatprep.mubr.msk.bf16.mxu1 %vm1595_vm0, %v8136_v30  ;;  %v8991_v30 = vshrl.u32 %v3308_v47, 7 }
 0x183   : > { %v8979_v41 = vpop.f32.mrb[48].mxu0  ;;  %v8981_v42 = vpop.f32.mrb[48].mxu1 }
 0x184   : > { %14478 = vst [vmem:[#allocation17_spill] sm:$0xff] %v8979_v41  ;;  %14479 = vst [vmem:[#allocation18_spill] sm:$0xff] %v8981_v42  ;;  %v1920_v48 = vpop.f32.mrb[49].mxu0  ;;  %v2304_v55 = vpop.f32.mrb[49].mxu1  ;;  %v4086_v42 = vsub.s32 2, %v8991_v30  ;;  %v3180_v41 = vld [vmem:[#allocation2] sm:$0xff] }
 0x185   : > { %v8985_v60 = vpop.f32.mrb[50].mxu0  ;;  %v8987_v5 = vpop.f32.mrb[50].mxu1  ;;  %v8142_v48 = vld [vmem:[%s8273_s9 + $0x3c0] ss:$12 sps:$4 sm:$0xff]   ;;  %v3310_v55 = vsub.s32 0, %v8991_v30 }
 0x186   : > { %14480 = vst [vmem:[#allocation19_spill] sm:$0xff] %v8985_v60  ;;  %14481 = vst [vmem:[#allocation20_spill] sm:$0xff] %v8987_v5  ;;  %v1923_v14 = vpop.f32.mrb[51].mxu0  ;;  %v2307_v29 = vpop.f32.mrb[51].mxu1  ;;  %v8143_v5 = vld [vmem:[%s8273_s9 + $0x4a0] ss:$12 sps:$4 sm:$0xff]  }
 0x187   : > { %v3698_v14 = vsub.s32 1, %v8991_v30 }
 0x188   : > { %2133 = vmatmul.mubr.bf16.gmra.mrb[156].mxu0 %v8137_v56  ;;  %7827 = vmatmul.mubr.msk.bf16.gmra.mrb[156].mxu1 %vm1595_vm0, %v8138_v59  ;;  %v9006_v56 = vld [vmem:[%s14311_s3] sm:$0xff] }
 0x189   : > { %2140 = vmatprep.mubr.bf16.mxu0 %v8139_v6  ;;  %7830 = vmatprep.mubr.msk.bf16.mxu1 %vm1595_vm0, %v8141_v13  ;;  %v8144_v13 = vld [vmem:[%s8273_s9 + $0x3dc] ss:$12 sps:$4 sm:$0xff]  }
 0x18b   : > { %v8995_v31 = vpop.f32.mrb[52].mxu0  ;;  %v8997_v32 = vpop.f32.mrb[52].mxu1 }
 0x18c   : > { %14482 = vst [vmem:[#allocation21_spill] sm:$0xff] %v8995_v31  ;;  %14483 = vst [vmem:[#allocation22_spill] sm:$0xff] %v8997_v32  ;;  %v1928_v29 = vpop.f32.mrb[53].mxu0  ;;  %v2312_v47 = vpop.f32.mrb[53].mxu1  ;;  %v8146_v31 = vld [vmem:[%s8273_s9 + $0x4b8] ss:$12 sps:$4 sm:$0xff]  }
 0x18d   : > { %v9008_v59 = vpop.f32.mrb[54].mxu0  ;;  %v9010_v6 = vpop.f32.mrb[54].mxu1  ;;  %v9016_v29 = vrot.slane %v9006_v56, %v3310_v55  ;;  %v9019_v47 = vrot.slane %v9006_v56, %v3698_v14  ;;  %v3569_v55 = vld [vmem:[#allocation2 + $0x9] sm:$0xff]  ;;  %v9029_v14 = vrot.slane %v9006_v56, %v4086_v42 }
 0x18e   : > { %14484 = vst [vmem:[#allocation23_spill] sm:$0xff] %v9008_v59  ;;  %14485 = vst [vmem:[#allocation24_spill] sm:$0xff] %v9010_v6  ;;  %v1931_v32 = vpop.f32.mrb[55].mxu0  ;;  %v2315_v60 = vpop.f32.mrb[55].mxu1  ;;  %v3568_v59 = vld [vmem:[#allocation2 + $0x1] sm:$0xff]  ;;  %v3183_v6 = vld [vmem:[#allocation2 + $0x18] sm:$0xff] }
 0x18f   : > { %14486 = vst [vmem:[#allocation25_spill] sm:$0xff] %v9016_v29  ;;  %v9025_v60 = vld [vmem:[%s14310_s2] ss:$0 sm:$0xff]  ;;  %v3181_v32 = vld [vmem:[#allocation2 + $0x8] sm:$0xff]  ;;  %v3312_v49 = vmul.f32 %v9016_v29, %v3180_v41  ;;  %v3703_v38 = vmul.f32 %v9019_v47, %v3571_v20  ;;  %v3701_v12 = vmul.f32 %v9019_v47, %v3569_v55  ;;  %v4088_v11 = vmul.f32 %v9029_v14, %v3956_v23 }
 0x190   : > { %2141 = vmatmul.mubr.bf16.gmra.mrb[160].mxu0 %v8142_v48  ;;  %7831 = vmatmul.mubr.msk.bf16.gmra.mrb[160].mxu1 %vm1595_vm0, %v8143_v5  ;;  %v3182_v48 = vld [vmem:[#allocation2 + $0x10] sm:$0xff]  ;;  %v9043_v42 = vadd.f32 %v9025_v60, %v8471_v2  ;;  %v3959_v41 = vld [vmem:[#allocation2 + $0x1a] sm:$0xff]  ;;  %v9054_v20 = vadd.f32 %v9025_v60, %v8817_v9  ;;  %v9058_v2 = vadd.f32 %v9025_v60, %v8819_v10  ;;  %v4862_v10 = vsub.s32 4, %v8991_v30 }
 0x191   : > { %2148 = vmatprep.mubr.bf16.mxu0 %v8144_v13  ;;  %7834 = vmatprep.mubr.msk.bf16.mxu1 %vm1595_vm0, %v8146_v31  ;;  %v3700_v13 = vmul.f32 %v9019_v47, %v3568_v59  ;;  %v3315_v31 = vmul.f32 %v9016_v29, %v3183_v6  ;;  %v3313_v59 = vmul.f32 %v9016_v29, %v3181_v32 }
 0x192   : > { %14489 = vst [vmem:[#allocation28_spill] sm:$0xff] %v9043_v42  ;;  %14491 = vst [vmem:[#allocation30_spill] sm:$0xff] %v9054_v20  ;;  %v3702_v32 = vmul.f32 %v9019_v47, %v3570_v19  ;;  %v9069_v55 = vadd.f32 %v9025_v60, %v8825_v15  ;;  %v4474_v42 = vsub.s32 3, %v8991_v30  ;;  %v5639_v15 = vsub.s32 6, %v8991_v30 }
 0x193   : > { %v9031_v5 = vpop.f32.mrb[56].mxu0  ;;  %v9033_v4 = vpop.f32.mrb[56].mxu1  ;;  %14492 = vst [vmem:[#allocation31_spill] sm:$0xff] %v9058_v2  ;;  %v5250_v2 = vsub.s32 5, %v8991_v30  ;;  %v3831_v62 = vadd.f32 %v3703_v38, %v3315_v31  ;;  %v6027_v19 = vsub.s32 7, %v8991_v30 }
 0x194   : > { %14487 = vst [vmem:[#allocation26_spill] sm:$0xff] %v9031_v5  ;;  %14488 = vst [vmem:[#allocation27_spill] sm:$0xff] %v9033_v4  ;;  %v9047_v5 = vadd.f32 %v9025_v60, %v8473_v3  ;;  %v1936_v4 = vpop.f32.mrb[57].mxu0  ;;  %v2320_v37 = vpop.f32.mrb[57].mxu1 }
 0x195   : > { %v9060_v6 = vpop.f32.mrb[58].mxu0  ;;  %v9062_v3 = vpop.f32.mrb[58].mxu1  ;;  %v8151_v37 = vld [vmem:[%s8273_s9 + $0x4e8] ss:$12 sps:$4 sm:$0xff]  }
 0x196   : > { %14490 = vst [vmem:[#allocation29_spill] sm:$0xff] %v9047_v5  ;;  %14493 = vst [vmem:[#allocation32_spill] sm:$0xff] %v9060_v6  ;;  %v3957_v4 = vld [vmem:[#allocation2 + $0xa] sm:$0xff]  ;;  %v3314_v5 = vmul.f32 %v9016_v29, %v3182_v48  ;;  %v1939_v9 = vpop.f32.mrb[59].mxu0  ;;  %v2323_v20 = vpop.f32.mrb[59].mxu1  ;;  %v3958_v6 = vld [vmem:[#allocation2 + $0x12] sm:$0xff]  ;;  %v4091_v48 = vmul.f32 %v9029_v14, %v3959_v41  ;;  %v9082_v29 = vadd.f32 %v9025_v60, %v8827_v16 }
 0x197   : > { %14494 = vst [vmem:[#allocation33_spill] sm:$0xff] %v9062_v3  ;;  %v3828_v3 = vadd.f32 %v3700_v13, %v3312_v49  ;;  %v3829_v20 = vadd.f32 %v3701_v12, %v3313_v59  ;;  %v4089_v9 = vmul.f32 %v9029_v14, %v3957_v4  ;;  %v4090_v38 = vmul.f32 %v9029_v14, %v3958_v6  ;;  %v8153_v41 = vld [vmem:[%s8273_s9 + $0x500] ss:$12 sps:$4 sm:$0xff]   ;;  %v8156_v4 = vld [vmem:[%s8273_s9 + $0x518] ss:$12 sps:$4 sm:$0xff]  }
 0x198   : > { %2149 = vmatmul.mubr.bf16.gmra.mrb[164].mxu0 %v8147_v1  ;;  %7835 = vmatmul.mubr.msk.bf16.gmra.mrb[164].mxu1 %vm1595_vm0, %v8148_v50  ;;  %14495 = vst [vmem:[#allocation34_spill] sm:$0xff] %v9082_v29  ;;  %v3830_v23 = vadd.f32 %v3702_v32, %v3314_v5  ;;  %v9088_v49 = vadd.f32 %v9025_v60, %v8831_v21 }
 0x199   : > { %2156 = vmatprep.mubr.bf16.mxu0 %v8149_v24  ;;  %7838 = vmatprep.mubr.msk.bf16.mxu1 %vm1595_vm0, %v8151_v37  ;;  %v9092_v12 = vadd.f32 %v9025_v60, %v8833_v22  ;;  %v9095_v50 = vrot.slane %v9006_v56, %v4474_v42  ;;  %v9098_v16 = vrot.slane %v9006_v56, %v4862_v10  ;;  %v8152_v42 = vld [vmem:[%s8273_s9 + $0x3f0] ss:$12 sps:$4 sm:$0xff]  }
 0x19a   : > { %v9102_v24 = vadd.f32 %v9025_v60, %v8839_v27  ;;  %v9108_v21 = vadd.f32 %v4088_v11, %v3828_v3  ;;  %v9111_v22 = vrot.slane %v9006_v56, %v5250_v2  ;;  %v9113_v5 = vadd.f32 %v4091_v48, %v3831_v62 }
 0x19b   : > { %14496 = vst [vmem:[#allocation35_spill] sm:$0xff] %v9092_v12  ;;  %v9104_v1 = vpop.f32.mrb[60].mxu0  ;;  %v9106_v30 = vpop.f32.mrb[60].mxu1  ;;  %v9117_v13 = vadd.f32 %v9025_v60, %v8841_v28  ;;  %v9122_v59 = vrot.slane %v9006_v56, %v5639_v15  ;;  %v9125_v11 = vrot.slane %v9006_v56, %v6027_v19  ;;  %v9127_v6 = vadd.f32 %v4089_v9, %v3829_v20  ;;  %v8154_v56 = vld [vmem:[%s8273_s9 + $0x40c] ss:$12 sps:$4 sm:$0xff]  }
 0x19c   : > { %v1944_v31 = vpop.f32.mrb[61].mxu0  ;;  %v2328_v27 = vpop.f32.mrb[61].mxu1  ;;  %v9131_v62 = vadd.f32 %v9025_v60, %v8845_v33  ;;  %v9135_v28 = vadd.f32 %v9025_v60, %v8847_v34  ;;  %v9139_v2 = vadd.f32 %v9025_v60, %v8853_v39  ;;  %v9147_v32 = vadd.f32 %v4090_v38, %v3830_v23  ;;  %v14510_v9 = vld [vmem:[#allocation4_spill] sm:$0xff]  ;;  %v14512_v23 = vld [vmem:[#allocation5_spill] sm:$0xff]  ;;  %v14513_v38 = vld [vmem:[#allocation6_spill] sm:$0xff] }
 0x19d   : > { %14497 = vst [vmem:[#allocation36_spill] sm:$0xff] %v9117_v13  ;;  %v9141_v3 = vpop.f32.mrb[62].mxu0  ;;  %v9143_v37 = vpop.f32.mrb[62].mxu1  ;;  %v9151_v33 = vadd.f32 %v9025_v60, %v8855_v40  ;;  %v9155_v34 = vadd.f32 %v9025_v60, %v8859_v45  ;;  %v9159_v39 = vadd.f32 %v9025_v60, %v8861_v46  ;;  %v9163_v10 = vadd.f32 %v9025_v60, %v8867_v51 }
 0x19e   : > { %14498 = vst [vmem:[#allocation37_spill] sm:$0xff] %v9135_v28  ;;  %v1947_v48 = vpop.f32.mrb[63].mxu0  ;;  %v2331_v15 = vpop.f32.mrb[63].mxu1  ;;  %v9167_v19 = vadd.f32 %v9025_v60, %v8869_v52  ;;  %v9171_v40 = vadd.f32 %v9025_v60, %v8873_v57  ;;  %v9175_v45 = vadd.f32 %v9025_v60, %v8875_v58  ;;  %v9179_v46 = vadd.f32 %v9025_v60, %v8881_v63 }
 0x19f   : > { %14499 = vst [vmem:[#allocation38_spill] sm:$0xff] %v9151_v33  ;;  %14500 = vst [vmem:[#allocation39_spill] sm:$0xff] %v9159_v39  ;;  %v9183_v51 = vadd.f32 %v9025_v60, %v8883_v0  ;;  %v9187_v52 = vadd.f32 %v9025_v60, %v8887_v7  ;;  %v9191_v57 = vadd.f32 %v9025_v60, %v8889_v8  ;;  %v14516_v48 = vld [vmem:[#allocation8_spill] sm:$0xff] }
 0x1a0   : > { %14501 = vst [vmem:[#allocation40_spill] sm:$0xff] %v9167_v19  ;;  %14502 = vst [vmem:[#allocation41_spill] sm:$0xff] %v9175_v45  ;;  %2157 = vmatmul.mubr.bf16.gmra.mrb[168].mxu0 %v8152_v42  ;;  %7839 = vmatmul.mubr.msk.bf16.gmra.mrb[168].mxu1 %vm1595_vm0, %v8153_v41  ;;  %v9196_v58 = vadd.f32 %v9025_v60, %v8895_v17  ;;  %v9200_v63 = vadd.f32 %v9025_v60, %v8897_v18  ;;  %v8157_v42 = vld [vmem:[%s8273_s9 + $0x408] ss:$12 sps:$4 sm:$0xff]   ;;  %v8158_v41 = vld [vmem:[%s8273_s9 + $0x530] ss:$12 sps:$4 sm:$0xff]  }
 0x1a1   : > { %14503 = vst [vmem:[#allocation42_spill] sm:$0xff] %v9183_v51  ;;  %14504 = vst [vmem:[#allocation43_spill] sm:$0xff] %v9191_v57  ;;  %v9204_v0 = vadd.f32 %v9025_v60, %v8901_v25  ;;  %2164 = vmatprep.mubr.bf16.mxu0 %v8154_v56  ;;  %7842 = vmatprep.mubr.msk.bf16.mxu1 %vm1595_vm0, %v8156_v4  ;;  %v9209_v7 = vadd.f32 %v9025_v60, %v8903_v26  ;;  %v14515_v56 = vld [vmem:[#allocation7_spill] sm:$0xff] }
 0x1a2   : > { %14505 = vst [vmem:[#allocation44_spill] sm:$0xff] %v9200_v63  ;;  %v9213_v8 = vadd.f32 %v9025_v60, %v8909_v35  ;;  %v9217_v17 = vadd.f32 %v9025_v60, %v8911_v36  ;;  %v9221_v18 = vadd.f32 %v9025_v60, %v8915_v43  ;;  %v9225_v25 = vadd.f32 %v9025_v60, %v8917_v44  ;;  %v14527_v63 = vld [vmem:[#allocation13_spill] sm:$0xff] }
 0x1a3   : > { %14506 = vst [vmem:[#allocation45_spill] sm:$0xff] %v9209_v7  ;;  %v9229_v26 = vadd.f32 %v9025_v60, %v8923_v53  ;;  %v9233_v35 = vadd.f32 %v9025_v60, %v8925_v54  ;;  %v9237_v36 = vadd.f32 %v9025_v60, %v8929_v61  ;;  %v1950_v20 = vpop.f32.mrb[64].mxu0  ;;  %v7736_v43 = vpop.f32.mrb[64].mxu1  ;;  %v9241_v44 = vadd.f32 %v9025_v60, %v14510_v9  ;;  %v14518_v9 = vld [vmem:[#allocation9_spill] sm:$0xff] }
 0x1a4   : > { %14507 = vst [vmem:[#allocation46_spill] sm:$0xff] %v9217_v17  ;;  %14508 = vst [vmem:[#allocation47_spill] sm:$0xff] %v9225_v25  ;;  %v9245_v53 = vadd.f32 %v9025_v60, %v14512_v23  ;;  %v9249_v54 = vadd.f32 %v9025_v60, %v14513_v38  ;;  %v2376_v31 = vadd.f32 %v7736_v43, %v9069_v55  ;;  %v1952_v61 = vpop.f32.mrb[65].mxu0  ;;  %v2367_v27 = vpop.f32.mrb[65].mxu1  ;;  %v14520_v38 = vld [vmem:[#allocation28_spill] sm:$0xff] }
 0x1a5   : > { %14509 = vst [vmem:[#allocation48_spill] sm:$0xff] %v9233_v35  ;;  %14511 = vst [vmem:[#allocation4_spill] sm:$0xff] %v9241_v44  ;;  %v9256_v4 = vadd.f32 %v9025_v60, %v14515_v56  ;;  %v9260_v15 = vadd.f32 %v9025_v60, %v14516_v48  ;;  %v9264_v23 = vadd.f32 %v9025_v60, %v14518_v9  ;;  %v1953_v35 = vpop.f32.mrb[66].mxu0  ;;  %v7737_v55 = vpop.f32.mrb[66].mxu1  ;;  %v8159_v43 = vld [vmem:[%s8273_s9 + $0x424] ss:$12 sps:$4 sm:$0xff]  }
 0x1a6   : > { %14514 = vst [vmem:[#allocation5_spill] sm:$0xff] %v9249_v54  ;;  %v2368_v44 = vadd.f32 %v2367_v27, %v14520_v38  ;;  %v8161_v61 = vld [vmem:[%s8273_s9 + $0x548] ss:$12 sps:$4 sm:$0xff]   ;;  %3052 = vst.msk [vmem:[#allocation2 + $0x39] sm:$0xff] %vm1595_vm0, %v2376_v31  ;;  %v2379_v27 = vadd.f32 %v7737_v55, %v9088_v49  ;;  %v1955_v9 = vpop.f32.mrb[67].mxu0  ;;  %v2370_v38 = vpop.f32.mrb[67].mxu1  ;;  %v9285_v17 = vadd.f32 %v9025_v60, %v14527_v63 }
 0x1a7   : > { %14517 = vst [vmem:[#allocation6_spill] sm:$0xff] %v9260_v15  ;;  %14519 = vst [vmem:[#allocation7_spill] sm:$0xff] %v9264_v23  ;;  %v14521_v54 = vld [vmem:[#allocation10_spill] sm:$0xff]  ;;  %v14523_v56 = vld [vmem:[#allocation11_spill] sm:$0xff]  ;;  %v9374_v57 = vadd.f32 %v9025_v60, %v1950_v20 }
 0x1a8   : > { %v9271_v7 = vadd.f32 %v9025_v60, %v14521_v54  ;;  %v9275_v25 = vadd.f32 %v9025_v60, %v14523_v56  ;;  %v14525_v48 = vld [vmem:[#allocation12_spill] sm:$0xff]  ;;  %v14528_v54 = vld [vmem:[#allocation14_spill] sm:$0xff]  ;;  %v14530_v56 = vld [vmem:[#allocation15_spill] sm:$0xff]  ;;  %3050 = vst.msk [vmem:[#allocation2 + $0x29] sm:$0xff] %vm1595_vm0, %v2368_v44  ;;  %2165 = vmatmul.mubr.bf16.gmra.mrb[172].mxu0 %v8157_v42  ;;  %7843 = vmatmul.mubr.msk.bf16.gmra.mrb[172].mxu1 %vm1595_vm0, %v8158_v41 }
 0x1a9   : > { %v9279_v15 = vadd.f32 %v9025_v60, %v14525_v48  ;;  %v9293_v45 = vadd.f32 %v9025_v60, %v14530_v56  ;;  %v14532_v48 = vld [vmem:[#allocation30_spill] sm:$0xff]  ;;  %v14535_v55 = vld [vmem:[#allocation17_spill] sm:$0xff]  ;;  %3053 = vst.msk [vmem:[#allocation2 + $0x41] sm:$0xff] %vm1595_vm0, %v2379_v27  ;;  %v14539_v44 = vld [vmem:[#allocation19_spill] sm:$0xff]  ;;  %2172 = vmatprep.mubr.bf16.mxu0 %v8159_v43  ;;  %7846 = vmatprep.mubr.msk.bf16.mxu1 %vm1595_vm0, %v8161_v61 }
 0x1aa   : > { %14522 = vst [vmem:[#allocation8_spill] sm:$0xff] %v9271_v7  ;;  %14524 = vst [vmem:[#allocation9_spill] sm:$0xff] %v9275_v25  ;;  %v9289_v7 = vadd.f32 %v9025_v60, %v14528_v54  ;;  %v2371_v31 = vadd.f32 %v2370_v38, %v14532_v48  ;;  %v9303_v63 = vadd.f32 %v9025_v60, %v14535_v55  ;;  %v14537_v9 = vld [vmem:[#allocation18_spill] sm:$0xff]  ;;  %v14541_v56 = vld [vmem:[#allocation20_spill] sm:$0xff] }
 0x1ab   : > { %14526 = vst [vmem:[#allocation28_spill] sm:$0xff] %v9279_v15  ;;  %14531 = vst [vmem:[#allocation11_spill] sm:$0xff] %v9293_v45  ;;  %v14533_v15 = vld [vmem:[#allocation16_spill] sm:$0xff]  ;;  %v9307_v54 = vadd.f32 %v9025_v60, %v14537_v9  ;;  %v9313_v38 = vadd.f32 %v9025_v60, %v14539_v44  ;;  %v14543_v48 = vld [vmem:[#allocation21_spill] sm:$0xff] }
 0x1ac   : > { %14529 = vst [vmem:[#allocation10_spill] sm:$0xff] %v9289_v7  ;;  %v9299_v49 = vadd.f32 %v9025_v60, %v14533_v15  ;;  %14536 = vst [vmem:[#allocation13_spill] sm:$0xff] %v9303_v63  ;;  %v9317_v15 = vadd.f32 %v9025_v60, %v14541_v56  ;;  %v9321_v55 = vadd.f32 %v9025_v60, %v14543_v48  ;;  %v14545_v42 = vld [vmem:[#allocation22_spill] sm:$0xff]  ;;  %v14547_v27 = vld [vmem:[#allocation23_spill] sm:$0xff] }
 0x1ad   : > { %14538 = vst [vmem:[#allocation14_spill] sm:$0xff] %v9307_v54  ;;  %14540 = vst [vmem:[#allocation15_spill] sm:$0xff] %v9313_v38  ;;  %v9327_v41 = vadd.f32 %v9025_v60, %v14545_v42  ;;  %v9331_v9 = vadd.f32 %v9025_v60, %v14547_v27  ;;  %v14549_v44 = vld [vmem:[#allocation24_spill] sm:$0xff]  ;;  %v14551_v48 = vld [vmem:[#allocation26_spill] sm:$0xff] }
 0x1ae   : > { %14534 = vst [vmem:[#allocation12_spill] sm:$0xff] %v9299_v49  ;;  %14542 = vst [vmem:[#allocation30_spill] sm:$0xff] %v9317_v15  ;;  %v9335_v56 = vadd.f32 %v9025_v60, %v14549_v44  ;;  %v14553_v43 = vld [vmem:[#allocation27_spill] sm:$0xff]  ;;  %v14555_v42 = vld [vmem:[#allocation32_spill] sm:$0xff]  ;;  %v9355_v44 = vadd.f32 %v9025_v60, %v9104_v1 }
 0x1af   : > { %14544 = vst [vmem:[#allocation16_spill] sm:$0xff] %v9321_v55  ;;  %3051 = vst.msk [vmem:[#allocation2 + $0x31] sm:$0xff] %vm1595_vm0, %v2371_v31  ;;  %v9339_v31 = vadd.f32 %v9025_v60, %v14551_v48  ;;  %v9343_v61 = vadd.f32 %v9025_v60, %v14553_v43  ;;  %v9347_v15 = vadd.f32 %v9025_v60, %v14555_v42  ;;  %v14557_v27 = vld [vmem:[#allocation33_spill] sm:$0xff]  ;;  %v4732_v28 = vld [vmem:[#allocation2 + $0x29] sm:$0xff] }
 0x1b0   : > { %14546 = vst [vmem:[#allocation17_spill] sm:$0xff] %v9327_v41  ;;  %14548 = vst [vmem:[#allocation18_spill] sm:$0xff] %v9331_v9  ;;  %v9351_v54 = vadd.f32 %v9025_v60, %v14557_v27  ;;  %v7740_v41 = vpop.f32.mrb[68].mxu1  ;;  %v8162_v48 = vld [vmem:[%s8273_s9 + $0x420] ss:$12 sps:$4 sm:$0xff]   ;;  %v9360_v43 = vadd.f32 %v9025_v60, %v9106_v30  ;;  %v9364_v42 = vadd.f32 %v9025_v60, %v9141_v3 }
 0x1b1   : > { %14550 = vst [vmem:[#allocation19_spill] sm:$0xff] %v9335_v56  ;;  %14552 = vst [vmem:[#allocation20_spill] sm:$0xff] %v9339_v31  ;;  %v1958_v56 = vpop.f32.mrb[68].mxu0  ;;  %v9368_v27 = vadd.f32 %v9025_v60, %v9143_v37  ;;  %v8163_v49 = vld [vmem:[%s8273_s9 + $0x560] ss:$12 sps:$4 sm:$0xff]   ;;  %v9377_v30 = vadd.f32 %v9025_v60, %v1953_v35  ;;  %2173 = vmatmul.mubr.bf16.gmra.mrb[176].mxu0 %v8162_v48 }
 0x1b2   : > { %14554 = vst [vmem:[#allocation21_spill] sm:$0xff] %v9343_v61  ;;  %14556 = vst [vmem:[#allocation22_spill] sm:$0xff] %v9347_v15  ;;  %v1960_v1 = vpop.f32.mrb[69].mxu0  ;;  %v2383_v61 = vpop.f32.mrb[69].mxu1  ;;  %v8164_v7 = vld [vmem:[%s8273_s9 + $0x43c] ss:$12 sps:$4 sm:$0xff]   ;;  %7847 = vmatmul.mubr.msk.bf16.gmra.mrb[176].mxu1 %vm1595_vm0, %v8163_v49 }
 0x1b3   : > { %14558 = vst [vmem:[#allocation23_spill] sm:$0xff] %v9351_v54  ;;  %14559 = vst [vmem:[#allocation24_spill] sm:$0xff] %v9355_v44  ;;  %v2392_v54 = vadd.f32 %v7740_v41, %v9139_v2  ;;  %v2384_v3 = vadd.f32 %v2383_v61, %v9102_v24  ;;  %v1961_v19 = vpop.f32.mrb[70].mxu0  ;;  %v7741_v37 = vpop.f32.mrb[70].mxu1  ;;  %v4734_v51 = vld [vmem:[#allocation2 + $0x39] sm:$0xff]  ;;  %v4344_v35 = vld [vmem:[#allocation2 + $0x28] sm:$0xff]  ;;  %2180 = vmatprep.mubr.bf16.mxu0 %v8164_v7 }
 0x1b4   : > { %14560 = vst [vmem:[#allocation26_spill] sm:$0xff] %v9360_v43  ;;  %14561 = vst [vmem:[#allocation27_spill] sm:$0xff] %v9364_v42  ;;  %v9380_v43 = vadd.f32 %v9025_v60, %v1958_v56  ;;  %v9386_v2 = vadd.f32 %v9025_v60, %v1961_v19  ;;  %v2395_v20 = vadd.f32 %v7741_v37, %v9155_v34  ;;  %v1963_v41 = vpop.f32.mrb[71].mxu0  ;;  %v2386_v1 = vpop.f32.mrb[71].mxu1  ;;  %v9399_v39 = vld [vmem:[#allocation2 + $0x40] sm:$0xff] }
 0x1b5   : > { %14562 = vst [vmem:[#allocation32_spill] sm:$0xff] %v9368_v27  ;;  %14563 = vst [vmem:[#allocation33_spill] sm:$0xff] %v9374_v57  ;;  %v8166_v27 = vld [vmem:[%s8273_s9 + $0x578] ss:$12 sps:$4 sm:$0xff]   ;;  %v9390_v56 = vmul.f32 %v9098_v16, %v4734_v51  ;;  %v9393_v24 = vmul.f32 %v4734_v51, %v9019_v47  ;;  %v2387_v61 = vadd.f32 %v2386_v1, %v9131_v62  ;;  %v8168_v9 = vld [vmem:[%s8273_s9 + $0x590] ss:$12 sps:$4 sm:$0xff]  }
 0x1b6   : > { %14564 = vst [vmem:[#allocation49_spill] sm:$0xff] %v9377_v30  ;;  %14565 = vst [vmem:[#allocation50_spill] sm:$0xff] %v9380_v43  ;;  %v4864_v19 = vmul.f32 %v9098_v16, %v4732_v28  ;;  %v9401_v34 = vld [vmem:[#allocation2 + $0x41] sm:$0xff]  ;;  %v14567_v41 = vld [vmem:[#allocation25_spill] sm:$0xff]  ;;  %v4479_v62 = vmul.f32 %v9095_v50, %v9399_v39  ;;  %7850 = vmatprep.mubr.msk.bf16.mxu1 %vm1595_vm0, %v8166_v27 }
 0x1b7   : > { %3056 = vst.msk [vmem:[#allocation2 + $0x61] sm:$0xff] %vm1595_vm0, %v2392_v54  ;;  %14566 = vst [vmem:[#allocation51_spill] sm:$0xff] %v9386_v2  ;;  %v4476_v54 = vmul.f32 %v9095_v50, %v4344_v35  ;;  %v9403_v37 = vld [vmem:[#allocation2 + $0x42] sm:$0xff]  ;;  %v3316_v13 = vmul.f32 %v4344_v35, %v14567_v41  ;;  %v9408_v51 = vld [vmem:[#allocation2 + $0x2a] sm:$0xff]  ;;  %v7744_v2 = vpop.f32.mrb[72].mxu1 }
 0x1b8   : > { %3054 = vst.msk [vmem:[#allocation2 + $0x51] sm:$0xff] %vm1595_vm0, %v2384_v3  ;;  %3057 = vst.msk [vmem:[#allocation2 + $0x69] sm:$0xff] %vm1595_vm0, %v2395_v20  ;;  %v4867_v3 = vmul.f32 %v9098_v16, %v9401_v34  ;;  %v5255_v1 = vmul.f32 %v9111_v22, %v9403_v37  ;;  %v9416_v33 = vld [vmem:[#allocation2 + $0x30] sm:$0xff]  ;;  %v5252_v48 = vmul.f32 %v9111_v22, %v9408_v51  ;;  %v9429_v29 = vld [vmem:[#allocation2 + $0x38] sm:$0xff]  ;;  %v2399_v38 = vpop.f32.mrb[73].mxu1 }
 0x1b9   : > { %v9418_v12 = vld [vmem:[#allocation2 + $0x31] sm:$0xff]  ;;  %3055 = vst.msk [vmem:[#allocation2 + $0x59] sm:$0xff] %vm1595_vm0, %v2387_v61  ;;  %v4604_v49 = vadd.f32 %v4476_v54, %v9108_v21  ;;  %v4477_v20 = vmul.f32 %v9095_v50, %v9416_v33  ;;  %v9431_v30 = vld [vmem:[#allocation2 + $0x3a] sm:$0xff]  ;;  %v4607_v61 = vadd.f32 %v4479_v62, %v9113_v5  ;;  %v4478_v27 = vmul.f32 %v9095_v50, %v9429_v29  ;;  %v1966_v54 = vpop.f32.mrb[72].mxu0 }
 0x1ba   : > { %14568 = vst [vmem:[#allocation25_spill] sm:$0xff] %v9418_v12  ;;  %v9427_v35 = vld [vmem:[#allocation2 + $0x32] sm:$0xff]  ;;  %v4865_v7 = vmul.f32 %v9098_v16, %v9418_v12  ;;  %v5254_v5 = vmul.f32 %v9111_v22, %v9431_v30  ;;  %v3704_v62 = vmul.f32 %v4732_v28, %v9019_v47  ;;  %v9446_v42 = vadd.f32 %v9025_v60, %v1966_v54  ;;  %v1968_v44 = vpop.f32.mrb[73].mxu0  ;;  %v7745_v28 = vpop.f32.mrb[74].mxu1 }
 0x1bb   : > { %14569 = vst [vmem:[#allocation52_spill] sm:$0xff] %v9427_v35  ;;  %v5253_v21 = vmul.f32 %v9111_v22, %v9427_v35  ;;  %v8167_v57 = vld [vmem:[%s8273_s9 + $0x438] ss:$12 sps:$4 sm:$0xff]   ;;  %v4992_v43 = vadd.f32 %v4864_v19, %v4604_v49  ;;  %v4605_v15 = vadd.f32 %v4477_v20, %v9127_v6  ;;  %v2408_v31 = vadd.f32 %v7744_v2, %v9179_v46  ;;  %v9453_v19 = vld [vmem:[%s14311_s3 + $0x8] ss:$0 sm:$0xff]  ;;  %v1969_v63 = vpop.f32.mrb[74].mxu0 }
 0x1bc   : > { %14570 = vst [vmem:[#allocation53_spill] sm:$0xff] %v9446_v42  ;;  %v4995_v49 = vadd.f32 %v4867_v3, %v4607_v61  ;;  %v4606_v6 = vadd.f32 %v4478_v27, %v9147_v32  ;;  %v2400_v20 = vadd.f32 %v2399_v38, %v9163_v10  ;;  %v8169_v55 = vld [vmem:[%s8273_s9 + $0x454] ss:$12 sps:$4 sm:$0xff]   ;;  %v9459_v46 = vadd.f32 %v3704_v62, %v3316_v13  ;;  %v1971_v3 = vpop.f32.mrb[75].mxu0  ;;  %v2402_v61 = vpop.f32.mrb[75].mxu1 }
 0x1bd   : > { %v8171_v54 = vld [vmem:[%s8273_s9 + $0x5a8] ss:$12 sps:$4 sm:$0xff]   ;;  %v5380_v42 = vadd.f32 %v5252_v48, %v4992_v43  ;;  %v4993_v25 = vadd.f32 %v4865_v7, %v4605_v15  ;;  %3060 = vst.msk [vmem:[#allocation2 + $0x89] sm:$0xff] %vm1595_vm0, %v2408_v31  ;;  %v9463_v44 = vadd.f32 %v9025_v60, %v1969_v63  ;;  %v2411_v2 = vadd.f32 %v7745_v28, %v9187_v52  ;;  %v1974_v3 = vpop.f32.mrb[76].mxu0 }
 0x1be   : > { %v5383_v38 = vadd.f32 %v5255_v1, %v4995_v49  ;;  %v4994_v27 = vadd.f32 %v9390_v56, %v4606_v6  ;;  %v9471_v43 = vld [vmem:[#allocation2 + $0x61] sm:$0xff]  ;;  %3058 = vst.msk [vmem:[#allocation2 + $0x79] sm:$0xff] %vm1595_vm0, %v2400_v20  ;;  %v2403_v13 = vadd.f32 %v2402_v61, %v9171_v40  ;;  %2181 = vmatmul.mubr.bf16.gmra.mrb[180].mxu0 %v8167_v57  ;;  %v7748_v61 = vpop.f32.mrb[76].mxu1 }
 0x1bf   : > { %14571 = vst [vmem:[#allocation54_spill] sm:$0xff] %v9463_v44  ;;  %v9466_v32 = vld [vmem:[#allocation2 + $0x50] sm:$0xff]  ;;  %v9479_v15 = vld [vmem:[#allocation2 + $0x68] sm:$0xff]  ;;  %v5381_v1 = vadd.f32 %v5253_v21, %v4993_v25  ;;  %3061 = vst.msk [vmem:[#allocation2 + $0x91] sm:$0xff] %vm1595_vm0, %v2411_v2  ;;  %7851 = vmatmul.mubr.msk.bf16.gmra.mrb[180].mxu1 %vm1595_vm0, %v8168_v9  ;;  %2188 = vmatprep.mubr.bf16.mxu0 %v8169_v55  ;;  %v2415_v45 = vpop.f32.mrb[77].mxu1 }
 0x1c0   : > { %v9468_v10 = vld [vmem:[#allocation2 + $0x51] sm:$0xff]  ;;  %v5641_v63 = vmul.f32 %v9122_v59, %v9466_v32  ;;  %v9481_v31 = vld [vmem:[#allocation2 + $0x69] sm:$0xff]  ;;  %v5644_v40 = vmul.f32 %v9122_v59, %v9479_v15  ;;  %v9497_v6 = vld [vmem:[#allocation2 + $0x59] sm:$0xff]  ;;  %3059 = vst.msk [vmem:[#allocation2 + $0x81] sm:$0xff] %vm1595_vm0, %v2403_v13  ;;  %7854 = vmatprep.mubr.msk.bf16.mxu1 %vm1595_vm0, %v8171_v54  ;;  %v5382_v54 = vadd.f32 %v5254_v5, %v4994_v27 }
 0x1c1   : > { %v6029_v52 = vmul.f32 %v9125_v11, %v9468_v10  ;;  %v9483_v48 = vld [vmem:[#allocation2 + $0x6a] sm:$0xff]  ;;  %v9487_v56 = vld [vmem:[#allocation2 + $0x52] sm:$0xff]  ;;  %v6032_v7 = vmul.f32 %v9125_v11, %v9481_v31  ;;  %14573 = vst [vmem:[#allocation56_spill] sm:$0xff] %v9497_v6  ;;  %v9505_v21 = vld [vmem:[#allocation2 + $0x5a] sm:$0xff]  ;;  %v6030_v55 = vmul.f32 %v9125_v11, %v9497_v6  ;;  %v1976_v6 = vpop.f32.mrb[77].mxu0 }
 0x1c2   : > { %v6420_v62 = vmul.f32 %v9453_v19, %v9483_v48  ;;  %v9495_v49 = vld [vmem:[#allocation2 + $0x58] sm:$0xff]  ;;  %v5769_v57 = vadd.f32 %v5641_v63, %v5380_v42  ;;  %v6417_v25 = vmul.f32 %v9453_v19, %v9487_v56  ;;  %14574 = vst [vmem:[#allocation57_spill] sm:$0xff] %v9505_v21  ;;  %v9507_v20 = vld [vmem:[#allocation2 + $0x60] sm:$0xff]  ;;  %v5772_v2 = vadd.f32 %v5644_v40, %v5383_v38 }
 0x1c3   : > { %14572 = vst [vmem:[#allocation55_spill] sm:$0xff] %v9495_v49  ;;  %v5642_v9 = vmul.f32 %v9122_v59, %v9495_v49  ;;  %v9509_v28 = vld [vmem:[#allocation2 + $0x62] sm:$0xff]  ;;  %v6418_v42 = vmul.f32 %v9453_v19, %v9505_v21  ;;  %v5643_v44 = vmul.f32 %v9122_v59, %v9507_v20  ;;  %v6031_v49 = vmul.f32 %v9125_v11, %v9471_v43  ;;  %v8172_v21 = vld [vmem:[%s8273_s9 + $0x450] ss:$12 sps:$4 sm:$0xff]  }
 0x1c4   : > { %v6157_v13 = vadd.f32 %v6029_v52, %v5769_v57  ;;  %v9520_v38 = vadd.f32 %v9025_v60, %v1974_v3  ;;  %v2424_v40 = vadd.f32 %v7748_v61, %v9213_v8  ;;  %v8173_v5 = vld [vmem:[%s8273_s9 + $0x5c0] ss:$12 sps:$4 sm:$0xff]   ;;  %v6160_v27 = vadd.f32 %v6032_v7, %v5772_v2  ;;  %v1977_v57 = vpop.f32.mrb[78].mxu0 }
 0x1c5   : > { %v5770_v63 = vadd.f32 %v5642_v9, %v5381_v1  ;;  %v6419_v52 = vmul.f32 %v9453_v19, %v9509_v28  ;;  %v2416_v1 = vadd.f32 %v2415_v45, %v9196_v58  ;;  %v7749_v9 = vpop.f32.mrb[78].mxu1  ;;  %v5771_v23 = vadd.f32 %v5643_v44, %v5382_v54  ;;  %v8174_v3 = vld [vmem:[%s8273_s9 + $0x46c] ss:$12 sps:$4 sm:$0xff]   ;;  %v1979_v61 = vpop.f32.mrb[79].mxu0 }
 0x1c6   : > { %14575 = vst [vmem:[#allocation58_spill] sm:$0xff] %v9520_v38  ;;  %v6545_v35 = vadd.f32 %v6417_v25, %v6157_v13  ;;  %3064 = vst.msk [vmem:[#allocation2 + $0xb1] sm:$0xff] %vm1595_vm0, %v2424_v40  ;;  %v9531_v8 = vadd.f32 %v9025_v60, %v1977_v57  ;;  %v2427_v6 = vadd.f32 %v7749_v9, %v9221_v18  ;;  %v2418_v7 = vpop.f32.mrb[79].mxu1  ;;  %v8176_v38 = vld [vmem:[%s8273_s9 + $0x5d8] ss:$12 sps:$4 sm:$0xff]   ;;  %2189 = vmatmul.mubr.bf16.gmra.mrb[184].mxu0 %v8172_v21  ;;  %v1982_v40 = vpop.f32.mrb[80].mxu0 }
 0x1c7   : > { %v6158_v12 = vadd.f32 %v6030_v55, %v5770_v63  ;;  %v6548_v2 = vadd.f32 %v6420_v62, %v6160_v27  ;;  %v4092_v45 = vmul.f32 %v9408_v51, %v9029_v14  ;;  %v9537_v58 = vld [vmem:[#allocation2 + $0x78] sm:$0xff]  ;;  %3062 = vst.msk [vmem:[#allocation2 + $0xa1] sm:$0xff] %vm1595_vm0, %v2416_v1  ;;  %v2419_v44 = vadd.f32 %v2418_v7, %v9204_v0 }
 0x1c8   : > { %14576 = vst [vmem:[#allocation59_spill] sm:$0xff] %v9531_v8  ;;  %v6673_v25 = vsel %vm1595_vm0, %v6545_v35, 0.0  ;;  %v6159_v54 = vadd.f32 %v6031_v49, %v5771_v23  ;;  %v9542_v13 = vld [vmem:[#allocation2 + $0x79] sm:$0xff]  ;;  %3065 = vst.msk [vmem:[#allocation2 + $0xb9] sm:$0xff] %vm1595_vm0, %v2427_v6  ;;  %7855 = vmatmul.mubr.msk.bf16.gmra.mrb[184].mxu1 %vm1595_vm0, %v8173_v5  ;;  %v4480_v62 = vmul.f32 %v9466_v32, %v9095_v50  ;;  %2196 = vmatprep.mubr.bf16.mxu0 %v8174_v3  ;;  %v7752_v5 = vpop.f32.mrb[80].mxu1  ;;  %v1984_v6 = vpop.f32.mrb[81].mxu0 }
 0x1c9   : > { %v6546_v55 = vadd.f32 %v6418_v42, %v6158_v12  ;;  %v6682_v18 = vsel %vm1595_vm0, %v6548_v2, 0.0  ;;  %v4220_v51 = vadd.f32 %v4092_v45, %v9459_v46  ;;  %v4868_v0 = vmul.f32 %v9468_v10, %v9098_v16  ;;  %v9552_v35 = vld [vmem:[#allocation2 + $0x7a] sm:$0xff]  ;;  %3063 = vst.msk [vmem:[#allocation2 + $0xa9] sm:$0xff] %vm1595_vm0, %v2419_v44  ;;  %6674 = vadd.xlane.f32.xlu0 %v6673_v25  ;;  %v2431_v61 = vpop.f32.mrb[81].mxu1  ;;  %v9580_v44 = vld [vmem:[#allocation2 + $0x90] sm:$0xff] }
 0x1ca   : > { %6683 = vadd.xlane.f32.xlu1 %v6682_v18  ;;  %v6547_v12 = vadd.f32 %v6419_v52, %v6159_v54  ;;  %v5256_v23 = vmul.f32 %v9487_v56, %v9111_v22  ;;  %v5645_v46 = vmul.f32 %v9122_v59, %v9537_v58  ;;  %7858 = vmatprep.mubr.msk.bf16.mxu1 %vm1595_vm0, %v8176_v38  ;;  %v8177_v52 = vld [vmem:[%s8273_s9 + $0x468] ss:$12 sps:$4 sm:$0xff]   ;;  %v8178_v7 = vld [vmem:[%s8273_s9 + $0x5f0] ss:$12 sps:$4 sm:$0xff]   ;;  %v7753_v25 = vpop.f32.mrb[82].mxu1 }
 0x1cb   : > { %v6676_v49 = vsel %vm1595_vm0, %v6546_v55, 0.0  ;;  %v4608_v21 = vadd.f32 %v4480_v62, %v4220_v51  ;;  %v6033_v42 = vmul.f32 %v9125_v11, %v9542_v13  ;;  %v6421_v63 = vmul.f32 %v9453_v19, %v9552_v35  ;;  %v9587_v54 = vld [vmem:[#allocation2 + $0x92] sm:$0xff] }
 0x1cc   : > { %v6679_v27 = vsel %vm1595_vm0, %v6547_v12, 0.0  ;;  %v3319_v1 = vmul.f32 %v9399_v39, %v14567_v41  ;;  %v3707_v57 = vmul.f32 %v9401_v34, %v9019_v47  ;;  %v4095_v38 = vmul.f32 %v9403_v37, %v9029_v14  ;;  %v9582_v39 = vld [vmem:[#allocation2 + $0x91] sm:$0xff]  ;;  %v1985_v37 = vpop.f32.mrb[82].mxu0  ;;  %14579 = vst [vmem:[#allocation62_spill] sm:$0xff] %v9587_v54 }
 0x1cd   : > { %v9574_v9 = vadd.f32 %v9025_v60, %v1982_v40  ;;  %v2440_v3 = vadd.f32 %v7752_v5, %v9245_v53  ;;  %v4996_v2 = vadd.f32 %v4868_v0, %v4608_v21  ;;  %v4483_v45 = vmul.f32 %v9479_v15, %v9095_v50  ;;  %14578 = vst [vmem:[#allocation61_spill] sm:$0xff] %v9582_v39  ;;  %v1987_v62 = vpop.f32.mrb[83].mxu0  ;;  %v2434_v0 = vpop.f32.mrb[83].mxu1 }
 0x1ce   : > { %v2432_v34 = vadd.f32 %v2431_v61, %v9229_v26  ;;  %6677 = vadd.xlane.f32.xlu0 %v6676_v49  ;;  %6680 = vadd.xlane.f32.xlu1 %v6679_v27  ;;  %v3835_v55 = vadd.f32 %v3707_v57, %v3319_v1  ;;  %v4871_v53 = vmul.f32 %v9481_v31, %v9098_v16  ;;  %v9602_v27 = vld [vmem:[#allocation2 + $0x88] sm:$0xff] }
 0x1cf   : > { %14577 = vst [vmem:[#allocation60_spill] sm:$0xff] %v9574_v9  ;;  %3068 = vst.msk [vmem:[#allocation2 + $0xd9] sm:$0xff] %vm1595_vm0, %v2440_v3  ;;  %v9591_v18 = vadd.f32 %v9025_v60, %v1985_v37  ;;  %v2443_v51 = vadd.f32 %v7753_v25, %v9256_v4  ;;  %v5384_v26 = vadd.f32 %v5256_v23, %v4996_v2  ;;  %2197 = vmatmul.mubr.bf16.gmra.mrb[188].mxu0 %v8177_v52  ;;  %v9612_v1 = vld [vmem:[#allocation2 + $0x89] sm:$0xff] }
 0x1d0   : > { %v5259_v12 = vmul.f32 %v9483_v48, %v9111_v22  ;;  %3066 = vst.msk [vmem:[#allocation2 + $0xc9] sm:$0xff] %vm1595_vm0, %v2432_v34  ;;  %v2435_v49 = vadd.f32 %v2434_v0, %v9237_v36  ;;  %v4223_v21 = vadd.f32 %v4095_v38, %v3835_v55  ;;  %v5648_v40 = vmul.f32 %v9122_v59, %v9580_v44  ;;  %v9614_v57 = vld [vmem:[#allocation2 + $0x8a] sm:$0xff]  ;;  %v7756_v34 = vpop.f32.mrb[84].mxu1 }
 0x1d1   : > { %14580 = vst [vmem:[#allocation63_spill] sm:$0xff] %v9591_v18  ;;  %v6036_v5 = vmul.f32 %v9125_v11, %v9582_v39  ;;  %3069 = vst.msk [vmem:[#allocation2 + $0xe1] sm:$0xff] %vm1595_vm0, %v2443_v51  ;;  %7859 = vmatmul.mubr.msk.bf16.gmra.mrb[188].mxu1 %vm1595_vm0, %v8178_v7  ;;  %v5773_v4 = vadd.f32 %v5645_v46, %v5384_v26  ;;  %v9608_v23 = vmul.f32 %v9453_v19, %v9587_v54  ;;  %v2447_v51 = vpop.f32.mrb[85].mxu1  ;;  %v14582_v26 = vld [vmem:[#allocation7_spill] sm:$0xff]  ;;  %v14584_v18 = vld [vmem:[#allocation52_spill] sm:$0xff] }
 0x1d2   : > { %v3318_v36 = vmul.f32 %v9429_v29, %v14567_v41  ;;  %3067 = vst.msk [vmem:[#allocation2 + $0xd1] sm:$0xff] %vm1595_vm0, %v2435_v49  ;;  %v4611_v38 = vadd.f32 %v4483_v45, %v4223_v21  ;;  %v4094_v52 = vmul.f32 %v9431_v30, %v9029_v14  ;;  %v4482_v46 = vmul.f32 %v9507_v20, %v9095_v50  ;;  %v1990_v45 = vpop.f32.mrb[84].mxu0 }
 0x1d3   : > { %v4870_v3 = vmul.f32 %v9471_v43, %v9098_v16  ;;  %v6161_v6 = vadd.f32 %v6033_v42, %v5773_v4  ;;  %v5258_v29 = vmul.f32 %v9509_v28, %v9111_v22  ;;  %v5647_v7 = vmul.f32 %v9122_v59, %v9602_v27  ;;  %v7757_v4 = vpop.f32.mrb[86].mxu1 }
 0x1d4   : > { %v3834_v61 = vadd.f32 %v9393_v24, %v3318_v36  ;;  %v4999_v2 = vadd.f32 %v4871_v53, %v4611_v38  ;;  %v9630_v30 = vmul.f32 %v9125_v11, %v9612_v1  ;;  %v9634_v37 = vmul.f32 %v9453_v19, %v9614_v57  ;;  %v1992_v53 = vpop.f32.mrb[85].mxu0  ;;  %v14583_v36 = vld [vmem:[#allocation25_spill] sm:$0xff] }
 0x1d5   : > { %v3317_v24 = vmul.f32 %v9416_v33, %v14567_v41  ;;  %v6549_v42 = vadd.f32 %v6421_v63, %v6161_v6  ;;  %v9639_v25 = vadd.f32 %v9025_v60, %v1990_v45  ;;  %v2456_v55 = vadd.f32 %v7756_v34, %v9285_v17  ;;  %v1993_v21 = vpop.f32.mrb[86].mxu0  ;;  %v9647_v63 = vld [vmem:[#allocation2 + $0x80] sm:$0xff]  ;;  %v2450_v53 = vpop.f32.mrb[87].mxu1 }
 0x1d6   : > { %v4222_v62 = vadd.f32 %v4094_v52, %v3834_v61  ;;  %v5387_v0 = vadd.f32 %v5259_v12, %v4999_v2  ;;  %v2448_v49 = vadd.f32 %v2447_v51, %v14582_v26  ;;  %v3705_v38 = vmul.f32 %v14583_v36, %v9019_v47  ;;  %v9649_v6 = vld [vmem:[#allocation2 + $0x81] sm:$0xff]  ;;  %v14586_v61 = vld [vmem:[#allocation11_spill] sm:$0xff]  ;;  %v1995_v34 = vpop.f32.mrb[87].mxu0 }
 0x1d7   : > { %14581 = vst [vmem:[#allocation64_spill] sm:$0xff] %v9639_v25  ;;  %v4093_v33 = vmul.f32 %v14584_v18, %v9029_v14  ;;  %v6685_v17 = vsel %vm1595_vm0, %v6549_v42, 0.0  ;;  %3072 = vst.msk [vmem:[#allocation2 + $0x101] sm:$0xff] %vm1595_vm0, %v2456_v55  ;;  %v9654_v12 = vadd.f32 %v9025_v60, %v1993_v21  ;;  %v2459_v2 = vadd.f32 %v7757_v4, %v14586_v61  ;;  %v9657_v45 = vld [vmem:[#allocation2 + $0x82] sm:$0xff]  ;;  %v14588_v55 = vld [vmem:[#allocation56_spill] sm:$0xff] }
 0x1d8   : > { %v4610_v52 = vadd.f32 %v4482_v46, %v4222_v62  ;;  %6686 = vadd.xlane.f32.xlu0 %v6685_v17  ;;  %v5776_v18 = vadd.f32 %v5648_v40, %v5387_v0  ;;  %3070 = vst.msk [vmem:[#allocation2 + $0xf1] sm:$0xff] %vm1595_vm0, %v2448_v49  ;;  %v3833_v51 = vadd.f32 %v3705_v38, %v3317_v24  ;;  %v14587_v26 = vld [vmem:[#allocation55_spill] sm:$0xff]  ;;  %v14589_v21 = vld [vmem:[#allocation57_spill] sm:$0xff] }
 0x1d9   : > { %14585 = vst [vmem:[#allocation7_spill] sm:$0xff] %v9654_v12  ;;  %v4481_v42 = vmul.f32 %v14587_v26, %v9095_v50  ;;  %v4869_v46 = vmul.f32 %v14588_v55, %v9098_v16  ;;  %3073 = vst.msk [vmem:[#allocation2 + $0x109] sm:$0xff] %vm1595_vm0, %v2459_v2  ;;  %v5257_v4 = vmul.f32 %v14589_v21, %v9111_v22  ;;  %v14590_v38 = vld [vmem:[#allocation9_spill] sm:$0xff] }
 0x1da   : > { %v4998_v62 = vadd.f32 %v4870_v3, %v4610_v52  ;;  %v5646_v36 = vmul.f32 %v9122_v59, %v9647_v63  ;;  %v6034_v40 = vmul.f32 %v9125_v11, %v9649_v6  ;;  %v6164_v0 = vadd.f32 %v6036_v5, %v5776_v18  ;;  %v9676_v3 = vld [vmem:[#allocation2 + $0xa0] sm:$0xff] }
 0x1db   : > { %v4221_v24 = vadd.f32 %v4093_v33, %v3833_v51  ;;  %v9673_v49 = vmul.f32 %v9453_v19, %v9657_v45  ;;  %v2451_v17 = vadd.f32 %v2450_v53, %v14590_v38  ;;  %v3320_v61 = vmul.f32 %v9466_v32, %v14567_v41  ;;  %v9684_v5 = vld [vmem:[#allocation2 + $0xa1] sm:$0xff]  ;;  %v1998_v53 = vpop.f32.mrb[88].mxu0 }
 0x1dc   : > { %v5386_v52 = vadd.f32 %v5258_v29, %v4998_v62  ;;  %v3708_v2 = vmul.f32 %v9468_v10, %v9019_v47  ;;  %v4096_v34 = vmul.f32 %v9487_v56, %v9029_v14  ;;  %14591 = vst [vmem:[#allocation25_spill] sm:$0xff] %v9684_v5  ;;  %v9686_v33 = vld [vmem:[#allocation2 + $0xa2] sm:$0xff]  ;;  %v6552_v18 = vadd.f32 %v9608_v23, %v6164_v0  ;;  %v7760_v10 = vpop.f32.mrb[88].mxu1  ;;  %v2000_v23 = vpop.f32.mrb[89].mxu0  ;;  %v9718_v25 = vld [vmem:[#allocation2 + $0xba] sm:$0xff] }
 0x1dd   : > { %14592 = vst [vmem:[#allocation52_spill] sm:$0xff] %v9686_v33  ;;  %v4609_v51 = vadd.f32 %v4481_v42, %v4221_v24  ;;  %3071 = vst.msk [vmem:[#allocation2 + $0xf9] sm:$0xff] %vm1595_vm0, %v2451_v17  ;;  %v4484_v29 = vmul.f32 %v9537_v58, %v9095_v50  ;;  %v4872_v32 = vmul.f32 %v9542_v13, %v9098_v16  ;;  %v2463_v42 = vpop.f32.mrb[89].mxu1 }
 0x1de   : > { %v5775_v62 = vadd.f32 %v5647_v7, %v5386_v52  ;;  %v3836_v38 = vadd.f32 %v3708_v2, %v3320_v61  ;;  %v5260_v56 = vmul.f32 %v9552_v35, %v9111_v22  ;;  %v5649_v12 = vmul.f32 %v9122_v59, %v9676_v3  ;;  %v2001_v7 = vpop.f32.mrb[90].mxu0  ;;  %v9707_v52 = vpop.f32.mrb[90].mxu1  ;;  %14595 = vst [vmem:[#allocation56_spill] sm:$0xff] %v9718_v25 }
 0x1df   : > { %v6694_v0 = vsel %vm1595_vm0, %v6552_v18, 0.0  ;;  %v4997_v24 = vadd.f32 %v4869_v46, %v4609_v51  ;;  %v9701_v17 = vmul.f32 %v9125_v11, %v9684_v5  ;;  %v9705_v9 = vmul.f32 %v9453_v19, %v9686_v33  ;;  %v9714_v18 = vld [vmem:[#allocation2 + $0xb8] sm:$0xff]  ;;  %v2003_v8 = vpop.f32.mrb[91].mxu0  ;;  %v9720_v33 = vpop.f32.mrb[91].mxu1 }
 0x1e0   : > { %6695 = vadd.xlane.f32.xlu1 %v6694_v0  ;;  %v6163_v61 = vadd.f32 %v9630_v30, %v5775_v62  ;;  %v4224_v2 = vadd.f32 %v4096_v34, %v3836_v38  ;;  %v3323_v23 = vmul.f32 %v9479_v15, %v14567_v41  ;;  %v3711_v46 = vmul.f32 %v9481_v31, %v9019_v47  ;;  %v9716_v51 = vld [vmem:[#allocation2 + $0xb9] sm:$0xff] }
 0x1e1   : > { %14593 = vst [vmem:[#allocation11_spill] sm:$0xff] %v9714_v18  ;;  %14594 = vst [vmem:[#allocation55_spill] sm:$0xff] %v9716_v51  ;;  %v5385_v5 = vadd.f32 %v5257_v4, %v4997_v24  ;;  %v4099_v30 = vmul.f32 %v9483_v48, %v9029_v14  ;;  %v4487_v34 = vmul.f32 %v9580_v44, %v9095_v50 }
 0x1e2   : > { %v4875_v15 = vmul.f32 %v9582_v39, %v9098_v16  ;;  %v6551_v31 = vadd.f32 %v9634_v37, %v6163_v61  ;;  %v4612_v62 = vadd.f32 %v4484_v29, %v4224_v2  ;;  %v3839_v38 = vadd.f32 %v3711_v46, %v3323_v23  ;;  %v14598_v23 = vld [vmem:[#allocation13_spill] sm:$0xff] }
 0x1e3   : > { %v5263_v0 = vmul.f32 %v9587_v54, %v9111_v22  ;;  %v5774_v8 = vadd.f32 %v5646_v36, %v5385_v5  ;;  %v5652_v4 = vmul.f32 %v9122_v59, %v9714_v18  ;;  %v9735_v48 = vmul.f32 %v9125_v11, %v9716_v51  ;;  %v14597_v5 = vld [vmem:[#allocation16_spill] sm:$0xff]  ;;  %v9753_v54 = vpop.f32.mrb[92].mxu1 }
 0x1e4   : > { %v9739_v24 = vmul.f32 %v9453_v19, %v9718_v25  ;;  %v6691_v39 = vsel %vm1595_vm0, %v6551_v31, 0.0  ;;  %v5000_v37 = vadd.f32 %v4872_v32, %v4612_v62  ;;  %v4227_v29 = vadd.f32 %v4099_v30, %v3839_v38  ;;  %v9749_v18 = vld [vmem:[#allocation2 + $0xb0] sm:$0xff]  ;;  %v9751_v25 = vpop.f32.mrb[92].mxu0 }
 0x1e5   : > { %v9743_v61 = vadd.f32 %v9025_v60, %v1998_v53  ;;  %6692 = vadd.xlane.f32.xlu0 %v6691_v39  ;;  %v6162_v36 = vadd.f32 %v6034_v40, %v5774_v8  ;;  %v2472_v2 = vadd.f32 %v7760_v10, %v14597_v5  ;;  %v2464_v46 = vadd.f32 %v2463_v42, %v14598_v23  ;;  %v9759_v40 = vld [vmem:[#allocation2 + $0xb1] sm:$0xff]  ;;  %v2008_v10 = vpop.f32.mrb[93].mxu0 }
 0x1e6   : > { %v3322_v51 = vmul.f32 %v9507_v20, %v14567_v41  ;;  %v5388_v32 = vadd.f32 %v5260_v56, %v5000_v37  ;;  %v4615_v30 = vadd.f32 %v4487_v34, %v4227_v29  ;;  %v3710_v60 = vmul.f32 %v9471_v43, %v9019_v47  ;;  %v9761_v53 = vld [vmem:[#allocation2 + $0xb2] sm:$0xff]  ;;  %v9763_v20 = vpop.f32.mrb[93].mxu1  ;;  %v9774_v34 = vpop.f32.mrb[94].mxu0  ;;  %v9804_v10 = vld [vmem:[#allocation2 + $0xa9] sm:$0xff] }
 0x1e7   : > { %14596 = vst [vmem:[#allocation57_spill] sm:$0xff] %v9743_v61  ;;  %v4098_v39 = vmul.f32 %v9509_v28, %v9029_v14  ;;  %v6550_v42 = vadd.f32 %v9673_v49, %v6162_v36  ;;  %3076 = vst.msk [vmem:[#allocation2 + $0x129] sm:$0xff] %vm1595_vm0, %v2472_v2  ;;  %v4486_v56 = vmul.f32 %v9602_v27, %v9095_v50  ;;  %v9776_v31 = vpop.f32.mrb[94].mxu1  ;;  %v2011_v37 = vpop.f32.mrb[95].mxu0 }
 0x1e8   : > { %3074 = vst.msk [vmem:[#allocation2 + $0x119] sm:$0xff] %vm1595_vm0, %v2464_v46  ;;  %v4874_v43 = vmul.f32 %v9612_v1, %v9098_v16  ;;  %v5262_v28 = vmul.f32 %v9614_v57, %v9111_v22  ;;  %v5777_v62 = vadd.f32 %v5649_v12, %v5388_v32  ;;  %v5003_v38 = vadd.f32 %v4875_v15, %v4615_v30  ;;  %v9780_v29 = vpop.f32.mrb[95].mxu1  ;;  %v9794_v12 = vld [vmem:[%s14310_s2] ss:$0 sm:$0xff]  ;;  %v14600_v32 = vld [vmem:[#allocation18_spill] sm:$0xff] }
 0x1e9   : > { %v3838_v49 = vadd.f32 %v3710_v60, %v3322_v51  ;;  %v5651_v8 = vmul.f32 %v9122_v59, %v9749_v18  ;;  %v6688_v36 = vsel %vm1595_vm0, %v6550_v42, 0.0  ;;  %v9785_v5 = vmul.f32 %v9125_v11, %v9759_v40  ;;  %v9802_v60 = vld [vmem:[#allocation2 + $0xa8] sm:$0xff] }
 0x1ea   : > { %v9789_v2 = vmul.f32 %v9453_v19, %v9761_v53  ;;  %v9797_v51 = vadd.f32 %v9794_v12, %v2001_v7  ;;  %6689 = vadd.xlane.f32.xlu1 %v6688_v36  ;;  %v6165_v15 = vadd.f32 %v9701_v17, %v5777_v62  ;;  %v5391_v23 = vadd.f32 %v5263_v0, %v5003_v38  ;;  %v9814_v0 = vld [vmem:[#allocation2 + $0xaa] sm:$0xff]  ;;  %v9828_v36 = vpop.f32.mrb[96].mxu0 }
 0x1eb   : > { %v4226_v46 = vadd.f32 %v4098_v39, %v3838_v49  ;;  %v2475_v30 = vadd.f32 %v9707_v52, %v14600_v32  ;;  %v3321_v42 = vmul.f32 %v14587_v26, %v14567_v41  ;;  %v3709_v37 = vmul.f32 %v14588_v55, %v9019_v47  ;;  %14601 = vst [vmem:[#allocation16_spill] sm:$0xff] %v9828_v36 }
 0x1ec   : > { %14599 = vst [vmem:[#allocation9_spill] sm:$0xff] %v9797_v51  ;;  %v4097_v7 = vmul.f32 %v14589_v21, %v9029_v14  ;;  %v4485_v17 = vmul.f32 %v9647_v63, %v9095_v50  ;;  %v6553_v52 = vadd.f32 %v9705_v9, %v6165_v15  ;;  %v5780_v39 = vadd.f32 %v5652_v4, %v5391_v23  ;;  %v9830_v9 = vpop.f32.mrb[96].mxu1 }
 0x1ed   : > { %v4614_v62 = vadd.f32 %v4486_v56, %v4226_v46  ;;  %3077 = vst.msk [vmem:[#allocation2 + $0x131] sm:$0xff] %vm1595_vm0, %v2475_v30  ;;  %v4873_v26 = vmul.f32 %v9649_v6, %v9098_v16  ;;  %v3837_v38 = vadd.f32 %v3709_v37, %v3321_v42  ;;  %v5261_v55 = vmul.f32 %v9657_v45, %v9111_v22  ;;  %v2016_v46 = vpop.f32.mrb[97].mxu0  ;;  %v9838_v32 = vpop.f32.mrb[97].mxu1  ;;  %v14604_v42 = vld [vmem:[#allocation15_spill] sm:$0xff] }
 0x1ee   : > { %v5650_v21 = vmul.f32 %v9122_v59, %v9802_v60  ;;  %v9826_v49 = vmul.f32 %v9125_v11, %v9804_v10  ;;  %14602 = vst [vmem:[#allocation13_spill] sm:$0xff] %v9830_v9  ;;  %v6697_v4 = vsel %vm1595_vm0, %v6553_v52, 0.0  ;;  %v6168_v56 = vadd.f32 %v9735_v48, %v5780_v39  ;;  %14603 = vst [vmem:[#allocation18_spill] sm:$0xff] %v9838_v32  ;;  %v9846_v48 = vld [vmem:[#allocation2 + $0xc8] sm:$0xff]  ;;  %v9850_v39 = vpop.f32.mrb[98].mxu0 }
 0x1ef   : > { %v5002_v15 = vadd.f32 %v4874_v43, %v4614_v62  ;;  %v9836_v23 = vmul.f32 %v9453_v19, %v9814_v0  ;;  %6698 = vadd.xlane.f32.xlu0 %v6697_v4  ;;  %v4225_v30 = vadd.f32 %v4097_v7, %v3837_v38  ;;  %v2467_v37 = vadd.f32 %v9720_v33, %v14604_v42  ;;  %v9848_v43 = vld [vmem:[#allocation2 + $0xc9] sm:$0xff]  ;;  %v9852_v62 = vpop.f32.mrb[98].mxu1 }
 0x1f0   : > { %v3324_v51 = vmul.f32 %v9537_v58, %v14567_v41  ;;  %v3712_v52 = vmul.f32 %v9542_v13, %v9019_v47  ;;  %14605 = vst [vmem:[#allocation15_spill] sm:$0xff] %v9848_v43  ;;  %14606 = vst [vmem:[#allocation65_spill] sm:$0xff] %v9850_v39  ;;  %v6556_v4 = vadd.f32 %v9739_v24, %v6168_v56  ;;  %v9859_v38 = vld [vmem:[#allocation2 + $0xca] sm:$0xff]  ;;  %v2019_v13 = vpop.f32.mrb[99].mxu0  ;;  %v9861_v46 = vpop.f32.mrb[99].mxu1 }
 0x1f1   : > { %14607 = vst [vmem:[#allocation66_spill] sm:$0xff] %v9852_v62  ;;  %v5390_v7 = vadd.f32 %v5262_v28, %v5002_v15  ;;  %v4100_v33 = vmul.f32 %v9552_v35, %v9029_v14  ;;  %v4488_v58 = vmul.f32 %v9676_v3, %v9095_v50  ;;  %14608 = vst [vmem:[#allocation67_spill] sm:$0xff] %v9859_v38  ;;  %v14610_v62 = vld [vmem:[#allocation25_spill] sm:$0xff]  ;;  %v14611_v24 = vld [vmem:[#allocation52_spill] sm:$0xff] }
 0x1f2   : > { %14609 = vst [vmem:[#allocation68_spill] sm:$0xff] %v9861_v46  ;;  %v4613_v42 = vadd.f32 %v4485_v17, %v4225_v30  ;;  %3075 = vst.msk [vmem:[#allocation2 + $0x121] sm:$0xff] %vm1595_vm0, %v2467_v37  ;;  %v3840_v61 = vadd.f32 %v3712_v52, %v3324_v51  ;;  %v4876_v39 = vmul.f32 %v14610_v62, %v9098_v16  ;;  %v6706_v35 = vsel %vm1595_vm0, %v6556_v4, 0.0  ;;  %v9879_v52 = vld [vmem:[#allocation2 + $0xe0] sm:$0xff] }
 0x1f3   : > { %v5264_v28 = vmul.f32 %v14611_v24, %v9111_v22  ;;  %v5779_v56 = vadd.f32 %v5651_v8, %v5390_v7  ;;  %v5653_v15 = vmul.f32 %v9122_v59, %v9846_v48  ;;  %v6041_v13 = vmul.f32 %v9125_v11, %v9848_v43  ;;  %6707 = vadd.xlane.f32.xlu1 %v6706_v35  ;;  %v9881_v4 = vld [vmem:[#allocation2 + $0xe1] sm:$0xff]  ;;  %v14612_v7 = vld [vmem:[#allocation61_spill] sm:$0xff] }
 0x1f4   : > { %v5001_v17 = vadd.f32 %v4873_v26, %v4613_v42  ;;  %v4228_v30 = vadd.f32 %v4100_v33, %v3840_v61  ;;  %v9875_v51 = vmul.f32 %v9453_v19, %v9859_v38  ;;  %v3327_v37 = vmul.f32 %v9580_v44, %v14567_v41  ;;  %v14613_v35 = vld [vmem:[#allocation62_spill] sm:$0xff]  ;;  %v14614_v61 = vld [vmem:[#allocation11_spill] sm:$0xff]  ;;  %v14616_v38 = vld [vmem:[#allocation56_spill] sm:$0xff] }
 0x1f5   : > { %v6167_v8 = vadd.f32 %v9785_v5, %v5779_v56  ;;  %v3715_v46 = vmul.f32 %v14612_v7, %v9019_v47  ;;  %v4103_v26 = vmul.f32 %v14613_v35, %v9029_v14  ;;  %v4491_v33 = vmul.f32 %v14614_v61, %v9095_v50  ;;  %v9890_v42 = vld [vmem:[#allocation2 + $0xe2] sm:$0xff]  ;;  %v9896_v5 = vpop.f32.mrb[100].mxu0  ;;  %v9898_v56 = vpop.f32.mrb[100].mxu1 }
 0x1f6   : > { %v5389_v32 = vadd.f32 %v5261_v55, %v5001_v17  ;;  %v4616_v9 = vadd.f32 %v4488_v58, %v4228_v30  ;;  %v14615_v44 = vld [vmem:[#allocation55_spill] sm:$0xff]  ;;  %v5267_v43 = vmul.f32 %v14616_v38, %v9111_v22  ;;  %14617 = vst [vmem:[#allocation25_spill] sm:$0xff] %v9896_v5  ;;  %14618 = vst [vmem:[#allocation52_spill] sm:$0xff] %v9898_v56  ;;  %v2024_v58 = vpop.f32.mrb[101].mxu0  ;;  %v9907_v17 = vpop.f32.mrb[101].mxu1 }
 0x1f7   : > { %v4879_v36 = vmul.f32 %v14615_v44, %v9098_v16  ;;  %v6555_v7 = vadd.f32 %v9789_v2, %v6167_v8  ;;  %v3843_v35 = vadd.f32 %v3715_v46, %v3327_v37  ;;  %v5656_v61 = vmul.f32 %v9122_v59, %v9879_v52  ;;  %14619 = vst [vmem:[#allocation61_spill] sm:$0xff] %v9907_v17  ;;  %v9917_v46 = vpop.f32.mrb[102].mxu0  ;;  %v9919_v37 = vpop.f32.mrb[102].mxu1  ;;  %v14623_v58 = vld [vmem:[#allocation24_spill] sm:$0xff] }
 0x1f8   : > { %v9905_v55 = vmul.f32 %v9125_v11, %v9881_v4  ;;  %v5778_v30 = vadd.f32 %v5650_v21, %v5389_v32  ;;  %v5004_v44 = vadd.f32 %v4876_v39, %v4616_v9  ;;  %v9911_v5 = vmul.f32 %v9453_v19, %v9890_v42  ;;  %14621 = vst [vmem:[#allocation56_spill] sm:$0xff] %v9917_v46  ;;  %v14624_v21 = vld [vmem:[#allocation20_spill] sm:$0xff]  ;;  %v2027_v32 = vpop.f32.mrb[103].mxu0  ;;  %v9926_v39 = vpop.f32.mrb[103].mxu1 }
 0x1f9   : > { %v9915_v2 = vadd.f32 %v9794_v12, %v9751_v25  ;;  %14622 = vst [vmem:[#allocation69_spill] sm:$0xff] %v9919_v37  ;;  %v6703_v8 = vsel %vm1595_vm0, %v6555_v7, 0.0  ;;  %v4231_v56 = vadd.f32 %v4103_v26, %v3843_v35  ;;  %v2488_v17 = vadd.f32 %v9753_v54, %v14623_v58  ;;  %14625 = vst [vmem:[#allocation24_spill] sm:$0xff] %v9926_v39  ;;  %v9933_v26 = vld [vmem:[#allocation2 + $0xd8] sm:$0xff]  ;;  %v14651_v39 = vld [vmem:[#allocation18_spill] sm:$0xff] }
 0x1fa   : > { %v2480_v9 = vadd.f32 %v9763_v20, %v14624_v21  ;;  %6704 = vadd.xlane.f32.xlu0 %v6703_v8  ;;  %v6166_v25 = vadd.f32 %v9826_v49, %v5778_v30  ;;  %v3326_v46 = vmul.f32 %v9602_v27, %v14567_v41  ;;  %v3714_v7 = vmul.f32 %v9612_v1, %v9019_v47  ;;  %v9935_v35 = vld [vmem:[#allocation2 + $0xd9] sm:$0xff] }
 0x1fb   : > { %14620 = vst [vmem:[#allocation62_spill] sm:$0xff] %v9915_v2  ;;  %v5392_v2 = vadd.f32 %v5264_v28, %v5004_v44  ;;  %v9937_v54 = vld [vmem:[#allocation2 + $0xda] sm:$0xff]  ;;  %v4619_v20 = vadd.f32 %v4491_v33, %v4231_v56  ;;  %3080 = vst.msk [vmem:[#allocation2 + $0x151] sm:$0xff] %vm1595_vm0, %v2488_v17  ;;  %v4102_v49 = vmul.f32 %v9614_v57, %v9029_v14 }
 0x1fc   : > { %3078 = vst.msk [vmem:[#allocation2 + $0x141] sm:$0xff] %vm1595_vm0, %v2480_v9  ;;  %v4490_v27 = vmul.f32 %v9749_v18, %v9095_v50  ;;  %v4878_v1 = vmul.f32 %v9759_v40, %v9098_v16  ;;  %v6554_v28 = vadd.f32 %v9836_v23, %v6166_v25  ;;  %v3842_v30 = vadd.f32 %v3714_v7, %v3326_v46  ;;  %v9967_v46 = vpop.f32.mrb[104].mxu1  ;;  %v14629_v9 = vld [vmem:[#allocation27_spill] sm:$0xff] }
 0x1fd   : > { %v5781_v44 = vadd.f32 %v5653_v15, %v5392_v2  ;;  %v5266_v33 = vmul.f32 %v9761_v53, %v9111_v22  ;;  %v5007_v56 = vadd.f32 %v4879_v36, %v4619_v20  ;;  %v5655_v17 = vmul.f32 %v9122_v59, %v9933_v26  ;;  %v9965_v36 = vpop.f32.mrb[104].mxu0  ;;  %14628 = vst [vmem:[#allocation71_spill] sm:$0xff] %v9967_v46  ;;  %v9975_v7 = vld [vmem:[#allocation2 + $0xd0] sm:$0xff] }
 0x1fe   : > { %v9954_v57 = vmul.f32 %v9125_v11, %v9935_v35  ;;  %v9958_v8 = vmul.f32 %v9453_v19, %v9937_v54  ;;  %v6700_v58 = vsel %vm1595_vm0, %v6554_v28, 0.0  ;;  %v4230_v15 = vadd.f32 %v4102_v49, %v3842_v30  ;;  %14627 = vst [vmem:[#allocation70_spill] sm:$0xff] %v9965_v36  ;;  %v9977_v20 = vld [vmem:[#allocation2 + $0xd1] sm:$0xff]  ;;  %v9979_v49 = vpop.f32.mrb[105].mxu1 }
 0x1ff   : > { %v6169_v23 = vadd.f32 %v6041_v13, %v5781_v44  ;;  %v9963_v2 = vadd.f32 %v9794_v12, %v9774_v34  ;;  %6701 = vadd.xlane.f32.xlu1 %v6700_v58  ;;  %v5395_v21 = vadd.f32 %v5267_v43, %v5007_v56  ;;  %v2491_v32 = vadd.f32 %v9776_v31, %v14629_v9  ;;  %v2032_v34 = vpop.f32.mrb[105].mxu0 }
 0x200   : > { %v3325_v25 = vmul.f32 %v9647_v63, %v14567_v41  ;;  %v3713_v13 = vmul.f32 %v9649_v6, %v9019_v47  ;;  %14630 = vst [vmem:[#allocation27_spill] sm:$0xff] %v9979_v49  ;;  %v4618_v44 = vadd.f32 %v4490_v27, %v4230_v15  ;;  %v4101_v43 = vmul.f32 %v9657_v45, %v9029_v14  ;;  %v9986_v63 = vld [vmem:[#allocation2 + $0xd2] sm:$0xff]  ;;  %v9988_v30 = vpop.f32.mrb[106].mxu0  ;;  %v9990_v6 = vpop.f32.mrb[106].mxu1  ;;  %v10057_v49 = vld [vmem:[#allocation2 + $0x10a] sm:$0xff] }
 0x201   : > { %14626 = vst [vmem:[#allocation20_spill] sm:$0xff] %v9963_v2  ;;  %v6557_v28 = vadd.f32 %v9875_v51, %v6169_v23  ;;  %v4489_v31 = vmul.f32 %v9802_v60, %v9095_v50  ;;  %14631 = vst [vmem:[#allocation72_spill] sm:$0xff] %v9988_v30  ;;  %v5784_v56 = vadd.f32 %v5656_v61, %v5395_v21  ;;  %v2035_v45 = vpop.f32.mrb[107].mxu0  ;;  %v9997_v23 = vpop.f32.mrb[107].mxu1  ;;  %v10011_v2 = vld [vmem:[#allocation2 + $0xf0] sm:$0xff] }
 0x202   : > { %14632 = vst [vmem:[#allocation73_spill] sm:$0xff] %v9990_v6  ;;  %3081 = vst.msk [vmem:[#allocation2 + $0x159] sm:$0xff] %vm1595_vm0, %v2491_v32  ;;  %v3841_v58 = vadd.f32 %v3713_v13, %v3325_v25  ;;  %v4877_v51 = vmul.f32 %v9804_v10, %v9098_v16  ;;  %v5265_v27 = vmul.f32 %v9814_v0, %v9111_v22  ;;  %v14634_v13 = vld [vmem:[#allocation22_spill] sm:$0xff]  ;;  %v10033_v6 = vpop.f32.mrb[108].mxu0  ;;  %v10055_v30 = vld [vmem:[#allocation2 + $0x109] sm:$0xff] }
 0x203   : > { %14633 = vst [vmem:[#allocation74_spill] sm:$0xff] %v9997_v23  ;;  %v6709_v15 = vsel %vm1595_vm0, %v6557_v28, 0.0  ;;  %v5006_v9 = vadd.f32 %v4878_v1, %v4618_v44  ;;  %v5654_v34 = vmul.f32 %v9122_v59, %v9975_v7  ;;  %v6042_v61 = vmul.f32 %v9125_v11, %v9977_v20  ;;  %14637 = vst [vmem:[#allocation22_spill] sm:$0xff] %v10033_v6 }
 0x204   : > { %6710 = vadd.xlane.f32.xlu0 %v6709_v15  ;;  %v6172_v21 = vadd.f32 %v9905_v55, %v5784_v56  ;;  %v4229_v32 = vadd.f32 %v4101_v43, %v3841_v58  ;;  %v10007_v25 = vmul.f32 %v9453_v19, %v9986_v63  ;;  %v2483_v45 = vadd.f32 %v9780_v29, %v14634_v13  ;;  %v10019_v43 = vld [vmem:[#allocation2 + $0xf1] sm:$0xff]  ;;  %v14636_v13 = vld [vmem:[#allocation67_spill] sm:$0xff] }
 0x205   : > { %v5394_v1 = vadd.f32 %v5266_v33, %v5006_v9  ;;  %v3328_v28 = vmul.f32 %v9676_v3, %v14567_v41  ;;  %v3716_v44 = vmul.f32 %v14610_v62, %v9019_v47  ;;  %v4104_v55 = vmul.f32 %v14611_v24, %v9029_v14  ;;  %v10021_v56 = vld [vmem:[#allocation2 + $0xf2] sm:$0xff]  ;;  %v14635_v3 = vld [vmem:[#allocation15_spill] sm:$0xff] }
 0x206   : > { %v6560_v58 = vadd.f32 %v9911_v5, %v6172_v21  ;;  %v4617_v15 = vadd.f32 %v4489_v31, %v4229_v32  ;;  %3079 = vst.msk [vmem:[#allocation2 + $0x149] sm:$0xff] %vm1595_vm0, %v2483_v45  ;;  %v4492_v29 = vmul.f32 %v9846_v48, %v9095_v50  ;;  %v4880_v33 = vmul.f32 %v14635_v3, %v9098_v16  ;;  %v10035_v5 = vpop.f32.mrb[108].mxu1  ;;  %v2040_v45 = vpop.f32.mrb[109].mxu0 }
 0x207   : > { %v5783_v9 = vadd.f32 %v5655_v17, %v5394_v1  ;;  %v3844_v62 = vadd.f32 %v3716_v44, %v3328_v28  ;;  %v5268_v24 = vmul.f32 %v14636_v13, %v9111_v22  ;;  %v5657_v23 = vmul.f32 %v9122_v59, %v10011_v2  ;;  %14638 = vst [vmem:[#allocation15_spill] sm:$0xff] %v10035_v5  ;;  %v10046_v1 = vpop.f32.mrb[109].mxu1  ;;  %v14640_v5 = vld [vmem:[#allocation11_spill] sm:$0xff]  ;;  %v10059_v46 = vpop.f32.mrb[110].mxu0 }
 0x208   : > { %v6718_v31 = vsel %vm1595_vm0, %v6560_v58, 0.0  ;;  %v5005_v21 = vadd.f32 %v4877_v51, %v4617_v15  ;;  %v10040_v32 = vmul.f32 %v9125_v11, %v10019_v43  ;;  %v10044_v17 = vmul.f32 %v9453_v19, %v10021_v56  ;;  %14639 = vst [vmem:[#allocation67_spill] sm:$0xff] %v10046_v1  ;;  %v14641_v51 = vld [vmem:[#allocation55_spill] sm:$0xff]  ;;  %14642 = vst [vmem:[#allocation11_spill] sm:$0xff] %v10057_v49  ;;  %v10061_v45 = vpop.f32.mrb[110].mxu1 }
 0x209   : > { %6719 = vadd.xlane.f32.xlu1 %v6718_v31  ;;  %v6171_v28 = vadd.f32 %v9954_v57, %v5783_v9  ;;  %v4232_v44 = vadd.f32 %v4104_v55, %v3844_v62  ;;  %v3331_v6 = vmul.f32 %v14640_v5, %v14567_v41  ;;  %v3719_v58 = vmul.f32 %v14641_v51, %v9019_v47  ;;  %v10053_v15 = vld [vmem:[#allocation2 + $0x108] sm:$0xff]  ;;  %v2043_v62 = vpop.f32.mrb[111].mxu0  ;;  %v10069_v5 = vpop.f32.mrb[111].mxu1 }
 0x20a   : > { %14643 = vst [vmem:[#allocation55_spill] sm:$0xff] %v10059_v46  ;;  %14644 = vst [vmem:[#allocation75_spill] sm:$0xff] %v10061_v45  ;;  %v5393_v31 = vadd.f32 %v5265_v27, %v5005_v21  ;;  %v4107_v57 = vmul.f32 %v14616_v38, %v9029_v14  ;;  %v4495_v55 = vmul.f32 %v9879_v52, %v9095_v50  ;;  %v14650_v46 = vld [vmem:[#allocation33_spill] sm:$0xff] }
 0x20b   : > { %v4883_v9 = vmul.f32 %v9881_v4, %v9098_v16  ;;  %14645 = vst [vmem:[#allocation76_spill] sm:$0xff] %v10069_v5  ;;  %v6559_v51 = vadd.f32 %v9958_v8, %v6171_v28  ;;  %v4620_v1 = vadd.f32 %v4492_v29, %v4232_v44  ;;  %v3847_v36 = vadd.f32 %v3719_v58, %v3331_v6  ;;  %v14646_v6 = vld [vmem:[#allocation16_spill] sm:$0xff]  ;;  %v14648_v44 = vld [vmem:[#allocation50_spill] sm:$0xff]  ;;  %v14649_v58 = vld [vmem:[#allocation13_spill] sm:$0xff] }
 0x20c   : > { %v5271_v45 = vmul.f32 %v9890_v42, %v9111_v22  ;;  %v5782_v27 = vadd.f32 %v5654_v34, %v5393_v31  ;;  %v5660_v38 = vmul.f32 %v9122_v59, %v10053_v15  ;;  %v10078_v21 = vmul.f32 %v9125_v11, %v10055_v30 }
 0x20d   : > { %v10082_v62 = vmul.f32 %v9453_v19, %v10057_v49  ;;  %v6715_v5 = vsel %vm1595_vm0, %v6559_v51, 0.0  ;;  %v5008_v8 = vadd.f32 %v4880_v33, %v4620_v1  ;;  %v4235_v29 = vadd.f32 %v4107_v57, %v3847_v36  ;;  %v10095_v49 = vld [vmem:[#allocation2 + $0x100] sm:$0xff] }
 0x20e   : > { %v10087_v28 = vadd.f32 %v9794_v12, %v14646_v6  ;;  %6716 = vadd.xlane.f32.xlu0 %v6715_v5  ;;  %v6170_v34 = vadd.f32 %v6042_v61, %v5782_v27  ;;  %v2504_v31 = vadd.f32 %v14649_v58, %v14648_v44  ;;  %v2496_v37 = vadd.f32 %v14651_v39, %v14650_v46  ;;  %v10101_v61 = vld [vmem:[#allocation2 + $0x101] sm:$0xff]  ;;  %v10105_v5 = vpop.f32.mrb[112].mxu0  ;;  %v10107_v39 = vpop.f32.mrb[112].mxu1 }
 0x20f   : > { %v3330_v19 = vmul.f32 %v9749_v18, %v14567_v41  ;;  %v5396_v51 = vadd.f32 %v5268_v24, %v5008_v8  ;;  %v4623_v33 = vadd.f32 %v4495_v55, %v4235_v29  ;;  %v3718_v36 = vmul.f32 %v9759_v40, %v9019_v47  ;;  %v10103_v57 = vld [vmem:[#allocation2 + $0x102] sm:$0xff]  ;;  %14652 = vst [vmem:[#allocation50_spill] sm:$0xff] %v10105_v5  ;;  %v2048_v24 = vpop.f32.mrb[113].mxu0  ;;  %v10118_v55 = vpop.f32.mrb[113].mxu1 }
 0x210   : > { %14647 = vst [vmem:[#allocation16_spill] sm:$0xff] %v10087_v28  ;;  %v4106_v1 = vmul.f32 %v9761_v53, %v9029_v14  ;;  %14653 = vst [vmem:[#allocation13_spill] sm:$0xff] %v10107_v39  ;;  %v6558_v18 = vadd.f32 %v10007_v25, %v6170_v34  ;;  %v4494_v40 = vmul.f32 %v9933_v26, %v9095_v50  ;;  %v10122_v6 = vpop.f32.mrb[114].mxu0  ;;  %v10134_v58 = vld [vmem:[%s14311_s3 + $0x8] ss:$0 sm:$0xff]  ;;  %v14660_v24 = vld [vmem:[#allocation51_spill] sm:$0xff] }
 0x211   : > { %3084 = vst.msk [vmem:[#allocation2 + $0x179] sm:$0xff] %vm1595_vm0, %v2504_v31  ;;  %3082 = vst.msk [vmem:[#allocation2 + $0x169] sm:$0xff] %vm1595_vm0, %v2496_v37  ;;  %v4882_v53 = vmul.f32 %v9935_v35, %v9098_v16  ;;  %v5270_v46 = vmul.f32 %v9937_v54, %v9111_v22  ;;  %v5785_v27 = vadd.f32 %v5657_v23, %v5396_v51  ;;  %v10124_v37 = vpop.f32.mrb[114].mxu1  ;;  %v10151_v28 = vld [vmem:[#allocation2 + $0xf9] sm:$0xff]  ;;  %v14677_v5 = vld [vmem:[#allocation58_spill] sm:$0xff] }
 0x212   : > { %14654 = vst [vmem:[#allocation33_spill] sm:$0xff] %v10118_v55  ;;  %v5011_v8 = vadd.f32 %v4883_v9, %v4623_v33  ;;  %v3846_v29 = vadd.f32 %v3718_v36, %v3330_v19  ;;  %v5659_v25 = vmul.f32 %v9122_v59, %v10095_v49  ;;  %14655 = vst [vmem:[#allocation18_spill] sm:$0xff] %v10122_v6  ;;  %v6712_v34 = vsel %vm1595_vm0, %v6558_v18, 0.0  ;;  %v14657_v9 = vld [vmem:[#allocation65_spill] sm:$0xff]  ;;  %v2051_v19 = vpop.f32.mrb[115].mxu0  ;;  %v10144_v51 = vpop.f32.mrb[115].mxu1 }
 0x213   : > { %14656 = vst [vmem:[#allocation77_spill] sm:$0xff] %v10124_v37  ;;  %v10129_v44 = vmul.f32 %v9125_v11, %v10101_v61  ;;  %v10138_v23 = vmul.f32 %v10134_v58, %v10103_v57  ;;  %v10142_v31 = vadd.f32 %v9794_v12, %v14657_v9  ;;  %14659 = vst [vmem:[#allocation78_spill] sm:$0xff] %v10144_v51  ;;  %6713 = vadd.xlane.f32.xlu1 %v6712_v34  ;;  %v14661_v37 = vld [vmem:[#allocation66_spill] sm:$0xff]  ;;  %v10149_v55 = vld [vmem:[#allocation2 + $0xf8] sm:$0xff]  ;;  %v10183_v19 = vpop.f32.mrb[116].mxu1 }
 0x214   : > { %v6173_v33 = vadd.f32 %v10040_v32, %v5785_v27  ;;  %v5399_v36 = vadd.f32 %v5271_v45, %v5011_v8  ;;  %v4234_v18 = vadd.f32 %v4106_v1, %v3846_v29  ;;  %v2507_v6 = vadd.f32 %v14661_v37, %v14660_v24  ;;  %v10161_v45 = vld [vmem:[#allocation2 + $0xfa] sm:$0xff]  ;;  %14663 = vst [vmem:[#allocation66_spill] sm:$0xff] %v10183_v19 }
 0x215   : > { %14658 = vst [vmem:[#allocation65_spill] sm:$0xff] %v10142_v31  ;;  %v3329_v39 = vmul.f32 %v9802_v60, %v14567_v41  ;;  %v3717_v9 = vmul.f32 %v9804_v10, %v9019_v47  ;;  %v4105_v34 = vmul.f32 %v9814_v0, %v9029_v14  ;;  %v4493_v32 = vmul.f32 %v9975_v7, %v9095_v50  ;;  %v14674_v51 = vld [vmem:[#allocation25_spill] sm:$0xff] }
 0x216   : > { %v6561_v1 = vadd.f32 %v10044_v17, %v6173_v33  ;;  %v5788_v27 = vadd.f32 %v5660_v38, %v5399_v36  ;;  %v4622_v8 = vadd.f32 %v4494_v40, %v4234_v18  ;;  %3085 = vst.msk [vmem:[#allocation2 + $0x181] sm:$0xff] %vm1595_vm0, %v2507_v6  ;;  %v4881_v60 = vmul.f32 %v9977_v20, %v9098_v16  ;;  %v14664_v36 = vld [vmem:[#allocation49_spill] sm:$0xff]  ;;  %v14665_v18 = vld [vmem:[#allocation68_spill] sm:$0xff] }
 0x217   : > { %v3845_v29 = vadd.f32 %v3717_v9, %v3329_v39  ;;  %v5269_v10 = vmul.f32 %v9986_v63, %v9111_v22  ;;  %v5658_v0 = vmul.f32 %v9122_v59, %v10149_v55  ;;  %v10173_v37 = vmul.f32 %v9125_v11, %v10151_v28  ;;  %v10181_v39 = vpop.f32.mrb[116].mxu0 }
 0x218   : > { %v6721_v17 = vsel %vm1595_vm0, %v6561_v1, 0.0  ;;  %v6176_v38 = vadd.f32 %v10078_v21, %v5788_v27  ;;  %v5010_v40 = vadd.f32 %v4882_v53, %v4622_v8  ;;  %v10179_v6 = vmul.f32 %v10134_v58, %v10161_v45  ;;  %14662 = vst [vmem:[#allocation51_spill] sm:$0xff] %v10181_v39  ;;  %v10191_v53 = vld [vmem:[#allocation2 + $0x118] sm:$0xff]  ;;  %v2056_v27 = vpop.f32.mrb[117].mxu0  ;;  %v10195_v8 = vpop.f32.mrb[117].mxu1 }
 0x219   : > { %6722 = vadd.xlane.f32.xlu0 %v6721_v17  ;;  %v4233_v33 = vadd.f32 %v4105_v34, %v3845_v29  ;;  %v2499_v24 = vadd.f32 %v14665_v18, %v14664_v36  ;;  %v3332_v9 = vmul.f32 %v9846_v48, %v14567_v41  ;;  %v3720_v21 = vmul.f32 %v14635_v3, %v9019_v47  ;;  %v10193_v1 = vld [vmem:[#allocation2 + $0x119] sm:$0xff]  ;;  %v10204_v36 = vpop.f32.mrb[118].mxu0  ;;  %v10206_v3 = vpop.f32.mrb[118].mxu1 }
 0x21a   : > { %14666 = vst [vmem:[#allocation49_spill] sm:$0xff] %v10195_v8  ;;  %v6564_v19 = vadd.f32 %v10082_v62, %v6176_v38  ;;  %v5398_v17 = vadd.f32 %v5270_v46, %v5010_v40  ;;  %v4108_v34 = vmul.f32 %v14636_v13, %v9029_v14  ;;  %v4496_v29 = vmul.f32 %v10011_v2, %v9095_v50  ;;  %v10202_v48 = vld [vmem:[#allocation2 + $0x11a] sm:$0xff]  ;;  %v2059_v13 = vpop.f32.mrb[119].mxu0  ;;  %v10213_v38 = vpop.f32.mrb[119].mxu1 }
 0x21b   : > { %14667 = vst [vmem:[#allocation68_spill] sm:$0xff] %v10204_v36  ;;  %14668 = vst [vmem:[#allocation79_spill] sm:$0xff] %v10206_v3  ;;  %v4621_v18 = vadd.f32 %v4493_v32, %v4233_v33  ;;  %v3848_v27 = vadd.f32 %v3720_v21, %v3332_v9  ;;  %v4884_v62 = vmul.f32 %v10019_v43, %v9098_v16  ;;  %v10226_v13 = vld [vmem:[#allocation2 + $0x130] sm:$0xff]  ;;  %v10250_v39 = vpop.f32.mrb[120].mxu0 }
 0x21c   : > { %3083 = vst.msk [vmem:[#allocation2 + $0x171] sm:$0xff] %vm1595_vm0, %v2499_v24  ;;  %v5272_v46 = vmul.f32 %v10021_v56, %v9111_v22  ;;  %14669 = vst [vmem:[#allocation80_spill] sm:$0xff] %v10213_v38  ;;  %v6730_v40 = vsel %vm1595_vm0, %v6564_v19, 0.0  ;;  %v5787_v8 = vadd.f32 %v5659_v25, %v5398_v17  ;;  %v5661_v36 = vmul.f32 %v9122_v59, %v10191_v53  ;;  %v10228_v19 = vld [vmem:[#allocation2 + $0x131] sm:$0xff]  ;;  %v14671_v38 = vld [vmem:[#allocation11_spill] sm:$0xff] }
 0x21d   : > { %v6049_v32 = vmul.f32 %v9125_v11, %v10193_v1  ;;  %6731 = vadd.xlane.f32.xlu1 %v6730_v40  ;;  %v5009_v33 = vadd.f32 %v4881_v60, %v4621_v18  ;;  %v4236_v24 = vadd.f32 %v4108_v34, %v3848_v27  ;;  %v10222_v9 = vmul.f32 %v10134_v58, %v10202_v48  ;;  %v10237_v18 = vld [vmem:[#allocation2 + $0x132] sm:$0xff] }
 0x21e   : > { %v3335_v21 = vmul.f32 %v9879_v52, %v14567_v41  ;;  %14670 = vst [vmem:[#allocation81_spill] sm:$0xff] %v10228_v19  ;;  %v6175_v25 = vadd.f32 %v10129_v44, %v5787_v8  ;;  %v3723_v17 = vmul.f32 %v9881_v4, %v9019_v47  ;;  %v4111_v60 = vmul.f32 %v9890_v42, %v9029_v14 }
 0x21f   : > { %v4499_v34 = vmul.f32 %v10053_v15, %v9095_v50  ;;  %v5397_v27 = vadd.f32 %v5269_v10, %v5009_v33  ;;  %v4624_v40 = vadd.f32 %v4496_v29, %v4236_v24  ;;  %v4887_v52 = vmul.f32 %v10055_v30, %v9098_v16  ;;  %14672 = vst [vmem:[#allocation11_spill] sm:$0xff] %v10250_v39  ;;  %v10252_v10 = vpop.f32.mrb[120].mxu1  ;;  %v14678_v39 = vld [vmem:[#allocation52_spill] sm:$0xff] }
 0x220   : > { %v5275_v3 = vmul.f32 %v14671_v38, %v9111_v22  ;;  %v6563_v44 = vadd.f32 %v10138_v23, %v6175_v25  ;;  %v3851_v8 = vadd.f32 %v3723_v17, %v3335_v21  ;;  %v5664_v4 = vmul.f32 %v9122_v59, %v10226_v13  ;;  %14673 = vst [vmem:[#allocation82_spill] sm:$0xff] %v10252_v10  ;;  %v2064_v21 = vpop.f32.mrb[121].mxu0  ;;  %v10262_v25 = vpop.f32.mrb[121].mxu1  ;;  %v14679_v10 = vld [vmem:[#allocation53_spill] sm:$0xff] }
 0x221   : > { %v10248_v42 = vmul.f32 %v9125_v11, %v10228_v19  ;;  %v5786_v29 = vadd.f32 %v5658_v0, %v5397_v27  ;;  %v5012_v33 = vadd.f32 %v4884_v62, %v4624_v40  ;;  %v10256_v24 = vmul.f32 %v10134_v58, %v10237_v18  ;;  %14676 = vst [vmem:[#allocation83_spill] sm:$0xff] %v10262_v25  ;;  %v14680_v0 = vld [vmem:[#allocation61_spill] sm:$0xff]  ;;  %v10269_v27 = vpop.f32.mrb[122].mxu0  ;;  %v10271_v40 = vpop.f32.mrb[122].mxu1  ;;  %v14704_v25 = vld [vmem:[#allocation27_spill] sm:$0xff] }
 0x222   : > { %v10260_v23 = vadd.f32 %v9794_v12, %v14674_v51  ;;  %v6727_v17 = vsel %vm1595_vm0, %v6563_v44, 0.0  ;;  %v4239_v31 = vadd.f32 %v4111_v60, %v3851_v8  ;;  %v2520_v19 = vadd.f32 %v14678_v39, %v14677_v5  ;;  %14681 = vst [vmem:[#allocation58_spill] sm:$0xff] %v10269_v27  ;;  %14682 = vst [vmem:[#allocation52_spill] sm:$0xff] %v10271_v40  ;;  %v10278_v44 = vld [vmem:[#allocation2 + $0x128] sm:$0xff]  ;;  %v2067_v8 = vpop.f32.mrb[123].mxu0  ;;  %v10316_v40 = vld [vmem:[#allocation2 + $0x120] sm:$0xff] }
 0x223   : > { %v2512_v62 = vadd.f32 %v14680_v0, %v14679_v10  ;;  %6728 = vadd.xlane.f32.xlu0 %v6727_v17  ;;  %v6174_v51 = vadd.f32 %v10173_v37, %v5786_v29  ;;  %v3334_v21 = vmul.f32 %v9933_v26, %v14567_v41  ;;  %v3722_v60 = vmul.f32 %v9935_v35, %v9019_v47  ;;  %v10280_v5 = vld [vmem:[#allocation2 + $0x129] sm:$0xff]  ;;  %v10284_v10 = vpop.f32.mrb[123].mxu1 }
 0x224   : > { %14675 = vst [vmem:[#allocation25_spill] sm:$0xff] %v10260_v23  ;;  %v5400_v23 = vadd.f32 %v5272_v46, %v5012_v33  ;;  %v10282_v39 = vld [vmem:[#allocation2 + $0x12a] sm:$0xff]  ;;  %14683 = vst [vmem:[#allocation53_spill] sm:$0xff] %v10284_v10  ;;  %v4627_v0 = vadd.f32 %v4499_v34, %v4239_v31  ;;  %v4110_v26 = vmul.f32 %v9937_v54, %v9029_v14 }
 0x225   : > { %3088 = vst.msk [vmem:[#allocation2 + $0x1a1] sm:$0xff] %vm1595_vm0, %v2520_v19  ;;  %3086 = vst.msk [vmem:[#allocation2 + $0x191] sm:$0xff] %vm1595_vm0, %v2512_v62  ;;  %v4498_v35 = vmul.f32 %v10095_v49, %v9095_v50  ;;  %v4886_v37 = vmul.f32 %v10101_v61, %v9098_v16  ;;  %v6562_v46 = vadd.f32 %v10179_v6, %v6174_v51  ;;  %v14686_v51 = vld [vmem:[#allocation59_spill] sm:$0xff] }
 0x226   : > { %v5789_v29 = vadd.f32 %v5661_v36, %v5400_v23  ;;  %v3850_v33 = vadd.f32 %v3722_v60, %v3334_v21  ;;  %v5274_v31 = vmul.f32 %v10103_v57, %v9111_v22  ;;  %v5015_v34 = vadd.f32 %v4887_v52, %v4627_v0  ;;  %v14684_v36 = vld [vmem:[#allocation56_spill] sm:$0xff]  ;;  %v14687_v21 = vld [vmem:[#allocation69_spill] sm:$0xff] }
 0x227   : > { %v5663_v19 = vmul.f32 %v9122_v59, %v10278_v44  ;;  %v6051_v54 = vmul.f32 %v9125_v11, %v10280_v5  ;;  %v10303_v17 = vmul.f32 %v10134_v58, %v10282_v39  ;;  %v6724_v62 = vsel %vm1595_vm0, %v6562_v46, 0.0  ;;  %v10318_v46 = vld [vmem:[#allocation2 + $0x121] sm:$0xff] }
 0x228   : > { %v6177_v8 = vadd.f32 %v6049_v32, %v5789_v29  ;;  %v4238_v6 = vadd.f32 %v4110_v26, %v3850_v33  ;;  %v10308_v23 = vadd.f32 %v9794_v12, %v14684_v36  ;;  %6725 = vadd.xlane.f32.xlu1 %v6724_v62  ;;  %v5403_v52 = vadd.f32 %v5275_v3, %v5015_v34  ;;  %v10320_v32 = vpop.f32.mrb[124].mxu0  ;;  %v10322_v26 = vpop.f32.mrb[124].mxu1  ;;  %v10329_v34 = vld [vmem:[#allocation2 + $0x122] sm:$0xff] }
 0x229   : > { %v2523_v60 = vadd.f32 %v14687_v21, %v14686_v51  ;;  %v3333_v0 = vmul.f32 %v9975_v7, %v14567_v41  ;;  %v3721_v10 = vmul.f32 %v9977_v20, %v9019_v47  ;;  %14688 = vst [vmem:[#allocation56_spill] sm:$0xff] %v10320_v32  ;;  %14689 = vst [vmem:[#allocation59_spill] sm:$0xff] %v10322_v26  ;;  %v2072_v20 = vpop.f32.mrb[125].mxu0  ;;  %v10331_v62 = vpop.f32.mrb[125].mxu1 }
 0x22a   : > { %14685 = vst [vmem:[#allocation61_spill] sm:$0xff] %v10308_v23  ;;  %v6565_v29 = vadd.f32 %v10222_v9, %v6177_v8  ;;  %v4626_v3 = vadd.f32 %v4498_v35, %v4238_v6  ;;  %v4109_v33 = vmul.f32 %v9986_v63, %v9029_v14  ;;  %v4497_v7 = vmul.f32 %v10149_v55, %v9095_v50  ;;  %v10343_v20 = vpop.f32.mrb[126].mxu0 }
 0x22b   : > { %14690 = vst [vmem:[#allocation69_spill] sm:$0xff] %v10331_v62  ;;  %v5792_v36 = vadd.f32 %v5664_v4, %v5403_v52  ;;  %3089 = vst.msk [vmem:[#allocation2 + $0x1a9] sm:$0xff] %vm1595_vm0, %v2523_v60  ;;  %v3849_v51 = vadd.f32 %v3721_v10, %v3333_v0  ;;  %v4885_v21 = vmul.f32 %v10151_v28, %v9098_v16  ;;  %v10345_v4 = vpop.f32.mrb[126].mxu1  ;;  %v14693_v0 = vld [vmem:[#allocation54_spill] sm:$0xff]  ;;  %v2075_v26 = vpop.f32.mrb[127].mxu0 }
 0x22c   : > { %v5273_v9 = vmul.f32 %v10161_v45, %v9111_v22  ;;  %v6733_v63 = vsel %vm1595_vm0, %v6565_v29, 0.0  ;;  %v5014_v35 = vadd.f32 %v4886_v37, %v4626_v3  ;;  %v5662_v8 = vmul.f32 %v9122_v59, %v10316_v40  ;;  %14691 = vst [vmem:[#allocation84_spill] sm:$0xff] %v10343_v20  ;;  %14692 = vst [vmem:[#allocation85_spill] sm:$0xff] %v10345_v4  ;;  %v14694_v29 = vld [vmem:[#allocation24_spill] sm:$0xff]  ;;  %v10352_v3 = vld [vmem:[#allocation2 + $0x140] sm:$0xff] }
 0x22d   : > { %v6050_v6 = vmul.f32 %v9125_v11, %v10318_v46  ;;  %6734 = vadd.xlane.f32.xlu0 %v6733_v63  ;;  %v6180_v10 = vadd.f32 %v10248_v42, %v5792_v36  ;;  %v4237_v52 = vadd.f32 %v4109_v33, %v3849_v51  ;;  %v6438_v60 = vmul.f32 %v10134_v58, %v10329_v34  ;;  %v10360_v33 = vld [vmem:[#allocation2 + $0x141] sm:$0xff] }
 0x22e   : > { %v2515_v37 = vadd.f32 %v14694_v29, %v14693_v0  ;;  %v5402_v62 = vadd.f32 %v5274_v31, %v5014_v35  ;;  %v3336_v32 = vmul.f32 %v10011_v2, %v14567_v41  ;;  %v3724_v4 = vmul.f32 %v10019_v43, %v9019_v47  ;;  %v10362_v36 = vld [vmem:[#allocation2 + $0x142] sm:$0xff]  ;;  %v10387_v29 = vld [vmem:[#allocation2 + $0x158] sm:$0xff] }
 0x22f   : > { %v4112_v42 = vmul.f32 %v10021_v56, %v9029_v14  ;;  %v6568_v51 = vadd.f32 %v10256_v24, %v6180_v10  ;;  %v4625_v63 = vadd.f32 %v4497_v7, %v4237_v52  ;;  %v4500_v31 = vmul.f32 %v10191_v53, %v9095_v50  ;;  %v10381_v52 = vpop.f32.mrb[127].mxu1 }
 0x230   : > { %3087 = vst.msk [vmem:[#allocation2 + $0x199] sm:$0xff] %vm1595_vm0, %v2515_v37  ;;  %v4888_v2 = vmul.f32 %v10193_v1, %v9098_v16  ;;  %v5791_v26 = vadd.f32 %v5663_v19, %v5402_v62  ;;  %v3852_v43 = vadd.f32 %v3724_v4, %v3336_v32  ;;  %v5276_v56 = vmul.f32 %v10202_v48, %v9111_v22  ;;  %v10391_v37 = vld [vmem:[#allocation2 + $0x15a] sm:$0xff] }
 0x231   : > { %v5665_v35 = vmul.f32 %v9122_v59, %v10352_v3  ;;  %v6742_v0 = vsel %vm1595_vm0, %v6568_v51, 0.0  ;;  %v5013_v24 = vadd.f32 %v4885_v21, %v4625_v63  ;;  %v6053_v7 = vmul.f32 %v9125_v11, %v10360_v33  ;;  %14695 = vst [vmem:[#allocation54_spill] sm:$0xff] %v10381_v52  ;;  %v10389_v21 = vld [vmem:[#allocation2 + $0x159] sm:$0xff]  ;;  %14697 = vst [vmem:[#allocation86_spill] sm:$0xff] %v10391_v37 }
 0x232   : > { %v10379_v10 = vmul.f32 %v10134_v58, %v10362_v36  ;;  %6743 = vadd.xlane.f32.xlu1 %v6742_v0  ;;  %v6179_v19 = vadd.f32 %v6051_v54, %v5791_v26  ;;  %v4240_v32 = vadd.f32 %v4112_v42, %v3852_v43  ;;  %v3339_v62 = vmul.f32 %v10053_v15, %v14567_v41  ;;  %v14698_v42 = vld [vmem:[#allocation81_spill] sm:$0xff] }
 0x233   : > { %v3727_v4 = vmul.f32 %v10055_v30, %v9019_v47  ;;  %14696 = vst [vmem:[#allocation24_spill] sm:$0xff] %v10389_v21  ;;  %v5401_v51 = vadd.f32 %v5273_v9, %v5013_v24  ;;  %v4115_v63 = vmul.f32 %v14671_v38, %v9029_v14  ;;  %v4503_v54 = vmul.f32 %v10226_v13, %v9095_v50 }
 0x234   : > { %v4891_v26 = vmul.f32 %v14698_v42, %v9098_v16  ;;  %v6567_v15 = vadd.f32 %v10303_v17, %v6179_v19  ;;  %v4628_v43 = vadd.f32 %v4500_v31, %v4240_v32  ;;  %v5279_v0 = vmul.f32 %v10237_v18, %v9111_v22  ;;  %v14699_v31 = vld [vmem:[#allocation70_spill] sm:$0xff]  ;;  %v14701_v32 = vld [vmem:[#allocation64_spill] sm:$0xff] }
 0x235   : > { %v3855_v30 = vadd.f32 %v3727_v4, %v3339_v62  ;;  %v5790_v52 = vadd.f32 %v5662_v8, %v5401_v51  ;;  %v5668_v9 = vmul.f32 %v9122_v59, %v10387_v29  ;;  %v6056_v38 = vmul.f32 %v9125_v11, %v10389_v21  ;;  %v14702_v62 = vld [vmem:[#allocation71_spill] sm:$0xff]  ;;  %v14703_v51 = vld [vmem:[#allocation60_spill] sm:$0xff] }
 0x236   : > { %v10408_v24 = vmul.f32 %v10134_v58, %v10391_v37  ;;  %v6739_v20 = vsel %vm1595_vm0, %v6567_v15, 0.0  ;;  %v5016_v27 = vadd.f32 %v4888_v2, %v4628_v43  ;;  %v10413_v19 = vadd.f32 %v9794_v12, %v14699_v31  ;;  %v10421_v21 = vld [vmem:[#allocation2 + $0x150] sm:$0xff] }
 0x237   : > { %v4243_v17 = vadd.f32 %v4115_v63, %v3855_v30  ;;  %6740 = vadd.xlane.f32.xlu0 %v6739_v20  ;;  %v6178_v8 = vadd.f32 %v6050_v6, %v5790_v52  ;;  %v2536_v4 = vadd.f32 %v14702_v62, %v14701_v32  ;;  %v2528_v23 = vadd.f32 %v14704_v25, %v14703_v51  ;;  %v10427_v6 = vld [vmem:[#allocation2 + $0x151] sm:$0xff]  ;;  %v10443_v30 = vpop.f32.mrb[128].mxu1  ;;  %v14710_v51 = vld [vmem:[#allocation7_spill] sm:$0xff] }
 0x238   : > { %14700 = vst [vmem:[#allocation81_spill] sm:$0xff] %v10413_v19  ;;  %v3338_v37 = vmul.f32 %v10095_v49, %v14567_v41  ;;  %v5404_v15 = vadd.f32 %v5276_v56, %v5016_v27  ;;  %v3726_v63 = vmul.f32 %v10101_v61, %v9019_v47  ;;  %v4114_v20 = vmul.f32 %v10103_v57, %v9029_v14  ;;  %v10429_v52 = vld [vmem:[#allocation2 + $0x152] sm:$0xff] }
 0x239   : > { %v4631_v2 = vadd.f32 %v4503_v54, %v4243_v17  ;;  %v6566_v43 = vadd.f32 %v6438_v60, %v6178_v8  ;;  %3092 = vst.msk [vmem:[#allocation2 + $0x1c9] sm:$0xff] %vm1595_vm0, %v2536_v4  ;;  %3090 = vst.msk [vmem:[#allocation2 + $0x1b9] sm:$0xff] %vm1595_vm0, %v2528_v23  ;;  %v4502_v49 = vmul.f32 %v10278_v44, %v9095_v50  ;;  %v10441_v60 = vpop.f32.mrb[128].mxu0  ;;  %v14707_v8 = vld [vmem:[#allocation72_spill] sm:$0xff] }
 0x23a   : > { %v4890_v25 = vmul.f32 %v10280_v5, %v9098_v16  ;;  %v5278_v61 = vmul.f32 %v10282_v39, %v9111_v22  ;;  %v5793_v27 = vadd.f32 %v5665_v35, %v5404_v15  ;;  %v3854_v56 = vadd.f32 %v3726_v63, %v3338_v37  ;;  %14705 = vst [vmem:[#allocation70_spill] sm:$0xff] %v10441_v60  ;;  %v2080_v37 = vpop.f32.mrb[129].mxu0  ;;  %v14711_v15 = vld [vmem:[#allocation73_spill] sm:$0xff]  ;;  %v10460_v63 = vld [vmem:[#allocation2 + $0x148] sm:$0xff] }
 0x23b   : > { %v5019_v57 = vadd.f32 %v4891_v26, %v4631_v2  ;;  %v5667_v54 = vmul.f32 %v9122_v59, %v10421_v21  ;;  %14706 = vst [vmem:[#allocation64_spill] sm:$0xff] %v10443_v30  ;;  %v6736_v23 = vsel %vm1595_vm0, %v6566_v43, 0.0  ;;  %v6055_v17 = vmul.f32 %v9125_v11, %v10427_v6  ;;  %v10456_v26 = vpop.f32.mrb[129].mxu1  ;;  %v10462_v43 = vld [vmem:[#allocation2 + $0x149] sm:$0xff]  ;;  %v10484_v37 = vpop.f32.mrb[130].mxu0 }
 0x23c   : > { %v10450_v31 = vmul.f32 %v10134_v58, %v10429_v52  ;;  %v10454_v35 = vadd.f32 %v9794_v12, %v14707_v8  ;;  %14709 = vst [vmem:[#allocation60_spill] sm:$0xff] %v10456_v26  ;;  %6737 = vadd.xlane.f32.xlu1 %v6736_v23  ;;  %v6181_v32 = vadd.f32 %v6053_v7, %v5793_v27  ;;  %14712 = vst [vmem:[#allocation27_spill] sm:$0xff] %v10484_v37  ;;  %v10499_v37 = vld [vmem:[#allocation2 + $0x168] sm:$0xff] }
 0x23d   : > { %v5407_v62 = vadd.f32 %v5279_v0, %v5019_v57  ;;  %v4242_v4 = vadd.f32 %v4114_v20, %v3854_v56  ;;  %v2539_v2 = vadd.f32 %v14711_v15, %v14710_v51  ;;  %v3337_v30 = vmul.f32 %v10149_v55, %v14567_v41  ;;  %v10472_v0 = vld [vmem:[#allocation2 + $0x14a] sm:$0xff]  ;;  %v14715_v15 = vld [vmem:[#allocation74_spill] sm:$0xff] }
 0x23e   : > { %14708 = vst [vmem:[#allocation71_spill] sm:$0xff] %v10454_v35  ;;  %v3725_v12 = vmul.f32 %v10151_v28, %v9019_v47  ;;  %v4113_v8 = vmul.f32 %v10161_v45, %v9029_v14  ;;  %v4501_v7 = vmul.f32 %v10316_v40, %v9095_v50  ;;  %v6569_v20 = vadd.f32 %v10379_v10, %v6181_v32  ;;  %v10486_v10 = vpop.f32.mrb[130].mxu1  ;;  %v14714_v51 = vld [vmem:[#allocation63_spill] sm:$0xff] }
 0x23f   : > { %v5796_v27 = vadd.f32 %v5668_v9, %v5407_v62  ;;  %v4630_v57 = vadd.f32 %v4502_v49, %v4242_v4  ;;  %3093 = vst.msk [vmem:[#allocation2 + $0x1d1] sm:$0xff] %vm1595_vm0, %v2539_v2  ;;  %v4889_v55 = vmul.f32 %v10318_v46, %v9098_v16  ;;  %v5277_v28 = vmul.f32 %v10329_v34, %v9111_v22  ;;  %v2083_v62 = vpop.f32.mrb[131].mxu0 }
 0x240   : > { %v3853_v56 = vadd.f32 %v3725_v12, %v3337_v30  ;;  %v5666_v45 = vmul.f32 %v9122_v59, %v10460_v63  ;;  %v6054_v23 = vmul.f32 %v9125_v11, %v10462_v43  ;;  %14713 = vst [vmem:[#allocation72_spill] sm:$0xff] %v10486_v10  ;;  %v6745_v9 = vsel %vm1595_vm0, %v6569_v20, 0.0 }
 0x241   : > { %v6184_v49 = vadd.f32 %v6056_v38, %v5796_v27  ;;  %v5018_v32 = vadd.f32 %v4890_v25, %v4630_v57  ;;  %v10491_v30 = vmul.f32 %v10134_v58, %v10472_v0  ;;  %6746 = vadd.xlane.f32.xlu0 %v6745_v9  ;;  %v2531_v2 = vadd.f32 %v14715_v15, %v14714_v51  ;;  %v10501_v38 = vld [vmem:[#allocation2 + $0x169] sm:$0xff]  ;;  %v10528_v51 = vld [vmem:[#allocation2 + $0x180] sm:$0xff] }
 0x242   : > { %v4241_v4 = vadd.f32 %v4113_v8, %v3853_v56  ;;  %v3340_v12 = vmul.f32 %v10191_v53, %v14567_v41  ;;  %v3728_v10 = vmul.f32 %v10193_v1, %v9019_v47  ;;  %v4116_v27 = vmul.f32 %v10202_v48, %v9029_v14  ;;  %v10508_v57 = vld [vmem:[#allocation2 + $0x16a] sm:$0xff] }
 0x243   : > { %v6572_v25 = vadd.f32 %v10408_v24, %v6184_v49  ;;  %v5406_v20 = vadd.f32 %v5278_v61, %v5018_v32  ;;  %v4504_v8 = vmul.f32 %v10352_v3, %v9095_v50  ;;  %3091 = vst.msk [vmem:[#allocation2 + $0x1c1] sm:$0xff] %vm1595_vm0, %v2531_v2  ;;  %v4892_v1 = vmul.f32 %v10360_v33, %v9098_v16  ;;  %v10520_v32 = vpop.f32.mrb[131].mxu1 }
 0x244   : > { %v4629_v56 = vadd.f32 %v4501_v7, %v4241_v4  ;;  %v3856_v53 = vadd.f32 %v3728_v10, %v3340_v12  ;;  %v5280_v9 = vmul.f32 %v10362_v36, %v9111_v22  ;;  %v5669_v48 = vmul.f32 %v9122_v59, %v10499_v37  ;;  %14716 = vst [vmem:[#allocation7_spill] sm:$0xff] %v10520_v32 }
 0x245   : > { %v6754_v24 = vsel %vm1595_vm0, %v6572_v25, 0.0  ;;  %v5795_v61 = vadd.f32 %v5667_v54, %v5406_v20  ;;  %v6057_v49 = vmul.f32 %v9125_v11, %v10501_v38  ;;  %v10524_v62 = vmul.f32 %v10134_v58, %v10508_v57  ;;  %v10530_v54 = vld [vmem:[#allocation2 + $0x181] sm:$0xff] }
 0x246   : > { %6755 = vadd.xlane.f32.xlu1 %v6754_v24  ;;  %v5017_v7 = vadd.f32 %v4889_v55, %v4629_v56  ;;  %v4244_v10 = vadd.f32 %v4116_v27, %v3856_v53  ;;  %v3343_v4 = vmul.f32 %v10226_v13, %v14567_v41  ;;  %v3731_v2 = vmul.f32 %v14698_v42, %v9019_v47  ;;  %v10538_v25 = vld [vmem:[#allocation2 + $0x182] sm:$0xff]  ;;  %v14718_v13 = vld [vmem:[#allocation24_spill] sm:$0xff] }
 0x247   : > { %v6183_v15 = vadd.f32 %v6055_v17, %v5795_v61  ;;  %v4119_v12 = vmul.f32 %v10237_v18, %v9029_v14  ;;  %v4507_v55 = vmul.f32 %v10387_v29, %v9095_v50  ;;  %14717 = vst [vmem:[#allocation73_spill] sm:$0xff] %v10538_v25  ;;  %v4895_v56 = vmul.f32 %v14718_v13, %v9098_v16  ;;  %v14719_v53 = vld [vmem:[#allocation86_spill] sm:$0xff] }
 0x248   : > { %v5405_v20 = vadd.f32 %v5277_v28, %v5017_v7  ;;  %v4632_v27 = vadd.f32 %v4504_v8, %v4244_v10  ;;  %v5283_v24 = vmul.f32 %v14719_v53, %v9111_v22  ;;  %v3859_v61 = vadd.f32 %v3731_v2, %v3343_v4  ;;  %v10558_v8 = vld [vmem:[%s14310_s2] ss:$0 sm:$0xff]  ;;  %v14723_v2 = vld [vmem:[#allocation15_spill] sm:$0xff] }
 0x249   : > { %v6571_v17 = vadd.f32 %v10450_v31, %v6183_v15  ;;  %v5672_v42 = vmul.f32 %v9122_v59, %v10528_v51  ;;  %v10549_v18 = vmul.f32 %v9125_v11, %v10530_v54  ;;  %v10553_v28 = vmul.f32 %v10134_v58, %v10538_v25  ;;  %v14720_v31 = vld [vmem:[#allocation22_spill] sm:$0xff] }
 0x24a   : > { %v5794_v32 = vadd.f32 %v5666_v45, %v5405_v20  ;;  %v5020_v26 = vadd.f32 %v4892_v1, %v4632_v27  ;;  %v10562_v7 = vadd.f32 %v10558_v8, %v14720_v31  ;;  %v4247_v4 = vadd.f32 %v4119_v12, %v3859_v61  ;;  %v14722_v15 = vld [vmem:[#allocation62_spill] sm:$0xff]  ;;  %v14724_v1 = vld [vmem:[#allocation57_spill] sm:$0xff]  ;;  %v14725_v20 = vld [vmem:[#allocation67_spill] sm:$0xff]  ;;  %v10590_v61 = vpop.f32.mrb[132].mxu0 }
 0x24b   : > { %v6751_v10 = vsel %vm1595_vm0, %v6571_v17, 0.0  ;;  %v2552_v45 = vadd.f32 %v14723_v2, %v14722_v15  ;;  %v2544_v27 = vadd.f32 %v14725_v20, %v14724_v1  ;;  %v3342_v19 = vmul.f32 %v10278_v44, %v14567_v41  ;;  %v10573_v31 = vld [vmem:[#allocation2 + $0x178] sm:$0xff]  ;;  %14726 = vst [vmem:[#allocation74_spill] sm:$0xff] %v10590_v61  ;;  %v14732_v20 = vld [vmem:[#allocation75_spill] sm:$0xff] }
 0x24c   : > { %14721 = vst [vmem:[#allocation63_spill] sm:$0xff] %v10562_v7  ;;  %6752 = vadd.xlane.f32.xlu0 %v6751_v10  ;;  %v6182_v60 = vadd.f32 %v6054_v23, %v5794_v32  ;;  %v5408_v35 = vadd.f32 %v5280_v9, %v5020_v26  ;;  %v3730_v25 = vmul.f32 %v10280_v5, %v9019_v47  ;;  %v10575_v7 = vld [vmem:[#allocation2 + $0x179] sm:$0xff]  ;;  %v10592_v10 = vpop.f32.mrb[132].mxu1  ;;  %v14731_v1 = vld [vmem:[#allocation20_spill] sm:$0xff] }
 0x24d   : > { %v10577_v12 = vld [vmem:[#allocation2 + $0x17a] sm:$0xff]  ;;  %v4635_v17 = vadd.f32 %v4507_v55, %v4247_v4  ;;  %3096 = vst.msk [vmem:[#allocation2 + $0x1f1] sm:$0xff] %vm1595_vm0, %v2552_v45  ;;  %3094 = vst.msk [vmem:[#allocation2 + $0x1e1] sm:$0xff] %vm1595_vm0, %v2544_v27  ;;  %v4118_v26 = vmul.f32 %v10282_v39, %v9029_v14  ;;  %v4506_v44 = vmul.f32 %v10421_v21, %v9095_v50 }
 0x24e   : > { %v4894_v5 = vmul.f32 %v10427_v6, %v9098_v16  ;;  %v6570_v23 = vadd.f32 %v10491_v30, %v6182_v60  ;;  %v5797_v9 = vadd.f32 %v5669_v48, %v5408_v35  ;;  %v3858_v32 = vadd.f32 %v3730_v25, %v3342_v19  ;;  %14727 = vst [vmem:[#allocation24_spill] sm:$0xff] %v10592_v10  ;;  %v2088_v60 = vpop.f32.mrb[133].mxu0  ;;  %v10602_v19 = vpop.f32.mrb[133].mxu1  ;;  %v14729_v25 = vld [vmem:[#allocation55_spill] sm:$0xff]  ;;  %v14746_v61 = vld [vmem:[#allocation33_spill] sm:$0xff] }
 0x24f   : > { %v5282_v55 = vmul.f32 %v10429_v52, %v9111_v22  ;;  %v5023_v4 = vadd.f32 %v4895_v56, %v4635_v17  ;;  %v5671_v39 = vmul.f32 %v9122_v59, %v10573_v31  ;;  %v6059_v15 = vmul.f32 %v9125_v11, %v10575_v7  ;;  %14728 = vst [vmem:[#allocation86_spill] sm:$0xff] %v10602_v19  ;;  %v10615_v10 = vld [vmem:[#allocation2 + $0x170] sm:$0xff] }
 0x250   : > { %v10600_v2 = vmul.f32 %v10134_v58, %v10577_v12  ;;  %v6748_v35 = vsel %vm1595_vm0, %v6570_v23, 0.0  ;;  %v6185_v30 = vadd.f32 %v6057_v49, %v5797_v9  ;;  %v4246_v48 = vadd.f32 %v4118_v26, %v3858_v32  ;;  %v10617_v23 = vld [vmem:[#allocation2 + $0x171] sm:$0xff] }
 0x251   : > { %v10607_v56 = vadd.f32 %v10558_v8, %v14729_v25  ;;  %6749 = vadd.xlane.f32.xlu1 %v6748_v35  ;;  %v5411_v45 = vadd.f32 %v5283_v24, %v5023_v4  ;;  %v2555_v27 = vadd.f32 %v14732_v20, %v14731_v1  ;;  %v3341_v17 = vmul.f32 %v10316_v40, %v14567_v41  ;;  %v10624_v32 = vld [vmem:[#allocation2 + $0x172] sm:$0xff] }
 0x252   : > { %v3729_v60 = vmul.f32 %v10318_v46, %v9019_v47  ;;  %v6573_v49 = vadd.f32 %v10524_v62, %v6185_v30  ;;  %v4634_v26 = vadd.f32 %v4506_v44, %v4246_v48  ;;  %v4117_v9 = vmul.f32 %v10329_v34, %v9029_v14  ;;  %v10631_v62 = vpop.f32.mrb[134].mxu0  ;;  %v10633_v44 = vpop.f32.mrb[134].mxu1 }
 0x253   : > { %14730 = vst [vmem:[#allocation22_spill] sm:$0xff] %v10607_v56  ;;  %v4505_v24 = vmul.f32 %v10460_v63, %v9095_v50  ;;  %v5800_v4 = vadd.f32 %v5672_v42, %v5411_v45  ;;  %3097 = vst.msk [vmem:[#allocation2 + $0x1f9] sm:$0xff] %vm1595_vm0, %v2555_v27  ;;  %v4893_v46 = vmul.f32 %v10462_v43, %v9098_v16  ;;  %v2091_v25 = vpop.f32.mrb[135].mxu0  ;;  %v14735_v27 = vld [vmem:[#allocation9_spill] sm:$0xff] }
 0x254   : > { %v3857_v40 = vadd.f32 %v3729_v60, %v3341_v17  ;;  %v5281_v35 = vmul.f32 %v10472_v0, %v9111_v22  ;;  %14733 = vst [vmem:[#allocation62_spill] sm:$0xff] %v10631_v62  ;;  %14734 = vst [vmem:[#allocation15_spill] sm:$0xff] %v10633_v44  ;;  %v6757_v34 = vsel %vm1595_vm0, %v6573_v49, 0.0  ;;  %v5022_v30 = vadd.f32 %v4894_v5, %v4634_v26  ;;  %v14736_v17 = vld [vmem:[#allocation76_spill] sm:$0xff] }
 0x255   : > { %v5670_v48 = vmul.f32 %v9122_v59, %v10615_v10  ;;  %v6058_v42 = vmul.f32 %v9125_v11, %v10617_v23  ;;  %6758 = vadd.xlane.f32.xlu0 %v6757_v34  ;;  %v6188_v45 = vadd.f32 %v10549_v18, %v5800_v4  ;;  %v6446_v20 = vmul.f32 %v10134_v58, %v10624_v32  ;;  %v10645_v44 = vld [vmem:[#allocation2 + $0x190] sm:$0xff] }
 0x256   : > { %v4245_v1 = vadd.f32 %v4117_v9, %v3857_v40  ;;  %v2547_v60 = vadd.f32 %v14736_v17, %v14735_v27  ;;  %v5410_v5 = vadd.f32 %v5282_v55, %v5022_v30  ;;  %v3344_v49 = vmul.f32 %v10352_v3, %v14567_v41  ;;  %v10653_v18 = vld [vmem:[#allocation2 + $0x191] sm:$0xff]  ;;  %v10667_v27 = vpop.f32.mrb[135].mxu1 }
 0x257   : > { %v3732_v26 = vmul.f32 %v10360_v33, %v9019_v47  ;;  %v4120_v34 = vmul.f32 %v10362_v36, %v9029_v14  ;;  %v10655_v9 = vld [vmem:[#allocation2 + $0x192] sm:$0xff]  ;;  %v6576_v4 = vadd.f32 %v10553_v28, %v6188_v45  ;;  %v4508_v55 = vmul.f32 %v10499_v37, %v9095_v50  ;;  %14737 = vst [vmem:[#allocation57_spill] sm:$0xff] %v10667_v27 }
 0x258   : > { %v4633_v40 = vadd.f32 %v4505_v24, %v4245_v1  ;;  %3095 = vst.msk [vmem:[#allocation2 + $0x1e9] sm:$0xff] %vm1595_vm0, %v2547_v60  ;;  %v4896_v3 = vmul.f32 %v10501_v38, %v9098_v16  ;;  %v5799_v30 = vadd.f32 %v5671_v39, %v5410_v5  ;;  %v5284_v36 = vmul.f32 %v10508_v57, %v9111_v22 }
 0x259   : > { %v3860_v33 = vadd.f32 %v3732_v26, %v3344_v49  ;;  %v5673_v25 = vmul.f32 %v9122_v59, %v10645_v44  ;;  %v6766_v28 = vsel %vm1595_vm0, %v6576_v4, 0.0  ;;  %v6061_v45 = vmul.f32 %v9125_v11, %v10653_v18  ;;  %v10680_v49 = vld [vmem:[#allocation2 + $0x1a8] sm:$0xff] }
 0x25a   : > { %v5021_v24 = vadd.f32 %v4893_v46, %v4633_v40  ;;  %v10674_v1 = vmul.f32 %v10134_v58, %v10655_v9  ;;  %6767 = vadd.xlane.f32.xlu1 %v6766_v28  ;;  %v6187_v39 = vadd.f32 %v6059_v15, %v5799_v30  ;;  %v3347_v60 = vmul.f32 %v10387_v29, %v14567_v41  ;;  %v10682_v26 = vld [vmem:[#allocation2 + $0x1a9] sm:$0xff] }
 0x25b   : > { %v4248_v17 = vadd.f32 %v4120_v34, %v3860_v33  ;;  %v3735_v5 = vmul.f32 %v14718_v13, %v9019_v47  ;;  %14738 = vst [vmem:[#allocation67_spill] sm:$0xff] %v10682_v26  ;;  %v10684_v46 = vld [vmem:[#allocation2 + $0x1aa] sm:$0xff]  ;;  %v4123_v40 = vmul.f32 %v14719_v53, %v9029_v14  ;;  %v4511_v15 = vmul.f32 %v10528_v51, %v9095_v50  ;;  %v14740_v33 = vld [vmem:[#allocation73_spill] sm:$0xff] }
 0x25c   : > { %14739 = vst [vmem:[#allocation55_spill] sm:$0xff] %v10684_v46  ;;  %v5409_v4 = vadd.f32 %v5281_v35, %v5021_v24  ;;  %v4899_v34 = vmul.f32 %v10530_v54, %v9098_v16  ;;  %v6575_v29 = vadd.f32 %v10600_v2, %v6187_v39  ;;  %v5287_v28 = vmul.f32 %v14740_v33, %v9111_v22 }
 0x25d   : > { %v4636_v30 = vadd.f32 %v4508_v55, %v4248_v17  ;;  %v3863_v13 = vadd.f32 %v3735_v5, %v3347_v60  ;;  %v5676_v35 = vmul.f32 %v9122_v59, %v10680_v49  ;;  %v6064_v53 = vmul.f32 %v9125_v11, %v10682_v26  ;;  %v14741_v55 = vld [vmem:[#allocation50_spill] sm:$0xff]  ;;  %v14743_v17 = vld [vmem:[#allocation25_spill] sm:$0xff] }
 0x25e   : > { %v5798_v27 = vadd.f32 %v5670_v48, %v5409_v4  ;;  %v10701_v24 = vmul.f32 %v10134_v58, %v10684_v46  ;;  %v6763_v19 = vsel %vm1595_vm0, %v6575_v29, 0.0  ;;  %v10706_v39 = vadd.f32 %v10558_v8, %v14741_v55  ;;  %v14744_v60 = vld [vmem:[#allocation13_spill] sm:$0xff]  ;;  %v14745_v4 = vld [vmem:[#allocation16_spill] sm:$0xff] }
 0x25f   : > { %v5024_v62 = vadd.f32 %v4896_v3, %v4636_v30  ;;  %v4251_v2 = vadd.f32 %v4123_v40, %v3863_v13  ;;  %6764 = vadd.xlane.f32.xlu0 %v6763_v19  ;;  %v2568_v5 = vadd.f32 %v14744_v60, %v14743_v17  ;;  %v2560_v56 = vadd.f32 %v14746_v61, %v14745_v4  ;;  %v10714_v26 = vld [vmem:[#allocation2 + $0x1a0] sm:$0xff] }
 0x260   : > { %14742 = vst [vmem:[#allocation20_spill] sm:$0xff] %v10706_v39  ;;  %v6186_v48 = vadd.f32 %v6058_v42, %v5798_v27  ;;  %v3346_v46 = vmul.f32 %v10421_v21, %v14567_v41  ;;  %v3734_v40 = vmul.f32 %v10427_v6, %v9019_v47  ;;  %v4122_v19 = vmul.f32 %v10429_v52, %v9029_v14  ;;  %v10720_v42 = vld [vmem:[#allocation2 + $0x1a1] sm:$0xff]  ;;  %v10734_v52 = vpop.f32.mrb[136].mxu1  ;;  %v14752_v4 = vld [vmem:[#allocation61_spill] sm:$0xff] }
 0x261   : > { %v5412_v29 = vadd.f32 %v5284_v36, %v5024_v62  ;;  %v4639_v3 = vadd.f32 %v4511_v15, %v4251_v2  ;;  %v10722_v27 = vld [vmem:[#allocation2 + $0x1a2] sm:$0xff]  ;;  %3100 = vst.msk [vmem:[#allocation2 + $0x219] sm:$0xff] %vm1595_vm0, %v2568_v5  ;;  %3098 = vst.msk [vmem:[#allocation2 + $0x209] sm:$0xff] %vm1595_vm0, %v2560_v56  ;;  %v4510_v21 = vmul.f32 %v10573_v31, %v9095_v50  ;;  %v10732_v62 = vpop.f32.mrb[136].mxu0  ;;  %v10738_v2 = vpop.f32.mrb[137].mxu1 }
 0x262   : > { %v6574_v30 = vadd.f32 %v6446_v20, %v6186_v48  ;;  %v4898_v61 = vmul.f32 %v10575_v7, %v9098_v16  ;;  %v5286_v6 = vmul.f32 %v10577_v12, %v9111_v22  ;;  %14747 = vst [vmem:[#allocation75_spill] sm:$0xff] %v10732_v62  ;;  %14748 = vst [vmem:[#allocation9_spill] sm:$0xff] %v10734_v52  ;;  %v2096_v56 = vpop.f32.mrb[137].mxu0  ;;  %v14750_v60 = vld [vmem:[#allocation18_spill] sm:$0xff]  ;;  %v14770_v62 = vld [vmem:[#allocation49_spill] sm:$0xff] }
 0x263   : > { %v5801_v36 = vadd.f32 %v5673_v25, %v5412_v29  ;;  %v5027_v15 = vadd.f32 %v4899_v34, %v4639_v3  ;;  %v3862_v20 = vadd.f32 %v3734_v40, %v3346_v46  ;;  %v5675_v13 = vmul.f32 %v9122_v59, %v10714_v26  ;;  %14749 = vst [vmem:[#allocation76_spill] sm:$0xff] %v10738_v2  ;;  %v14753_v29 = vld [vmem:[#allocation77_spill] sm:$0xff] }
 0x264   : > { %v6760_v55 = vsel %vm1595_vm0, %v6574_v30, 0.0  ;;  %v6063_v48 = vmul.f32 %v9125_v11, %v10720_v42  ;;  %v10745_v17 = vmul.f32 %v10134_v58, %v10722_v27  ;;  %v10749_v25 = vadd.f32 %v10558_v8, %v14750_v60  ;;  %v10753_v40 = vld [vmem:[#allocation2 + $0x198] sm:$0xff] }
 0x265   : > { %6761 = vadd.xlane.f32.xlu1 %v6760_v55  ;;  %v6189_v46 = vadd.f32 %v6061_v45, %v5801_v36  ;;  %v5415_v34 = vadd.f32 %v5287_v28, %v5027_v15  ;;  %v4250_v5 = vadd.f32 %v4122_v19, %v3862_v20  ;;  %v2571_v3 = vadd.f32 %v14753_v29, %v14752_v4  ;;  %v10755_v30 = vld [vmem:[#allocation2 + $0x199] sm:$0xff]  ;;  %v10771_v20 = vpop.f32.mrb[138].mxu0 }
 0x266   : > { %14751 = vst [vmem:[#allocation73_spill] sm:$0xff] %v10749_v25  ;;  %v3345_v56 = vmul.f32 %v10460_v63, %v14567_v41  ;;  %v3733_v52 = vmul.f32 %v10462_v43, %v9019_v47  ;;  %v4121_v60 = vmul.f32 %v10472_v0, %v9029_v14  ;;  %v4509_v45 = vmul.f32 %v10615_v10, %v9095_v50  ;;  %v10765_v28 = vld [vmem:[#allocation2 + $0x19a] sm:$0xff]  ;;  %v10773_v43 = vpop.f32.mrb[138].mxu1 }
 0x267   : > { %v6577_v19 = vadd.f32 %v10674_v1, %v6189_v46  ;;  %v5804_v36 = vadd.f32 %v5676_v35, %v5415_v34  ;;  %v4638_v15 = vadd.f32 %v4510_v21, %v4250_v5  ;;  %3101 = vst.msk [vmem:[#allocation2 + $0x221] sm:$0xff] %vm1595_vm0, %v2571_v3  ;;  %v4897_v63 = vmul.f32 %v10617_v23, %v9098_v16  ;;  %v2099_v35 = vpop.f32.mrb[139].mxu0  ;;  %v10783_v21 = vpop.f32.mrb[139].mxu1  ;;  %v14757_v3 = vld [vmem:[#allocation65_spill] sm:$0xff] }
 0x268   : > { %14754 = vst [vmem:[#allocation50_spill] sm:$0xff] %v10771_v20  ;;  %14755 = vst [vmem:[#allocation25_spill] sm:$0xff] %v10773_v43  ;;  %v3861_v55 = vadd.f32 %v3733_v52, %v3345_v56  ;;  %v5285_v0 = vmul.f32 %v10624_v32, %v9111_v22  ;;  %v5674_v4 = vmul.f32 %v9122_v59, %v10753_v40  ;;  %v14758_v56 = vld [vmem:[#allocation78_spill] sm:$0xff] }
 0x269   : > { %v10781_v1 = vmul.f32 %v9125_v11, %v10755_v30  ;;  %14756 = vst [vmem:[#allocation13_spill] sm:$0xff] %v10783_v21  ;;  %v6769_v46 = vsel %vm1595_vm0, %v6577_v19, 0.0  ;;  %v6192_v34 = vadd.f32 %v6064_v53, %v5804_v36  ;;  %v5026_v5 = vadd.f32 %v4898_v61, %v4638_v15  ;;  %v10796_v21 = vld [vmem:[#allocation2 + $0x1b8] sm:$0xff] }
 0x26a   : > { %v10788_v52 = vmul.f32 %v10134_v58, %v10765_v28  ;;  %6770 = vadd.xlane.f32.xlu0 %v6769_v46  ;;  %v4249_v29 = vadd.f32 %v4121_v60, %v3861_v55  ;;  %v2563_v43 = vadd.f32 %v14758_v56, %v14757_v3  ;;  %v3348_v2 = vmul.f32 %v10499_v37, %v14567_v41  ;;  %v10798_v19 = vld [vmem:[#allocation2 + $0x1b9] sm:$0xff]  ;;  %v10825_v3 = vld [vmem:[#allocation2 + $0x1d1] sm:$0xff] }
 0x26b   : > { %v3736_v35 = vmul.f32 %v10501_v38, %v9019_v47  ;;  %v6580_v53 = vadd.f32 %v10701_v24, %v6192_v34  ;;  %v5414_v61 = vadd.f32 %v5286_v6, %v5026_v5  ;;  %v4124_v36 = vmul.f32 %v10508_v57, %v9029_v14  ;;  %v10805_v15 = vld [vmem:[#allocation2 + $0x1ba] sm:$0xff] }
 0x26c   : > { %v4512_v60 = vmul.f32 %v10645_v44, %v9095_v50  ;;  %v4637_v55 = vadd.f32 %v4509_v45, %v4249_v29  ;;  %3099 = vst.msk [vmem:[#allocation2 + $0x211] sm:$0xff] %vm1595_vm0, %v2563_v43  ;;  %v4900_v38 = vmul.f32 %v10653_v18, %v9098_v16  ;;  %v5288_v46 = vmul.f32 %v10655_v9, %v9111_v22  ;;  %v10823_v29 = vld [vmem:[#allocation2 + $0x1d0] sm:$0xff] }
 0x26d   : > { %v3864_v37 = vadd.f32 %v3736_v35, %v3348_v2  ;;  %v6778_v24 = vsel %vm1595_vm0, %v6580_v53, 0.0  ;;  %v5803_v6 = vadd.f32 %v5675_v13, %v5414_v61  ;;  %v5677_v57 = vmul.f32 %v9122_v59, %v10796_v21  ;;  %v10833_v53 = vld [vmem:[#allocation2 + $0x1d2] sm:$0xff] }
 0x26e   : > { %v6065_v34 = vmul.f32 %v9125_v11, %v10798_v19  ;;  %6779 = vadd.xlane.f32.xlu1 %v6778_v24  ;;  %v5025_v45 = vadd.f32 %v4897_v63, %v4637_v55  ;;  %v10819_v2 = vmul.f32 %v10134_v58, %v10805_v15  ;;  %v3351_v43 = vmul.f32 %v10528_v51, %v14567_v41  ;;  %v14760_v51 = vld [vmem:[#allocation67_spill] sm:$0xff] }
 0x26f   : > { %v4252_v5 = vadd.f32 %v4124_v36, %v3864_v37  ;;  %v6191_v13 = vadd.f32 %v6063_v48, %v5803_v6  ;;  %v3739_v56 = vmul.f32 %v10530_v54, %v9019_v47  ;;  %v4127_v35 = vmul.f32 %v14740_v33, %v9029_v14  ;;  %14759 = vst [vmem:[#allocation16_spill] sm:$0xff] %v10833_v53  ;;  %v14761_v55 = vld [vmem:[#allocation55_spill] sm:$0xff]  ;;  %v10846_v6 = vpop.f32.mrb[140].mxu0 }
 0x270   : > { %v4515_v63 = vmul.f32 %v10680_v49, %v9095_v50  ;;  %v5413_v58 = vadd.f32 %v5285_v0, %v5025_v45  ;;  %v4903_v36 = vmul.f32 %v14760_v51, %v9098_v16  ;;  %v5291_v37 = vmul.f32 %v14761_v55, %v9111_v22  ;;  %14762 = vst [vmem:[#allocation33_spill] sm:$0xff] %v10846_v6  ;;  %v10848_v0 = vpop.f32.mrb[140].mxu1  ;;  %v14769_v6 = vld [vmem:[#allocation81_spill] sm:$0xff] }
 0x271   : > { %v4640_v61 = vadd.f32 %v4512_v60, %v4252_v5  ;;  %v6579_v48 = vadd.f32 %v10745_v17, %v6191_v13  ;;  %v3867_v24 = vadd.f32 %v3739_v56, %v3351_v43  ;;  %v5680_v54 = vmul.f32 %v9122_v59, %v10823_v29  ;;  %14763 = vst [vmem:[#allocation18_spill] sm:$0xff] %v10848_v0  ;;  %v10853_v5 = vld [vmem:[%s14311_s3 + $0x8] ss:$0 sm:$0xff]  ;;  %v14764_v43 = vld [vmem:[#allocation51_spill] sm:$0xff]  ;;  %v2104_v56 = vpop.f32.mrb[141].mxu0  ;;  %v10863_v20 = vpop.f32.mrb[141].mxu1 }
 0x272   : > { %v10844_v33 = vmul.f32 %v9125_v11, %v10825_v3  ;;  %v5802_v60 = vadd.f32 %v5674_v4, %v5413_v58  ;;  %v10857_v17 = vmul.f32 %v10853_v5, %v10833_v53  ;;  %v10861_v13 = vadd.f32 %v10558_v8, %v14764_v43  ;;  %14766 = vst [vmem:[#allocation77_spill] sm:$0xff] %v10863_v20  ;;  %v14768_v58 = vld [vmem:[#allocation66_spill] sm:$0xff]  ;;  %v10870_v39 = vpop.f32.mrb[142].mxu0  ;;  %v10872_v53 = vpop.f32.mrb[142].mxu1 }
 0x273   : > { %v5028_v45 = vadd.f32 %v4900_v38, %v4640_v61  ;;  %v6775_v0 = vsel %vm1595_vm0, %v6579_v48, 0.0  ;;  %v4255_v4 = vadd.f32 %v4127_v35, %v3867_v24  ;;  %v14767_v38 = vld [vmem:[#allocation63_spill] sm:$0xff]  ;;  %v2576_v25 = vadd.f32 %v14770_v62, %v14769_v6  ;;  %14771 = vst [vmem:[#allocation65_spill] sm:$0xff] %v10870_v39  ;;  %14772 = vst [vmem:[#allocation78_spill] sm:$0xff] %v10872_v53  ;;  %v2107_v62 = vpop.f32.mrb[143].mxu0 }
 0x274   : > { %14765 = vst [vmem:[#allocation61_spill] sm:$0xff] %v10861_v13  ;;  %v2584_v61 = vadd.f32 %v14768_v58, %v14767_v38  ;;  %6776 = vadd.xlane.f32.xlu0 %v6775_v0  ;;  %v6190_v43 = vadd.f32 %v10781_v1, %v5802_v60  ;;  %v3350_v56 = vmul.f32 %v10573_v31, %v14567_v41  ;;  %v10879_v48 = vld [vmem:[#allocation2 + $0x1c8] sm:$0xff] }
 0x275   : > { %v5416_v13 = vadd.f32 %v5288_v46, %v5028_v45  ;;  %v3738_v35 = vmul.f32 %v10575_v7, %v9019_v47  ;;  %v10881_v24 = vld [vmem:[#allocation2 + $0x1c9] sm:$0xff]  ;;  %v4643_v6 = vadd.f32 %v4515_v63, %v4255_v4  ;;  %3102 = vst.msk [vmem:[#allocation2 + $0x231] sm:$0xff] %vm1595_vm0, %v2576_v25  ;;  %v4126_v1 = vmul.f32 %v10577_v12, %v9029_v14  ;;  %v10896_v45 = vpop.f32.mrb[143].mxu1 }
 0x276   : > { %v10883_v38 = vld [vmem:[#allocation2 + $0x1ca] sm:$0xff]  ;;  %3104 = vst.msk [vmem:[#allocation2 + $0x241] sm:$0xff] %vm1595_vm0, %v2584_v61  ;;  %v4514_v31 = vmul.f32 %v10714_v26, %v9095_v50  ;;  %v4902_v7 = vmul.f32 %v10720_v42, %v9098_v16  ;;  %v6578_v46 = vadd.f32 %v10788_v52, %v6190_v43  ;;  %v5290_v63 = vmul.f32 %v10722_v27, %v9111_v22 }
 0x277   : > { %v5805_v0 = vadd.f32 %v5677_v57, %v5416_v13  ;;  %v3866_v60 = vadd.f32 %v3738_v35, %v3350_v56  ;;  %14773 = vst [vmem:[#allocation67_spill] sm:$0xff] %v10896_v45  ;;  %v5031_v4 = vadd.f32 %v4903_v36, %v4643_v6  ;;  %v5679_v25 = vmul.f32 %v9122_v59, %v10879_v48  ;;  %v14774_v61 = vld [vmem:[#allocation68_spill] sm:$0xff]  ;;  %v14775_v56 = vld [vmem:[#allocation22_spill] sm:$0xff]  ;;  %v14776_v35 = vld [vmem:[#allocation79_spill] sm:$0xff] }
 0x278   : > { %v6067_v12 = vmul.f32 %v9125_v11, %v10881_v24  ;;  %v10904_v58 = vmul.f32 %v10853_v5, %v10883_v38  ;;  %v6772_v52 = vsel %vm1595_vm0, %v6578_v46, 0.0  ;;  %v10909_v43 = vadd.f32 %v10558_v8, %v14774_v61  ;;  %v10917_v45 = vld [vmem:[#allocation2 + $0x1c0] sm:$0xff] }
 0x279   : > { %v6193_v57 = vadd.f32 %v6065_v34, %v5805_v0  ;;  %v4254_v13 = vadd.f32 %v4126_v1, %v3866_v60  ;;  %6773 = vadd.xlane.f32.xlu1 %v6772_v52  ;;  %v5419_v36 = vadd.f32 %v5291_v37, %v5031_v4  ;;  %v2587_v62 = vadd.f32 %v14776_v35, %v14775_v56  ;;  %v10919_v46 = vld [vmem:[#allocation2 + $0x1c1] sm:$0xff]  ;;  %v14779_v35 = vld [vmem:[#allocation71_spill] sm:$0xff] }
 0x27a   : > { %v3349_v6 = vmul.f32 %v10615_v10, %v14567_v41  ;;  %v3737_v53 = vmul.f32 %v10617_v23, %v9019_v47  ;;  %v4125_v0 = vmul.f32 %v10624_v32, %v9029_v14  ;;  %v4513_v37 = vmul.f32 %v10753_v40, %v9095_v50  ;;  %v10926_v60 = vld [vmem:[#allocation2 + $0x1c2] sm:$0xff] }
 0x27b   : > { %v6581_v34 = vadd.f32 %v10819_v2, %v6193_v57  ;;  %v4642_v1 = vadd.f32 %v4514_v31, %v4254_v13  ;;  %v5808_v4 = vadd.f32 %v5680_v54, %v5419_v36  ;;  %3105 = vst.msk [vmem:[#allocation2 + $0x249] sm:$0xff] %vm1595_vm0, %v2587_v62  ;;  %v4901_v23 = vmul.f32 %v10755_v30, %v9098_v16  ;;  %v10933_v2 = vpop.f32.mrb[144].mxu0  ;;  %v10935_v31 = vpop.f32.mrb[144].mxu1  ;;  %v14780_v62 = vld [vmem:[#allocation80_spill] sm:$0xff]  ;;  %v14793_v39 = vld [vmem:[#allocation61_spill] sm:$0xff] }
 0x27c   : > { %v3865_v10 = vadd.f32 %v3737_v53, %v3349_v6  ;;  %v5289_v52 = vmul.f32 %v10765_v28, %v9111_v22  ;;  %14777 = vst [vmem:[#allocation55_spill] sm:$0xff] %v10933_v2  ;;  %14778 = vst [vmem:[#allocation51_spill] sm:$0xff] %v10935_v31  ;;  %v5678_v13 = vmul.f32 %v9122_v59, %v10917_v45  ;;  %v2112_v53 = vpop.f32.mrb[145].mxu0 }
 0x27d   : > { %v6781_v32 = vsel %vm1595_vm0, %v6581_v34, 0.0  ;;  %v5030_v57 = vadd.f32 %v4902_v7, %v4642_v1  ;;  %v6066_v54 = vmul.f32 %v9125_v11, %v10919_v46  ;;  %v6196_v61 = vadd.f32 %v10844_v33, %v5808_v4  ;;  %v10949_v34 = vld [vmem:[#allocation2 + $0x1e0] sm:$0xff] }
 0x27e   : > { %6782 = vadd.xlane.f32.xlu0 %v6781_v32  ;;  %v4253_v36 = vadd.f32 %v4125_v0, %v3865_v10  ;;  %v10945_v56 = vmul.f32 %v10853_v5, %v10926_v60  ;;  %v2579_v6 = vadd.f32 %v14780_v62, %v14779_v35  ;;  %v3352_v1 = vmul.f32 %v10645_v44, %v14567_v41  ;;  %v10957_v0 = vld [vmem:[#allocation2 + $0x1e1] sm:$0xff]  ;;  %v10971_v62 = vpop.f32.mrb[145].mxu1 }
 0x27f   : > { %v5418_v7 = vadd.f32 %v5290_v63, %v5030_v57  ;;  %v3740_v53 = vmul.f32 %v10653_v18, %v9019_v47  ;;  %v4128_v33 = vmul.f32 %v10655_v9, %v9029_v14  ;;  %v10959_v4 = vld [vmem:[#allocation2 + $0x1e2] sm:$0xff]  ;;  %v6584_v10 = vadd.f32 %v10857_v17, %v6196_v61  ;;  %14781 = vst [vmem:[#allocation63_spill] sm:$0xff] %v10971_v62  ;;  %v10973_v17 = vpop.f32.mrb[146].mxu0  ;;  %v10994_v62 = vld [vmem:[#allocation2 + $0x1fa] sm:$0xff] }
 0x280   : > { %v4641_v32 = vadd.f32 %v4513_v37, %v4253_v36  ;;  %3103 = vst.msk [vmem:[#allocation2 + $0x239] sm:$0xff] %vm1595_vm0, %v2579_v6  ;;  %v4516_v63 = vmul.f32 %v10796_v21, %v9095_v50  ;;  %v4904_v44 = vmul.f32 %v10798_v19, %v9098_v16  ;;  %v5292_v9 = vmul.f32 %v10805_v15, %v9111_v22  ;;  %v10984_v6 = vpop.f32.mrb[146].mxu1 }
 0x281   : > { %v5807_v57 = vadd.f32 %v5679_v25, %v5418_v7  ;;  %v3868_v18 = vadd.f32 %v3740_v53, %v3352_v1  ;;  %v5681_v35 = vmul.f32 %v9122_v59, %v10949_v34  ;;  %14782 = vst [vmem:[#allocation66_spill] sm:$0xff] %v10973_v17  ;;  %v6790_v37 = vsel %vm1595_vm0, %v6584_v10, 0.0  ;;  %14783 = vst [vmem:[#allocation81_spill] sm:$0xff] %v10984_v6  ;;  %v2115_v7 = vpop.f32.mrb[147].mxu0  ;;  %v10990_v10 = vld [vmem:[#allocation2 + $0x1f8] sm:$0xff]  ;;  %v10996_v20 = vpop.f32.mrb[147].mxu1 }
 0x282   : > { %v5029_v61 = vadd.f32 %v4901_v23, %v4641_v32  ;;  %v10978_v36 = vmul.f32 %v9125_v11, %v10957_v0  ;;  %v10982_v25 = vmul.f32 %v10853_v5, %v10959_v4  ;;  %6791 = vadd.xlane.f32.xlu1 %v6790_v37  ;;  %v3355_v31 = vmul.f32 %v10680_v49, %v14567_v41  ;;  %v10992_v32 = vld [vmem:[#allocation2 + $0x1f9] sm:$0xff]  ;;  %v11017_v2 = vpop.f32.mrb[148].mxu1 }
 0x283   : > { %v6195_v1 = vadd.f32 %v6067_v12, %v5807_v57  ;;  %v4256_v53 = vadd.f32 %v4128_v33, %v3868_v18  ;;  %v3743_v23 = vmul.f32 %v14760_v51, %v9019_v47  ;;  %14784 = vst [vmem:[#allocation49_spill] sm:$0xff] %v10990_v10  ;;  %14785 = vst [vmem:[#allocation68_spill] sm:$0xff] %v10992_v32  ;;  %v14788_v18 = vld [vmem:[#allocation16_spill] sm:$0xff] }
 0x284   : > { %14786 = vst [vmem:[#allocation22_spill] sm:$0xff] %v10994_v62  ;;  %14787 = vst [vmem:[#allocation79_spill] sm:$0xff] %v10996_v20  ;;  %v5417_v17 = vadd.f32 %v5289_v52, %v5029_v61  ;;  %v4131_v37 = vmul.f32 %v14761_v55, %v9029_v14  ;;  %v4519_v12 = vmul.f32 %v10823_v29, %v9095_v50  ;;  %v11015_v20 = vpop.f32.mrb[148].mxu0 }
 0x285   : > { %v4907_v49 = vmul.f32 %v10825_v3, %v9098_v16  ;;  %v6583_v51 = vadd.f32 %v10904_v58, %v6195_v1  ;;  %v4644_v33 = vadd.f32 %v4516_v63, %v4256_v53  ;;  %v3871_v57 = vadd.f32 %v3743_v23, %v3355_v31  ;;  %14789 = vst [vmem:[#allocation71_spill] sm:$0xff] %v11015_v20  ;;  %v14791_v1 = vld [vmem:[#allocation11_spill] sm:$0xff]  ;;  %v11024_v53 = vpop.f32.mrb[149].mxu1 }
 0x286   : > { %v5295_v7 = vmul.f32 %v14788_v18, %v9111_v22  ;;  %v5806_v6 = vadd.f32 %v5678_v13, %v5417_v17  ;;  %v5684_v52 = vmul.f32 %v9122_v59, %v10990_v10  ;;  %v6072_v55 = vmul.f32 %v9125_v11, %v10992_v32  ;;  %14790 = vst [vmem:[#allocation80_spill] sm:$0xff] %v11017_v2  ;;  %v2120_v17 = vpop.f32.mrb[149].mxu0  ;;  %v14795_v10 = vld [vmem:[#allocation20_spill] sm:$0xff]  ;;  %v14796_v20 = vld [vmem:[#allocation83_spill] sm:$0xff] }
 0x287   : > { %v11013_v61 = vmul.f32 %v10853_v5, %v10994_v62  ;;  %v6787_v58 = vsel %vm1595_vm0, %v6583_v51, 0.0  ;;  %v5032_v31 = vadd.f32 %v4904_v44, %v4644_v33  ;;  %v4259_v63 = vadd.f32 %v4131_v37, %v3871_v57  ;;  %14792 = vst [vmem:[#allocation11_spill] sm:$0xff] %v11024_v53  ;;  %v14794_v62 = vld [vmem:[#allocation82_spill] sm:$0xff]  ;;  %v11032_v44 = vld [vmem:[#allocation2 + $0x1f0] sm:$0xff]  ;;  %v11034_v37 = vpop.f32.mrb[150].mxu0  ;;  %v11036_v33 = vpop.f32.mrb[150].mxu1 }
 0x288   : > { %v11022_v13 = vadd.f32 %v10558_v8, %v14791_v1  ;;  %6788 = vadd.xlane.f32.xlu0 %v6787_v58  ;;  %v6194_v23 = vadd.f32 %v6066_v54, %v5806_v6  ;;  %v2600_v32 = vadd.f32 %v14794_v62, %v14793_v39  ;;  %v2592_v18 = vadd.f32 %v14796_v20, %v14795_v10  ;;  %v11042_v62 = vld [vmem:[#allocation2 + $0x1f1] sm:$0xff]  ;;  %v2123_v6 = vpop.f32.mrb[151].mxu0 }
 0x289   : > { %v3354_v51 = vmul.f32 %v10714_v26, %v14567_v41  ;;  %14797 = vst [vmem:[#allocation61_spill] sm:$0xff] %v11034_v37  ;;  %14798 = vst [vmem:[#allocation82_spill] sm:$0xff] %v11036_v33  ;;  %v5420_v57 = vadd.f32 %v5292_v9, %v5032_v31  ;;  %v4647_v1 = vadd.f32 %v4519_v12, %v4259_v63  ;;  %v11044_v20 = vld [vmem:[#allocation2 + $0x1f2] sm:$0xff]  ;;  %v14799_v63 = vld [vmem:[#allocation58_spill] sm:$0xff]  ;;  %v11075_v6 = vpop.f32.mrb[151].mxu1 }
 0x28a   : > { %v3742_v54 = vmul.f32 %v10720_v42, %v9019_v47  ;;  %v4130_v39 = vmul.f32 %v10722_v27, %v9029_v14  ;;  %v6582_v26 = vadd.f32 %v10945_v56, %v6194_v23  ;;  %3108 = vst.msk [vmem:[#allocation2 + $0x269] sm:$0xff] %vm1595_vm0, %v2600_v32  ;;  %3106 = vst.msk [vmem:[#allocation2 + $0x259] sm:$0xff] %vm1595_vm0, %v2592_v18 }
 0x28b   : > { %v4518_v9 = vmul.f32 %v10879_v48, %v9095_v50  ;;  %v4906_v42 = vmul.f32 %v10881_v24, %v9098_v16  ;;  %v5294_v27 = vmul.f32 %v10883_v38, %v9111_v22  ;;  %v5809_v10 = vadd.f32 %v5681_v35, %v5420_v57  ;;  %14801 = vst [vmem:[#allocation20_spill] sm:$0xff] %v11075_v6 }
 0x28c   : > { %v5035_v12 = vadd.f32 %v4907_v49, %v4647_v1  ;;  %v3870_v58 = vadd.f32 %v3742_v54, %v3354_v51  ;;  %v5683_v31 = vmul.f32 %v9122_v59, %v11032_v44  ;;  %v6784_v56 = vsel %vm1595_vm0, %v6582_v26, 0.0  ;;  %v14800_v51 = vld [vmem:[#allocation52_spill] sm:$0xff]  ;;  %v11071_v1 = vld [vmem:[#allocation2 + $0x1e8] sm:$0xff] }
 0x28d   : > { %v6071_v32 = vmul.f32 %v9125_v11, %v11042_v62  ;;  %v11062_v18 = vmul.f32 %v10853_v5, %v11044_v20  ;;  %v11066_v17 = vadd.f32 %v10558_v8, %v14799_v63  ;;  %6785 = vadd.xlane.f32.xlu1 %v6784_v56  ;;  %v6197_v35 = vadd.f32 %v10978_v36, %v5809_v10  ;;  %v11073_v54 = vld [vmem:[#allocation2 + $0x1e9] sm:$0xff] }
 0x28e   : > { %v5423_v49 = vadd.f32 %v5295_v7, %v5035_v12  ;;  %v4258_v23 = vadd.f32 %v4130_v39, %v3870_v58  ;;  %v2603_v57 = vadd.f32 %v14800_v51, %v10909_v43  ;;  %v3353_v26 = vmul.f32 %v10753_v40, %v14567_v41  ;;  %v11085_v39 = vld [vmem:[#allocation2 + $0x1ea] sm:$0xff]  ;;  %v14803_v51 = vld [vmem:[#allocation73_spill] sm:$0xff] }
 0x28f   : > { %v3741_v63 = vmul.f32 %v10755_v30, %v9019_v47  ;;  %v4129_v36 = vmul.f32 %v10765_v28, %v9029_v14  ;;  %v4517_v7 = vmul.f32 %v10917_v45, %v9095_v50  ;;  %v6585_v43 = vadd.f32 %v10982_v25, %v6197_v35 }
 0x290   : > { %v5812_v10 = vadd.f32 %v5684_v52, %v5423_v49  ;;  %v4646_v12 = vadd.f32 %v4518_v9, %v4258_v23  ;;  %3109 = vst.msk [vmem:[#allocation2 + $0x271] sm:$0xff] %vm1595_vm0, %v2603_v57  ;;  %v4905_v40 = vmul.f32 %v10919_v46, %v9098_v16  ;;  %v5293_v30 = vmul.f32 %v10926_v60, %v9111_v22  ;;  %v11104_v49 = vpop.f32.mrb[152].mxu0  ;;  %v14804_v57 = vld [vmem:[#allocation53_spill] sm:$0xff] }
 0x291   : > { %v3869_v58 = vadd.f32 %v3741_v63, %v3353_v26  ;;  %v5682_v28 = vmul.f32 %v9122_v59, %v11071_v1  ;;  %v11097_v56 = vmul.f32 %v9125_v11, %v11073_v54  ;;  %v6793_v25 = vsel %vm1595_vm0, %v6585_v43, 0.0  ;;  %14802 = vst [vmem:[#allocation83_spill] sm:$0xff] %v11104_v49  ;;  %v11112_v43 = vld [vmem:[#allocation2 + $0x208] sm:$0xff] }
 0x292   : > { %v6200_v52 = vadd.f32 %v6072_v55, %v5812_v10  ;;  %v5034_v9 = vadd.f32 %v4906_v42, %v4646_v12  ;;  %v11102_v35 = vmul.f32 %v10853_v5, %v11085_v39  ;;  %6794 = vadd.xlane.f32.xlu0 %v6793_v25  ;;  %v2595_v26 = vadd.f32 %v14804_v57, %v14803_v51  ;;  %v11114_v55 = vld [vmem:[#allocation2 + $0x209] sm:$0xff]  ;;  %v11116_v42 = vpop.f32.mrb[152].mxu1  ;;  %v2128_v10 = vpop.f32.mrb[153].mxu0 }
 0x293   : > { %v4257_v23 = vadd.f32 %v4129_v36, %v3869_v58  ;;  %v3356_v63 = vmul.f32 %v10796_v21, %v14567_v41  ;;  %v3744_v33 = vmul.f32 %v10798_v19, %v9019_v47  ;;  %14805 = vst [vmem:[#allocation58_spill] sm:$0xff] %v11116_v42  ;;  %v4132_v36 = vmul.f32 %v10805_v15, %v9029_v14  ;;  %v11123_v21 = vld [vmem:[#allocation2 + $0x20a] sm:$0xff]  ;;  %v11157_v42 = vld [vmem:[#allocation2 + $0x222] sm:$0xff] }
 0x294   : > { %v6588_v12 = vadd.f32 %v11013_v61, %v6200_v52  ;;  %v5422_v25 = vadd.f32 %v5294_v27, %v5034_v9  ;;  %v4520_v58 = vmul.f32 %v10949_v34, %v9095_v50  ;;  %3107 = vst.msk [vmem:[#allocation2 + $0x261] sm:$0xff] %vm1595_vm0, %v2595_v26  ;;  %v4908_v57 = vmul.f32 %v10957_v0, %v9098_v16  ;;  %v11143_v26 = vld [vmem:[#allocation2 + $0x220] sm:$0xff] }
 0x295   : > { %v4645_v51 = vadd.f32 %v4517_v7, %v4257_v23  ;;  %v3872_v19 = vadd.f32 %v3744_v33, %v3356_v63  ;;  %v5296_v10 = vmul.f32 %v10959_v4, %v9111_v22  ;;  %v5685_v15 = vmul.f32 %v9122_v59, %v11112_v43  ;;  %v11147_v63 = vpop.f32.mrb[153].mxu1 }
 0x296   : > { %v6802_v61 = vsel %vm1595_vm0, %v6588_v12, 0.0  ;;  %v5811_v27 = vadd.f32 %v5683_v31, %v5422_v25  ;;  %v11135_v52 = vmul.f32 %v9125_v11, %v11114_v55  ;;  %v11139_v33 = vmul.f32 %v10853_v5, %v11123_v21  ;;  %v11145_v31 = vld [vmem:[#allocation2 + $0x221] sm:$0xff]  ;;  %14807 = vst [vmem:[#allocation73_spill] sm:$0xff] %v11147_v63  ;;  %v11149_v12 = vpop.f32.mrb[154].mxu0  ;;  %v14813_v63 = vld [vmem:[#allocation68_spill] sm:$0xff] }
 0x297   : > { %6803 = vadd.xlane.f32.xlu1 %v6802_v61  ;;  %v5033_v7 = vadd.f32 %v4905_v40, %v4645_v51  ;;  %v4260_v9 = vadd.f32 %v4132_v36, %v3872_v19  ;;  %v3359_v23 = vmul.f32 %v10823_v29, %v14567_v41  ;;  %14806 = vst [vmem:[#allocation52_spill] sm:$0xff] %v11145_v31  ;;  %14808 = vst [vmem:[#allocation53_spill] sm:$0xff] %v11149_v12  ;;  %v14809_v36 = vld [vmem:[#allocation16_spill] sm:$0xff]  ;;  %v14810_v19 = vld [vmem:[#allocation49_spill] sm:$0xff]  ;;  %v11159_v29 = vpop.f32.mrb[154].mxu1  ;;  %v2131_v12 = vpop.f32.mrb[155].mxu0 }
 0x298   : > { %v6199_v25 = vadd.f32 %v6071_v32, %v5811_v27  ;;  %v3747_v40 = vmul.f32 %v10825_v3, %v9019_v47  ;;  %v4135_v51 = vmul.f32 %v14809_v36, %v9029_v14  ;;  %v4523_v61 = vmul.f32 %v14810_v19, %v9095_v50  ;;  %14811 = vst [vmem:[#allocation16_spill] sm:$0xff] %v11157_v42  ;;  %v14814_v32 = vld [vmem:[#allocation22_spill] sm:$0xff]  ;;  %v11165_v3 = vpop.f32.mrb[155].mxu1 }
 0x299   : > { %14812 = vst [vmem:[#allocation49_spill] sm:$0xff] %v11159_v29  ;;  %v5421_v2 = vadd.f32 %v5293_v30, %v5033_v7  ;;  %v4648_v6 = vadd.f32 %v4520_v58, %v4260_v9  ;;  %v4911_v53 = vmul.f32 %v14813_v63, %v9098_v16  ;;  %v5299_v27 = vmul.f32 %v14814_v32, %v9111_v22  ;;  %v14816_v9 = vld [vmem:[#allocation56_spill] sm:$0xff] }
 0x29a   : > { %14815 = vst [vmem:[#allocation68_spill] sm:$0xff] %v11165_v3  ;;  %v6587_v36 = vadd.f32 %v11062_v18, %v6199_v25  ;;  %v3875_v49 = vadd.f32 %v3747_v40, %v3359_v23  ;;  %v5688_v37 = vmul.f32 %v9122_v59, %v11143_v26  ;;  %v11172_v29 = vmul.f32 %v9125_v11, %v11145_v31  ;;  %v14817_v23 = vld [vmem:[#allocation69_spill] sm:$0xff] }
 0x29b   : > { %v5810_v30 = vadd.f32 %v5682_v28, %v5421_v2  ;;  %v5036_v58 = vadd.f32 %v4908_v57, %v4648_v6  ;;  %v11176_v7 = vmul.f32 %v10853_v5, %v11157_v42  ;;  %v2071_v12 = vadd.f32 %v10558_v8, %v14816_v9  ;;  %v14818_v28 = vld [vmem:[#allocation59_spill] sm:$0xff]  ;;  %v11189_v31 = vld [vmem:[#allocation2 + $0x218] sm:$0xff] }
 0x29c   : > { %v6799_v3 = vsel %vm1595_vm0, %v6587_v36, 0.0  ;;  %v4263_v18 = vadd.f32 %v4135_v51, %v3875_v49  ;;  %v2608_v25 = vadd.f32 %v14817_v23, %v11022_v13  ;;  %v3358_v40 = vmul.f32 %v10879_v48, %v14567_v41  ;;  %v11191_v9 = vld [vmem:[#allocation2 + $0x219] sm:$0xff]  ;;  %v11195_v51 = vpop.f32.mrb[156].mxu0 }
 0x29d   : > { %6800 = vadd.xlane.f32.xlu0 %v6799_v3  ;;  %v6198_v2 = vadd.f32 %v11097_v56, %v5810_v30  ;;  %v5424_v6 = vadd.f32 %v5296_v10, %v5036_v58  ;;  %v2616_v57 = vadd.f32 %v14818_v28, %v2071_v12  ;;  %v3746_v42 = vmul.f32 %v10881_v24, %v9019_v47  ;;  %v11193_v49 = vld [vmem:[#allocation2 + $0x21a] sm:$0xff]  ;;  %v11204_v10 = vpop.f32.mrb[156].mxu1  ;;  %v2136_v58 = vpop.f32.mrb[157].mxu0 }
 0x29e   : > { %14819 = vst [vmem:[#allocation22_spill] sm:$0xff] %v11195_v51  ;;  %v4651_v13 = vadd.f32 %v4523_v61, %v4263_v18  ;;  %3110 = vst.msk [vmem:[#allocation2 + $0x281] sm:$0xff] %vm1595_vm0, %v2608_v25  ;;  %v4134_v48 = vmul.f32 %v10883_v38, %v9029_v14  ;;  %v4522_v56 = vmul.f32 %v11032_v44, %v9095_v50  ;;  %v11210_v12 = vpop.f32.mrb[157].mxu1 }
 0x29f   : > { %v4910_v24 = vmul.f32 %v11042_v62, %v9098_v16  ;;  %14820 = vst [vmem:[#allocation56_spill] sm:$0xff] %v11204_v10  ;;  %v6586_v3 = vadd.f32 %v11102_v35, %v6198_v2  ;;  %v5813_v36 = vadd.f32 %v5685_v15, %v5424_v6  ;;  %3112 = vst.msk [vmem:[#allocation2 + $0x291] sm:$0xff] %vm1595_vm0, %v2616_v57  ;;  %v11220_v15 = vpop.f32.mrb[158].mxu0  ;;  %v11234_v10 = vld [vmem:[#allocation2 + $0x210] sm:$0xff] }
 0x2a0   : > { %v3874_v30 = vadd.f32 %v3746_v42, %v3358_v40  ;;  %v5298_v61 = vmul.f32 %v11044_v20, %v9111_v22  ;;  %14821 = vst [vmem:[#allocation69_spill] sm:$0xff] %v11210_v12  ;;  %v5039_v38 = vadd.f32 %v4911_v53, %v4651_v13  ;;  %v5687_v18 = vmul.f32 %v9122_v59, %v11189_v31  ;;  %v11222_v42 = vpop.f32.mrb[158].mxu1  ;;  %v14824_v53 = vld [vmem:[#allocation84_spill] sm:$0xff]  ;;  %v2139_v28 = vpop.f32.mrb[159].mxu0 }
 0x2a1   : > { %v6075_v23 = vmul.f32 %v9125_v11, %v11191_v9  ;;  %v11218_v35 = vmul.f32 %v10853_v5, %v11193_v49  ;;  %14822 = vst [vmem:[#allocation59_spill] sm:$0xff] %v11220_v15  ;;  %14823 = vst [vmem:[#allocation87_spill] sm:$0xff] %v11222_v42  ;;  %v6796_v25 = vsel %vm1595_vm0, %v6586_v3, 0.0  ;;  %v6201_v40 = vadd.f32 %v11135_v52, %v5813_v36  ;;  %v11236_v3 = vld [vmem:[#allocation2 + $0x211] sm:$0xff]  ;;  %v14827_v28 = vld [vmem:[#allocation54_spill] sm:$0xff] }
 0x2a2   : > { %v4262_v2 = vadd.f32 %v4134_v48, %v3874_v30  ;;  %v2074_v6 = vadd.f32 %v10558_v8, %v14824_v53  ;;  %6797 = vadd.xlane.f32.xlu1 %v6796_v25  ;;  %v5427_v57 = vadd.f32 %v5299_v27, %v5039_v38  ;;  %v3357_v13 = vmul.f32 %v10917_v45, %v14567_v41  ;;  %v14825_v8 = vld [vmem:[#allocation85_spill] sm:$0xff]  ;;  %v11244_v45 = vpop.f32.mrb[159].mxu1 }
 0x2a3   : > { %v3745_v58 = vmul.f32 %v10919_v46, %v9019_v47  ;;  %v4133_v42 = vmul.f32 %v10926_v60, %v9029_v14  ;;  %v6589_v52 = vadd.f32 %v11139_v33, %v6201_v40  ;;  %v4521_v27 = vmul.f32 %v11071_v1, %v9095_v50  ;;  %v11242_v30 = vld [vmem:[#allocation2 + $0x212] sm:$0xff]  ;;  %14826 = vst [vmem:[#allocation84_spill] sm:$0xff] %v11244_v45 }
 0x2a4   : > { %v4650_v48 = vadd.f32 %v4522_v56, %v4262_v2  ;;  %v2619_v36 = vadd.f32 %v14825_v8, %v2074_v6  ;;  %v5816_v46 = vadd.f32 %v5688_v37, %v5427_v57  ;;  %v4909_v60 = vmul.f32 %v11073_v54, %v9098_v16 }
 0x2a5   : > { %v3873_v38 = vadd.f32 %v3745_v58, %v3357_v13  ;;  %v5297_v25 = vmul.f32 %v11085_v39, %v9111_v22  ;;  %v6805_v33 = vsel %vm1595_vm0, %v6589_v52, 0.0  ;;  %v5686_v40 = vmul.f32 %v9122_v59, %v11234_v10 }
 0x2a6   : > { %v5038_v56 = vadd.f32 %v4910_v24, %v4650_v48  ;;  %3113 = vst.msk [vmem:[#allocation2 + $0x299] sm:$0xff] %vm1595_vm0, %v2619_v36  ;;  %v6074_v2 = vmul.f32 %v9125_v11, %v11236_v3  ;;  %6806 = vadd.xlane.f32.xlu0 %v6805_v33  ;;  %v6204_v37 = vadd.f32 %v11172_v29, %v5816_v46  ;;  %v11263_v24 = vld [vmem:[#allocation2 + $0x230] sm:$0xff] }
 0x2a7   : > { %v4261_v53 = vadd.f32 %v4133_v42, %v3873_v38  ;;  %v11259_v6 = vmul.f32 %v10853_v5, %v11242_v30  ;;  %v2611_v57 = vadd.f32 %v14827_v28, %v11066_v17  ;;  %v3360_v58 = vmul.f32 %v10949_v34, %v14567_v41  ;;  %v11271_v42 = vld [vmem:[#allocation2 + $0x231] sm:$0xff]  ;;  %v11285_v38 = vpop.f32.mrb[160].mxu0 }
 0x2a8   : > { %v5426_v13 = vadd.f32 %v5298_v61, %v5038_v56  ;;  %v3748_v52 = vmul.f32 %v10957_v0, %v9019_v47  ;;  %v4136_v29 = vmul.f32 %v10959_v4, %v9029_v14  ;;  %v11273_v48 = vld [vmem:[#allocation2 + $0x232] sm:$0xff]  ;;  %v6592_v8 = vadd.f32 %v11176_v7, %v6204_v37  ;;  %14828 = vst [vmem:[#allocation85_spill] sm:$0xff] %v11285_v38  ;;  %v11287_v7 = vpop.f32.mrb[160].mxu1  ;;  %v2144_v37 = vpop.f32.mrb[161].mxu0 }
 0x2a9   : > { %v4649_v36 = vadd.f32 %v4521_v27, %v4261_v53  ;;  %3111 = vst.msk [vmem:[#allocation2 + $0x289] sm:$0xff] %vm1595_vm0, %v2611_v57  ;;  %v4524_v17 = vmul.f32 %v11112_v43, %v9095_v50  ;;  %v4912_v34 = vmul.f32 %v11114_v55, %v9098_v16  ;;  %v5300_v4 = vmul.f32 %v11123_v21, %v9111_v22  ;;  %v11325_v12 = vpop.f32.mrb[161].mxu1 }
 0x2aa   : > { %v5815_v61 = vadd.f32 %v5687_v18, %v5426_v13  ;;  %v3876_v0 = vadd.f32 %v3748_v52, %v3360_v58  ;;  %v5689_v46 = vmul.f32 %v9122_v59, %v11263_v24  ;;  %14829 = vst [vmem:[#allocation54_spill] sm:$0xff] %v11287_v7  ;;  %v6814_v27 = vsel %vm1595_vm0, %v6592_v8, 0.0  ;;  %v11300_v58 = vld [vmem:[#allocation2 + $0x248] sm:$0xff] }
 0x2ab   : > { %v5037_v33 = vadd.f32 %v4909_v60, %v4649_v36  ;;  %v6077_v56 = vmul.f32 %v9125_v11, %v11271_v42  ;;  %v11294_v18 = vmul.f32 %v10853_v5, %v11273_v48  ;;  %6815 = vadd.xlane.f32.xlu1 %v6814_v27  ;;  %v3363_v57 = vmul.f32 %v14810_v19, %v14567_v41  ;;  %v11302_v60 = vld [vmem:[#allocation2 + $0x249] sm:$0xff]  ;;  %v14831_v27 = vld [vmem:[#allocation16_spill] sm:$0xff] }
 0x2ac   : > { %v6203_v53 = vadd.f32 %v6075_v23, %v5815_v61  ;;  %v4264_v28 = vadd.f32 %v4136_v29, %v3876_v0  ;;  %v3751_v13 = vmul.f32 %v14813_v63, %v9019_v47  ;;  %v11304_v52 = vld [vmem:[#allocation2 + $0x24a] sm:$0xff]  ;;  %v4139_v36 = vmul.f32 %v14814_v32, %v9029_v14 }
 0x2ad   : > { %v5425_v8 = vadd.f32 %v5297_v25, %v5037_v33  ;;  %v4527_v23 = vmul.f32 %v11143_v26, %v9095_v50  ;;  %v14830_v29 = vld [vmem:[#allocation52_spill] sm:$0xff]  ;;  %v5303_v37 = vmul.f32 %v14831_v27, %v9111_v22  ;;  %v5692_v25 = vmul.f32 %v9122_v59, %v11300_v58 }
 0x2ae   : > { %v4915_v61 = vmul.f32 %v14830_v29, %v9098_v16  ;;  %v6591_v19 = vadd.f32 %v11218_v35, %v6203_v53  ;;  %v4652_v0 = vadd.f32 %v4524_v17, %v4264_v28  ;;  %v3879_v63 = vadd.f32 %v3751_v13, %v3363_v57  ;;  %14832 = vst [vmem:[#allocation52_spill] sm:$0xff] %v11325_v12  ;;  %v11327_v35 = vpop.f32.mrb[162].mxu0  ;;  %v14834_v57 = vld [vmem:[#allocation70_spill] sm:$0xff] }
 0x2af   : > { %v5814_v45 = vadd.f32 %v5686_v40, %v5425_v8  ;;  %v11319_v32 = vmul.f32 %v9125_v11, %v11302_v60  ;;  %v11323_v33 = vmul.f32 %v10853_v5, %v11304_v52  ;;  %14833 = vst [vmem:[#allocation16_spill] sm:$0xff] %v11327_v35  ;;  %v11333_v40 = vld [vmem:[%s14310_s2] ss:$0 sm:$0xff]  ;;  %v11337_v8 = vpop.f32.mrb[162].mxu1  ;;  %v3362_v12 = vmul.f32 %v11032_v44, %v14567_v41 }
 0x2b0   : > { %v6811_v17 = vsel %vm1595_vm0, %v6591_v19, 0.0  ;;  %v5040_v53 = vadd.f32 %v4912_v34, %v4652_v0  ;;  %v4267_v28 = vadd.f32 %v4139_v36, %v3879_v63  ;;  %v2079_v13 = vadd.f32 %v11333_v40, %v14834_v57  ;;  %14835 = vst [vmem:[#allocation70_spill] sm:$0xff] %v11337_v8  ;;  %v11345_v36 = vld [vmem:[#allocation2 + $0x240] sm:$0xff]  ;;  %v2147_v63 = vpop.f32.mrb[163].mxu0  ;;  %v11349_v35 = vpop.f32.mrb[163].mxu1 }
 0x2b1   : > { %6812 = vadd.xlane.f32.xlu0 %v6811_v17  ;;  %v6202_v7 = vadd.f32 %v6074_v2, %v5814_v45  ;;  %v3750_v19 = vmul.f32 %v11042_v62, %v9019_v47  ;;  %v4138_v34 = vmul.f32 %v11044_v20, %v9029_v14  ;;  %v11347_v0 = vld [vmem:[#allocation2 + $0x241] sm:$0xff]  ;;  %14836 = vst [vmem:[#allocation88_spill] sm:$0xff] %v11349_v35  ;;  %v14837_v17 = vld [vmem:[#allocation60_spill] sm:$0xff] }
 0x2b2   : > { %v5428_v57 = vadd.f32 %v5300_v4, %v5040_v53  ;;  %v4655_v8 = vadd.f32 %v4527_v23, %v4267_v28  ;;  %v2624_v45 = vadd.f32 %v14837_v17, %v2079_v13  ;;  %v4526_v44 = vmul.f32 %v11189_v31, %v9095_v50  ;;  %v11354_v2 = vld [vmem:[#allocation2 + $0x242] sm:$0xff] }
 0x2b3   : > { %v6590_v62 = vadd.f32 %v11259_v6, %v6202_v7  ;;  %v3878_v38 = vadd.f32 %v3750_v19, %v3362_v12  ;;  %v4914_v20 = vmul.f32 %v11191_v9, %v9098_v16  ;;  %v5302_v63 = vmul.f32 %v11193_v49, %v9111_v22  ;;  %v14838_v7 = vld [vmem:[#allocation27_spill] sm:$0xff]  ;;  %v11377_v19 = vld [vmem:[#allocation2 + $0x238] sm:$0xff] }
 0x2b4   : > { %v5817_v15 = vadd.f32 %v5689_v46, %v5428_v57  ;;  %v5043_v35 = vadd.f32 %v4915_v61, %v4655_v8  ;;  %3114 = vst.msk [vmem:[#allocation2 + $0x2a9] sm:$0xff] %vm1595_vm0, %v2624_v45  ;;  %v5691_v4 = vmul.f32 %v9122_v59, %v11345_v36  ;;  %v6079_v23 = vmul.f32 %v9125_v11, %v11347_v0  ;;  %v11379_v57 = vld [vmem:[#allocation2 + $0x239] sm:$0xff] }
 0x2b5   : > { %v6808_v53 = vsel %vm1595_vm0, %v6590_v62, 0.0  ;;  %v4266_v6 = vadd.f32 %v4138_v34, %v3878_v38  ;;  %v11369_v12 = vmul.f32 %v10853_v5, %v11354_v2  ;;  %v2082_v28 = vadd.f32 %v11333_v40, %v14838_v7  ;;  %v11381_v38 = vld [vmem:[#allocation2 + $0x23a] sm:$0xff] }
 0x2b6   : > { %6809 = vadd.xlane.f32.xlu1 %v6808_v53  ;;  %v6205_v46 = vadd.f32 %v6077_v56, %v5817_v15  ;;  %v5431_v61 = vadd.f32 %v5303_v37, %v5043_v35  ;;  %v3361_v13 = vmul.f32 %v11071_v1, %v14567_v41  ;;  %v3749_v8 = vmul.f32 %v11073_v54, %v9019_v47  ;;  %v11389_v1 = vpop.f32.mrb[164].mxu0  ;;  %v11391_v37 = vpop.f32.mrb[164].mxu1 }
 0x2b7   : > { %v4654_v34 = vadd.f32 %v4526_v44, %v4266_v6  ;;  %v4137_v17 = vmul.f32 %v11085_v39, %v9029_v14  ;;  %v4525_v15 = vmul.f32 %v11234_v10, %v9095_v50  ;;  %v4913_v56 = vmul.f32 %v11236_v3, %v9098_v16  ;;  %14839 = vst [vmem:[#allocation60_spill] sm:$0xff] %v11389_v1  ;;  %v2152_v62 = vpop.f32.mrb[165].mxu0  ;;  %v11396_v53 = vpop.f32.mrb[165].mxu1 }
 0x2b8   : > { %14840 = vst [vmem:[#allocation27_spill] sm:$0xff] %v11391_v37  ;;  %v6593_v54 = vadd.f32 %v11294_v18, %v6205_v46  ;;  %v5820_v35 = vadd.f32 %v5692_v25, %v5431_v61  ;;  %v3877_v45 = vadd.f32 %v3749_v8, %v3361_v13  ;;  %v5301_v44 = vmul.f32 %v11242_v30, %v9111_v22  ;;  %v11406_v18 = vpop.f32.mrb[166].mxu0  ;;  %v11408_v25 = vpop.f32.mrb[166].mxu1 }
 0x2b9   : > { %14841 = vst [vmem:[#allocation89_spill] sm:$0xff] %v11396_v53  ;;  %v5042_v39 = vadd.f32 %v4914_v20, %v4654_v34  ;;  %v5690_v6 = vmul.f32 %v9122_v59, %v11377_v19  ;;  %v6078_v7 = vmul.f32 %v9125_v11, %v11379_v57  ;;  %v11404_v37 = vmul.f32 %v10853_v5, %v11381_v38  ;;  %v14844_v20 = vld [vmem:[#allocation7_spill] sm:$0xff]  ;;  %v11413_v34 = vld [vmem:[#allocation2 + $0x258] sm:$0xff]  ;;  %v2155_v62 = vpop.f32.mrb[167].mxu0 }
 0x2ba   : > { %14842 = vst [vmem:[#allocation90_spill] sm:$0xff] %v11406_v18  ;;  %14843 = vst [vmem:[#allocation91_spill] sm:$0xff] %v11408_v25  ;;  %v6817_v46 = vsel %vm1595_vm0, %v6593_v54, 0.0  ;;  %v6208_v61 = vadd.f32 %v11319_v32, %v5820_v35  ;;  %v4265_v13 = vadd.f32 %v4137_v17, %v3877_v45  ;;  %v2627_v8 = vadd.f32 %v14844_v20, %v2082_v28  ;;  %v11421_v54 = vld [vmem:[#allocation2 + $0x259] sm:$0xff]  ;;  %v11431_v35 = vpop.f32.mrb[167].mxu1  ;;  %v11450_v20 = vld [vmem:[#allocation2 + $0x271] sm:$0xff] }
 0x2bb   : > { %6818 = vadd.xlane.f32.xlu0 %v6817_v46  ;;  %v5430_v53 = vadd.f32 %v5302_v63, %v5042_v39  ;;  %v3364_v1 = vmul.f32 %v11112_v43, %v14567_v41  ;;  %v3752_v18 = vmul.f32 %v11114_v55, %v9019_v47  ;;  %v4140_v25 = vmul.f32 %v11123_v21, %v9029_v14  ;;  %v11423_v32 = vld [vmem:[#allocation2 + $0x25a] sm:$0xff] }
 0x2bc   : > { %v6596_v28 = vadd.f32 %v11323_v33, %v6208_v61  ;;  %v4653_v17 = vadd.f32 %v4525_v15, %v4265_v13  ;;  %3115 = vst.msk [vmem:[#allocation2 + $0x2b1] sm:$0xff] %vm1595_vm0, %v2627_v8  ;;  %v4528_v63 = vmul.f32 %v11263_v24, %v9095_v50  ;;  %v4916_v43 = vmul.f32 %v11271_v42, %v9098_v16 }
 0x2bd   : > { %14845 = vst [vmem:[#allocation7_spill] sm:$0xff] %v11431_v35  ;;  %v5819_v55 = vadd.f32 %v5691_v4, %v5430_v53  ;;  %v3880_v45 = vadd.f32 %v3752_v18, %v3364_v1  ;;  %v5304_v21 = vmul.f32 %v11273_v48, %v9111_v22  ;;  %v5693_v39 = vmul.f32 %v9122_v59, %v11413_v34  ;;  %v11448_v18 = vld [vmem:[#allocation2 + $0x270] sm:$0xff] }
 0x2be   : > { %v6826_v33 = vsel %vm1595_vm0, %v6596_v28, 0.0  ;;  %v5041_v15 = vadd.f32 %v4913_v56, %v4653_v17  ;;  %v6081_v46 = vmul.f32 %v9125_v11, %v11421_v54  ;;  %v11442_v61 = vmul.f32 %v10853_v5, %v11423_v32  ;;  %v11452_v56 = vld [vmem:[#allocation2 + $0x272] sm:$0xff] }
 0x2bf   : > { %6827 = vadd.xlane.f32.xlu1 %v6826_v33  ;;  %v6207_v13 = vadd.f32 %v6079_v23, %v5819_v55  ;;  %v4268_v4 = vadd.f32 %v4140_v25, %v3880_v45  ;;  %v3367_v1 = vmul.f32 %v11143_v26, %v14567_v41  ;;  %v3755_v53 = vmul.f32 %v14830_v29, %v9019_v47  ;;  %v11471_v33 = vpop.f32.mrb[168].mxu0 }
 0x2c0   : > { %v5429_v8 = vadd.f32 %v5301_v44, %v5041_v15  ;;  %v4143_v62 = vmul.f32 %v14831_v27, %v9029_v14  ;;  %v4531_v23 = vmul.f32 %v11300_v58, %v9095_v50  ;;  %v4919_v25 = vmul.f32 %v11302_v60, %v9098_v16  ;;  %14846 = vst [vmem:[#allocation92_spill] sm:$0xff] %v11471_v33  ;;  %v11473_v15 = vpop.f32.mrb[168].mxu1 }
 0x2c1   : > { %v6595_v26 = vadd.f32 %v11369_v12, %v6207_v13  ;;  %v4656_v28 = vadd.f32 %v4528_v63, %v4268_v4  ;;  %v3883_v29 = vadd.f32 %v3755_v53, %v3367_v1  ;;  %v5307_v17 = vmul.f32 %v11304_v52, %v9111_v22  ;;  %14847 = vst [vmem:[#allocation93_spill] sm:$0xff] %v11473_v15  ;;  %v14848_v4 = vld [vmem:[#allocation74_spill] sm:$0xff]  ;;  %v2160_v1 = vpop.f32.mrb[169].mxu0 }
 0x2c2   : > { %v5818_v55 = vadd.f32 %v5690_v6, %v5429_v8  ;;  %v5696_v44 = vmul.f32 %v9122_v59, %v11448_v18  ;;  %v6084_v27 = vmul.f32 %v9125_v11, %v11450_v20  ;;  %v11469_v45 = vmul.f32 %v10853_v5, %v11452_v56  ;;  %v11484_v15 = vld [vmem:[#allocation2 + $0x268] sm:$0xff] }
 0x2c3   : > { %v6823_v12 = vsel %vm1595_vm0, %v6595_v26, 0.0  ;;  %v5044_v63 = vadd.f32 %v4916_v43, %v4656_v28  ;;  %v4271_v13 = vadd.f32 %v4143_v62, %v3883_v29  ;;  %v2087_v6 = vadd.f32 %v11333_v40, %v14848_v4  ;;  %v11486_v26 = vld [vmem:[#allocation2 + $0x269] sm:$0xff]  ;;  %v14849_v28 = vld [vmem:[#allocation64_spill] sm:$0xff] }
 0x2c4   : > { %6824 = vadd.xlane.f32.xlu0 %v6823_v12  ;;  %v6206_v53 = vadd.f32 %v6078_v7, %v5818_v55  ;;  %v3366_v8 = vmul.f32 %v11189_v31, %v14567_v41  ;;  %v3754_v35 = vmul.f32 %v11191_v9, %v9019_v47  ;;  %v4142_v33 = vmul.f32 %v11193_v49, %v9029_v14  ;;  %v11491_v55 = vld [vmem:[#allocation2 + $0x26a] sm:$0xff] }
 0x2c5   : > { %v5432_v43 = vadd.f32 %v5304_v21, %v5044_v63  ;;  %v4659_v62 = vadd.f32 %v4531_v23, %v4271_v13  ;;  %v2632_v29 = vadd.f32 %v14849_v28, %v2087_v6  ;;  %v4530_v7 = vmul.f32 %v11345_v36, %v9095_v50  ;;  %v11505_v63 = vpop.f32.mrb[169].mxu1 }
 0x2c6   : > { %v6594_v31 = vadd.f32 %v11404_v37, %v6206_v53  ;;  %v3882_v12 = vadd.f32 %v3754_v35, %v3366_v8  ;;  %v4918_v9 = vmul.f32 %v11347_v0, %v9098_v16  ;;  %v5306_v49 = vmul.f32 %v11354_v2, %v9111_v22  ;;  %14850 = vst [vmem:[#allocation74_spill] sm:$0xff] %v11505_v63  ;;  %v11507_v37 = vpop.f32.mrb[170].mxu0  ;;  %v11516_v53 = vpop.f32.mrb[170].mxu1  ;;  %v11634_v63 = vld [vmem:[#allocation2 + $0x291] sm:$0xff] }
 0x2c7   : > { %v5821_v4 = vadd.f32 %v5693_v39, %v5432_v43  ;;  %v5047_v1 = vadd.f32 %v4919_v25, %v4659_v62  ;;  %3116 = vst.msk [vmem:[#allocation2 + $0x2b9] sm:$0xff] %vm1595_vm0, %v2632_v29  ;;  %v5695_v21 = vmul.f32 %v9122_v59, %v11484_v15  ;;  %v11503_v23 = vmul.f32 %v9125_v11, %v11486_v26  ;;  %v14852_v25 = vld [vmem:[#allocation62_spill] sm:$0xff] }
 0x2c8   : > { %14851 = vst [vmem:[#allocation64_spill] sm:$0xff] %v11507_v37  ;;  %v6820_v35 = vsel %vm1595_vm0, %v6594_v31, 0.0  ;;  %v4270_v13 = vadd.f32 %v4142_v33, %v3882_v12  ;;  %v11512_v39 = vmul.f32 %v10853_v5, %v11491_v55  ;;  %v2090_v6 = vadd.f32 %v11333_v40, %v14852_v25  ;;  %14853 = vst [vmem:[#allocation62_spill] sm:$0xff] %v11516_v53  ;;  %v11522_v29 = vld [vmem:[#allocation2 + $0x260] sm:$0xff]  ;;  %v11526_v31 = vpop.f32.mrb[171].mxu1  ;;  %v14855_v37 = vld [vmem:[#allocation72_spill] sm:$0xff] }
 0x2c9   : > { %6821 = vadd.xlane.f32.xlu1 %v6820_v35  ;;  %v6209_v8 = vadd.f32 %v6081_v46, %v5821_v4  ;;  %v5435_v43 = vadd.f32 %v5307_v17, %v5047_v1  ;;  %v3365_v62 = vmul.f32 %v11234_v10, %v14567_v41  ;;  %v3753_v28 = vmul.f32 %v11236_v3, %v9019_v47  ;;  %v11524_v33 = vld [vmem:[#allocation2 + $0x261] sm:$0xff]  ;;  %v2163_v10 = vpop.f32.mrb[171].mxu0 }
 0x2ca   : > { %14854 = vst [vmem:[#allocation94_spill] sm:$0xff] %v11526_v31  ;;  %v4658_v12 = vadd.f32 %v4530_v7, %v4270_v13  ;;  %v2635_v25 = vadd.f32 %v14855_v37, %v2090_v6  ;;  %v4141_v35 = vmul.f32 %v11242_v30, %v9029_v14  ;;  %v4529_v46 = vmul.f32 %v11377_v19, %v9095_v50  ;;  %v11533_v17 = vld [vmem:[#allocation2 + $0x262] sm:$0xff] }
 0x2cb   : > { %v6597_v3 = vadd.f32 %v11442_v61, %v6209_v8  ;;  %v5824_v4 = vadd.f32 %v5696_v44, %v5435_v43  ;;  %v3881_v1 = vadd.f32 %v3753_v28, %v3365_v62  ;;  %v4917_v53 = vmul.f32 %v11379_v57, %v9098_v16 }
 0x2cc   : > { %v5046_v31 = vadd.f32 %v4918_v9, %v4658_v12  ;;  %3117 = vst.msk [vmem:[#allocation2 + $0x2c1] sm:$0xff] %vm1595_vm0, %v2635_v25  ;;  %v5305_v7 = vmul.f32 %v11381_v38, %v9111_v22  ;;  %v5694_v30 = vmul.f32 %v9122_v59, %v11522_v29  ;;  %v6082_v37 = vmul.f32 %v9125_v11, %v11524_v33  ;;  %v11550_v9 = vld [vmem:[#allocation2 + $0x280] sm:$0xff] }
 0x2cd   : > { %v6829_v13 = vsel %vm1595_vm0, %v6597_v3, 0.0  ;;  %v6212_v61 = vadd.f32 %v6084_v27, %v5824_v4  ;;  %v4269_v44 = vadd.f32 %v4141_v35, %v3881_v1  ;;  %v11548_v6 = vmul.f32 %v10853_v5, %v11533_v17  ;;  %v11558_v12 = vld [vmem:[#allocation2 + $0x281] sm:$0xff] }
 0x2ce   : > { %6830 = vadd.xlane.f32.xlu0 %v6829_v13  ;;  %v5434_v8 = vadd.f32 %v5306_v49, %v5046_v31  ;;  %v3368_v43 = vmul.f32 %v11263_v24, %v14567_v41  ;;  %v3756_v62 = vmul.f32 %v11271_v42, %v9019_v47  ;;  %v4144_v28 = vmul.f32 %v11273_v48, %v9029_v14  ;;  %v11560_v27 = vld [vmem:[#allocation2 + $0x282] sm:$0xff]  ;;  %v11567_v24 = vpop.f32.mrb[172].mxu0  ;;  %v11569_v31 = vpop.f32.mrb[172].mxu1 }
 0x2cf   : > { %v6600_v5 = vadd.f32 %v11469_v45, %v6212_v61  ;;  %v4657_v25 = vadd.f32 %v4529_v46, %v4269_v44  ;;  %v4532_v35 = vmul.f32 %v11413_v34, %v9095_v50  ;;  %v4920_v49 = vmul.f32 %v11421_v54, %v9098_v16  ;;  %14856 = vst [vmem:[#allocation72_spill] sm:$0xff] %v11567_v24  ;;  %v2168_v45 = vpop.f32.mrb[173].mxu0  ;;  %v11575_v46 = vpop.f32.mrb[173].mxu1  ;;  %v11632_v24 = vld [vmem:[#allocation2 + $0x290] sm:$0xff] }
 0x2d0   : > { %14857 = vst [vmem:[#allocation95_spill] sm:$0xff] %v11569_v31  ;;  %v5823_v42 = vadd.f32 %v5695_v21, %v5434_v8  ;;  %v3884_v10 = vadd.f32 %v3756_v62, %v3368_v43  ;;  %v5308_v48 = vmul.f32 %v11423_v32, %v9111_v22  ;;  %v5697_v3 = vmul.f32 %v9122_v59, %v11550_v9  ;;  %v11583_v21 = vld [vmem:[%s14311_s3 + $0x8] ss:$0 sm:$0xff]  ;;  %v11589_v44 = vpop.f32.mrb[174].mxu0  ;;  %v11591_v8 = vpop.f32.mrb[174].mxu1  ;;  %v11600_v45 = vld [vmem:[#allocation2 + $0x289] sm:$0xff] }
 0x2d1   : > { %14858 = vst [vmem:[#allocation96_spill] sm:$0xff] %v11575_v46  ;;  %v6838_v4 = vsel %vm1595_vm0, %v6600_v5, 0.0  ;;  %v5045_v1 = vadd.f32 %v4917_v53, %v4657_v25  ;;  %v6085_v13 = vmul.f32 %v9125_v11, %v11558_v12  ;;  %v11587_v61 = vmul.f32 %v11583_v21, %v11560_v27  ;;  %14859 = vst [vmem:[#allocation97_spill] sm:$0xff] %v11589_v44  ;;  %v11598_v25 = vld [vmem:[#allocation2 + $0x288] sm:$0xff]  ;;  %v2171_v31 = vpop.f32.mrb[175].mxu0 }
 0x2d2   : > { %14860 = vst [vmem:[#allocation98_spill] sm:$0xff] %v11591_v8  ;;  %6839 = vadd.xlane.f32.xlu1 %v6838_v4  ;;  %v6211_v43 = vadd.f32 %v11503_v23, %v5823_v42  ;;  %v4272_v53 = vadd.f32 %v4144_v28, %v3884_v10  ;;  %v3369_v62 = vmul.f32 %v11377_v19, %v14567_v41  ;;  %v11602_v46 = vld [vmem:[#allocation2 + $0x28a] sm:$0xff]  ;;  %v11613_v8 = vpop.f32.mrb[175].mxu1 }
 0x2d3   : > { %v3757_v5 = vmul.f32 %v11379_v57, %v9019_v47  ;;  %v5433_v44 = vadd.f32 %v5305_v7, %v5045_v1  ;;  %v4145_v4 = vmul.f32 %v11381_v38, %v9029_v14  ;;  %v4533_v23 = vmul.f32 %v11522_v29, %v9095_v50  ;;  %14861 = vst [vmem:[#allocation99_spill] sm:$0xff] %v11613_v8 }
 0x2d4   : > { %v4921_v19 = vmul.f32 %v11524_v33, %v9098_v16  ;;  %v6599_v28 = vadd.f32 %v11512_v39, %v6211_v43  ;;  %v4660_v57 = vadd.f32 %v4532_v35, %v4272_v53  ;;  %v5309_v10 = vmul.f32 %v11533_v17, %v9111_v22  ;;  %v14862_v53 = vld [vmem:[#allocation75_spill] sm:$0xff] }
 0x2d5   : > { %v3885_v42 = vadd.f32 %v3757_v5, %v3369_v62  ;;  %v5822_v31 = vadd.f32 %v5694_v30, %v5433_v44  ;;  %v5698_v7 = vmul.f32 %v9122_v59, %v11598_v25  ;;  %v6086_v38 = vmul.f32 %v9125_v11, %v11600_v45 }
 0x2d6   : > { %v11621_v1 = vmul.f32 %v11583_v21, %v11602_v46  ;;  %v6835_v39 = vsel %vm1595_vm0, %v6599_v28, 0.0  ;;  %v5048_v35 = vadd.f32 %v4920_v49, %v4660_v57  ;;  %v2095_v62 = vadd.f32 %v11333_v40, %v14862_v53  ;;  %v14863_v28 = vld [vmem:[#allocation86_spill] sm:$0xff] }
 0x2d7   : > { %v4273_v43 = vadd.f32 %v4145_v4, %v3885_v42  ;;  %6836 = vadd.xlane.f32.xlu0 %v6835_v39  ;;  %v6210_v5 = vadd.f32 %v6082_v37, %v5822_v31  ;;  %v3370_v30 = vmul.f32 %v11345_v36, %v14567_v41  ;;  %v3758_v44 = vmul.f32 %v11347_v0, %v9019_v47  ;;  %v11639_v42 = vld [vmem:[#allocation2 + $0x292] sm:$0xff]  ;;  %v11646_v39 = vpop.f32.mrb[176].mxu0 }
 0x2d8   : > { %v4146_v8 = vmul.f32 %v11354_v2, %v9029_v14  ;;  %v5436_v49 = vadd.f32 %v5308_v48, %v5048_v35  ;;  %v2640_v57 = vadd.f32 %v14863_v28, %v2095_v62  ;;  %v4534_v37 = vmul.f32 %v11484_v15, %v9095_v50  ;;  %14864 = vst [vmem:[#allocation75_spill] sm:$0xff] %v11646_v39  ;;  %v11648_v48 = vpop.f32.mrb[176].mxu1  ;;  %v2176_v53 = vpop.f32.mrb[177].mxu0  ;;  %v11740_v39 = vld [vmem:[#allocation2 + $0x2b1] sm:$0xff] }
 0x2d9   : > { %v4661_v4 = vadd.f32 %v4533_v23, %v4273_v43  ;;  %v6598_v36 = vadd.f32 %v11548_v6, %v6210_v5  ;;  %v3886_v31 = vadd.f32 %v3758_v44, %v3370_v30  ;;  %v4922_v0 = vmul.f32 %v11486_v26, %v9098_v16  ;;  %14865 = vst [vmem:[#allocation86_spill] sm:$0xff] %v11648_v48  ;;  %v14866_v44 = vld [vmem:[#allocation50_spill] sm:$0xff]  ;;  %v11666_v53 = vld [vmem:[#allocation2 + $0x299] sm:$0xff] }
 0x2da   : > { %v5310_v2 = vmul.f32 %v11491_v55, %v9111_v22  ;;  %v5825_v23 = vadd.f32 %v5697_v3, %v5436_v49  ;;  %3118 = vst.msk [vmem:[#allocation2 + $0x2d1] sm:$0xff] %vm1595_vm0, %v2640_v57  ;;  %v5699_v43 = vmul.f32 %v9122_v59, %v11632_v24  ;;  %v6087_v6 = vmul.f32 %v9125_v11, %v11634_v63  ;;  %v11664_v57 = vld [vmem:[#allocation2 + $0x298] sm:$0xff] }
 0x2db   : > { %v5049_v35 = vadd.f32 %v4921_v19, %v4661_v4  ;;  %v6832_v62 = vsel %vm1595_vm0, %v6598_v36, 0.0  ;;  %v4274_v5 = vadd.f32 %v4146_v8, %v3886_v31  ;;  %v6475_v30 = vmul.f32 %v11583_v21, %v11639_v42  ;;  %v14867_v36 = vld [vmem:[#allocation57_spill] sm:$0xff] }
 0x2dc   : > { %v2098_v28 = vadd.f32 %v11333_v40, %v14866_v44  ;;  %6833 = vadd.xlane.f32.xlu1 %v6832_v62  ;;  %v6213_v3 = vadd.f32 %v6085_v13, %v5825_v23  ;;  %v3371_v49 = vmul.f32 %v11300_v58, %v14567_v41  ;;  %v3759_v4 = vmul.f32 %v11302_v60, %v9019_v47  ;;  %v11685_v44 = vpop.f32.mrb[177].mxu1 }
 0x2dd   : > { %v5437_v19 = vadd.f32 %v5309_v10, %v5049_v35  ;;  %v4662_v8 = vadd.f32 %v4534_v37, %v4274_v5  ;;  %v4147_v48 = vmul.f32 %v11304_v52, %v9029_v14  ;;  %v4535_v13 = vmul.f32 %v11448_v18, %v9095_v50  ;;  %v11673_v10 = vld [vmem:[#allocation2 + $0x29a] sm:$0xff]  ;;  %14868 = vst [vmem:[#allocation50_spill] sm:$0xff] %v11685_v44  ;;  %v11736_v44 = vld [vmem:[#allocation2 + $0x2b0] sm:$0xff] }
 0x2de   : > { %v2643_v31 = vadd.f32 %v14867_v36, %v2098_v28  ;;  %v6601_v58 = vadd.f32 %v11587_v61, %v6213_v3  ;;  %v3887_v35 = vadd.f32 %v3759_v4, %v3371_v49  ;;  %v4923_v60 = vmul.f32 %v11450_v20, %v9098_v16  ;;  %v11687_v61 = vpop.f32.mrb[178].mxu0  ;;  %v11696_v49 = vpop.f32.mrb[178].mxu1 }
 0x2df   : > { %v5826_v23 = vadd.f32 %v5698_v7, %v5437_v19  ;;  %v5050_v62 = vadd.f32 %v4922_v0, %v4662_v8  ;;  %v5311_v37 = vmul.f32 %v11452_v56, %v9111_v22  ;;  %v5700_v52 = vmul.f32 %v9122_v59, %v11664_v57  ;;  %14869 = vst [vmem:[#allocation57_spill] sm:$0xff] %v11687_v61  ;;  %v11694_v19 = vld [vmem:[#allocation2 + $0x2a8] sm:$0xff]  ;;  %v2179_v4 = vpop.f32.mrb[179].mxu0 }
 0x2e0   : > { %3119 = vst.msk [vmem:[#allocation2 + $0x2d9] sm:$0xff] %vm1595_vm0, %v2643_v31  ;;  %v6088_v5 = vmul.f32 %v9125_v11, %v11666_v53  ;;  %v6841_v7 = vsel %vm1595_vm0, %v6601_v58, 0.0  ;;  %v4275_v3 = vadd.f32 %v4147_v48, %v3887_v35  ;;  %v11692_v0 = vmul.f32 %v11583_v21, %v11673_v10  ;;  %14870 = vst [vmem:[#allocation100_spill] sm:$0xff] %v11696_v49  ;;  %v11704_v48 = vld [vmem:[#allocation2 + $0x2a9] sm:$0xff] }
 0x2e1   : > { %v6214_v28 = vadd.f32 %v6086_v38, %v5826_v23  ;;  %6842 = vadd.xlane.f32.xlu0 %v6841_v7  ;;  %v5438_v8 = vadd.f32 %v5310_v2, %v5050_v62  ;;  %v3372_v36 = vmul.f32 %v11413_v34, %v14567_v41  ;;  %v3760_v31 = vmul.f32 %v11421_v54, %v9019_v47  ;;  %v11706_v58 = vld [vmem:[#allocation2 + $0x2aa] sm:$0xff]  ;;  %v11708_v23 = vpop.f32.mrb[179].mxu1 }
 0x2e2   : > { %v4148_v38 = vmul.f32 %v11423_v32, %v9029_v14  ;;  %14871 = vst [vmem:[#allocation101_spill] sm:$0xff] %v11708_v23  ;;  %v4663_v4 = vadd.f32 %v4535_v13, %v4275_v3  ;;  %v4536_v2 = vmul.f32 %v11550_v9, %v9095_v50  ;;  %v4924_v34 = vmul.f32 %v11558_v12, %v9098_v16  ;;  %v14872_v3 = vld [vmem:[#allocation33_spill] sm:$0xff] }
 0x2e3   : > { %v6602_v35 = vadd.f32 %v11621_v1, %v6214_v28  ;;  %v5827_v62 = vadd.f32 %v5699_v43, %v5438_v8  ;;  %v3888_v54 = vadd.f32 %v3760_v31, %v3372_v36  ;;  %v5312_v32 = vmul.f32 %v11560_v27, %v9111_v22  ;;  %v14873_v36 = vld [vmem:[#allocation65_spill] sm:$0xff] }
 0x2e4   : > { %v5701_v7 = vmul.f32 %v9122_v59, %v11694_v19  ;;  %v5051_v23 = vadd.f32 %v4923_v60, %v4663_v4  ;;  %v6089_v1 = vmul.f32 %v9125_v11, %v11704_v48  ;;  %v11724_v13 = vmul.f32 %v11583_v21, %v11706_v58 }
 0x2e5   : > { %v6844_v49 = vsel %vm1595_vm0, %v6602_v35, 0.0  ;;  %v6215_v28 = vadd.f32 %v6087_v6, %v5827_v62  ;;  %v4276_v43 = vadd.f32 %v4148_v38, %v3888_v54  ;;  %v2103_v8 = vadd.f32 %v11333_v40, %v14872_v3  ;;  %v14874_v38 = vld [vmem:[#allocation24_spill] sm:$0xff]  ;;  %v14875_v54 = vld [vmem:[#allocation15_spill] sm:$0xff] }
 0x2e6   : > { %6845 = vadd.xlane.f32.xlu1 %v6844_v49  ;;  %v2106_v31 = vadd.f32 %v11333_v40, %v14873_v36  ;;  %v5439_v61 = vadd.f32 %v5311_v37, %v5051_v23  ;;  %v3373_v60 = vmul.f32 %v11522_v29, %v14567_v41  ;;  %v3761_v35 = vmul.f32 %v11524_v33, %v9019_v47  ;;  %v11742_v37 = vld [vmem:[#allocation2 + $0x2b2] sm:$0xff] }
 0x2e7   : > { %v4149_v4 = vmul.f32 %v11533_v17, %v9029_v14  ;;  %v6603_v6 = vadd.f32 %v6475_v30, %v6215_v28  ;;  %v4664_v49 = vadd.f32 %v4536_v2, %v4276_v43  ;;  %v2648_v62 = vadd.f32 %v14874_v38, %v2103_v8  ;;  %v11757_v28 = vpop.f32.mrb[180].mxu1 }
 0x2e8   : > { %v2651_v3 = vadd.f32 %v14875_v54, %v2106_v31  ;;  %v5828_v23 = vadd.f32 %v5700_v52, %v5439_v61  ;;  %v3889_v29 = vadd.f32 %v3761_v35, %v3373_v60  ;;  %v4537_v33 = vmul.f32 %v11598_v25, %v9095_v50  ;;  %v11755_v61 = vpop.f32.mrb[180].mxu0  ;;  %14877 = vst [vmem:[#allocation65_spill] sm:$0xff] %v11757_v28  ;;  %v11765_v60 = vld [vmem:[#allocation2 + $0x2b8] sm:$0xff] }
 0x2e9   : > { %v4925_v17 = vmul.f32 %v11600_v45, %v9098_v16  ;;  %v6847_v36 = vsel %vm1595_vm0, %v6603_v6, 0.0  ;;  %v5052_v30 = vadd.f32 %v4924_v34, %v4664_v49  ;;  %3120 = vst.msk [vmem:[#allocation2 + $0x2e1] sm:$0xff] %vm1595_vm0, %v2648_v62  ;;  %v5313_v2 = vmul.f32 %v11602_v46, %v9111_v22  ;;  %14876 = vst [vmem:[#allocation33_spill] sm:$0xff] %v11755_v61  ;;  %v2184_v35 = vpop.f32.mrb[181].mxu0  ;;  %v11767_v6 = vpop.f32.mrb[181].mxu1  ;;  %v11775_v62 = vld [vmem:[#allocation2 + $0x2b9] sm:$0xff] }
 0x2ea   : > { %3121 = vst.msk [vmem:[#allocation2 + $0x2e9] sm:$0xff] %vm1595_vm0, %v2651_v3  ;;  %v5702_v52 = vmul.f32 %v9122_v59, %v11736_v44  ;;  %6848 = vadd.xlane.f32.xlu0 %v6847_v36  ;;  %v6216_v43 = vadd.f32 %v6088_v5, %v5828_v23  ;;  %v4277_v8 = vadd.f32 %v4149_v4, %v3889_v29  ;;  %14878 = vst [vmem:[#allocation24_spill] sm:$0xff] %v11767_v6  ;;  %v11777_v54 = vld [vmem:[#allocation2 + $0x2ba] sm:$0xff] }
 0x2eb   : > { %v6090_v34 = vmul.f32 %v9125_v11, %v11740_v39  ;;  %v11763_v31 = vmul.f32 %v11583_v21, %v11742_v37  ;;  %v5440_v49 = vadd.f32 %v5312_v32, %v5052_v30  ;;  %v3374_v38 = vmul.f32 %v11484_v15, %v14567_v41 }
 0x2ec   : > { %v3762_v5 = vmul.f32 %v11486_v26, %v9019_v47  ;;  %v4150_v4 = vmul.f32 %v11491_v55, %v9029_v14  ;;  %v6604_v3 = vadd.f32 %v11692_v0, %v6216_v43  ;;  %v4665_v23 = vadd.f32 %v4537_v33, %v4277_v8  ;;  %v14879_v8 = vld [vmem:[#allocation55_spill] sm:$0xff] }
 0x2ed   : > { %v4538_v29 = vmul.f32 %v11632_v24, %v9095_v50  ;;  %v4926_v32 = vmul.f32 %v11634_v63, %v9098_v16  ;;  %v5829_v15 = vadd.f32 %v5701_v7, %v5440_v49  ;;  %v5314_v26 = vmul.f32 %v11639_v42, %v9111_v22 }
 0x2ee   : > { %v3890_v36 = vadd.f32 %v3762_v5, %v3374_v38  ;;  %v5703_v55 = vmul.f32 %v9122_v59, %v11765_v60  ;;  %v6850_v30 = vsel %vm1595_vm0, %v6604_v3, 0.0  ;;  %v5053_v35 = vadd.f32 %v4925_v17, %v4665_v23  ;;  %v11799_v5 = vld [vmem:[#allocation2 + $0x2c0] sm:$0xff]  ;;  %v11801_v3 = vpop.f32.mrb[182].mxu0  ;;  %v11803_v17 = vpop.f32.mrb[182].mxu1 }
 0x2ef   : > { %v6091_v0 = vmul.f32 %v9125_v11, %v11775_v62  ;;  %v11793_v33 = vmul.f32 %v11583_v21, %v11777_v54  ;;  %6851 = vadd.xlane.f32.xlu1 %v6850_v30  ;;  %v6217_v43 = vadd.f32 %v6089_v1, %v5829_v15  ;;  %v2111_v49 = vadd.f32 %v11333_v40, %v14879_v8  ;;  %v11811_v15 = vld [vmem:[#allocation2 + $0x2c1] sm:$0xff] }
 0x2f0   : > { %v4278_v7 = vadd.f32 %v4150_v4, %v3890_v36  ;;  %v3375_v38 = vmul.f32 %v11448_v18, %v14567_v41  ;;  %14880 = vst [vmem:[#allocation15_spill] sm:$0xff] %v11801_v3  ;;  %14881 = vst [vmem:[#allocation55_spill] sm:$0xff] %v11803_v17  ;;  %v5441_v23 = vadd.f32 %v5313_v2, %v5053_v35  ;;  %v11813_v36 = vld [vmem:[#allocation2 + $0x2c2] sm:$0xff]  ;;  %v2187_v18 = vpop.f32.mrb[183].mxu0  ;;  %v14882_v3 = vld [vmem:[#allocation76_spill] sm:$0xff] }
 0x2f1   : > { %v3763_v6 = vmul.f32 %v11450_v20, %v9019_v47  ;;  %v4151_v1 = vmul.f32 %v11452_v56, %v9029_v14  ;;  %v4539_v4 = vmul.f32 %v11664_v57, %v9095_v50  ;;  %v6605_v30 = vadd.f32 %v11724_v13, %v6217_v43  ;;  %v14883_v43 = vld [vmem:[#allocation66_spill] sm:$0xff] }
 0x2f2   : > { %v4666_v8 = vadd.f32 %v4538_v29, %v4278_v7  ;;  %v2656_v17 = vadd.f32 %v14882_v3, %v2111_v49  ;;  %v4927_v2 = vmul.f32 %v11666_v53, %v9098_v16  ;;  %v5830_v20 = vadd.f32 %v5702_v52, %v5441_v23  ;;  %v11845_v23 = vld [vmem:[#allocation2 + $0x2d1] sm:$0xff] }
 0x2f3   : > { %v3891_v35 = vadd.f32 %v3763_v6, %v3375_v38  ;;  %v5315_v56 = vmul.f32 %v11673_v10, %v9111_v22  ;;  %v5704_v28 = vmul.f32 %v9122_v59, %v11799_v5  ;;  %v6853_v61 = vsel %vm1595_vm0, %v6605_v30, 0.0  ;;  %v11837_v38 = vpop.f32.mrb[183].mxu1  ;;  %v14886_v30 = vld [vmem:[#allocation13_spill] sm:$0xff] }
 0x2f4   : > { %v5054_v51 = vadd.f32 %v4926_v32, %v4666_v8  ;;  %3122 = vst.msk [vmem:[#allocation2 + $0x2f9] sm:$0xff] %vm1595_vm0, %v2656_v17  ;;  %v6092_v13 = vmul.f32 %v9125_v11, %v11811_v15  ;;  %v11829_v29 = vmul.f32 %v11583_v21, %v11813_v36  ;;  %6854 = vadd.xlane.f32.xlu0 %v6853_v61  ;;  %v11835_v32 = vld [vmem:[#allocation2 + $0x2d0] sm:$0xff]  ;;  %14884 = vst [vmem:[#allocation76_spill] sm:$0xff] %v11837_v38  ;;  %v11887_v38 = vld [vmem:[#allocation2 + $0x2d9] sm:$0xff] }
 0x2f5   : > { %v6218_v52 = vadd.f32 %v6090_v34, %v5830_v20  ;;  %v4279_v6 = vadd.f32 %v4151_v1, %v3891_v35  ;;  %v2114_v7 = vadd.f32 %v11333_v40, %v14883_v43  ;;  %v3376_v49 = vmul.f32 %v11550_v9, %v14567_v41  ;;  %v11847_v1 = vld [vmem:[#allocation2 + $0x2d2] sm:$0xff]  ;;  %v11858_v43 = vld [vmem:[#allocation3] ss:$0 sm:$0xff] }
 0x2f6   : > { %v5442_v3 = vadd.f32 %v5314_v26, %v5054_v51  ;;  %v3764_v17 = vmul.f32 %v11558_v12, %v9019_v47  ;;  %v4152_v61 = vmul.f32 %v11560_v27, %v9029_v14  ;;  %v4540_v34 = vmul.f32 %v11694_v19, %v9095_v50  ;;  %14885 = vst [vmem:[#allocation66_spill] sm:$0xff] %v11847_v1  ;;  %v6675_v12 = vpop.xlane.xlu0 %6674 }
 0x2f7   : > { %v6606_v9 = vadd.f32 %v11763_v31, %v6218_v52  ;;  %v4667_v18 = vadd.f32 %v4539_v4, %v4279_v6  ;;  %v2659_v8 = vadd.f32 %v14886_v30, %v2114_v7  ;;  %v4928_v51 = vmul.f32 %v11704_v48, %v9098_v16  ;;  %v6684_v6 = vpop.xlane.xlu1 %6683  ;;  %v14888_v30 = vld [vmem:[#allocation61_spill] sm:$0xff] }
 0x2f8   : > { %v5831_v26 = vadd.f32 %v5703_v55, %v5442_v3  ;;  %v3892_v20 = vadd.f32 %v3764_v17, %v3376_v49  ;;  %v5316_v27 = vmul.f32 %v11706_v58, %v9111_v22  ;;  %v5705_v35 = vmul.f32 %v9122_v59, %v11835_v32  ;;  %v14887_v3 = vld [vmem:[#allocation71_spill] sm:$0xff] }
 0x2f9   : > { %v6856_v31 = vsel %vm1595_vm0, %v6606_v9, 0.0  ;;  %v5055_v4 = vadd.f32 %v4927_v2, %v4667_v18  ;;  %3123 = vst.msk [vmem:[#allocation2 + $0x301] sm:$0xff] %vm1595_vm0, %v2659_v8  ;;  %v11864_v52 = vmul.f32 %v9125_v11, %v11845_v23  ;;  %v11868_v55 = vmul.f32 %v11583_v21, %v11847_v1 }
 0x2fa   : > { %6857 = vadd.xlane.f32.xlu1 %v6856_v31  ;;  %v6219_v7 = vadd.f32 %v6091_v0, %v5831_v26  ;;  %v4280_v49 = vadd.f32 %v4152_v61, %v3892_v20  ;;  %v2119_v17 = vadd.f32 %v11333_v40, %v14887_v3  ;;  %v2122_v2 = vadd.f32 %v11333_v40, %v14888_v30  ;;  %v14889_v26 = vld [vmem:[#allocation9_spill] sm:$0xff] }
 0x2fb   : > { %v5443_v9 = vadd.f32 %v5315_v56, %v5055_v4  ;;  %v7064_v18 = vadd.f32 %v11858_v43, %v6675_v12  ;;  %v3377_v0 = vmul.f32 %v11598_v25, %v14567_v41  ;;  %v14890_v31 = vld [vmem:[#allocation25_spill] sm:$0xff]  ;;  %v3765_v56 = vmul.f32 %v11600_v45, %v9019_v47  ;;  %v6678_v12 = vpop.xlane.xlu0 %6677 }
 0x2fc   : > { %v6607_v61 = vadd.f32 %v11793_v33, %v6219_v7  ;;  %v4668_v8 = vadd.f32 %v4540_v34, %v4280_v49  ;;  %v2664_v20 = vadd.f32 %v14889_v26, %v2119_v17  ;;  %v2667_v3 = vadd.f32 %v14890_v31, %v2122_v2  ;;  %v11885_v30 = vld [vmem:[#allocation2 + $0x2d8] sm:$0xff] }
 0x2fd   : > { %v5832_v1 = vadd.f32 %v5704_v28, %v5443_v9  ;;  %7193 = vst.msk [vmem:[%s11877_s8] sm:$0xff] %vm7192_vm2, %v7064_v18  ;;  %v4153_v25 = vmul.f32 %v11602_v46, %v9029_v14  ;;  %v4541_v33 = vmul.f32 %v11736_v44, %v9095_v50  ;;  %v11897_v34 = vld [vmem:[#allocation2 + $0x2da] sm:$0xff]  ;;  %v4929_v28 = vmul.f32 %v11740_v39, %v9098_v16  ;;  %v11912_v9 = vpop.f32.mrb[184].mxu0 }
 0x2fe   : > { %v6859_v4 = vsel %vm1595_vm0, %v6607_v61, 0.0  ;;  %v5056_v7 = vadd.f32 %v4928_v51, %v4668_v8  ;;  %3124 = vst.msk [vmem:[#allocation2 + $0x309] sm:$0xff] %vm1595_vm0, %v2664_v20  ;;  %3125 = vst.msk [vmem:[#allocation2 + $0x311] sm:$0xff] %vm1595_vm0, %v2667_v3  ;;  %v5317_v45 = vmul.f32 %v11742_v37, %v9111_v22  ;;  %v3893_v49 = vadd.f32 %v3765_v56, %v3377_v0  ;;  %v6681_v51 = vpop.xlane.xlu1 %6680  ;;  %v11920_v0 = vpop.f32.mrb[184].mxu1  ;;  %v11927_v3 = vld [vmem:[#allocation2 + $0x2e0] sm:$0xff] }
 0x2ff   : > { %6860 = vadd.xlane.f32.xlu0 %v6859_v4  ;;  %v6220_v46 = vadd.f32 %v6092_v13, %v5832_v1  ;;  %v5706_v17 = vmul.f32 %v9122_v59, %v11885_v30  ;;  %v11910_v2 = vmul.f32 %v9125_v11, %v11887_v38  ;;  %14891 = vst [vmem:[#allocation13_spill] sm:$0xff] %v11912_v9  ;;  %14892 = vst [vmem:[#allocation71_spill] sm:$0xff] %v11920_v0  ;;  %v2192_v8 = vpop.f32.mrb[185].mxu0  ;;  %v11929_v56 = vld [vmem:[#allocation2 + $0x2e1] sm:$0xff] }
 0x300   : > { %v5444_v18 = vadd.f32 %v5316_v27, %v5056_v7  ;;  %v11916_v61 = vmul.f32 %v11583_v21, %v11897_v34  ;;  %v7067_v13 = vadd.f32 %v11858_v43, %v6684_v6  ;;  %v7065_v1 = vadd.f32 %v11858_v43, %v6678_v12  ;;  %v11931_v4 = vld [vmem:[#allocation2 + $0x2e2] sm:$0xff]  ;;  %v11933_v6 = vpop.f32.mrb[185].mxu1 }
 0x301   : > { %v6608_v26 = vadd.f32 %v11829_v29, %v6220_v46  ;;  %v4281_v20 = vadd.f32 %v4153_v25, %v3893_v49  ;;  %v3378_v31 = vmul.f32 %v11632_v24, %v14567_v41  ;;  %v3766_v27 = vmul.f32 %v11634_v63, %v9019_v47  ;;  %14893 = vst [vmem:[#allocation61_spill] sm:$0xff] %v11933_v6 }
 0x302   : > { %v5833_v12 = vadd.f32 %v5705_v35, %v5444_v18  ;;  %7196 = vst.msk [vmem:[%s11877_s8 + $0x18] sm:$0xff] %vm7192_vm2, %v7067_v13  ;;  %7194 = vst.msk [vmem:[%s11877_s8 + $0x8] sm:$0xff] %vm7192_vm2, %v7065_v1  ;;  %v4154_v29 = vmul.f32 %v11639_v42, %v9029_v14  ;;  %v4542_v24 = vmul.f32 %v11765_v60, %v9095_v50 }
 0x303   : > { %v4930_v63 = vmul.f32 %v11775_v62, %v9098_v16  ;;  %v6862_v25 = vsel %vm1595_vm0, %v6608_v26, 0.0  ;;  %v4669_v7 = vadd.f32 %v4541_v33, %v4281_v20  ;;  %v3894_v46 = vadd.f32 %v3766_v27, %v3378_v31  ;;  %v14894_v26 = vld [vmem:[#allocation83_spill] sm:$0xff]  ;;  %v6696_v31 = vpop.xlane.xlu1 %6695 }
 0x304   : > { %v5318_v35 = vmul.f32 %v11777_v54, %v9111_v22  ;;  %6863 = vadd.xlane.f32.xlu1 %v6862_v25  ;;  %v6221_v49 = vadd.f32 %v11864_v52, %v5833_v12  ;;  %v5707_v18 = vmul.f32 %v9122_v59, %v11927_v3  ;;  %v11953_v42 = vmul.f32 %v9125_v11, %v11929_v56  ;;  %v6687_v52 = vpop.xlane.xlu0 %6686 }
 0x305   : > { %v11957_v13 = vmul.f32 %v11583_v21, %v11931_v4  ;;  %v5057_v1 = vadd.f32 %v4929_v28, %v4669_v7  ;;  %v4282_v33 = vadd.f32 %v4154_v29, %v3894_v46  ;;  %v7066_v8 = vadd.f32 %v11858_v43, %v6681_v51  ;;  %v11969_v7 = vld [vmem:[#allocation2 + $0x2e8] sm:$0xff]  ;;  %v11973_v51 = vpop.f32.mrb[186].mxu0  ;;  %v11975_v46 = vpop.f32.mrb[186].mxu1 }
 0x306   : > { %v2127_v20 = vadd.f32 %v11333_v40, %v14894_v26  ;;  %v6609_v27 = vadd.f32 %v11868_v55, %v6221_v49  ;;  %v3379_v12 = vmul.f32 %v11664_v57, %v14567_v41  ;;  %v3767_v25 = vmul.f32 %v11666_v53, %v9019_v47  ;;  %v11971_v29 = vld [vmem:[#allocation2 + $0x2e9] sm:$0xff]  ;;  %14895 = vst [vmem:[#allocation9_spill] sm:$0xff] %v11973_v51  ;;  %v14897_v55 = vld [vmem:[#allocation77_spill] sm:$0xff] }
 0x307   : > { %v4155_v28 = vmul.f32 %v11673_v10, %v9029_v14  ;;  %14896 = vst [vmem:[#allocation25_spill] sm:$0xff] %v11975_v46  ;;  %v5445_v26 = vadd.f32 %v5317_v45, %v5057_v1  ;;  %v4670_v6 = vadd.f32 %v4542_v24, %v4282_v33  ;;  %7195 = vst.msk [vmem:[%s11877_s8 + $0x10] sm:$0xff] %vm7192_vm2, %v7066_v8  ;;  %v11982_v49 = vld [vmem:[#allocation2 + $0x2ea] sm:$0xff]  ;;  %v2195_v10 = vpop.f32.mrb[187].mxu0 }
 0x308   : > { %v2672_v57 = vadd.f32 %v14897_v55, %v2127_v20  ;;  %v4543_v53 = vmul.f32 %v11799_v5, %v9095_v50  ;;  %v6865_v0 = vsel %vm1595_vm0, %v6609_v27, 0.0  ;;  %v3895_v9 = vadd.f32 %v3767_v25, %v3379_v12  ;;  %v14898_v12 = vld [vmem:[#allocation53_spill] sm:$0xff] }
 0x309   : > { %v4931_v51 = vmul.f32 %v11811_v15, %v9098_v16  ;;  %v5319_v45 = vmul.f32 %v11813_v36, %v9111_v22  ;;  %6866 = vadd.xlane.f32.xlu0 %v6865_v0  ;;  %v5834_v24 = vadd.f32 %v5706_v17, %v5445_v26  ;;  %v5058_v1 = vadd.f32 %v4930_v63, %v4670_v6  ;;  %v12001_v0 = vpop.f32.mrb[187].mxu1 }
 0x30a   : > { %3126 = vst.msk [vmem:[#allocation2 + $0x321] sm:$0xff] %vm1595_vm0, %v2672_v57  ;;  %v5708_v33 = vmul.f32 %v9122_v59, %v11969_v7  ;;  %v6096_v8 = vmul.f32 %v9125_v11, %v11971_v29  ;;  %v4283_v20 = vadd.f32 %v4155_v28, %v3895_v9  ;;  %v11996_v27 = vmul.f32 %v11583_v21, %v11982_v49  ;;  %v12007_v28 = vld [vmem:[#allocation2 + $0x2f8] sm:$0xff]  ;;  %v14900_v57 = vld [vmem:[#allocation67_spill] sm:$0xff]  ;;  %v12079_v46 = vpop.f32.mrb[188].mxu1 }
 0x30b   : > { %v2130_v25 = vadd.f32 %v11333_v40, %v14898_v12  ;;  %v7068_v17 = vadd.f32 %v11858_v43, %v6687_v52  ;;  %14899 = vst [vmem:[#allocation83_spill] sm:$0xff] %v12001_v0  ;;  %v6222_v6 = vadd.f32 %v11910_v2, %v5834_v24  ;;  %v5446_v63 = vadd.f32 %v5318_v35, %v5058_v1  ;;  %v12016_v52 = vld [vmem:[#allocation2 + $0x2f9] sm:$0xff]  ;;  %v6690_v24 = vpop.xlane.xlu1 %6689  ;;  %v14901_v12 = vld [vmem:[#allocation66_spill] sm:$0xff]  ;;  %v12077_v0 = vpop.f32.mrb[188].mxu0 }
 0x30c   : > { %v7071_v26 = vadd.f32 %v11858_v43, %v6696_v31  ;;  %v3380_v9 = vmul.f32 %v11694_v19, %v14567_v41  ;;  %v4671_v55 = vadd.f32 %v4543_v53, %v4283_v20  ;;  %v3768_v40 = vmul.f32 %v11704_v48, %v9019_v47  ;;  %v12018_v35 = vld [vmem:[#allocation2 + $0x2fa] sm:$0xff]  ;;  %v6693_v31 = vpop.xlane.xlu0 %6692  ;;  %14906 = vst [vmem:[#allocation77_spill] sm:$0xff] %v12077_v0 }
 0x30d   : > { %v2675_v10 = vadd.f32 %v14900_v57, %v2130_v25  ;;  %7197 = vst.msk [vmem:[%s11877_s8 + $0x20] sm:$0xff] %vm7192_vm2, %v7068_v17  ;;  %v4156_v2 = vmul.f32 %v11706_v58, %v9029_v14  ;;  %v6610_v19 = vadd.f32 %v11916_v61, %v6222_v6  ;;  %v5835_v1 = vadd.f32 %v5707_v18, %v5446_v63 }
 0x30e   : > { %7200 = vst.msk [vmem:[%s11877_s8 + $0x38] sm:$0xff] %vm7192_vm2, %v7071_v26  ;;  %v4544_v53 = vmul.f32 %v11835_v32, %v9095_v50  ;;  %v4932_v48 = vmul.f32 %v11845_v23, %v9098_v16  ;;  %v5059_v20 = vadd.f32 %v4931_v51, %v4671_v55  ;;  %v3896_v58 = vadd.f32 %v3768_v40, %v3380_v9 }
 0x30f   : > { %3127 = vst.msk [vmem:[#allocation2 + $0x329] sm:$0xff] %vm1595_vm0, %v2675_v10  ;;  %v5320_v25 = vmul.f32 %v14901_v12, %v9111_v22  ;;  %v5709_v17 = vmul.f32 %v9122_v59, %v12007_v28  ;;  %v6868_v61 = vsel %vm1595_vm0, %v6610_v19, 0.0  ;;  %v6223_v18 = vadd.f32 %v11953_v42, %v5835_v1  ;;  %v12048_v42 = vld [vmem:[%s14310_s2] ss:$0 sm:$0xff]  ;;  %v14902_v10 = vld [vmem:[#allocation22_spill] sm:$0xff]  ;;  %v14903_v19 = vld [vmem:[#allocation59_spill] sm:$0xff] }
 0x310   : > { %v12036_v6 = vmul.f32 %v9125_v11, %v12016_v52  ;;  %v12040_v51 = vmul.f32 %v11583_v21, %v12018_v35  ;;  %6869 = vadd.xlane.f32.xlu1 %v6868_v61  ;;  %v5447_v63 = vadd.f32 %v5319_v45, %v5059_v20  ;;  %v4284_v26 = vadd.f32 %v4156_v2, %v3896_v58  ;;  %v12064_v20 = vld [vmem:[#allocation2 + $0x300] sm:$0xff] }
 0x311   : > { %v7070_v9 = vadd.f32 %v11858_v43, %v6693_v31  ;;  %v7069_v55 = vadd.f32 %v11858_v43, %v6690_v24  ;;  %v6611_v57 = vadd.f32 %v11957_v13, %v6223_v18  ;;  %v2135_v40 = vadd.f32 %v12048_v42, %v14902_v10  ;;  %v12066_v58 = vld [vmem:[#allocation2 + $0x301] sm:$0xff]  ;;  %v6699_v18 = vpop.xlane.xlu0 %6698  ;;  %14907 = vst [vmem:[#allocation53_spill] sm:$0xff] %v12079_v46 }
 0x312   : > { %v2138_v1 = vadd.f32 %v12048_v42, %v14903_v19  ;;  %v3381_v45 = vmul.f32 %v11736_v44, %v14567_v41  ;;  %v5836_v2 = vadd.f32 %v5708_v33, %v5447_v63  ;;  %v4672_v31 = vadd.f32 %v4544_v53, %v4284_v26  ;;  %v12068_v61 = vld [vmem:[#allocation2 + $0x302] sm:$0xff]  ;;  %v6708_v44 = vpop.xlane.xlu1 %6707 }
 0x313   : > { %7199 = vst.msk [vmem:[%s11877_s8 + $0x30] sm:$0xff] %vm7192_vm2, %v7070_v9  ;;  %7198 = vst.msk [vmem:[%s11877_s8 + $0x28] sm:$0xff] %vm7192_vm2, %v7069_v55  ;;  %v3769_v13 = vmul.f32 %v11740_v39, %v9019_v47  ;;  %v4157_v24 = vmul.f32 %v11742_v37, %v9029_v14  ;;  %v6871_v33 = vsel %vm1595_vm0, %v6611_v57, 0.0  ;;  %v14904_v53 = vld [vmem:[#allocation18_spill] sm:$0xff]  ;;  %v4545_v39 = vmul.f32 %v11885_v30, %v9095_v50 }
 0x314   : > { %v2680_v63 = vadd.f32 %v14904_v53, %v2135_v40  ;;  %v14905_v26 = vld [vmem:[#allocation78_spill] sm:$0xff]  ;;  %6872 = vadd.xlane.f32.xlu0 %v6871_v33  ;;  %v6224_v55 = vadd.f32 %v6096_v8, %v5836_v2  ;;  %v5060_v37 = vadd.f32 %v4932_v48, %v4672_v31  ;;  %v4933_v19 = vmul.f32 %v11887_v38, %v9098_v16 }
 0x315   : > { %v2683_v9 = vadd.f32 %v14905_v26, %v2138_v1  ;;  %v3897_v10 = vadd.f32 %v3769_v13, %v3381_v45  ;;  %v5321_v57 = vmul.f32 %v11897_v34, %v9111_v22  ;;  %v5710_v40 = vmul.f32 %v9122_v59, %v12064_v20  ;;  %v2200_v1 = vpop.f32.mrb[189].mxu0  ;;  %v12095_v45 = vpop.f32.mrb[189].mxu1  ;;  %v12099_v53 = vld [vmem:[#allocation2 + $0x308] sm:$0xff] }
 0x316   : > { %3128 = vst.msk [vmem:[#allocation2 + $0x331] sm:$0xff] %vm1595_vm0, %v2680_v63  ;;  %v12089_v8 = vmul.f32 %v9125_v11, %v12066_v58  ;;  %v12093_v48 = vmul.f32 %v11583_v21, %v12068_v61  ;;  %14908 = vst [vmem:[#allocation67_spill] sm:$0xff] %v12095_v45  ;;  %v6612_v2 = vadd.f32 %v11996_v27, %v6224_v55  ;;  %v12108_v45 = vld [vmem:[#allocation2 + $0x309] sm:$0xff]  ;;  %v6702_v55 = vpop.xlane.xlu1 %6701  ;;  %v14913_v46 = vld [vmem:[#allocation54_spill] sm:$0xff] }
 0x317   : > { %3129 = vst.msk [vmem:[#allocation2 + $0x339] sm:$0xff] %vm1595_vm0, %v2683_v9  ;;  %v5448_v31 = vadd.f32 %v5320_v25, %v5060_v37  ;;  %v4285_v13 = vadd.f32 %v4157_v24, %v3897_v10  ;;  %v7072_v33 = vadd.f32 %v11858_v43, %v6699_v18  ;;  %v7075_v63 = vadd.f32 %v11858_v43, %v6708_v44  ;;  %v12110_v27 = vld [vmem:[#allocation2 + $0x30a] sm:$0xff] }
 0x318   : > { %v3382_v26 = vmul.f32 %v11765_v60, %v14567_v41  ;;  %v3770_v9 = vmul.f32 %v11775_v62, %v9019_v47  ;;  %v4158_v1 = vmul.f32 %v11777_v54, %v9029_v14  ;;  %v6874_v25 = vsel %vm1595_vm0, %v6612_v2, 0.0  ;;  %v6705_v60 = vpop.xlane.xlu0 %6704 }
 0x319   : > { %v5837_v24 = vadd.f32 %v5709_v17, %v5448_v31  ;;  %v4673_v18 = vadd.f32 %v4545_v39, %v4285_v13  ;;  %7201 = vst.msk [vmem:[%s11877_s8 + $0x40] sm:$0xff] %vm7192_vm2, %v7072_v33  ;;  %v4546_v44 = vmul.f32 %v11927_v3, %v9095_v50  ;;  %6875 = vadd.xlane.f32.xlu1 %v6874_v25  ;;  %7204 = vst.msk [vmem:[%s11877_s8 + $0x58] sm:$0xff] %vm7192_vm2, %v7075_v63 }
 0x31a   : > { %v3898_v62 = vadd.f32 %v3770_v9, %v3382_v26  ;;  %v4934_v54 = vmul.f32 %v11929_v56, %v9098_v16  ;;  %v5322_v37 = vmul.f32 %v11931_v4, %v9111_v22  ;;  %v5711_v17 = vmul.f32 %v9122_v59, %v12099_v53  ;;  %v14909_v26 = vld [vmem:[#allocation85_spill] sm:$0xff] }
 0x31b   : > { %v6225_v39 = vadd.f32 %v12036_v6, %v5837_v24  ;;  %v5061_v10 = vadd.f32 %v4933_v19, %v4673_v18  ;;  %v12128_v2 = vmul.f32 %v9125_v11, %v12108_v45  ;;  %v12132_v31 = vmul.f32 %v11583_v21, %v12110_v27  ;;  %v12138_v6 = vpop.f32.mrb[190].mxu0  ;;  %v12140_v19 = vpop.f32.mrb[190].mxu1  ;;  %v14912_v18 = vld [vmem:[#allocation34_spill] sm:$0xff] }
 0x31c   : > { %v4286_v13 = vadd.f32 %v4158_v1, %v3898_v62  ;;  %v7074_v33 = vadd.f32 %v11858_v43, %v6705_v60  ;;  %v7073_v63 = vadd.f32 %v11858_v43, %v6702_v55  ;;  %v2143_v9 = vadd.f32 %v12048_v42, %v14909_v26  ;;  %14910 = vst [vmem:[#allocation66_spill] sm:$0xff] %v12138_v6  ;;  %v12147_v62 = vld [vmem:[#allocation2 + $0x310] sm:$0xff]  ;;  %v2203_v60 = vpop.f32.mrb[191].mxu0 }
 0x31d   : > { %14911 = vst [vmem:[#allocation22_spill] sm:$0xff] %v12140_v19  ;;  %v6613_v25 = vadd.f32 %v12040_v51, %v6225_v39  ;;  %v5449_v24 = vadd.f32 %v5321_v57, %v5061_v10  ;;  %v2760_v0 = vadd.f32 %v14913_v46, %v14912_v18  ;;  %v3383_v1 = vmul.f32 %v11799_v5, %v14567_v41  ;;  %v14915_v26 = vld [vmem:[#allocation63_spill] sm:$0xff]  ;;  %v12158_v46 = vld [vmem:[#allocation2 + $0x311] sm:$0xff] }
 0x31e   : > { %14914 = vst [vmem:[#allocation59_spill] sm:$0xff] %v12147_v62  ;;  %v4674_v55 = vadd.f32 %v4546_v44, %v4286_v13  ;;  %7203 = vst.msk [vmem:[%s11877_s8 + $0x50] sm:$0xff] %vm7192_vm2, %v7074_v33  ;;  %v2688_v6 = vadd.f32 %v14915_v26, %v2143_v9  ;;  %v3771_v51 = vmul.f32 %v11811_v15, %v9019_v47  ;;  %v12160_v39 = vld [vmem:[#allocation2 + $0x312] sm:$0xff]  ;;  %v6711_v33 = vpop.xlane.xlu0 %6710  ;;  %v6720_v15 = vpop.xlane.xlu1 %6719 }
 0x31f   : > { %7202 = vst.msk [vmem:[%s11877_s8 + $0x48] sm:$0xff] %vm7192_vm2, %v7073_v63  ;;  %v4159_v57 = vmul.f32 %v11813_v36, %v9029_v14  ;;  %14916 = vst [vmem:[#allocation18_spill] sm:$0xff] %v12158_v46  ;;  %v6877_v5 = vsel %vm1595_vm0, %v6613_v25, 0.0  ;;  %v5838_v10 = vadd.f32 %v5710_v40, %v5449_v24  ;;  %v4547_v44 = vmul.f32 %v11969_v7, %v9095_v50  ;;  %v14920_v18 = vld [vmem:[#allocation52_spill] sm:$0xff] }
 0x320   : > { %14917 = vst [vmem:[#allocation78_spill] sm:$0xff] %v12160_v39  ;;  %3148 = vst.msk [vmem:[#allocation2 + $0x3f9] sm:$0xff] %vm1595_vm0, %v2760_v0  ;;  %v4935_v13 = vmul.f32 %v11971_v29, %v9098_v16  ;;  %6878 = vadd.xlane.f32.xlu0 %v6877_v5  ;;  %v5062_v63 = vadd.f32 %v4934_v54, %v4674_v55  ;;  %v3899_v36 = vadd.f32 %v3771_v51, %v3383_v1  ;;  %v12173_v0 = vpop.f32.mrb[191].mxu1  ;;  %v14921_v26 = vld [vmem:[#allocation16_spill] sm:$0xff]  ;;  %v14922_v5 = vld [vmem:[#allocation35_spill] sm:$0xff] }
 0x321   : > { %3130 = vst.msk [vmem:[#allocation2 + $0x349] sm:$0xff] %vm1595_vm0, %v2688_v6  ;;  %v5323_v9 = vmul.f32 %v11982_v49, %v9111_v22  ;;  %v5712_v40 = vmul.f32 %v9122_v59, %v12147_v62  ;;  %14918 = vst [vmem:[#allocation85_spill] sm:$0xff] %v12173_v0  ;;  %v6226_v25 = vadd.f32 %v12089_v8, %v5838_v10  ;;  %v14919_v6 = vld [vmem:[#allocation29_spill] sm:$0xff]  ;;  %v14923_v0 = vld [vmem:[#allocation70_spill] sm:$0xff] }
 0x322   : > { %v12178_v24 = vmul.f32 %v9125_v11, %v12158_v46  ;;  %v12182_v54 = vmul.f32 %v11583_v21, %v12160_v39  ;;  %v2752_v1 = vadd.f32 %v14920_v18, %v14919_v6  ;;  %v5450_v60 = vadd.f32 %v5322_v37, %v5062_v63  ;;  %v14924_v39 = vld [vmem:[#allocation31_spill] sm:$0xff]  ;;  %v14925_v46 = vld [vmem:[#allocation88_spill] sm:$0xff] }
 0x323   : > { %v4287_v55 = vadd.f32 %v4159_v57, %v3899_v36  ;;  %v2146_v51 = vadd.f32 %v12048_v42, %v14921_v26  ;;  %v2763_v8 = vadd.f32 %v14923_v0, %v14922_v5  ;;  %v6614_v10 = vadd.f32 %v12093_v48, %v6226_v25  ;;  %v14926_v36 = vld [vmem:[#allocation79_spill] sm:$0xff]  ;;  %v12200_v48 = vld [vmem:[#allocation2 + $0x320] sm:$0xff] }
 0x324   : > { %3146 = vst.msk [vmem:[#allocation2 + $0x3e9] sm:$0xff] %vm1595_vm0, %v2752_v1  ;;  %v7076_v19 = vadd.f32 %v11858_v43, %v6711_v33  ;;  %v2755_v62 = vadd.f32 %v14925_v46, %v14924_v39  ;;  %v7079_v37 = vadd.f32 %v11858_v43, %v6720_v15  ;;  %v5839_v57 = vadd.f32 %v5711_v17, %v5450_v60  ;;  %v12202_v25 = vld [vmem:[#allocation2 + $0x321] sm:$0xff]  ;;  %v6717_v39 = vpop.xlane.xlu0 %6716 }
 0x325   : > { %v4675_v63 = vadd.f32 %v4547_v44, %v4287_v55  ;;  %v2691_v6 = vadd.f32 %v14926_v36, %v2146_v51  ;;  %3149 = vst.msk [vmem:[#allocation2 + $0x401] sm:$0xff] %vm1595_vm0, %v2763_v8  ;;  %v3384_v0 = vmul.f32 %v11835_v32, %v14567_v41  ;;  %v12204_v18 = vld [vmem:[#allocation2 + $0x322] sm:$0xff]  ;;  %v6880_v33 = vsel %vm1595_vm0, %v6614_v10, 0.0  ;;  %v6714_v44 = vpop.xlane.xlu1 %6713  ;;  %v14927_v8 = vld [vmem:[#allocation60_spill] sm:$0xff] }
 0x326   : > { %7205 = vst.msk [vmem:[%s11877_s8 + $0x60] sm:$0xff] %vm7192_vm2, %v7076_v19  ;;  %7208 = vst.msk [vmem:[%s11877_s8 + $0x78] sm:$0xff] %vm7192_vm2, %v7079_v37  ;;  %v3772_v17 = vmul.f32 %v11845_v23, %v9019_v47  ;;  %v4160_v32 = vmul.f32 %v14901_v12, %v9029_v14  ;;  %v4548_v46 = vmul.f32 %v12007_v28, %v9095_v50  ;;  %6881 = vadd.xlane.f32.xlu1 %v6880_v33  ;;  %v14928_v37 = vld [vmem:[#allocation38_spill] sm:$0xff]  ;;  %v14930_v36 = vld [vmem:[#allocation36_spill] sm:$0xff] }
 0x327   : > { %3147 = vst.msk [vmem:[#allocation2 + $0x3f1] sm:$0xff] %vm1595_vm0, %v2755_v62  ;;  %v6227_v15 = vadd.f32 %v12128_v2, %v5839_v57  ;;  %v5063_v1 = vadd.f32 %v4935_v13, %v4675_v63  ;;  %3131 = vst.msk [vmem:[#allocation2 + $0x351] sm:$0xff] %vm1595_vm0, %v2691_v6  ;;  %v4936_v19 = vmul.f32 %v12016_v52, %v9098_v16  ;;  %v14929_v57 = vld [vmem:[#allocation27_spill] sm:$0xff]  ;;  %v14931_v6 = vld [vmem:[#allocation89_spill] sm:$0xff] }
 0x328   : > { %v5324_v23 = vmul.f32 %v12018_v35, %v9111_v22  ;;  %v3900_v12 = vadd.f32 %v3772_v17, %v3384_v0  ;;  %v5713_v62 = vmul.f32 %v9122_v59, %v12200_v48  ;;  %v12228_v60 = vmul.f32 %v9125_v11, %v12202_v25  ;;  %v14933_v17 = vld [vmem:[#allocation39_spill] sm:$0xff] }
 0x329   : > { %v12232_v2 = vmul.f32 %v11583_v21, %v12204_v18  ;;  %v6615_v13 = vadd.f32 %v12132_v31, %v6227_v15  ;;  %v5451_v55 = vadd.f32 %v5323_v9, %v5063_v1  ;;  %v7078_v26 = vadd.f32 %v11858_v43, %v6717_v39  ;;  %v14932_v31 = vld [vmem:[#allocation90_spill] sm:$0xff]  ;;  %v14935_v15 = vld [vmem:[#allocation51_spill] sm:$0xff] }
 0x32a   : > { %v7077_v51 = vadd.f32 %v11858_v43, %v6714_v44  ;;  %v4288_v5 = vadd.f32 %v4160_v32, %v3900_v12  ;;  %v2151_v10 = vadd.f32 %v12048_v42, %v14927_v8  ;;  %v2776_v63 = vadd.f32 %v14929_v57, %v14928_v37  ;;  %v14934_v32 = vld [vmem:[#allocation91_spill] sm:$0xff]  ;;  %v14936_v8 = vld [vmem:[#allocation81_spill] sm:$0xff] }
 0x32b   : > { %v2768_v0 = vadd.f32 %v14931_v6, %v14930_v36  ;;  %v6883_v21 = vsel %vm1595_vm0, %v6615_v13, 0.0  ;;  %v5840_v33 = vadd.f32 %v5712_v40, %v5451_v55  ;;  %7207 = vst.msk [vmem:[%s11877_s8 + $0x70] sm:$0xff] %vm7192_vm2, %v7078_v26  ;;  %v2154_v9 = vadd.f32 %v12048_v42, %v14932_v31  ;;  %v12259_v13 = vld [vmem:[#allocation2 + $0x328] sm:$0xff]  ;;  %v14937_v31 = vld [vmem:[#allocation37_spill] sm:$0xff] }
 0x32c   : > { %7206 = vst.msk [vmem:[%s11877_s8 + $0x68] sm:$0xff] %vm7192_vm2, %v7077_v51  ;;  %v2779_v39 = vadd.f32 %v14934_v32, %v14933_v17  ;;  %6884 = vadd.xlane.f32.xlu0 %v6883_v21  ;;  %v4676_v44 = vadd.f32 %v4548_v46, %v4288_v5  ;;  %v2696_v1 = vadd.f32 %v14935_v15, %v2151_v10  ;;  %v12261_v55 = vld [vmem:[#allocation2 + $0x329] sm:$0xff]  ;;  %v6723_v51 = vpop.xlane.xlu0 %6722  ;;  %v6732_v46 = vpop.xlane.xlu1 %6731 }
 0x32d   : > { %3152 = vst.msk [vmem:[#allocation2 + $0x421] sm:$0xff] %vm1595_vm0, %v2776_v63  ;;  %3150 = vst.msk [vmem:[#allocation2 + $0x411] sm:$0xff] %vm1595_vm0, %v2768_v0  ;;  %v3385_v40 = vmul.f32 %v11885_v30, %v14567_v41  ;;  %v3773_v12 = vmul.f32 %v11887_v38, %v9019_v47  ;;  %v12263_v26 = vld [vmem:[#allocation2 + $0x32a] sm:$0xff]  ;;  %v6228_v5 = vadd.f32 %v12178_v24, %v5840_v33 }
 0x32e   : > { %v2699_v10 = vadd.f32 %v14936_v8, %v2154_v9  ;;  %3153 = vst.msk [vmem:[#allocation2 + $0x429] sm:$0xff] %vm1595_vm0, %v2779_v39  ;;  %v4161_v30 = vmul.f32 %v11897_v34, %v9029_v14  ;;  %v4549_v38 = vmul.f32 %v12064_v20, %v9095_v50  ;;  %v5064_v37 = vadd.f32 %v4936_v19, %v4676_v44  ;;  %v12286_v19 = vld [vmem:[%s14311_s3 + $0x8] ss:$0 sm:$0xff]  ;;  %v14938_v9 = vld [vmem:[#allocation7_spill] sm:$0xff] }
 0x32f   : > { %3132 = vst.msk [vmem:[#allocation2 + $0x359] sm:$0xff] %vm1595_vm0, %v2696_v1  ;;  %v3901_v57 = vadd.f32 %v3773_v12, %v3385_v40  ;;  %v4937_v63 = vmul.f32 %v12066_v58, %v9098_v16  ;;  %v5325_v24 = vmul.f32 %v12068_v61, %v9111_v22  ;;  %v6616_v36 = vadd.f32 %v12182_v54, %v6228_v5  ;;  %v12295_v32 = vld [vmem:[#allocation2 + $0x330] sm:$0xff] }
 0x330   : > { %3133 = vst.msk [vmem:[#allocation2 + $0x361] sm:$0xff] %vm1595_vm0, %v2699_v10  ;;  %v5714_v34 = vmul.f32 %v9122_v59, %v12259_v13  ;;  %v6102_v6 = vmul.f32 %v9125_v11, %v12261_v55  ;;  %v12290_v0 = vmul.f32 %v12286_v19, %v12263_v26  ;;  %v5452_v21 = vadd.f32 %v5324_v23, %v5064_v37  ;;  %v12303_v23 = vld [vmem:[#allocation2 + $0x331] sm:$0xff]  ;;  %v6729_v5 = vpop.xlane.xlu0 %6728  ;;  %v6726_v8 = vpop.xlane.xlu1 %6725 }
 0x331   : > { %v4289_v54 = vadd.f32 %v4161_v30, %v3901_v57  ;;  %v7080_v33 = vadd.f32 %v11858_v43, %v6723_v51  ;;  %v2771_v17 = vadd.f32 %v14938_v9, %v14937_v31  ;;  %v6886_v39 = vsel %vm1595_vm0, %v6616_v36, 0.0  ;;  %v12305_v40 = vld [vmem:[#allocation2 + $0x332] sm:$0xff] }
 0x332   : > { %v7083_v44 = vadd.f32 %v11858_v43, %v6732_v46  ;;  %v3386_v15 = vmul.f32 %v11927_v3, %v14567_v41  ;;  %v3774_v1 = vmul.f32 %v11929_v56, %v9019_v47  ;;  %6887 = vadd.xlane.f32.xlu1 %v6886_v39  ;;  %v5841_v12 = vadd.f32 %v5713_v62, %v5452_v21 }
 0x333   : > { %v4677_v51 = vadd.f32 %v4549_v38, %v4289_v54  ;;  %7209 = vst.msk [vmem:[%s11877_s8 + $0x80] sm:$0xff] %vm7192_vm2, %v7080_v33  ;;  %v4162_v46 = vmul.f32 %v11931_v4, %v9029_v14  ;;  %v4550_v3 = vmul.f32 %v12099_v53, %v9095_v50  ;;  %v4938_v10 = vmul.f32 %v12108_v45, %v9098_v16  ;;  %v14939_v33 = vld [vmem:[#allocation92_spill] sm:$0xff] }
 0x334   : > { %3151 = vst.msk [vmem:[#allocation2 + $0x419] sm:$0xff] %vm1595_vm0, %v2771_v17  ;;  %v3902_v56 = vadd.f32 %v3774_v1, %v3386_v15  ;;  %v5326_v62 = vmul.f32 %v12110_v27, %v9111_v22  ;;  %v5715_v30 = vmul.f32 %v9122_v59, %v12295_v32  ;;  %v6229_v4 = vadd.f32 %v12228_v60, %v5841_v12  ;;  %v14941_v17 = vld [vmem:[#allocation93_spill] sm:$0xff]  ;;  %v14943_v12 = vld [vmem:[#allocation11_spill] sm:$0xff] }
 0x335   : > { %7212 = vst.msk [vmem:[%s11877_s8 + $0x98] sm:$0xff] %vm7192_vm2, %v7083_v44  ;;  %v5065_v38 = vadd.f32 %v4937_v63, %v4677_v51  ;;  %v12325_v37 = vmul.f32 %v9125_v11, %v12303_v23  ;;  %v12329_v57 = vmul.f32 %v12286_v19, %v12305_v40  ;;  %v7082_v21 = vadd.f32 %v11858_v43, %v6729_v5  ;;  %v14940_v63 = vld [vmem:[#allocation42_spill] sm:$0xff]  ;;  %v12340_v15 = vld [vmem:[#allocation2 + $0x338] sm:$0xff] }
 0x336   : > { %v4290_v36 = vadd.f32 %v4162_v46, %v3902_v56  ;;  %v7081_v54 = vadd.f32 %v11858_v43, %v6726_v8  ;;  %v2159_v31 = vadd.f32 %v12048_v42, %v14939_v33  ;;  %v6617_v9 = vadd.f32 %v12232_v2, %v6229_v4  ;;  %14942 = vst [vmem:[#allocation34_spill] sm:$0xff] %v12340_v15  ;;  %v12353_v5 = vld [vmem:[#allocation2 + $0x33a] sm:$0xff] }
 0x337   : > { %v5453_v60 = vadd.f32 %v5325_v24, %v5065_v38  ;;  %v2792_v39 = vadd.f32 %v14941_v17, %v14940_v63  ;;  %v3387_v44 = vmul.f32 %v11969_v7, %v14567_v41  ;;  %7211 = vst.msk [vmem:[%s11877_s8 + $0x90] sm:$0xff] %vm7192_vm2, %v7082_v21  ;;  %v3775_v46 = vmul.f32 %v11971_v29, %v9019_v47  ;;  %v12351_v24 = vld [vmem:[#allocation2 + $0x339] sm:$0xff]  ;;  %v14947_v4 = vld [vmem:[#allocation18_spill] sm:$0xff]  ;;  %v6744_v29 = vpop.xlane.xlu1 %6743  ;;  %v14949_v63 = vld [vmem:[#allocation40_spill] sm:$0xff] }
 0x338   : > { %v4678_v1 = vadd.f32 %v4550_v3, %v4290_v36  ;;  %7210 = vst.msk [vmem:[%s11877_s8 + $0x88] sm:$0xff] %vm7192_vm2, %v7081_v54  ;;  %v2704_v51 = vadd.f32 %v14943_v12, %v2159_v31  ;;  %v4163_v2 = vmul.f32 %v11982_v49, %v9029_v14  ;;  %14944 = vst [vmem:[#allocation54_spill] sm:$0xff] %v12351_v24  ;;  %v6889_v7 = vsel %vm1595_vm0, %v6617_v9, 0.0  ;;  %v14946_v3 = vld [vmem:[#allocation59_spill] sm:$0xff]  ;;  %v6735_v36 = vpop.xlane.xlu0 %6734  ;;  %v14948_v54 = vld [vmem:[#allocation78_spill] sm:$0xff] }
 0x339   : > { %14945 = vst [vmem:[#allocation63_spill] sm:$0xff] %v12353_v5  ;;  %v5842_v8 = vadd.f32 %v5714_v34, %v5453_v60  ;;  %3156 = vst.msk [vmem:[#allocation2 + $0x449] sm:$0xff] %vm1595_vm0, %v2792_v39  ;;  %v4551_v56 = vmul.f32 %v14946_v3, %v9095_v50  ;;  %v4939_v38 = vmul.f32 %v14947_v4, %v9098_v16  ;;  %6890 = vadd.xlane.f32.xlu0 %v6889_v7 }
 0x33a   : > { %v5066_v21 = vadd.f32 %v4938_v10, %v4678_v1  ;;  %3134 = vst.msk [vmem:[#allocation2 + $0x371] sm:$0xff] %vm1595_vm0, %v2704_v51  ;;  %v3903_v49 = vadd.f32 %v3775_v46, %v3387_v44  ;;  %v5327_v33 = vmul.f32 %v14948_v54, %v9111_v22  ;;  %v5716_v34 = vmul.f32 %v9122_v59, %v12340_v15  ;;  %v14950_v10 = vld [vmem:[#allocation74_spill] sm:$0xff]  ;;  %v14951_v1 = vld [vmem:[#allocation64_spill] sm:$0xff]  ;;  %v14952_v51 = vld [vmem:[#allocation43_spill] sm:$0xff] }
 0x33b   : > { %v6230_v31 = vadd.f32 %v6102_v6, %v5842_v8  ;;  %v12368_v9 = vmul.f32 %v9125_v11, %v12351_v24  ;;  %v12372_v60 = vmul.f32 %v12286_v19, %v12353_v5  ;;  %v2784_v17 = vadd.f32 %v14950_v10, %v14949_v63  ;;  %v14953_v46 = vld [vmem:[#allocation62_spill] sm:$0xff]  ;;  %v14954_v5 = vld [vmem:[#allocation41_spill] sm:$0xff] }
 0x33c   : > { %v5454_v39 = vadd.f32 %v5326_v62, %v5066_v21  ;;  %v4291_v44 = vadd.f32 %v4163_v2, %v3903_v49  ;;  %v2162_v12 = vadd.f32 %v12048_v42, %v14951_v1  ;;  %v2795_v6 = vadd.f32 %v14953_v46, %v14952_v51  ;;  %v14955_v24 = vld [vmem:[#allocation94_spill] sm:$0xff]  ;;  %v14956_v49 = vld [vmem:[#allocation20_spill] sm:$0xff] }
 0x33d   : > { %v6618_v7 = vadd.f32 %v12290_v0, %v6230_v31  ;;  %3154 = vst.msk [vmem:[#allocation2 + $0x439] sm:$0xff] %vm1595_vm0, %v2784_v17  ;;  %v7084_v8 = vadd.f32 %v11858_v43, %v6735_v36  ;;  %v2787_v15 = vadd.f32 %v14955_v24, %v14954_v5  ;;  %v7087_v62 = vadd.f32 %v11858_v43, %v6744_v29  ;;  %v12390_v0 = vld [vmem:[#allocation2 + $0x348] sm:$0xff]  ;;  %v6741_v5 = vpop.xlane.xlu0 %6740 }
 0x33e   : > { %v5843_v2 = vadd.f32 %v5715_v30, %v5454_v39  ;;  %v4679_v21 = vadd.f32 %v4551_v56, %v4291_v44  ;;  %v2707_v63 = vadd.f32 %v14956_v49, %v2162_v12  ;;  %3157 = vst.msk [vmem:[#allocation2 + $0x451] sm:$0xff] %vm1595_vm0, %v2795_v6  ;;  %v3388_v10 = vmul.f32 %v12007_v28, %v14567_v41  ;;  %v12392_v31 = vld [vmem:[#allocation2 + $0x349] sm:$0xff]  ;;  %v6738_v56 = vpop.xlane.xlu1 %6737  ;;  %v14960_v49 = vld [vmem:[#allocation44_spill] sm:$0xff] }
 0x33f   : > { %v12394_v17 = vld [vmem:[#allocation2 + $0x34a] sm:$0xff]  ;;  %v6892_v36 = vsel %vm1595_vm0, %v6618_v7, 0.0  ;;  %7213 = vst.msk [vmem:[%s11877_s8 + $0xa0] sm:$0xff] %vm7192_vm2, %v7084_v8  ;;  %7216 = vst.msk [vmem:[%s11877_s8 + $0xb8] sm:$0xff] %vm7192_vm2, %v7087_v62  ;;  %v3776_v30 = vmul.f32 %v12016_v52, %v9019_v47  ;;  %v4164_v28 = vmul.f32 %v12018_v35, %v9029_v14  ;;  %v4552_v24 = vmul.f32 %v12200_v48, %v9095_v50  ;;  %v14958_v62 = vld [vmem:[#allocation46_spill] sm:$0xff] }
 0x340   : > { %3155 = vst.msk [vmem:[#allocation2 + $0x441] sm:$0xff] %vm1595_vm0, %v2787_v15  ;;  %6893 = vadd.xlane.f32.xlu1 %v6892_v36  ;;  %v6231_v29 = vadd.f32 %v12325_v37, %v5843_v2  ;;  %v5067_v39 = vadd.f32 %v4939_v38, %v4679_v21  ;;  %3135 = vst.msk [vmem:[#allocation2 + $0x379] sm:$0xff] %vm1595_vm0, %v2707_v63  ;;  %v4940_v15 = vmul.f32 %v12202_v25, %v9098_v16  ;;  %v14957_v7 = vld [vmem:[#allocation72_spill] sm:$0xff]  ;;  %v14959_v2 = vld [vmem:[#allocation95_spill] sm:$0xff] }
 0x341   : > { %v5328_v52 = vmul.f32 %v12204_v18, %v9111_v22  ;;  %v3904_v35 = vadd.f32 %v3776_v30, %v3388_v10  ;;  %v5717_v44 = vmul.f32 %v9122_v59, %v12390_v0  ;;  %v12418_v1 = vmul.f32 %v9125_v11, %v12392_v31  ;;  %v14961_v63 = vld [vmem:[#allocation96_spill] sm:$0xff] }
 0x342   : > { %v12422_v37 = vmul.f32 %v12286_v19, %v12394_v17  ;;  %v6619_v38 = vadd.f32 %v12329_v57, %v6231_v29  ;;  %v5455_v12 = vadd.f32 %v5327_v33, %v5067_v39  ;;  %v7086_v51 = vadd.f32 %v11858_v43, %v6741_v5  ;;  %v14962_v57 = vld [vmem:[#allocation97_spill] sm:$0xff]  ;;  %v14964_v5 = vld [vmem:[#allocation98_spill] sm:$0xff]  ;;  %v14965_v39 = vld [vmem:[#allocation80_spill] sm:$0xff] }
 0x343   : > { %v7085_v46 = vadd.f32 %v11858_v43, %v6738_v56  ;;  %v4292_v6 = vadd.f32 %v4164_v28, %v3904_v35  ;;  %v2167_v8 = vadd.f32 %v12048_v42, %v14957_v7  ;;  %v2808_v21 = vadd.f32 %v14959_v2, %v14958_v62  ;;  %v14963_v28 = vld [vmem:[#allocation47_spill] sm:$0xff]  ;;  %v6747_v7 = vpop.xlane.xlu0 %6746 }
 0x344   : > { %v2800_v10 = vadd.f32 %v14961_v63, %v14960_v49  ;;  %v6895_v36 = vsel %vm1595_vm0, %v6619_v38, 0.0  ;;  %v5844_v30 = vadd.f32 %v5716_v34, %v5455_v12  ;;  %7215 = vst.msk [vmem:[%s11877_s8 + $0xb0] sm:$0xff] %vm7192_vm2, %v7086_v51  ;;  %v2170_v33 = vadd.f32 %v12048_v42, %v14962_v57  ;;  %v12449_v12 = vld [vmem:[#allocation2 + $0x350] sm:$0xff] }
 0x345   : > { %7214 = vst.msk [vmem:[%s11877_s8 + $0xa8] sm:$0xff] %vm7192_vm2, %v7085_v46  ;;  %v2811_v56 = vadd.f32 %v14964_v5, %v14963_v28  ;;  %6896 = vadd.xlane.f32.xlu0 %v6895_v36  ;;  %v4680_v29 = vadd.f32 %v4552_v24, %v4292_v6  ;;  %v2712_v35 = vadd.f32 %v14965_v39, %v2167_v8  ;;  %v12451_v51 = vld [vmem:[#allocation2 + $0x351] sm:$0xff]  ;;  %v6756_v24 = vpop.xlane.xlu1 %6755  ;;  %v14966_v8 = vld [vmem:[#allocation82_spill] sm:$0xff]  ;;  %v14968_v28 = vld [vmem:[#allocation99_spill] sm:$0xff] }
 0x346   : > { %3160 = vst.msk [vmem:[#allocation2 + $0x471] sm:$0xff] %vm1595_vm0, %v2808_v21  ;;  %3158 = vst.msk [vmem:[#allocation2 + $0x461] sm:$0xff] %vm1595_vm0, %v2800_v10  ;;  %v3389_v34 = vmul.f32 %v12064_v20, %v14567_v41  ;;  %v3777_v38 = vmul.f32 %v12066_v58, %v9019_v47  ;;  %v12453_v46 = vld [vmem:[#allocation2 + $0x352] sm:$0xff]  ;;  %v6232_v6 = vadd.f32 %v12368_v9, %v5844_v30 }
 0x347   : > { %v2715_v62 = vadd.f32 %v14966_v8, %v2170_v33  ;;  %3161 = vst.msk [vmem:[#allocation2 + $0x479] sm:$0xff] %vm1595_vm0, %v2811_v56  ;;  %v4165_v20 = vmul.f32 %v12068_v61, %v9029_v14  ;;  %v4553_v58 = vmul.f32 %v12259_v13, %v9095_v50  ;;  %v5068_v2 = vadd.f32 %v4940_v15, %v4680_v29  ;;  %v14967_v33 = vld [vmem:[#allocation45_spill] sm:$0xff] }
 0x348   : > { %3136 = vst.msk [vmem:[#allocation2 + $0x381] sm:$0xff] %vm1595_vm0, %v2712_v35  ;;  %v3905_v21 = vadd.f32 %v3777_v38, %v3389_v34  ;;  %v4941_v49 = vmul.f32 %v12261_v55, %v9098_v16  ;;  %v5329_v9 = vmul.f32 %v12263_v26, %v9111_v22  ;;  %v6620_v63 = vadd.f32 %v12372_v60, %v6232_v6  ;;  %v12480_v5 = vld [vmem:[#allocation2 + $0x358] sm:$0xff]  ;;  %v6753_v6 = vpop.xlane.xlu0 %6752 }
 0x349   : > { %3137 = vst.msk [vmem:[#allocation2 + $0x389] sm:$0xff] %vm1595_vm0, %v2715_v62  ;;  %v5718_v61 = vmul.f32 %v9122_v59, %v12449_v12  ;;  %v6106_v10 = vmul.f32 %v9125_v11, %v12451_v51  ;;  %v12475_v15 = vmul.f32 %v12286_v19, %v12453_v46  ;;  %v5456_v36 = vadd.f32 %v5328_v52, %v5068_v2  ;;  %v12488_v52 = vld [vmem:[#allocation2 + $0x359] sm:$0xff]  ;;  %v6750_v8 = vpop.xlane.xlu1 %6749 }
 0x34a   : > { %v4293_v30 = vadd.f32 %v4165_v20, %v3905_v21  ;;  %v7088_v57 = vadd.f32 %v11858_v43, %v6747_v7  ;;  %v2803_v60 = vadd.f32 %v14968_v28, %v14967_v33  ;;  %14969 = vst [vmem:[#allocation29_spill] sm:$0xff] %v12480_v5  ;;  %v6898_v56 = vsel %vm1595_vm0, %v6620_v63, 0.0  ;;  %14970 = vst [vmem:[#allocation52_spill] sm:$0xff] %v12488_v52  ;;  %v12490_v34 = vld [vmem:[#allocation2 + $0x35a] sm:$0xff]  ;;  %v14972_v63 = vld [vmem:[#allocation75_spill] sm:$0xff] }
 0x34b   : > { %v7091_v29 = vadd.f32 %v11858_v43, %v6756_v24  ;;  %v3390_v39 = vmul.f32 %v12099_v53, %v14567_v41  ;;  %v3778_v35 = vmul.f32 %v12108_v45, %v9019_v47  ;;  %14971 = vst [vmem:[#allocation16_spill] sm:$0xff] %v12490_v34  ;;  %6899 = vadd.xlane.f32.xlu1 %v6898_v56 }
 0x34c   : > { %v5845_v38 = vadd.f32 %v5717_v44, %v5456_v36  ;;  %v4681_v7 = vadd.f32 %v4553_v58, %v4293_v30  ;;  %7217 = vst.msk [vmem:[%s11877_s8 + $0xc0] sm:$0xff] %vm7192_vm2, %v7088_v57  ;;  %v4166_v24 = vmul.f32 %v12110_v27, %v9029_v14  ;;  %v4554_v53 = vmul.f32 %v12295_v32, %v9095_v50  ;;  %v14974_v57 = vld [vmem:[#allocation86_spill] sm:$0xff] }
 0x34d   : > { %3159 = vst.msk [vmem:[#allocation2 + $0x469] sm:$0xff] %vm1595_vm0, %v2803_v60  ;;  %v3906_v45 = vadd.f32 %v3778_v35, %v3390_v39  ;;  %v4942_v62 = vmul.f32 %v12303_v23, %v9098_v16  ;;  %v5330_v44 = vmul.f32 %v12305_v40, %v9111_v22  ;;  %v5719_v20 = vmul.f32 %v9122_v59, %v12480_v5  ;;  %v12525_v60 = vld [vmem:[#allocation2 + $0x360] sm:$0xff] }
 0x34e   : > { %7220 = vst.msk [vmem:[%s11877_s8 + $0xd8] sm:$0xff] %vm7192_vm2, %v7091_v29  ;;  %v6233_v27 = vadd.f32 %v12418_v1, %v5845_v38  ;;  %v5069_v58 = vadd.f32 %v4941_v49, %v4681_v7  ;;  %v12510_v32 = vmul.f32 %v9125_v11, %v12488_v52  ;;  %v12514_v2 = vmul.f32 %v12286_v19, %v12490_v34  ;;  %v14973_v49 = vld [vmem:[#allocation5_spill] sm:$0xff]  ;;  %v12538_v35 = vld [vmem:[#allocation2 + $0x362] sm:$0xff] }
 0x34f   : > { %v4294_v23 = vadd.f32 %v4166_v24, %v3906_v45  ;;  %v7090_v21 = vadd.f32 %v11858_v43, %v6753_v6  ;;  %v7089_v40 = vadd.f32 %v11858_v43, %v6750_v8  ;;  %v2175_v36 = vadd.f32 %v12048_v42, %v14972_v63  ;;  %14975 = vst [vmem:[#allocation35_spill] sm:$0xff] %v12525_v60  ;;  %v14976_v43 = vld [vmem:[#allocation73_spill] sm:$0xff]  ;;  %v14979_v7 = vld [vmem:[#allocation34_spill] sm:$0xff]  ;;  %v14981_v8 = vld [vmem:[#allocation63_spill] sm:$0xff] }
 0x350   : > { %v6621_v30 = vadd.f32 %v12422_v37, %v6233_v27  ;;  %v5457_v1 = vadd.f32 %v5329_v9, %v5069_v58  ;;  %v2824_v33 = vadd.f32 %v14974_v57, %v14973_v49  ;;  %v3391_v28 = vmul.f32 %v14946_v3, %v14567_v41  ;;  %v12536_v9 = vld [vmem:[#allocation2 + $0x361] sm:$0xff]  ;;  %14978 = vst [vmem:[#allocation31_spill] sm:$0xff] %v12538_v35  ;;  %v6768_v58 = vpop.xlane.xlu1 %6767  ;;  %v14984_v57 = vld [vmem:[#allocation57_spill] sm:$0xff] }
 0x351   : > { %v4682_v56 = vadd.f32 %v4554_v53, %v4294_v23  ;;  %7219 = vst.msk [vmem:[%s11877_s8 + $0xd0] sm:$0xff] %vm7192_vm2, %v7090_v21  ;;  %7218 = vst.msk [vmem:[%s11877_s8 + $0xc8] sm:$0xff] %vm7192_vm2, %v7089_v40  ;;  %v2720_v29 = vadd.f32 %v14976_v43, %v2175_v36  ;;  %v3779_v39 = vmul.f32 %v14947_v4, %v9019_v47  ;;  %v14980_v53 = vld [vmem:[#allocation54_spill] sm:$0xff]  ;;  %v14982_v40 = vld [vmem:[#allocation48_spill] sm:$0xff] }
 0x352   : > { %v4167_v37 = vmul.f32 %v14948_v54, %v9029_v14  ;;  %14977 = vst [vmem:[#allocation70_spill] sm:$0xff] %v12536_v9  ;;  %v6901_v3 = vsel %vm1595_vm0, %v6621_v30, 0.0  ;;  %v5846_v38 = vadd.f32 %v5718_v61, %v5457_v1  ;;  %3164 = vst.msk [vmem:[#allocation2 + $0x499] sm:$0xff] %vm1595_vm0, %v2824_v33  ;;  %v4555_v24 = vmul.f32 %v14979_v7, %v9095_v50  ;;  %v6759_v61 = vpop.xlane.xlu0 %6758  ;;  %v14983_v63 = vld [vmem:[#allocation50_spill] sm:$0xff]  ;;  %v3668_v43 = vld [vmem:[#allocation2 + $0x3e9] sm:$0xff] }
 0x353   : > { %v4943_v6 = vmul.f32 %v14980_v53, %v9098_v16  ;;  %6902 = vadd.xlane.f32.xlu0 %v6901_v3  ;;  %v5070_v4 = vadd.f32 %v4942_v62, %v4682_v56  ;;  %3138 = vst.msk [vmem:[#allocation2 + $0x399] sm:$0xff] %vm1595_vm0, %v2720_v29  ;;  %v3907_v54 = vadd.f32 %v3779_v39, %v3391_v28  ;;  %v3280_v30 = vld [vmem:[#allocation2 + $0x3e8] sm:$0xff]  ;;  %v14986_v56 = vld [vmem:[#allocation100_spill] sm:$0xff]  ;;  %v14988_v7 = vld [vmem:[#allocation101_spill] sm:$0xff] }
 0x354   : > { %v5331_v45 = vmul.f32 %v14981_v8, %v9111_v22  ;;  %v12551_v27 = vmul.f32 %v9122_v59, %v12525_v60  ;;  %v6234_v23 = vadd.f32 %v6106_v10, %v5846_v38  ;;  %v12555_v21 = vmul.f32 %v9125_v11, %v12536_v9  ;;  %v14985_v28 = vld [vmem:[#allocation6_spill] sm:$0xff]  ;;  %v4056_v29 = vld [vmem:[#allocation2 + $0x3ea] sm:$0xff]  ;;  %v12579_v8 = vld [vmem:[#allocation2 + $0x412] sm:$0xff] }
 0x355   : > { %v12559_v62 = vmul.f32 %v12286_v19, %v12538_v35  ;;  %v2816_v36 = vadd.f32 %v14983_v63, %v14982_v40  ;;  %v5458_v1 = vadd.f32 %v5330_v44, %v5070_v4  ;;  %v4295_v49 = vadd.f32 %v4167_v37, %v3907_v54  ;;  %v12567_v39 = vld [vmem:[#allocation2 + $0x410] sm:$0xff]  ;;  %v14997_v52 = vld [vmem:[#allocation65_spill] sm:$0xff] }
 0x356   : > { %v2178_v33 = vadd.f32 %v12048_v42, %v14984_v57  ;;  %v2827_v10 = vadd.f32 %v14986_v56, %v14985_v28  ;;  %v6622_v3 = vadd.f32 %v12475_v15, %v6234_v23  ;;  %v12571_v38 = vld [vmem:[#allocation3] ss:$0 sm:$0xff]  ;;  %v14987_v37 = vld [vmem:[#allocation4_spill] sm:$0xff]  ;;  %v12588_v28 = vld [vmem:[#allocation2 + $0x43a] sm:$0xff] }
 0x357   : > { %3162 = vst.msk [vmem:[#allocation2 + $0x489] sm:$0xff] %vm1595_vm0, %v2816_v36  ;;  %v7092_v44 = vadd.f32 %v12571_v38, %v6759_v61  ;;  %v2819_v53 = vadd.f32 %v14988_v7, %v14987_v37  ;;  %v7095_v4 = vadd.f32 %v12571_v38, %v6768_v58  ;;  %v12577_v54 = vld [vmem:[#allocation2 + $0x411] sm:$0xff]  ;;  %v5847_v40 = vadd.f32 %v5719_v20, %v5458_v1  ;;  %v12586_v61 = vld [vmem:[#allocation2 + $0x439] sm:$0xff] }
 0x358   : > { %v4683_v63 = vadd.f32 %v4555_v24, %v4295_v49  ;;  %v14989_v15 = vld [vmem:[#allocation68_spill] sm:$0xff]  ;;  %3165 = vst.msk [vmem:[#allocation2 + $0x4a1] sm:$0xff] %vm1595_vm0, %v2827_v10  ;;  %v3412_v36 = vmul.f32 %v14567_v41, %v3280_v30  ;;  %v6904_v58 = vsel %vm1595_vm0, %v6622_v3, 0.0  ;;  %v3800_v20 = vmul.f32 %v9019_v47, %v3668_v43  ;;  %v3283_v1 = vld [vmem:[#allocation2 + $0x400] sm:$0xff] }
 0x359   : > { %v2723_v23 = vadd.f32 %v14989_v15, %v2178_v33  ;;  %v12584_v57 = vld [vmem:[#allocation2 + $0x438] sm:$0xff]  ;;  %7221 = vst.msk [vmem:[%s11877_s8 + $0xe0] sm:$0xff] %vm7192_vm2, %v7092_v44  ;;  %7224 = vst.msk [vmem:[%s11877_s8 + $0xf8] sm:$0xff] %vm7192_vm2, %v7095_v4  ;;  %v4188_v24 = vmul.f32 %v9029_v14, %v4056_v29  ;;  %v4576_v30 = vmul.f32 %v9095_v50, %v12567_v39  ;;  %v3671_v49 = vld [vmem:[#allocation2 + $0x401] sm:$0xff]  ;;  %6905 = vadd.xlane.f32.xlu1 %v6904_v58 }
 0x35a   : > { %3163 = vst.msk [vmem:[#allocation2 + $0x491] sm:$0xff] %vm1595_vm0, %v2819_v53  ;;  %v6235_v33 = vadd.f32 %v12510_v32, %v5847_v40  ;;  %v5071_v56 = vadd.f32 %v4943_v6, %v4683_v63  ;;  %v4964_v10 = vmul.f32 %v9098_v16, %v12577_v54  ;;  %v5352_v3 = vmul.f32 %v9111_v22, %v12579_v8  ;;  %v4059_v43 = vld [vmem:[#allocation2 + $0x402] sm:$0xff]  ;;  %v12620_v53 = vld [vmem:[#allocation2 + $0x42a] sm:$0xff]  ;;  %v12629_v58 = vld [vmem:[#allocation2 + $0x452] sm:$0xff] }
 0x35b   : > { %3139 = vst.msk [vmem:[#allocation2 + $0x3a1] sm:$0xff] %vm1595_vm0, %v2723_v23  ;;  %v12606_v44 = vld [vmem:[#allocation2 + $0x428] sm:$0xff]  ;;  %v3928_v37 = vadd.f32 %v3800_v20, %v3412_v36  ;;  %v5741_v7 = vmul.f32 %v9122_v59, %v12584_v57  ;;  %v12614_v32 = vmul.f32 %v9125_v11, %v12586_v61  ;;  %v12618_v6 = vmul.f32 %v12286_v19, %v12588_v28  ;;  %v12625_v23 = vld [vmem:[#allocation2 + $0x450] sm:$0xff] }
 0x35c   : > { %v12608_v29 = vld [vmem:[#allocation2 + $0x429] sm:$0xff]  ;;  %14991 = vst [vmem:[#allocation79_spill] sm:$0xff] %v12620_v53  ;;  %v6623_v4 = vadd.f32 %v12514_v2, %v6235_v33  ;;  %v5459_v40 = vadd.f32 %v5331_v45, %v5071_v56  ;;  %v3415_v63 = vmul.f32 %v14567_v41, %v3283_v1  ;;  %v3803_v15 = vmul.f32 %v9019_v47, %v3671_v49  ;;  %v12627_v36 = vld [vmem:[#allocation2 + $0x451] sm:$0xff]  ;;  %v6765_v45 = vpop.xlane.xlu0 %6764  ;;  %v6762_v33 = vpop.xlane.xlu1 %6761 }
 0x35d   : > { %14990 = vst [vmem:[#allocation88_spill] sm:$0xff] %v12608_v29  ;;  %14992 = vst [vmem:[#allocation60_spill] sm:$0xff] %v12625_v23  ;;  %v4316_v20 = vadd.f32 %v4188_v24, %v3928_v37  ;;  %v4191_v35 = vmul.f32 %v9029_v14, %v4059_v43  ;;  %v4579_v9 = vmul.f32 %v9095_v50, %v12606_v44 }
 0x35e   : > { %14993 = vst [vmem:[#allocation38_spill] sm:$0xff] %v12627_v36  ;;  %14994 = vst [vmem:[#allocation27_spill] sm:$0xff] %v12629_v58  ;;  %v4967_v2 = vmul.f32 %v9098_v16, %v12608_v29  ;;  %v6907_v1 = vsel %vm1595_vm0, %v6623_v4, 0.0  ;;  %v5848_v49 = vadd.f32 %v12551_v27, %v5459_v40  ;;  %v3931_v56 = vadd.f32 %v3803_v15, %v3415_v63 }
 0x35f   : > { %v5355_v60 = vmul.f32 %v9111_v22, %v12620_v53  ;;  %6908 = vadd.xlane.f32.xlu0 %v6907_v1  ;;  %v4704_v24 = vadd.f32 %v4576_v30, %v4316_v20  ;;  %v5744_v43 = vmul.f32 %v9122_v59, %v12625_v23  ;;  %v6132_v37 = vmul.f32 %v9125_v11, %v12627_v36  ;;  %v14995_v1 = vld [vmem:[#allocation33_spill] sm:$0xff]  ;;  %v14996_v20 = vld [vmem:[#allocation10_spill] sm:$0xff]  ;;  %v14998_v23 = vld [vmem:[#allocation8_spill] sm:$0xff] }
 0x360   : > { %v12646_v34 = vmul.f32 %v12286_v19, %v12629_v58  ;;  %v6236_v27 = vadd.f32 %v12555_v21, %v5848_v49  ;;  %v4319_v4 = vadd.f32 %v4191_v35, %v3931_v56  ;;  %v7094_v40 = vadd.f32 %v12571_v38, %v6765_v45  ;;  %v14999_v36 = vld [vmem:[#allocation24_spill] sm:$0xff] }
 0x361   : > { %v7093_v63 = vadd.f32 %v12571_v38, %v6762_v33  ;;  %v5092_v15 = vadd.f32 %v4964_v10, %v4704_v24  ;;  %v2183_v30 = vadd.f32 %v12048_v42, %v14995_v1  ;;  %v2840_v5 = vadd.f32 %v14997_v52, %v14996_v20  ;;  %v12666_v10 = vld [vmem:[#allocation2 + $0x370] sm:$0xff]  ;;  %v15002_v33 = vld [vmem:[#allocation58_spill] sm:$0xff] }
 0x362   : > { %v2832_v53 = vadd.f32 %v14999_v36, %v14998_v23  ;;  %v6624_v58 = vadd.f32 %v12559_v62, %v6236_v27  ;;  %v4707_v29 = vadd.f32 %v4579_v9, %v4319_v4  ;;  %7223 = vst.msk [vmem:[%s11877_s8 + $0xf0] sm:$0xff] %vm7192_vm2, %v7094_v40  ;;  %v3392_v35 = vmul.f32 %v12200_v48, %v14567_v41  ;;  %v12668_v45 = vld [vmem:[#allocation2 + $0x371] sm:$0xff]  ;;  %v12706_v20 = vld [vmem:[#allocation2 + $0x41a] sm:$0xff] }
 0x363   : > { %7222 = vst.msk [vmem:[%s11877_s8 + $0xe8] sm:$0xff] %vm7192_vm2, %v7093_v63  ;;  %v3780_v21 = vmul.f32 %v12202_v25, %v9019_v47  ;;  %15000 = vst [vmem:[#allocation36_spill] sm:$0xff] %v12666_v10  ;;  %v5480_v52 = vadd.f32 %v5352_v3, %v5092_v15  ;;  %v2728_v23 = vadd.f32 %v15002_v33, %v2183_v30  ;;  %v12677_v62 = vld [vmem:[#allocation2 + $0x372] sm:$0xff]  ;;  %v15006_v15 = vld [vmem:[#allocation55_spill] sm:$0xff] }
 0x364   : > { %15001 = vst [vmem:[#allocation89_spill] sm:$0xff] %v12668_v45  ;;  %3168 = vst.msk [vmem:[#allocation2 + $0x4c1] sm:$0xff] %vm1595_vm0, %v2840_v5  ;;  %v4168_v9 = vmul.f32 %v12204_v18, %v9029_v14  ;;  %v4556_v48 = vmul.f32 %v12390_v0, %v9095_v50  ;;  %v6910_v25 = vsel %vm1595_vm0, %v6624_v58, 0.0  ;;  %v5095_v36 = vadd.f32 %v4967_v2, %v4707_v29  ;;  %v3281_v56 = vld [vmem:[#allocation2 + $0x3f0] sm:$0xff]  ;;  %v12697_v4 = vld [vmem:[#allocation2 + $0x418] sm:$0xff] }
 0x365   : > { %3166 = vst.msk [vmem:[#allocation2 + $0x4b1] sm:$0xff] %vm1595_vm0, %v2832_v53  ;;  %15003 = vst [vmem:[#allocation90_spill] sm:$0xff] %v12677_v62  ;;  %v3908_v49 = vadd.f32 %v3780_v21, %v3392_v35  ;;  %v4944_v3 = vmul.f32 %v12392_v31, %v9098_v16  ;;  %v3669_v24 = vld [vmem:[#allocation2 + $0x3f1] sm:$0xff]  ;;  %6911 = vadd.xlane.f32.xlu1 %v6910_v25  ;;  %v5869_v5 = vadd.f32 %v5741_v7, %v5480_v52  ;;  %v15004_v7 = vld [vmem:[#allocation15_spill] sm:$0xff] }
 0x366   : > { %3140 = vst.msk [vmem:[#allocation2 + $0x3a9] sm:$0xff] %vm1595_vm0, %v2728_v23  ;;  %v5332_v18 = vmul.f32 %v12394_v17, %v9111_v22  ;;  %v5721_v0 = vmul.f32 %v9122_v59, %v12666_v10  ;;  %v12689_v53 = vmul.f32 %v9125_v11, %v12668_v45  ;;  %v4057_v29 = vld [vmem:[#allocation2 + $0x3f2] sm:$0xff]  ;;  %v5483_v58 = vadd.f32 %v5355_v60, %v5095_v36  ;;  %v12708_v35 = vld [vmem:[#allocation2 + $0x440] sm:$0xff]  ;;  %v15032_v45 = vld [vmem:[#allocation83_spill] sm:$0xff] }
 0x367   : > { %v4296_v2 = vadd.f32 %v4168_v9, %v3908_v49  ;;  %v12693_v31 = vmul.f32 %v12286_v19, %v12677_v62  ;;  %v2186_v27 = vadd.f32 %v12048_v42, %v15004_v7  ;;  %v12699_v17 = vld [vmem:[#allocation2 + $0x419] sm:$0xff]  ;;  %v6257_v40 = vadd.f32 %v12614_v32, %v5869_v5  ;;  %v15005_v63 = vld [vmem:[#allocation12_spill] sm:$0xff]  ;;  %v12712_v9 = vld [vmem:[#allocation2 + $0x441] sm:$0xff] }
 0x368   : > { %v2843_v1 = vadd.f32 %v15006_v15, %v15005_v63  ;;  %v3413_v30 = vmul.f32 %v14567_v41, %v3281_v56  ;;  %v3801_v60 = vmul.f32 %v9019_v47, %v3669_v24  ;;  %v5872_v21 = vadd.f32 %v5744_v43, %v5483_v58  ;;  %v15007_v42 = vld [vmem:[#allocation49_spill] sm:$0xff]  ;;  %v12714_v32 = vld [vmem:[#allocation2 + $0x442] sm:$0xff] }
 0x369   : > { %v4684_v52 = vadd.f32 %v4556_v48, %v4296_v2  ;;  %v2731_v33 = vadd.f32 %v15007_v42, %v2186_v27  ;;  %v4189_v23 = vmul.f32 %v9029_v14, %v4057_v29  ;;  %v6645_v25 = vadd.f32 %v12618_v6, %v6257_v40  ;;  %v6771_v48 = vpop.xlane.xlu0 %6770  ;;  %v6780_v29 = vpop.xlane.xlu1 %6779  ;;  %v3282_v58 = vld [vmem:[#allocation2 + $0x3f8] sm:$0xff]  ;;  %v12734_v63 = vld [vmem:[#allocation2 + $0x420] sm:$0xff]  ;;  %v12747_v62 = vld [vmem:[#allocation2 + $0x448] sm:$0xff] }
 0x36a   : > { %3169 = vst.msk [vmem:[#allocation2 + $0x4c9] sm:$0xff] %vm1595_vm0, %v2843_v1  ;;  %v3929_v36 = vadd.f32 %v3801_v60, %v3413_v30  ;;  %v4577_v49 = vmul.f32 %v9095_v50, %v12697_v4  ;;  %v4965_v43 = vmul.f32 %v9098_v16, %v12699_v17  ;;  %v6260_v56 = vadd.f32 %v6132_v37, %v5872_v21  ;;  %v3670_v2 = vld [vmem:[#allocation2 + $0x3f9] sm:$0xff]  ;;  %v15008_v60 = vld [vmem:[#allocation28_spill] sm:$0xff]  ;;  %v12740_v42 = vld [vmem:[#allocation2 + $0x421] sm:$0xff] }
 0x36b   : > { %v5072_v24 = vadd.f32 %v4944_v3, %v4684_v52  ;;  %3141 = vst.msk [vmem:[#allocation2 + $0x3b1] sm:$0xff] %vm1595_vm0, %v2731_v33  ;;  %v5353_v5 = vmul.f32 %v9111_v22, %v12706_v20  ;;  %v5742_v6 = vmul.f32 %v9122_v59, %v12708_v35  ;;  %v6973_v7 = vsel %vm1595_vm0, %v6645_v25, 0.0  ;;  %v4058_v3 = vld [vmem:[#allocation2 + $0x3fa] sm:$0xff]  ;;  %v15009_v21 = vld [vmem:[#allocation76_spill] sm:$0xff]  ;;  %v12742_v33 = vld [vmem:[#allocation2 + $0x422] sm:$0xff] }
 0x36c   : > { %v4317_v27 = vadd.f32 %v4189_v23, %v3929_v36  ;;  %v6130_v40 = vmul.f32 %v9125_v11, %v12712_v9  ;;  %v12732_v37 = vmul.f32 %v12286_v19, %v12714_v32  ;;  %6974 = vadd.xlane.f32.xlu0 %v6973_v7  ;;  %v6648_v15 = vadd.f32 %v12646_v34, %v6260_v56  ;;  %v12749_v34 = vld [vmem:[#allocation2 + $0x449] sm:$0xff] }
 0x36d   : > { %v5460_v1 = vadd.f32 %v5332_v18, %v5072_v24  ;;  %v7096_v30 = vadd.f32 %v12571_v38, %v6771_v48  ;;  %v2835_v52 = vadd.f32 %v15009_v21, %v15008_v60  ;;  %v7099_v25 = vadd.f32 %v12571_v38, %v6780_v29  ;;  %v12751_v18 = vld [vmem:[#allocation2 + $0x44a] sm:$0xff] }
 0x36e   : > { %v4705_v23 = vadd.f32 %v4577_v49, %v4317_v27  ;;  %v3414_v36 = vmul.f32 %v14567_v41, %v3282_v58  ;;  %v3802_v7 = vmul.f32 %v9019_v47, %v3670_v2  ;;  %v6982_v48 = vsel %vm1595_vm0, %v6648_v15, 0.0 }
 0x36f   : > { %v5849_v56 = vadd.f32 %v5721_v0, %v5460_v1  ;;  %7225 = vst.msk [vmem:[%s11877_s8 + $0x100] sm:$0xff] %vm7192_vm2, %v7096_v30  ;;  %v4190_v49 = vmul.f32 %v9029_v14, %v4058_v3  ;;  %v4578_v24 = vmul.f32 %v9095_v50, %v12734_v63  ;;  %6983 = vadd.xlane.f32.xlu1 %v6982_v48  ;;  %7228 = vst.msk [vmem:[%s11877_s8 + $0x118] sm:$0xff] %vm7192_vm2, %v7099_v25 }
 0x370   : > { %3167 = vst.msk [vmem:[#allocation2 + $0x4b9] sm:$0xff] %vm1595_vm0, %v2835_v52  ;;  %v5093_v29 = vadd.f32 %v4965_v43, %v4705_v23  ;;  %v3930_v58 = vadd.f32 %v3802_v7, %v3414_v36  ;;  %v4966_v2 = vmul.f32 %v9098_v16, %v12740_v42  ;;  %v5354_v0 = vmul.f32 %v9111_v22, %v12742_v33  ;;  %v12779_v52 = vld [vmem:[#allocation2 + $0x378] sm:$0xff]  ;;  %v6777_v7 = vpop.xlane.xlu0 %6776 }
 0x371   : > { %v6237_v27 = vadd.f32 %v12689_v53, %v5849_v56  ;;  %v5743_v15 = vmul.f32 %v9122_v59, %v12747_v62  ;;  %v6131_v3 = vmul.f32 %v9125_v11, %v12749_v34  ;;  %v12773_v43 = vmul.f32 %v12286_v19, %v12751_v18  ;;  %15010 = vst [vmem:[#allocation39_spill] sm:$0xff] %v12779_v52  ;;  %v12781_v53 = vld [vmem:[#allocation2 + $0x379] sm:$0xff] }
 0x372   : > { %v5481_v1 = vadd.f32 %v5353_v5, %v5093_v29  ;;  %v4318_v30 = vadd.f32 %v4190_v49, %v3930_v58  ;;  %v3393_v60 = vmul.f32 %v12259_v13, %v14567_v41  ;;  %v3781_v21 = vmul.f32 %v12261_v55, %v9019_v47  ;;  %15011 = vst [vmem:[#allocation91_spill] sm:$0xff] %v12781_v53  ;;  %v12783_v23 = vld [vmem:[#allocation2 + $0x37a] sm:$0xff]  ;;  %v6774_v29 = vpop.xlane.xlu1 %6773 }
 0x373   : > { %15012 = vst [vmem:[#allocation51_spill] sm:$0xff] %v12783_v23  ;;  %v6625_v25 = vadd.f32 %v12693_v31, %v6237_v27  ;;  %v4169_v36 = vmul.f32 %v12263_v26, %v9029_v14  ;;  %v4557_v5 = vmul.f32 %v12449_v12, %v9095_v50  ;;  %v4945_v13 = vmul.f32 %v12451_v51, %v9098_v16 }
 0x374   : > { %v5870_v48 = vadd.f32 %v5742_v6, %v5481_v1  ;;  %v4706_v55 = vadd.f32 %v4578_v24, %v4318_v30  ;;  %v3909_v56 = vadd.f32 %v3781_v21, %v3393_v60  ;;  %v5333_v49 = vmul.f32 %v12453_v46, %v9111_v22  ;;  %v12808_v1 = vld [vmem:[%s14310_s2] ss:$0 sm:$0xff] }
 0x375   : > { %v6913_v58 = vsel %vm1595_vm0, %v6625_v25, 0.0  ;;  %v5722_v31 = vmul.f32 %v9122_v59, %v12779_v52  ;;  %v6110_v26 = vmul.f32 %v9125_v11, %v12781_v53  ;;  %v12801_v12 = vmul.f32 %v12286_v19, %v12783_v23  ;;  %v15013_v30 = vld [vmem:[#allocation13_spill] sm:$0xff]  ;;  %v15015_v25 = vld [vmem:[#allocation71_spill] sm:$0xff]  ;;  %v15031_v52 = vld [vmem:[#allocation30_spill] sm:$0xff] }
 0x376   : > { %6914 = vadd.xlane.f32.xlu0 %v6913_v58  ;;  %v6258_v51 = vadd.f32 %v6130_v40, %v5870_v48  ;;  %v5094_v6 = vadd.f32 %v4966_v2, %v4706_v55  ;;  %v4297_v24 = vadd.f32 %v4169_v36, %v3909_v56  ;;  %v7098_v46 = vadd.f32 %v12571_v38, %v6777_v7  ;;  %v15014_v21 = vld [vmem:[#allocation17_spill] sm:$0xff]  ;;  %v15016_v58 = vld [vmem:[#allocation14_spill] sm:$0xff] }
 0x377   : > { %v7097_v27 = vadd.f32 %v12571_v38, %v6774_v29  ;;  %v2191_v60 = vadd.f32 %v12808_v1, %v15013_v30  ;;  %v2856_v23 = vadd.f32 %v15015_v25, %v15014_v21  ;;  %v15017_v40 = vld [vmem:[#allocation61_spill] sm:$0xff]  ;;  %v3416_v55 = vmul.f32 %v12567_v39, %v14567_v41  ;;  %v12823_v29 = vld [vmem:[#allocation2 + $0x461] sm:$0xff] }
 0x378   : > { %v2848_v48 = vadd.f32 %v15017_v40, %v15016_v58  ;;  %v6646_v2 = vadd.f32 %v12732_v37, %v6258_v51  ;;  %v5482_v36 = vadd.f32 %v5354_v0, %v5094_v6  ;;  %v4685_v7 = vadd.f32 %v4557_v5, %v4297_v24  ;;  %7227 = vst.msk [vmem:[%s11877_s8 + $0x110] sm:$0xff] %vm7192_vm2, %v7098_v46  ;;  %v12821_v56 = vld [vmem:[#allocation2 + $0x460] sm:$0xff] }
 0x379   : > { %7226 = vst.msk [vmem:[%s11877_s8 + $0x108] sm:$0xff] %vm7192_vm2, %v7097_v27  ;;  %v15018_v30 = vld [vmem:[#allocation69_spill] sm:$0xff]  ;;  %v3804_v37 = vmul.f32 %v12577_v54, %v9019_v47  ;;  %v4192_v0 = vmul.f32 %v12579_v8, %v9029_v14  ;;  %v4580_v39 = vmul.f32 %v12584_v57, %v9095_v50  ;;  %v12836_v5 = vld [vmem:[#allocation2 + $0x462] sm:$0xff]  ;;  %v5356_v54 = vmul.f32 %v12588_v28, %v9111_v22 }
 0x37a   : > { %v2736_v21 = vadd.f32 %v15018_v30, %v2191_v60  ;;  %3172 = vst.msk [vmem:[#allocation2 + $0x4e9] sm:$0xff] %vm1595_vm0, %v2856_v23  ;;  %3170 = vst.msk [vmem:[#allocation2 + $0x4d9] sm:$0xff] %vm1595_vm0, %v2848_v48  ;;  %v6976_v51 = vsel %vm1595_vm0, %v6646_v2, 0.0  ;;  %v5871_v6 = vadd.f32 %v5743_v15, %v5482_v36  ;;  %v5073_v24 = vadd.f32 %v4945_v13, %v4685_v7  ;;  %v15019_v25 = vld [vmem:[#allocation9_spill] sm:$0xff]  ;;  %v15020_v48 = vld [vmem:[#allocation19_spill] sm:$0xff] }
 0x37b   : > { %v4968_v23 = vmul.f32 %v12586_v61, %v9098_v16  ;;  %6977 = vadd.xlane.f32.xlu1 %v6976_v51  ;;  %v3932_v46 = vadd.f32 %v3804_v37, %v3416_v55  ;;  %v5745_v8 = vmul.f32 %v9122_v59, %v12821_v56  ;;  %v12848_v27 = vmul.f32 %v9125_v11, %v12823_v29  ;;  %v15021_v2 = vld [vmem:[#allocation25_spill] sm:$0xff]  ;;  %v15022_v55 = vld [vmem:[#allocation88_spill] sm:$0xff] }
 0x37c   : > { %3142 = vst.msk [vmem:[#allocation2 + $0x3c1] sm:$0xff] %vm1595_vm0, %v2736_v21  ;;  %v6259_v60 = vadd.f32 %v6131_v3, %v5871_v6  ;;  %v5461_v15 = vadd.f32 %v5333_v49, %v5073_v24  ;;  %v12852_v13 = vmul.f32 %v12286_v19, %v12836_v5  ;;  %v2194_v58 = vadd.f32 %v12808_v1, %v15019_v25  ;;  %v12862_v21 = vld [vmem:[#allocation2 + $0x478] sm:$0xff]  ;;  %v15025_v6 = vld [vmem:[#allocation79_spill] sm:$0xff] }
 0x37d   : > { %v4320_v40 = vadd.f32 %v4192_v0, %v3932_v46  ;;  %v2859_v36 = vadd.f32 %v15021_v2, %v15020_v48  ;;  %v3419_v7 = vmul.f32 %v12606_v44, %v14567_v41  ;;  %v3807_v30 = vmul.f32 %v15022_v55, %v9019_v47  ;;  %15023 = vst [vmem:[#allocation81_spill] sm:$0xff] %v12862_v21  ;;  %v15024_v37 = vld [vmem:[#allocation84_spill] sm:$0xff]  ;;  %v12868_v0 = vld [vmem:[#allocation2 + $0x479] sm:$0xff]  ;;  %v15029_v55 = vld [vmem:[#allocation38_spill] sm:$0xff] }
 0x37e   : > { %v6647_v3 = vadd.f32 %v12773_v43, %v6259_v60  ;;  %v5850_v49 = vadd.f32 %v5722_v31, %v5461_v15  ;;  %v2739_v51 = vadd.f32 %v15024_v37, %v2194_v58  ;;  %v4195_v24 = vmul.f32 %v15025_v6, %v9029_v14  ;;  %15026 = vst [vmem:[#allocation37_spill] sm:$0xff] %v12868_v0  ;;  %v12870_v46 = vld [vmem:[#allocation2 + $0x47a] sm:$0xff]  ;;  %v15028_v48 = vld [vmem:[#allocation60_spill] sm:$0xff]  ;;  %v6783_v31 = vpop.xlane.xlu0 %6782  ;;  %v6792_v60 = vpop.xlane.xlu1 %6791  ;;  %v15030_v37 = vld [vmem:[#allocation27_spill] sm:$0xff] }
 0x37f   : > { %15027 = vst [vmem:[#allocation7_spill] sm:$0xff] %v12870_v46  ;;  %v4708_v25 = vadd.f32 %v4580_v39, %v4320_v40  ;;  %3173 = vst.msk [vmem:[#allocation2 + $0x4f1] sm:$0xff] %vm1595_vm0, %v2859_v36  ;;  %v3935_v44 = vadd.f32 %v3807_v30, %v3419_v7  ;;  %v4583_v2 = vmul.f32 %v15028_v48, %v9095_v50  ;;  %v3262_v40 = vld [vmem:[#allocation2 + $0x330] sm:$0xff] }
 0x380   : > { %v4971_v43 = vmul.f32 %v15029_v55, %v9098_v16  ;;  %v6979_v15 = vsel %vm1595_vm0, %v6647_v3, 0.0  ;;  %v6238_v58 = vadd.f32 %v6110_v26, %v5850_v49  ;;  %3143 = vst.msk [vmem:[#allocation2 + $0x3c9] sm:$0xff] %vm1595_vm0, %v2739_v51  ;;  %v5359_v6 = vmul.f32 %v15030_v37, %v9111_v22  ;;  %v3650_v36 = vld [vmem:[#allocation2 + $0x331] sm:$0xff] }
 0x381   : > { %v5748_v39 = vmul.f32 %v9122_v59, %v12862_v21  ;;  %6980 = vadd.xlane.f32.xlu0 %v6979_v15  ;;  %v5096_v7 = vadd.f32 %v4968_v23, %v4708_v25  ;;  %v4323_v30 = vadd.f32 %v4195_v24, %v3935_v44  ;;  %v6136_v53 = vmul.f32 %v9125_v11, %v12868_v0  ;;  %v4038_v3 = vld [vmem:[#allocation2 + $0x332] sm:$0xff]  ;;  %v12894_v0 = vld [vmem:[#allocation2 + $0x380] sm:$0xff] }
 0x382   : > { %v6524_v26 = vmul.f32 %v12286_v19, %v12870_v46  ;;  %v6626_v49 = vadd.f32 %v12801_v12, %v6238_v58  ;;  %v7100_v51 = vadd.f32 %v12571_v38, %v6783_v31  ;;  %v2851_v10 = vadd.f32 %v15032_v45, %v15031_v52  ;;  %15033 = vst [vmem:[#allocation92_spill] sm:$0xff] %v12894_v0  ;;  %v12896_v46 = vld [vmem:[#allocation2 + $0x381] sm:$0xff]  ;;  %v15036_v52 = vld [vmem:[#allocation29_spill] sm:$0xff] }
 0x383   : > { %v7103_v15 = vadd.f32 %v12571_v38, %v6792_v60  ;;  %v5484_v23 = vadd.f32 %v5356_v54, %v5096_v7  ;;  %v4711_v24 = vadd.f32 %v4583_v2, %v4323_v30  ;;  %v3394_v25 = vmul.f32 %v14567_v41, %v3262_v40  ;;  %15034 = vst [vmem:[#allocation42_spill] sm:$0xff] %v12896_v46  ;;  %v12898_v21 = vld [vmem:[#allocation2 + $0x382] sm:$0xff]  ;;  %v15037_v2 = vld [vmem:[#allocation52_spill] sm:$0xff] }
 0x384   : > { %v3782_v44 = vmul.f32 %v9019_v47, %v3650_v36  ;;  %15035 = vst [vmem:[#allocation93_spill] sm:$0xff] %v12898_v21  ;;  %v6916_v12 = vsel %vm1595_vm0, %v6626_v49, 0.0  ;;  %7229 = vst.msk [vmem:[%s11877_s8 + $0x120] sm:$0xff] %vm7192_vm2, %v7100_v51  ;;  %v4170_v45 = vmul.f32 %v9029_v14, %v4038_v3  ;;  %v4558_v54 = vmul.f32 %v15036_v52, %v9095_v50  ;;  %v15038_v36 = vld [vmem:[#allocation16_spill] sm:$0xff] }
 0x385   : > { %3171 = vst.msk [vmem:[#allocation2 + $0x4e1] sm:$0xff] %vm1595_vm0, %v2851_v10  ;;  %v4946_v31 = vmul.f32 %v15037_v2, %v9098_v16  ;;  %6917 = vadd.xlane.f32.xlu1 %v6916_v12  ;;  %v5873_v60 = vadd.f32 %v5745_v8, %v5484_v23  ;;  %v5099_v58 = vadd.f32 %v4971_v43, %v4711_v24  ;;  %v12926_v23 = vld [vmem:[#allocation2 + $0x468] sm:$0xff]  ;;  %v6786_v2 = vpop.xlane.xlu1 %6785 }
 0x386   : > { %7232 = vst.msk [vmem:[%s11877_s8 + $0x138] sm:$0xff] %vm7192_vm2, %v7103_v15  ;;  %v3910_v40 = vadd.f32 %v3782_v44, %v3394_v25  ;;  %v5334_v7 = vmul.f32 %v15038_v36, %v9111_v22  ;;  %v5723_v10 = vmul.f32 %v9122_v59, %v12894_v0  ;;  %v6111_v30 = vmul.f32 %v9125_v11, %v12896_v46  ;;  %v12928_v24 = vld [vmem:[#allocation2 + $0x469] sm:$0xff]  ;;  %v6789_v44 = vpop.xlane.xlu0 %6788  ;;  %v15045_v0 = vld [vmem:[#allocation21_spill] sm:$0xff] }
 0x387   : > { %v12919_v3 = vmul.f32 %v12286_v19, %v12898_v21  ;;  %v3417_v49 = vmul.f32 %v12697_v4, %v14567_v41  ;;  %v6261_v8 = vadd.f32 %v12848_v27, %v5873_v60  ;;  %v5487_v43 = vadd.f32 %v5359_v6, %v5099_v58  ;;  %15039 = vst [vmem:[#allocation11_spill] sm:$0xff] %v12926_v23  ;;  %v12930_v25 = vld [vmem:[#allocation2 + $0x46a] sm:$0xff]  ;;  %v12950_v58 = vld [vmem:[%s14311_s3 + $0x8] ss:$0 sm:$0xff]  ;;  %v15044_v21 = vld [vmem:[#allocation53_spill] sm:$0xff] }
 0x388   : > { %v4298_v51 = vadd.f32 %v4170_v45, %v3910_v40  ;;  %v3805_v15 = vmul.f32 %v12699_v17, %v9019_v47  ;;  %15040 = vst [vmem:[#allocation59_spill] sm:$0xff] %v12928_v24  ;;  %15041 = vst [vmem:[#allocation18_spill] sm:$0xff] %v12930_v25  ;;  %v4193_v19 = vmul.f32 %v12706_v20, %v9029_v14 }
 0x389   : > { %v4581_v4 = vmul.f32 %v12708_v35, %v9095_v50  ;;  %v4969_v27 = vmul.f32 %v12712_v9, %v9098_v16  ;;  %v5357_v6 = vmul.f32 %v12714_v32, %v9111_v22  ;;  %v6649_v17 = vadd.f32 %v12852_v13, %v6261_v8 }
 0x38a   : > { %v5876_v12 = vadd.f32 %v5748_v39, %v5487_v43  ;;  %v4686_v45 = vadd.f32 %v4558_v54, %v4298_v51  ;;  %v3933_v52 = vadd.f32 %v3805_v15, %v3417_v49  ;;  %v5746_v60 = vmul.f32 %v9122_v59, %v12926_v23  ;;  %v15042_v43 = vld [vmem:[#allocation77_spill] sm:$0xff]  ;;  %v15043_v15 = vld [vmem:[#allocation26_spill] sm:$0xff] }
 0x38b   : > { %v12945_v20 = vmul.f32 %v9125_v11, %v12928_v24  ;;  %v12954_v40 = vmul.f32 %v12950_v58, %v12930_v25  ;;  %v7102_v13 = vadd.f32 %v12571_v38, %v6789_v44  ;;  %v6985_v39 = vsel %vm1595_vm0, %v6649_v17, 0.0  ;;  %v15046_v25 = vld [vmem:[#allocation67_spill] sm:$0xff] }
 0x38c   : > { %v6264_v54 = vadd.f32 %v6136_v53, %v5876_v12  ;;  %v5074_v36 = vadd.f32 %v4946_v31, %v4686_v45  ;;  %v4321_v49 = vadd.f32 %v4193_v19, %v3933_v52  ;;  %6986 = vadd.xlane.f32.xlu0 %v6985_v39  ;;  %v7101_v8 = vadd.f32 %v12571_v38, %v6786_v2  ;;  %v12969_v31 = vld [vmem:[#allocation2 + $0x470] sm:$0xff]  ;;  %v3263_v52 = vld [vmem:[#allocation2 + $0x338] sm:$0xff] }
 0x38d   : > { %7231 = vst.msk [vmem:[%s11877_s8 + $0x130] sm:$0xff] %vm7192_vm2, %v7102_v13  ;;  %v2199_v51 = vadd.f32 %v12808_v1, %v15042_v43  ;;  %v2872_v46 = vadd.f32 %v15044_v21, %v15043_v15  ;;  %v2864_v44 = vadd.f32 %v15046_v25, %v15045_v0  ;;  %v3418_v53 = vmul.f32 %v12734_v63, %v14567_v41  ;;  %v12971_v19 = vld [vmem:[#allocation2 + $0x471] sm:$0xff]  ;;  %v3651_v2 = vld [vmem:[#allocation2 + $0x339] sm:$0xff]  ;;  %v15050_v43 = vld [vmem:[#allocation22_spill] sm:$0xff] }
 0x38e   : > { %v6652_v24 = vadd.f32 %v6524_v26, %v6264_v54  ;;  %v5462_v17 = vadd.f32 %v5334_v7, %v5074_v36  ;;  %v4709_v23 = vadd.f32 %v4581_v4, %v4321_v49  ;;  %7230 = vst.msk [vmem:[%s11877_s8 + $0x128] sm:$0xff] %vm7192_vm2, %v7101_v8  ;;  %v15047_v12 = vld [vmem:[#allocation56_spill] sm:$0xff]  ;;  %v3806_v21 = vmul.f32 %v12740_v42, %v9019_v47  ;;  %v15048_v54 = vld [vmem:[#allocation66_spill] sm:$0xff] }
 0x38f   : > { %v2744_v45 = vadd.f32 %v15047_v12, %v2199_v51  ;;  %3176 = vst.msk [vmem:[#allocation2 + $0x511] sm:$0xff] %vm1595_vm0, %v2872_v46  ;;  %3174 = vst.msk [vmem:[#allocation2 + $0x501] sm:$0xff] %vm1595_vm0, %v2864_v44  ;;  %v4194_v0 = vmul.f32 %v12742_v33, %v9029_v14  ;;  %v4582_v63 = vmul.f32 %v12747_v62, %v9095_v50  ;;  %v12984_v26 = vld [vmem:[#allocation2 + $0x472] sm:$0xff] }
 0x390   : > { %v6994_v7 = vsel %vm1595_vm0, %v6652_v24, 0.0  ;;  %v5851_v25 = vadd.f32 %v5723_v10, %v5462_v17  ;;  %v5097_v4 = vadd.f32 %v4969_v27, %v4709_v23  ;;  %v4970_v46 = vmul.f32 %v12749_v34, %v9098_v16  ;;  %v4039_v10 = vld [vmem:[#allocation2 + $0x33a] sm:$0xff]  ;;  %v15049_v8 = vld [vmem:[#allocation32_spill] sm:$0xff]  ;;  %v13006_v17 = vld [vmem:[#allocation2 + $0x388] sm:$0xff] }
 0x391   : > { %6995 = vadd.xlane.f32.xlu1 %v6994_v7  ;;  %3144 = vst.msk [vmem:[#allocation2 + $0x3d1] sm:$0xff] %vm1595_vm0, %v2744_v45  ;;  %v3934_v42 = vadd.f32 %v3806_v21, %v3418_v53  ;;  %v5358_v33 = vmul.f32 %v12751_v18, %v9111_v22  ;;  %v5747_v13 = vmul.f32 %v9122_v59, %v12969_v31  ;;  %15051 = vst [vmem:[#allocation78_spill] sm:$0xff] %v13006_v17  ;;  %v15052_v53 = vld [vmem:[#allocation87_spill] sm:$0xff] }
 0x392   : > { %v6135_v24 = vmul.f32 %v9125_v11, %v12971_v19  ;;  %v6239_v23 = vadd.f32 %v6111_v30, %v5851_v25  ;;  %v5485_v27 = vadd.f32 %v5357_v6, %v5097_v4  ;;  %v12998_v39 = vmul.f32 %v12950_v58, %v12984_v26  ;;  %v13011_v21 = vld [vmem:[#allocation2 + $0x389] sm:$0xff] }
 0x393   : > { %v2202_v36 = vadd.f32 %v12808_v1, %v15048_v54  ;;  %v4322_v49 = vadd.f32 %v4194_v0, %v3934_v42  ;;  %v2875_v51 = vadd.f32 %v15050_v43, %v15049_v8  ;;  %v3395_v15 = vmul.f32 %v14567_v41, %v3263_v52  ;;  %15053 = vst [vmem:[#allocation40_spill] sm:$0xff] %v13011_v21  ;;  %v13013_v1 = vld [vmem:[#allocation2 + $0x38a] sm:$0xff]  ;;  %v15056_v52 = vld [vmem:[#allocation70_spill] sm:$0xff] }
 0x394   : > { %v3783_v44 = vmul.f32 %v9019_v47, %v3651_v2  ;;  %v6627_v30 = vadd.f32 %v12919_v3, %v6239_v23  ;;  %v5874_v6 = vadd.f32 %v5746_v60, %v5485_v27  ;;  %v4171_v45 = vmul.f32 %v9029_v14, %v4039_v10  ;;  %15054 = vst [vmem:[#allocation74_spill] sm:$0xff] %v13013_v1  ;;  %v15055_v25 = vld [vmem:[#allocation35_spill] sm:$0xff]  ;;  %v6795_v3 = vpop.xlane.xlu0 %6794  ;;  %v6804_v60 = vpop.xlane.xlu1 %6803 }
 0x395   : > { %v2747_v12 = vadd.f32 %v15052_v53, %v2202_v36  ;;  %v4710_v0 = vadd.f32 %v4582_v63, %v4322_v49  ;;  %3177 = vst.msk [vmem:[#allocation2 + $0x519] sm:$0xff] %vm1595_vm0, %v2875_v51  ;;  %v4559_v4 = vmul.f32 %v15055_v25, %v9095_v50  ;;  %v4947_v2 = vmul.f32 %v15056_v52, %v9098_v16  ;;  %v15057_v23 = vld [vmem:[#allocation31_spill] sm:$0xff] }
 0x396   : > { %v3911_v7 = vadd.f32 %v3783_v44, %v3395_v15  ;;  %v6919_v42 = vsel %vm1595_vm0, %v6627_v30, 0.0  ;;  %v6262_v10 = vadd.f32 %v12945_v20, %v5874_v6  ;;  %v5335_v63 = vmul.f32 %v15057_v23, %v9111_v22  ;;  %v15058_v51 = vld [vmem:[#allocation23_spill] sm:$0xff]  ;;  %v15059_v15 = vld [vmem:[#allocation85_spill] sm:$0xff] }
 0x397   : > { %3145 = vst.msk [vmem:[#allocation2 + $0x3d9] sm:$0xff] %vm1595_vm0, %v2747_v12  ;;  %v5724_v27 = vmul.f32 %v9122_v59, %v13006_v17  ;;  %6920 = vadd.xlane.f32.xlu0 %v6919_v42  ;;  %v5098_v54 = vadd.f32 %v4970_v46, %v4710_v0  ;;  %v6112_v49 = vmul.f32 %v9125_v11, %v13011_v21  ;;  %v13044_v0 = vld [vmem:[#allocation2 + $0x489] sm:$0xff] }
 0x398   : > { %v4299_v36 = vadd.f32 %v4171_v45, %v3911_v7  ;;  %v13031_v8 = vmul.f32 %v12950_v58, %v13013_v1  ;;  %v6650_v20 = vadd.f32 %v12954_v40, %v6262_v10  ;;  %v7104_v43 = vadd.f32 %v12571_v38, %v6795_v3  ;;  %v13042_v45 = vld [vmem:[#allocation2 + $0x488] sm:$0xff] }
 0x399   : > { %v2867_v44 = vadd.f32 %v15059_v15, %v15058_v51  ;;  %v7107_v30 = vadd.f32 %v12571_v38, %v6804_v60  ;;  %v5486_v46 = vadd.f32 %v5358_v33, %v5098_v54  ;;  %v3420_v53 = vmul.f32 %v12584_v57, %v14567_v41  ;;  %v13046_v40 = vld [vmem:[#allocation2 + $0x48a] sm:$0xff]  ;;  %v6801_v51 = vpop.xlane.xlu0 %6800 }
 0x39a   : > { %v4687_v6 = vadd.f32 %v4559_v4, %v4299_v36  ;;  %v3808_v12 = vmul.f32 %v12586_v61, %v9019_v47  ;;  %v6988_v7 = vsel %vm1595_vm0, %v6650_v20, 0.0  ;;  %7233 = vst.msk [vmem:[%s11877_s8 + $0x140] sm:$0xff] %vm7192_vm2, %v7104_v43  ;;  %v4196_v57 = vmul.f32 %v12588_v28, %v9029_v14  ;;  %v13074_v36 = vld [vmem:[#allocation2 + $0x4a0] sm:$0xff] }
 0x39b   : > { %3175 = vst.msk [vmem:[#allocation2 + $0x509] sm:$0xff] %vm1595_vm0, %v2867_v44  ;;  %v4584_v61 = vmul.f32 %v12821_v56, %v9095_v50  ;;  %v4972_v33 = vmul.f32 %v12823_v29, %v9098_v16  ;;  %6989 = vadd.xlane.f32.xlu1 %v6988_v7  ;;  %v5875_v25 = vadd.f32 %v5747_v13, %v5486_v46  ;;  %v13076_v20 = vld [vmem:[#allocation2 + $0x4a1] sm:$0xff]  ;;  %v15060_v44 = vld [vmem:[#allocation81_spill] sm:$0xff]  ;;  %v6798_v7 = vpop.xlane.xlu1 %6797 }
 0x39c   : > { %7236 = vst.msk [vmem:[%s11877_s8 + $0x158] sm:$0xff] %vm7192_vm2, %v7107_v30  ;;  %v5075_v4 = vadd.f32 %v4947_v2, %v4687_v6  ;;  %v3936_v52 = vadd.f32 %v3808_v12, %v3420_v53  ;;  %v5360_v3 = vmul.f32 %v12836_v5, %v9111_v22  ;;  %v5749_v60 = vmul.f32 %v9122_v59, %v13042_v45  ;;  %v13078_v43 = vld [vmem:[#allocation2 + $0x4a2] sm:$0xff] }
 0x39d   : > { %v6137_v42 = vmul.f32 %v9125_v11, %v13044_v0  ;;  %v13068_v28 = vmul.f32 %v12950_v58, %v13046_v40  ;;  %v3423_v10 = vmul.f32 %v15028_v48, %v14567_v41  ;;  %v6263_v23 = vadd.f32 %v6135_v24, %v5875_v25  ;;  %v15061_v48 = vld [vmem:[#allocation37_spill] sm:$0xff]  ;;  %v3652_v25 = vld [vmem:[#allocation2 + $0x349] sm:$0xff] }
 0x39e   : > { %v5463_v13 = vadd.f32 %v5335_v63, %v5075_v4  ;;  %v4324_v2 = vadd.f32 %v4196_v57, %v3936_v52  ;;  %v3811_v54 = vmul.f32 %v15029_v55, %v9019_v47  ;;  %v4199_v15 = vmul.f32 %v15030_v37, %v9029_v14  ;;  %v15062_v63 = vld [vmem:[#allocation7_spill] sm:$0xff] }
 0x39f   : > { %v4587_v30 = vmul.f32 %v15060_v44, %v9095_v50  ;;  %v4975_v24 = vmul.f32 %v15061_v48, %v9098_v16  ;;  %v5363_v46 = vmul.f32 %v15062_v63, %v9111_v22  ;;  %v6651_v55 = vadd.f32 %v12998_v39, %v6263_v23  ;;  %v3264_v57 = vld [vmem:[#allocation2 + $0x348] sm:$0xff] }
 0x3a0   : > { %v5852_v6 = vadd.f32 %v5724_v27, %v5463_v13  ;;  %v4712_v53 = vadd.f32 %v4584_v61, %v4324_v2  ;;  %v3939_v12 = vadd.f32 %v3811_v54, %v3423_v10  ;;  %v4040_v4 = vld [vmem:[#allocation2 + $0x34a] sm:$0xff]  ;;  %v5752_v37 = vmul.f32 %v9122_v59, %v13074_v36  ;;  %v13099_v13 = vld [vmem:[#allocation2 + $0x398] sm:$0xff] }
 0x3a1   : > { %v6140_v52 = vmul.f32 %v9125_v11, %v13076_v20  ;;  %v13095_v1 = vmul.f32 %v12950_v58, %v13078_v43  ;;  %v7106_v39 = vadd.f32 %v12571_v38, %v6801_v51  ;;  %v6991_v27 = vsel %vm1595_vm0, %v6651_v55, 0.0  ;;  %15063 = vst [vmem:[#allocation64_spill] sm:$0xff] %v13099_v13  ;;  %v13107_v51 = vld [vmem:[#allocation2 + $0x399] sm:$0xff] }
 0x3a2   : > { %v6240_v61 = vadd.f32 %v6112_v49, %v5852_v6  ;;  %v5100_v10 = vadd.f32 %v4972_v33, %v4712_v53  ;;  %v4327_v23 = vadd.f32 %v4199_v15, %v3939_v12  ;;  %6992 = vadd.xlane.f32.xlu0 %v6991_v27  ;;  %v7105_v2 = vadd.f32 %v12571_v38, %v6798_v7  ;;  %v15065_v15 = vld [vmem:[#allocation36_spill] sm:$0xff]  ;;  %v13112_v53 = vld [vmem:[#allocation2 + $0x39a] sm:$0xff] }
 0x3a3   : > { %7235 = vst.msk [vmem:[%s11877_s8 + $0x150] sm:$0xff] %vm7192_vm2, %v7106_v39  ;;  %v3396_v54 = vmul.f32 %v14567_v41, %v3264_v57  ;;  %v3784_v21 = vmul.f32 %v9019_v47, %v3652_v25  ;;  %v4172_v17 = vmul.f32 %v9029_v14, %v4040_v4  ;;  %15064 = vst [vmem:[#allocation43_spill] sm:$0xff] %v13107_v51  ;;  %v15067_v7 = vld [vmem:[#allocation89_spill] sm:$0xff]  ;;  %v15068_v25 = vld [vmem:[#allocation90_spill] sm:$0xff] }
 0x3a4   : > { %v6628_v49 = vadd.f32 %v13031_v8, %v6240_v61  ;;  %v5488_v55 = vadd.f32 %v5360_v3, %v5100_v10  ;;  %v4715_v33 = vadd.f32 %v4587_v30, %v4327_v23  ;;  %v4560_v6 = vmul.f32 %v15065_v15, %v9095_v50  ;;  %15066 = vst [vmem:[#allocation62_spill] sm:$0xff] %v13112_v53  ;;  %v6807_v15 = vpop.xlane.xlu0 %6806 }
 0x3a5   : > { %7234 = vst.msk [vmem:[%s11877_s8 + $0x148] sm:$0xff] %vm7192_vm2, %v7105_v2  ;;  %v3912_v12 = vadd.f32 %v3784_v21, %v3396_v54  ;;  %v4948_v57 = vmul.f32 %v15067_v7, %v9098_v16  ;;  %v5336_v4 = vmul.f32 %v15068_v25, %v9111_v22  ;;  %v5725_v39 = vmul.f32 %v9122_v59, %v13099_v13  ;;  %v13133_v2 = vld [vmem:[#allocation2 + $0x490] sm:$0xff]  ;;  %v15071_v25 = vld [vmem:[#allocation18_spill] sm:$0xff] }
 0x3a6   : > { %v6922_v8 = vsel %vm1595_vm0, %v6628_v49, 0.0  ;;  %v5877_v3 = vadd.f32 %v5749_v60, %v5488_v55  ;;  %v5103_v30 = vadd.f32 %v4975_v24, %v4715_v33  ;;  %v6113_v27 = vmul.f32 %v9125_v11, %v13107_v51  ;;  %v13135_v54 = vld [vmem:[#allocation2 + $0x491] sm:$0xff]  ;;  %v15070_v7 = vld [vmem:[#allocation59_spill] sm:$0xff] }
 0x3a7   : > { %6923 = vadd.xlane.f32.xlu1 %v6922_v8  ;;  %v4300_v61 = vadd.f32 %v4172_v17, %v3912_v12  ;;  %v13127_v21 = vmul.f32 %v12950_v58, %v13112_v53  ;;  %v3421_v10 = vmul.f32 %v12708_v35, %v14567_v41  ;;  %v3809_v23 = vmul.f32 %v12712_v9, %v9019_v47  ;;  %v15069_v17 = vld [vmem:[#allocation11_spill] sm:$0xff]  ;;  %v13141_v33 = vld [vmem:[#allocation2 + $0x492] sm:$0xff]  ;;  %v6816_v53 = vpop.xlane.xlu1 %6815 }
 0x3a8   : > { %v6265_v60 = vadd.f32 %v6137_v42, %v5877_v3  ;;  %v5491_v24 = vadd.f32 %v5363_v46, %v5103_v30  ;;  %v4197_v49 = vmul.f32 %v12714_v32, %v9029_v14  ;;  %v4585_v55 = vmul.f32 %v15069_v17, %v9095_v50  ;;  %v15077_v13 = vld [vmem:[#allocation39_spill] sm:$0xff] }
 0x3a9   : > { %v4688_v12 = vadd.f32 %v4560_v6, %v4300_v61  ;;  %v3937_v35 = vadd.f32 %v3809_v23, %v3421_v10  ;;  %v4973_v9 = vmul.f32 %v15070_v7, %v9098_v16  ;;  %v5361_v8 = vmul.f32 %v15071_v25, %v9111_v22 }
 0x3aa   : > { %v6653_v42 = vadd.f32 %v13068_v28, %v6265_v60  ;;  %v5880_v46 = vadd.f32 %v5752_v37, %v5491_v24  ;;  %v5750_v32 = vmul.f32 %v9122_v59, %v13133_v2  ;;  %v6138_v3 = vmul.f32 %v9125_v11, %v13135_v54  ;;  %v13161_v24 = vld [vmem:[#allocation2 + $0x498] sm:$0xff] }
 0x3ab   : > { %v5076_v30 = vadd.f32 %v4948_v57, %v4688_v12  ;;  %v4325_v6 = vadd.f32 %v4197_v49, %v3937_v35  ;;  %v13154_v61 = vmul.f32 %v12950_v58, %v13141_v33  ;;  %v7108_v10 = vadd.f32 %v12571_v38, %v6807_v15  ;;  %v13169_v35 = vld [vmem:[#allocation2 + $0x499] sm:$0xff] }
 0x3ac   : > { %v6997_v23 = vsel %vm1595_vm0, %v6653_v42, 0.0  ;;  %v6268_v28 = vadd.f32 %v6140_v52, %v5880_v46  ;;  %v7111_v37 = vadd.f32 %v12571_v38, %v6816_v53  ;;  %v3422_v60 = vmul.f32 %v12747_v62, %v14567_v41  ;;  %15072 = vst [vmem:[#allocation41_spill] sm:$0xff] %v13169_v35  ;;  %v13171_v52 = vld [vmem:[#allocation2 + $0x49a] sm:$0xff]  ;;  %v3265_v38 = vld [vmem:[#allocation2 + $0x350] sm:$0xff] }
 0x3ad   : > { %6998 = vadd.xlane.f32.xlu0 %v6997_v23  ;;  %v5464_v57 = vadd.f32 %v5336_v4, %v5076_v30  ;;  %v4713_v49 = vadd.f32 %v4585_v55, %v4325_v6  ;;  %7237 = vst.msk [vmem:[%s11877_s8 + $0x160] sm:$0xff] %vm7192_vm2, %v7108_v10  ;;  %v3810_v12 = vmul.f32 %v12749_v34, %v9019_v47  ;;  %15073 = vst [vmem:[#allocation94_spill] sm:$0xff] %v13171_v52  ;;  %v3653_v55 = vld [vmem:[#allocation2 + $0x351] sm:$0xff] }
 0x3ae   : > { %v4198_v15 = vmul.f32 %v12751_v18, %v9029_v14  ;;  %v6656_v62 = vadd.f32 %v13095_v1, %v6268_v28  ;;  %7240 = vst.msk [vmem:[%s11877_s8 + $0x178] sm:$0xff] %vm7192_vm2, %v7111_v37  ;;  %v4586_v53 = vmul.f32 %v12969_v31, %v9095_v50  ;;  %v4974_v4 = vmul.f32 %v12971_v19, %v9098_v16  ;;  %v4041_v6 = vld [vmem:[#allocation2 + $0x352] sm:$0xff] }
 0x3af   : > { %v5362_v34 = vmul.f32 %v12984_v26, %v9111_v22  ;;  %v5853_v18 = vadd.f32 %v5725_v39, %v5464_v57  ;;  %v5101_v42 = vadd.f32 %v4973_v9, %v4713_v49  ;;  %v3938_v46 = vadd.f32 %v3810_v12, %v3422_v60  ;;  %v13193_v57 = vld [vmem:[#allocation2 + $0x3a0] sm:$0xff] }
 0x3b0   : > { %v5751_v30 = vmul.f32 %v9122_v59, %v13161_v24  ;;  %v7006_v1 = vsel %vm1595_vm0, %v6656_v62, 0.0  ;;  %v6139_v10 = vmul.f32 %v9125_v11, %v13169_v35  ;;  %v13189_v23 = vmul.f32 %v12950_v58, %v13171_v52  ;;  %15074 = vst [vmem:[#allocation20_spill] sm:$0xff] %v13193_v57  ;;  %v13195_v49 = vld [vmem:[#allocation2 + $0x3a1] sm:$0xff]  ;;  %v6813_v62 = vpop.xlane.xlu0 %6812 }
 0x3b1   : > { %v3397_v28 = vmul.f32 %v14567_v41, %v3265_v38  ;;  %7007 = vadd.xlane.f32.xlu1 %v7006_v1  ;;  %v6241_v37 = vadd.f32 %v6113_v27, %v5853_v18  ;;  %v5489_v39 = vadd.f32 %v5361_v8, %v5101_v42  ;;  %v4326_v9 = vadd.f32 %v4198_v15, %v3938_v46  ;;  %v13197_v12 = vld [vmem:[#allocation2 + $0x3a2] sm:$0xff]  ;;  %v6810_v46 = vpop.xlane.xlu1 %6809 }
 0x3b2   : > { %v3785_v60 = vmul.f32 %v9019_v47, %v3653_v55  ;;  %15075 = vst [vmem:[#allocation72_spill] sm:$0xff] %v13195_v49  ;;  %15076 = vst [vmem:[#allocation46_spill] sm:$0xff] %v13197_v12  ;;  %v4173_v51 = vmul.f32 %v9029_v14, %v4041_v6  ;;  %v4561_v52 = vmul.f32 %v15077_v13, %v9095_v50  ;;  %v15078_v38 = vld [vmem:[#allocation91_spill] sm:$0xff] }
 0x3b3   : > { %v4949_v1 = vmul.f32 %v15078_v38, %v9098_v16  ;;  %v15079_v27 = vld [vmem:[#allocation51_spill] sm:$0xff]  ;;  %v6629_v15 = vadd.f32 %v13127_v21, %v6241_v37  ;;  %v5878_v55 = vadd.f32 %v5750_v32, %v5489_v39  ;;  %v4714_v18 = vadd.f32 %v4586_v53, %v4326_v9 }
 0x3b4   : > { %v5337_v8 = vmul.f32 %v15079_v27, %v9111_v22  ;;  %v3913_v42 = vadd.f32 %v3785_v60, %v3397_v28  ;;  %v5726_v35 = vmul.f32 %v9122_v59, %v13193_v57  ;;  %v6114_v6 = vmul.f32 %v9125_v11, %v13195_v49  ;;  %v13215_v38 = vld [vmem:[#allocation3] ss:$0 sm:$0xff]  ;;  %v13281_v49 = vld [vmem:[#allocation2 + $0x3a8] sm:$0xff] }
 0x3b5   : > { %v13213_v13 = vmul.f32 %v12950_v58, %v13197_v12  ;;  %v7110_v27 = vadd.f32 %v13215_v38, %v6813_v62  ;;  %v6925_v21 = vsel %vm1595_vm0, %v6629_v15, 0.0  ;;  %v6266_v32 = vadd.f32 %v6138_v3, %v5878_v55  ;;  %v13219_v37 = vld [vmem:[#allocation2 + $0x4b0] sm:$0xff]  ;;  %15081 = vst [vmem:[#allocation44_spill] sm:$0xff] %v13281_v49 }
 0x3b6   : > { %v5102_v53 = vadd.f32 %v4974_v4, %v4714_v18  ;;  %v4301_v28 = vadd.f32 %v4173_v51, %v3913_v42  ;;  %6926 = vadd.xlane.f32.xlu0 %v6925_v21  ;;  %v7109_v39 = vadd.f32 %v13215_v38, %v6810_v46  ;;  %v3424_v9 = vmul.f32 %v12821_v56, %v14567_v41  ;;  %v13230_v3 = vld [vmem:[#allocation2 + $0x4b1] sm:$0xff] }
 0x3b7   : > { %7239 = vst.msk [vmem:[%s11877_s8 + $0x170] sm:$0xff] %vm7192_vm2, %v7110_v27  ;;  %v3812_v60 = vmul.f32 %v12823_v29, %v9019_v47  ;;  %v4200_v62 = vmul.f32 %v12836_v5, %v9029_v14  ;;  %v6654_v51 = vadd.f32 %v13154_v61, %v6266_v32  ;;  %v4588_v55 = vmul.f32 %v13042_v45, %v9095_v50  ;;  %v13235_v18 = vld [vmem:[#allocation2 + $0x4b2] sm:$0xff] }
 0x3b8   : > { %v5490_v4 = vadd.f32 %v5362_v34, %v5102_v53  ;;  %v4689_v15 = vadd.f32 %v4561_v52, %v4301_v28  ;;  %7238 = vst.msk [vmem:[%s11877_s8 + $0x168] sm:$0xff] %vm7192_vm2, %v7109_v39  ;;  %v4976_v29 = vmul.f32 %v13044_v0, %v9098_v16  ;;  %v5364_v5 = vmul.f32 %v13046_v40, %v9111_v22  ;;  %v13256_v28 = vld [vmem:[#allocation2 + $0x4c8] sm:$0xff] }
 0x3b9   : > { %v3940_v56 = vadd.f32 %v3812_v60, %v3424_v9  ;;  %v5753_v42 = vmul.f32 %v9122_v59, %v13219_v37  ;;  %v7000_v61 = vsel %vm1595_vm0, %v6654_v51, 0.0  ;;  %v6141_v46 = vmul.f32 %v9125_v11, %v13230_v3  ;;  %v13258_v39 = vld [vmem:[#allocation2 + $0x4c9] sm:$0xff]  ;;  %v6819_v51 = vpop.xlane.xlu0 %6818 }
 0x3ba   : > { %v5879_v52 = vadd.f32 %v5751_v30, %v5490_v4  ;;  %v5077_v34 = vadd.f32 %v4949_v1, %v4689_v15  ;;  %7001 = vadd.xlane.f32.xlu1 %v7000_v61  ;;  %v13250_v21 = vmul.f32 %v12950_v58, %v13235_v18  ;;  %v3427_v32 = vmul.f32 %v15060_v44, %v14567_v41 }
 0x3bb   : > { %v4328_v27 = vadd.f32 %v4200_v62, %v3940_v56  ;;  %v3815_v53 = vmul.f32 %v15061_v48, %v9019_v47  ;;  %15080 = vst [vmem:[#allocation95_spill] sm:$0xff] %v13258_v39  ;;  %v4203_v9 = vmul.f32 %v15062_v63, %v9029_v14  ;;  %v4591_v60 = vmul.f32 %v13074_v36, %v9095_v50  ;;  %v13264_v62 = vld [vmem:[#allocation2 + $0x4ca] sm:$0xff]  ;;  %v6828_v56 = vpop.xlane.xlu1 %6827 }
 0x3bc   : > { %v6267_v30 = vadd.f32 %v6139_v10, %v5879_v52  ;;  %v5465_v1 = vadd.f32 %v5337_v8, %v5077_v34  ;;  %v4979_v48 = vmul.f32 %v13076_v20, %v9098_v16  ;;  %v5367_v15 = vmul.f32 %v13078_v43, %v9111_v22  ;;  %v3266_v10 = vld [vmem:[#allocation2 + $0x358] sm:$0xff] }
 0x3bd   : > { %v4716_v4 = vadd.f32 %v4588_v55, %v4328_v27  ;;  %v3943_v44 = vadd.f32 %v3815_v53, %v3427_v32  ;;  %v5756_v63 = vmul.f32 %v9122_v59, %v13256_v28  ;;  %v6144_v52 = vmul.f32 %v9125_v11, %v13258_v39  ;;  %v3654_v55 = vld [vmem:[#allocation2 + $0x359] sm:$0xff] }
 0x3be   : > { %v6655_v8 = vadd.f32 %v13189_v23, %v6267_v30  ;;  %v5854_v61 = vadd.f32 %v5726_v35, %v5465_v1  ;;  %v4042_v34 = vld [vmem:[#allocation2 + $0x35a] sm:$0xff]  ;;  %v6532_v53 = vmul.f32 %v12950_v58, %v13264_v62  ;;  %v7112_v12 = vadd.f32 %v13215_v38, %v6819_v51  ;;  %v13289_v51 = vld [vmem:[#allocation2 + $0x3aa] sm:$0xff] }
 0x3bf   : > { %v5104_v27 = vadd.f32 %v4976_v29, %v4716_v4  ;;  %v4331_v32 = vadd.f32 %v4203_v9, %v3943_v44  ;;  %v7115_v30 = vadd.f32 %v13215_v38, %v6828_v56  ;;  %v3398_v1 = vmul.f32 %v14567_v41, %v3266_v10  ;;  %v13287_v4 = vld [vmem:[#allocation2 + $0x3a9] sm:$0xff]  ;;  %15083 = vst [vmem:[#allocation97_spill] sm:$0xff] %v13289_v51  ;;  %v15084_v44 = vld [vmem:[#allocation92_spill] sm:$0xff] }
 0x3c0   : > { %v7003_v23 = vsel %vm1595_vm0, %v6655_v8, 0.0  ;;  %v6242_v35 = vadd.f32 %v6114_v6, %v5854_v61  ;;  %7241 = vst.msk [vmem:[%s11877_s8 + $0x180] sm:$0xff] %vm7192_vm2, %v7112_v12  ;;  %v3786_v29 = vmul.f32 %v9019_v47, %v3654_v55  ;;  %v4174_v9 = vmul.f32 %v9029_v14, %v4042_v34  ;;  %15082 = vst [vmem:[#allocation96_spill] sm:$0xff] %v13287_v4  ;;  %v15086_v12 = vld [vmem:[#allocation93_spill] sm:$0xff] }
 0x3c1   : > { %7004 = vadd.xlane.f32.xlu0 %v7003_v23  ;;  %v5492_v57 = vadd.f32 %v5364_v5, %v5104_v27  ;;  %v4719_v39 = vadd.f32 %v4591_v60, %v4331_v32  ;;  %7244 = vst.msk [vmem:[%s11877_s8 + $0x198] sm:$0xff] %vm7192_vm2, %v7115_v30  ;;  %v4562_v56 = vmul.f32 %v15084_v44, %v9095_v50  ;;  %v15085_v5 = vld [vmem:[#allocation42_spill] sm:$0xff]  ;;  %v13315_v30 = vld [vmem:[#allocation2 + $0x4b9] sm:$0xff] }
 0x3c2   : > { %v6630_v6 = vadd.f32 %v13213_v13, %v6242_v35  ;;  %v4950_v60 = vmul.f32 %v15085_v5, %v9098_v16  ;;  %v5338_v10 = vmul.f32 %v15086_v12, %v9111_v22  ;;  %v3914_v55 = vadd.f32 %v3786_v29, %v3398_v1  ;;  %v13317_v1 = vld [vmem:[#allocation2 + $0x4ba] sm:$0xff]  ;;  %v6825_v29 = vpop.xlane.xlu0 %6824  ;;  %v6822_v12 = vpop.xlane.xlu1 %6821 }
 0x3c3   : > { %v5881_v8 = vadd.f32 %v5753_v42, %v5492_v57  ;;  %v5107_v61 = vadd.f32 %v4979_v48, %v4719_v39  ;;  %v5727_v34 = vmul.f32 %v9122_v59, %v13281_v49  ;;  %v6115_v13 = vmul.f32 %v9125_v11, %v13287_v4  ;;  %v13313_v48 = vld [vmem:[#allocation2 + $0x4b8] sm:$0xff] }
 0x3c4   : > { %v6928_v27 = vsel %vm1595_vm0, %v6630_v6, 0.0  ;;  %v13307_v32 = vmul.f32 %v12950_v58, %v13289_v51  ;;  %v3425_v23 = vmul.f32 %v15069_v17, %v14567_v41  ;;  %v4302_v42 = vadd.f32 %v4174_v9, %v3914_v55  ;;  %v13374_v4 = vld [vmem:[#allocation2 + $0x3b1] sm:$0xff] }
 0x3c5   : > { %6929 = vadd.xlane.f32.xlu1 %v6928_v27  ;;  %v6269_v35 = vadd.f32 %v6141_v46, %v5881_v8  ;;  %v5495_v57 = vadd.f32 %v5367_v15, %v5107_v61  ;;  %v3813_v39 = vmul.f32 %v15070_v7, %v9019_v47  ;;  %v4201_v6 = vmul.f32 %v15071_v25, %v9029_v14 }
 0x3c6   : > { %v4589_v17 = vmul.f32 %v13133_v2, %v9095_v50  ;;  %v4977_v46 = vmul.f32 %v13135_v54, %v9098_v16  ;;  %v5365_v15 = vmul.f32 %v13141_v33, %v9111_v22  ;;  %v4690_v44 = vadd.f32 %v4562_v56, %v4302_v42  ;;  %v13338_v56 = vld [vmem:[#allocation2 + $0x4c0] sm:$0xff]  ;;  %15093 = vst [vmem:[#allocation45_spill] sm:$0xff] %v13374_v4 }
 0x3c7   : > { %v6657_v7 = vadd.f32 %v13250_v21, %v6269_v35  ;;  %v5884_v9 = vadd.f32 %v5756_v63, %v5495_v57  ;;  %v3941_v5 = vadd.f32 %v3813_v39, %v3425_v23  ;;  %v5754_v8 = vmul.f32 %v9122_v59, %v13313_v48  ;;  %15087 = vst [vmem:[#allocation47_spill] sm:$0xff] %v13338_v56 }
 0x3c8   : > { %v6142_v25 = vmul.f32 %v9125_v11, %v13315_v30  ;;  %v13334_v61 = vmul.f32 %v12950_v58, %v13317_v1  ;;  %v7114_v55 = vadd.f32 %v13215_v38, %v6825_v29  ;;  %v5078_v21 = vadd.f32 %v4950_v60, %v4690_v44  ;;  %v3655_v44 = vld [vmem:[#allocation2 + $0x361] sm:$0xff] }
 0x3c9   : > { %v7009_v27 = vsel %vm1595_vm0, %v6657_v7, 0.0  ;;  %v6272_v51 = vadd.f32 %v6144_v52, %v5884_v9  ;;  %v4329_v63 = vadd.f32 %v4201_v6, %v3941_v5  ;;  %v7113_v23 = vadd.f32 %v13215_v38, %v6822_v12  ;;  %v13349_v52 = vld [vmem:[#allocation2 + $0x4c1] sm:$0xff] }
 0x3ca   : > { %7010 = vadd.xlane.f32.xlu0 %v7009_v27  ;;  %7243 = vst.msk [vmem:[%s11877_s8 + $0x190] sm:$0xff] %vm7192_vm2, %v7114_v55  ;;  %v3426_v35 = vmul.f32 %v12969_v31, %v14567_v41  ;;  %v3814_v57 = vmul.f32 %v12971_v19, %v9019_v47  ;;  %v4202_v42 = vmul.f32 %v12984_v26, %v9029_v14  ;;  %15088 = vst [vmem:[#allocation98_spill] sm:$0xff] %v13349_v52  ;;  %v13353_v7 = vld [vmem:[#allocation2 + $0x4c2] sm:$0xff]  ;;  %v15090_v19 = vld [vmem:[#allocation41_spill] sm:$0xff] }
 0x3cb   : > { %v6660_v60 = vadd.f32 %v6532_v53, %v6272_v51  ;;  %v5466_v39 = vadd.f32 %v5338_v10, %v5078_v21  ;;  %v4717_v29 = vadd.f32 %v4589_v17, %v4329_v63  ;;  %v4590_v6 = vmul.f32 %v13161_v24, %v9095_v50  ;;  %15089 = vst [vmem:[#allocation80_spill] sm:$0xff] %v13353_v7  ;;  %v3267_v9 = vld [vmem:[#allocation2 + $0x360] sm:$0xff] }
 0x3cc   : > { %7242 = vst.msk [vmem:[%s11877_s8 + $0x188] sm:$0xff] %vm7192_vm2, %v7113_v23  ;;  %v3942_v31 = vadd.f32 %v3814_v57, %v3426_v35  ;;  %v4978_v5 = vmul.f32 %v15090_v19, %v9098_v16  ;;  %v15091_v26 = vld [vmem:[#allocation94_spill] sm:$0xff]  ;;  %v5755_v53 = vmul.f32 %v9122_v59, %v13338_v56  ;;  %v6143_v27 = vmul.f32 %v9125_v11, %v13349_v52  ;;  %v13372_v57 = vld [vmem:[#allocation2 + $0x3b0] sm:$0xff]  ;;  %v6840_v56 = vpop.xlane.xlu1 %6839 }
 0x3cd   : > { %v5366_v12 = vmul.f32 %v15091_v26, %v9111_v22  ;;  %v4043_v51 = vld [vmem:[#allocation2 + $0x362] sm:$0xff]  ;;  %v7018_v10 = vsel %vm1595_vm0, %v6660_v60, 0.0  ;;  %v5855_v17 = vadd.f32 %v5727_v34, %v5466_v39  ;;  %v5105_v55 = vadd.f32 %v4977_v46, %v4717_v29  ;;  %15092 = vst [vmem:[#allocation82_spill] sm:$0xff] %v13372_v57 }
 0x3ce   : > { %7019 = vadd.xlane.f32.xlu1 %v7018_v10  ;;  %v4330_v21 = vadd.f32 %v4202_v42, %v3942_v31  ;;  %v13368_v63 = vmul.f32 %v12950_v58, %v13353_v7  ;;  %v3399_v23 = vmul.f32 %v14567_v41, %v3267_v9  ;;  %v3787_v35 = vmul.f32 %v9019_v47, %v3655_v44  ;;  %v15094_v39 = vld [vmem:[#allocation78_spill] sm:$0xff]  ;;  %v13379_v42 = vld [vmem:[#allocation2 + $0x3b2] sm:$0xff]  ;;  %v6831_v31 = vpop.xlane.xlu0 %6830 }
 0x3cf   : > { %v6243_v60 = vadd.f32 %v6115_v13, %v5855_v17  ;;  %v5493_v34 = vadd.f32 %v5365_v15, %v5105_v55  ;;  %v4175_v46 = vmul.f32 %v9029_v14, %v4043_v51  ;;  %v4563_v29 = vmul.f32 %v15094_v39, %v9095_v50  ;;  %15095 = vst [vmem:[#allocation99_spill] sm:$0xff] %v13379_v42  ;;  %v15096_v9 = vld [vmem:[#allocation40_spill] sm:$0xff]  ;;  %v15097_v44 = vld [vmem:[#allocation74_spill] sm:$0xff] }
 0x3d0   : > { %v4718_v10 = vadd.f32 %v4590_v6, %v4330_v21  ;;  %v3915_v49 = vadd.f32 %v3787_v35, %v3399_v23  ;;  %v4951_v7 = vmul.f32 %v15096_v9, %v9098_v16  ;;  %v5339_v52 = vmul.f32 %v15097_v44, %v9111_v22 }
 0x3d1   : > { %v6631_v13 = vadd.f32 %v13307_v32, %v6243_v60  ;;  %v5882_v15 = vadd.f32 %v5754_v8, %v5493_v34  ;;  %v5728_v51 = vmul.f32 %v9122_v59, %v13372_v57  ;;  %v6116_v17 = vmul.f32 %v9125_v11, %v13374_v4  ;;  %v13399_v34 = vld [vmem:[#allocation2 + $0x4d8] sm:$0xff] }
 0x3d2   : > { %v5106_v55 = vadd.f32 %v4978_v5, %v4718_v10  ;;  %v4303_v6 = vadd.f32 %v4175_v46, %v3915_v49  ;;  %v13392_v21 = vmul.f32 %v12950_v58, %v13379_v42  ;;  %v7116_v23 = vadd.f32 %v13215_v38, %v6831_v31  ;;  %v13407_v31 = vld [vmem:[#allocation2 + $0x4d9] sm:$0xff] }
 0x3d3   : > { %v6931_v35 = vsel %vm1595_vm0, %v6631_v13, 0.0  ;;  %v6270_v32 = vadd.f32 %v6142_v25, %v5882_v15  ;;  %v7119_v8 = vadd.f32 %v13215_v38, %v6840_v56  ;;  %v3428_v60 = vmul.f32 %v13042_v45, %v14567_v41  ;;  %v13409_v25 = vld [vmem:[#allocation2 + $0x4da] sm:$0xff] }
 0x3d4   : > { %6932 = vadd.xlane.f32.xlu0 %v6931_v35  ;;  %v5494_v5 = vadd.f32 %v5366_v12, %v5106_v55  ;;  %v4691_v49 = vadd.f32 %v4563_v29, %v4303_v6  ;;  %7245 = vst.msk [vmem:[%s11877_s8 + $0x1a0] sm:$0xff] %vm7192_vm2, %v7116_v23  ;;  %v3816_v46 = vmul.f32 %v13044_v0, %v9019_v47  ;;  %15098 = vst [vmem:[#allocation75_spill] sm:$0xff] %v13409_v25  ;;  %v13433_v23 = vld [vmem:[#allocation2 + $0x4f0] sm:$0xff] }
 0x3d5   : > { %v4204_v39 = vmul.f32 %v13046_v40, %v9029_v14  ;;  %v6658_v56 = vadd.f32 %v13334_v61, %v6270_v32  ;;  %7248 = vst.msk [vmem:[%s11877_s8 + $0x1b8] sm:$0xff] %vm7192_vm2, %v7119_v8  ;;  %v4592_v45 = vmul.f32 %v13219_v37, %v9095_v50  ;;  %v4980_v12 = vmul.f32 %v13230_v3, %v9098_v16  ;;  %v13435_v35 = vld [vmem:[#allocation2 + $0x4f1] sm:$0xff]  ;;  %v6837_v8 = vpop.xlane.xlu0 %6836 }
 0x3d6   : > { %v5368_v0 = vmul.f32 %v13235_v18, %v9111_v22  ;;  %v5883_v29 = vadd.f32 %v5755_v53, %v5494_v5  ;;  %v5079_v10 = vadd.f32 %v4951_v7, %v4691_v49  ;;  %v3944_v40 = vadd.f32 %v3816_v46, %v3428_v60  ;;  %v13437_v32 = vld [vmem:[#allocation2 + $0x4f2] sm:$0xff] }
 0x3d7   : > { %v5757_v9 = vmul.f32 %v9122_v59, %v13399_v34  ;;  %v7012_v44 = vsel %vm1595_vm0, %v6658_v56, 0.0  ;;  %v6145_v61 = vmul.f32 %v9125_v11, %v13407_v31  ;;  %v13427_v13 = vmul.f32 %v12950_v58, %v13409_v25  ;;  %v6834_v56 = vpop.xlane.xlu1 %6833 }
 0x3d8   : > { %v3431_v15 = vmul.f32 %v13074_v36, %v14567_v41  ;;  %7013 = vadd.xlane.f32.xlu1 %v7012_v44  ;;  %v6271_v55 = vadd.f32 %v6143_v27, %v5883_v29  ;;  %v5467_v53 = vadd.f32 %v5339_v52, %v5079_v10  ;;  %v4332_v7 = vadd.f32 %v4204_v39, %v3944_v40  ;;  %v15099_v27 = vld [vmem:[#allocation95_spill] sm:$0xff]  ;;  %v3656_v10 = vld [vmem:[#allocation2 + $0x371] sm:$0xff] }
 0x3d9   : > { %v3819_v6 = vmul.f32 %v13076_v20, %v9019_v47  ;;  %v4207_v60 = vmul.f32 %v13078_v43, %v9029_v14  ;;  %v4595_v36 = vmul.f32 %v13256_v28, %v9095_v50  ;;  %v4983_v52 = vmul.f32 %v15099_v27, %v9098_v16  ;;  %v3268_v29 = vld [vmem:[#allocation2 + $0x370] sm:$0xff] }
 0x3da   : > { %v5371_v5 = vmul.f32 %v13264_v62, %v9111_v22  ;;  %v6659_v20 = vadd.f32 %v13368_v63, %v6271_v55  ;;  %v5856_v49 = vadd.f32 %v5728_v51, %v5467_v53  ;;  %v4720_v46 = vadd.f32 %v4592_v45, %v4332_v7  ;;  %v4044_v40 = vld [vmem:[#allocation2 + $0x372] sm:$0xff]  ;;  %v13458_v53 = vld [vmem:[#allocation2 + $0x3c0] sm:$0xff] }
 0x3db   : > { %v3947_v39 = vadd.f32 %v3819_v6, %v3431_v15  ;;  %v5760_v43 = vmul.f32 %v9122_v59, %v13433_v23  ;;  %v6148_v44 = vmul.f32 %v9125_v11, %v13435_v35  ;;  %v13454_v42 = vmul.f32 %v12950_v58, %v13437_v32  ;;  %v6846_v25 = vpop.xlane.xlu1 %6845 }
 0x3dc   : > { %v7118_v63 = vadd.f32 %v13215_v38, %v6837_v8  ;;  %v7015_v51 = vsel %vm1595_vm0, %v6659_v20, 0.0  ;;  %v6244_v45 = vadd.f32 %v6116_v17, %v5856_v49  ;;  %v5108_v15 = vadd.f32 %v4980_v12, %v4720_v46  ;;  %v13466_v8 = vld [vmem:[#allocation2 + $0x3c1] sm:$0xff] }
 0x3dd   : > { %v4335_v55 = vadd.f32 %v4207_v60, %v3947_v39  ;;  %7016 = vadd.xlane.f32.xlu0 %v7015_v51  ;;  %v7117_v7 = vadd.f32 %v13215_v38, %v6834_v56  ;;  %v3400_v6 = vmul.f32 %v14567_v41, %v3268_v29  ;;  %v3788_v4 = vmul.f32 %v9019_v47, %v3656_v10  ;;  %v15100_v60 = vld [vmem:[#allocation64_spill] sm:$0xff]  ;;  %v13471_v46 = vld [vmem:[#allocation2 + $0x3c2] sm:$0xff] }
 0x3de   : > { %7247 = vst.msk [vmem:[%s11877_s8 + $0x1b0] sm:$0xff] %vm7192_vm2, %v7118_v63  ;;  %v4176_v57 = vmul.f32 %v9029_v14, %v4044_v40  ;;  %v6632_v17 = vadd.f32 %v13392_v21, %v6244_v45  ;;  %v5496_v20 = vadd.f32 %v5368_v0, %v5108_v15  ;;  %v4564_v49 = vmul.f32 %v15100_v60, %v9095_v50  ;;  %v15101_v56 = vld [vmem:[#allocation43_spill] sm:$0xff]  ;;  %v15102_v10 = vld [vmem:[#allocation62_spill] sm:$0xff] }
 0x3df   : > { %v4723_v12 = vadd.f32 %v4595_v36, %v4335_v55  ;;  %7246 = vst.msk [vmem:[%s11877_s8 + $0x1a8] sm:$0xff] %vm7192_vm2, %v7117_v7  ;;  %v3916_v39 = vadd.f32 %v3788_v4, %v3400_v6  ;;  %v4952_v29 = vmul.f32 %v15101_v56, %v9098_v16  ;;  %v5340_v40 = vmul.f32 %v15102_v10, %v9111_v22  ;;  %v13492_v7 = vld [vmem:[#allocation2 + $0x4e0] sm:$0xff] }
 0x3e0   : > { %v5729_v63 = vmul.f32 %v9122_v59, %v13458_v53  ;;  %v6934_v21 = vsel %vm1595_vm0, %v6632_v17, 0.0  ;;  %v5885_v0 = vadd.f32 %v5757_v9, %v5496_v20  ;;  %v6117_v51 = vmul.f32 %v9125_v11, %v13466_v8  ;;  %15103 = vst [vmem:[#allocation5_spill] sm:$0xff] %v13492_v7  ;;  %v13494_v6 = vld [vmem:[#allocation2 + $0x4e1] sm:$0xff] }
 0x3e1   : > { %v5111_v36 = vadd.f32 %v4983_v52, %v4723_v12  ;;  %6935 = vadd.xlane.f32.xlu1 %v6934_v21  ;;  %v4304_v45 = vadd.f32 %v4176_v57, %v3916_v39  ;;  %v13486_v4 = vmul.f32 %v12950_v58, %v13471_v46  ;;  %v3429_v15 = vmul.f32 %v13133_v2, %v14567_v41  ;;  %v13500_v20 = vld [vmem:[#allocation2 + $0x4e2] sm:$0xff]  ;;  %v6843_v12 = vpop.xlane.xlu0 %6842 }
 0x3e2   : > { %v3817_v55 = vmul.f32 %v13135_v54, %v9019_v47  ;;  %15104 = vst [vmem:[#allocation86_spill] sm:$0xff] %v13494_v6  ;;  %v6273_v9 = vadd.f32 %v6145_v61, %v5885_v0  ;;  %v4205_v17 = vmul.f32 %v13141_v33, %v9029_v14  ;;  %v4593_v57 = vmul.f32 %v13313_v48, %v9095_v50 }
 0x3e3   : > { %v5499_v52 = vadd.f32 %v5371_v5, %v5111_v36  ;;  %15105 = vst [vmem:[#allocation73_spill] sm:$0xff] %v13500_v20  ;;  %v4692_v39 = vadd.f32 %v4564_v49, %v4304_v45  ;;  %v4981_v54 = vmul.f32 %v13315_v30, %v9098_v16  ;;  %v5369_v21 = vmul.f32 %v13317_v1, %v9111_v22 }
 0x3e4   : > { %v3945_v2 = vadd.f32 %v3817_v55, %v3429_v15  ;;  %v6661_v61 = vadd.f32 %v13427_v13, %v6273_v9  ;;  %v5758_v33 = vmul.f32 %v9122_v59, %v13492_v7  ;;  %v6146_v0 = vmul.f32 %v9125_v11, %v13494_v6 }
 0x3e5   : > { %v5888_v5 = vadd.f32 %v5760_v43, %v5499_v52  ;;  %v5080_v36 = vadd.f32 %v4952_v29, %v4692_v39  ;;  %v13513_v45 = vmul.f32 %v12950_v58, %v13500_v20  ;;  %v7120_v15 = vadd.f32 %v13215_v38, %v6843_v12  ;;  %v13520_v52 = vld [vmem:[#allocation2 + $0x4e8] sm:$0xff]  ;;  %v4045_v20 = vld [vmem:[#allocation2 + $0x37a] sm:$0xff] }
 0x3e6   : > { %v4333_v49 = vadd.f32 %v4205_v17, %v3945_v2  ;;  %v7021_v55 = vsel %vm1595_vm0, %v6661_v61, 0.0  ;;  %v7121_v43 = vadd.f32 %v13215_v38, %v6846_v25  ;;  %v3430_v9 = vmul.f32 %v13161_v24, %v14567_v41  ;;  %15106 = vst [vmem:[#allocation34_spill] sm:$0xff] %v13520_v52  ;;  %v13528_v39 = vld [vmem:[#allocation2 + $0x4e9] sm:$0xff]  ;;  %v3269_v25 = vld [vmem:[#allocation2 + $0x378] sm:$0xff]  ;;  %v15110_v2 = vld [vmem:[#allocation98_spill] sm:$0xff] }
 0x3e7   : > { %v6276_v13 = vadd.f32 %v6148_v44, %v5888_v5  ;;  %7022 = vadd.xlane.f32.xlu0 %v7021_v55  ;;  %v5468_v29 = vadd.f32 %v5340_v40, %v5080_v36  ;;  %7249 = vst.msk [vmem:[%s11877_s8 + $0x1c0] sm:$0xff] %vm7192_vm2, %v7120_v15  ;;  %v3818_v58 = vmul.f32 %v15090_v19, %v9019_v47  ;;  %15107 = vst [vmem:[#allocation54_spill] sm:$0xff] %v13528_v39  ;;  %v13530_v44 = vld [vmem:[#allocation2 + $0x4ea] sm:$0xff]  ;;  %v3657_v36 = vld [vmem:[#allocation2 + $0x379] sm:$0xff] }
 0x3e8   : > { %v4721_v17 = vadd.f32 %v4593_v57, %v4333_v49  ;;  %v4206_v12 = vmul.f32 %v15091_v26, %v9029_v14  ;;  %15108 = vst [vmem:[#allocation63_spill] sm:$0xff] %v13530_v44  ;;  %7250 = vst.msk [vmem:[%s11877_s8 + $0x1c8] sm:$0xff] %vm7192_vm2, %v7121_v43  ;;  %v15109_v40 = vld [vmem:[#allocation47_spill] sm:$0xff]  ;;  %v4982_v61 = vmul.f32 %v15110_v2, %v9098_v16  ;;  %v15111_v19 = vld [vmem:[#allocation80_spill] sm:$0xff] }
 0x3e9   : > { %v6664_v24 = vadd.f32 %v13454_v42, %v6276_v13  ;;  %v4594_v57 = vmul.f32 %v15109_v40, %v9095_v50  ;;  %v5370_v5 = vmul.f32 %v15111_v19, %v9111_v22  ;;  %v5857_v26 = vadd.f32 %v5729_v63, %v5468_v29  ;;  %v13549_v43 = vld [vmem:[%s14311_s3 + $0x8] ss:$0 sm:$0xff] }
 0x3ea   : > { %v5109_v49 = vadd.f32 %v4981_v54, %v4721_v17  ;;  %v3946_v15 = vadd.f32 %v3818_v58, %v3430_v9  ;;  %v5759_v55 = vmul.f32 %v9122_v59, %v13520_v52  ;;  %v6147_v13 = vmul.f32 %v9125_v11, %v13528_v39  ;;  %v13557_v58 = vld [vmem:[#allocation2 + $0x3c8] sm:$0xff]  ;;  %v6849_v52 = vpop.xlane.xlu0 %6848 }
 0x3eb   : > { %v7030_v42 = vsel %vm1595_vm0, %v6664_v24, 0.0  ;;  %v13553_v19 = vmul.f32 %v13549_v43, %v13530_v44  ;;  %v3401_v63 = vmul.f32 %v14567_v41, %v3269_v25  ;;  %v6245_v54 = vadd.f32 %v6117_v51, %v5857_v26  ;;  %v13559_v24 = vld [vmem:[#allocation2 + $0x3c9] sm:$0xff]  ;;  %v15112_v44 = vld [vmem:[#allocation20_spill] sm:$0xff]  ;;  %v15114_v51 = vld [vmem:[#allocation46_spill] sm:$0xff] }
 0x3ec   : > { %7031 = vadd.xlane.f32.xlu1 %v7030_v42  ;;  %v5497_v9 = vadd.f32 %v5369_v21, %v5109_v49  ;;  %v4334_v29 = vadd.f32 %v4206_v12, %v3946_v15  ;;  %v3789_v17 = vmul.f32 %v9019_v47, %v3657_v36  ;;  %v13561_v39 = vld [vmem:[#allocation2 + $0x3ca] sm:$0xff]  ;;  %v4177_v2 = vmul.f32 %v9029_v14, %v4045_v20  ;;  %v6852_v15 = vpop.xlane.xlu1 %6851 }
 0x3ed   : > { %v4565_v40 = vmul.f32 %v15112_v44, %v9095_v50  ;;  %v15113_v25 = vld [vmem:[#allocation72_spill] sm:$0xff]  ;;  %v5341_v21 = vmul.f32 %v15114_v51, %v9111_v22  ;;  %v6633_v12 = vadd.f32 %v13486_v4, %v6245_v54  ;;  %v5730_v6 = vmul.f32 %v9122_v59, %v13557_v58 }
 0x3ee   : > { %v4953_v42 = vmul.f32 %v15113_v25, %v9098_v16  ;;  %v5886_v36 = vadd.f32 %v5758_v33, %v5497_v9  ;;  %v4722_v26 = vadd.f32 %v4594_v57, %v4334_v29  ;;  %v3917_v49 = vadd.f32 %v3789_v17, %v3401_v63  ;;  %v13581_v57 = vld [vmem:[#allocation2 + $0x3e8] sm:$0xff] }
 0x3ef   : > { %v6118_v20 = vmul.f32 %v9125_v11, %v13559_v24  ;;  %v13577_v44 = vmul.f32 %v13549_v43, %v13561_v39  ;;  %v7122_v25 = vadd.f32 %v13215_v38, %v6849_v52  ;;  %v6937_v51 = vsel %vm1595_vm0, %v6633_v12, 0.0  ;;  %v13597_v12 = vld [vmem:[#allocation2 + $0x3ea] sm:$0xff] }
 0x3f0   : > { %v6274_v7 = vadd.f32 %v6146_v0, %v5886_v36  ;;  %v5110_v4 = vadd.f32 %v4982_v61, %v4722_v26  ;;  %v4305_v33 = vadd.f32 %v4177_v2, %v3917_v49  ;;  %6938 = vadd.xlane.f32.xlu0 %v6937_v51  ;;  %v7123_v63 = vadd.f32 %v13215_v38, %v6852_v15  ;;  %v13592_v0 = vld [vmem:[#allocation2 + $0x3e9] sm:$0xff]  ;;  %v13618_v51 = vld [vmem:[#allocation2 + $0x518] sm:$0xff] }
 0x3f1   : > { %7251 = vst.msk [vmem:[%s11877_s8 + $0x1d0] sm:$0xff] %vm7192_vm2, %v7122_v25  ;;  %v3404_v54 = vmul.f32 %v15100_v60, %v14567_v41  ;;  %v3792_v9 = vmul.f32 %v15101_v56, %v9019_v47  ;;  %v4180_v52 = vmul.f32 %v15102_v10, %v9029_v14  ;;  %v4568_v17 = vmul.f32 %v13458_v53, %v9095_v50 }
 0x3f2   : > { %v6662_v2 = vadd.f32 %v13513_v45, %v6274_v7  ;;  %v5498_v61 = vadd.f32 %v5370_v5, %v5110_v4  ;;  %v4693_v29 = vadd.f32 %v4565_v40, %v4305_v33  ;;  %7252 = vst.msk [vmem:[%s11877_s8 + $0x1d8] sm:$0xff] %vm7192_vm2, %v7123_v63  ;;  %v4956_v56 = vmul.f32 %v13466_v8, %v9098_v16  ;;  %v13620_v4 = vld [vmem:[#allocation2 + $0x519] sm:$0xff] }
 0x3f3   : > { %v3920_v60 = vadd.f32 %v3792_v9, %v3404_v54  ;;  %v5344_v10 = vmul.f32 %v13471_v46, %v9111_v22  ;;  %v5733_v36 = vmul.f32 %v9122_v59, %v13581_v57  ;;  %v6121_v5 = vmul.f32 %v9125_v11, %v13592_v0  ;;  %15115 = vst [vmem:[#allocation48_spill] sm:$0xff] %v13618_v51  ;;  %v13626_v54 = vld [vmem:[#allocation2 + $0x51a] sm:$0xff]  ;;  %v6855_v9 = vpop.xlane.xlu0 %6854 }
 0x3f4   : > { %v7024_v7 = vsel %vm1595_vm0, %v6662_v2, 0.0  ;;  %v5887_v45 = vadd.f32 %v5759_v55, %v5498_v61  ;;  %v5081_v40 = vadd.f32 %v4953_v42, %v4693_v29  ;;  %v13612_v49 = vmul.f32 %v13549_v43, %v13597_v12  ;;  %15116 = vst [vmem:[#allocation50_spill] sm:$0xff] %v13620_v4  ;;  %15117 = vst [vmem:[#allocation57_spill] sm:$0xff] %v13626_v54 }
 0x3f5   : > { %7025 = vadd.xlane.f32.xlu1 %v7024_v7  ;;  %v4308_v26 = vadd.f32 %v4180_v52, %v3920_v60  ;;  %v3435_v15 = vmul.f32 %v13256_v28, %v14567_v41  ;;  %v3823_v25 = vmul.f32 %v15099_v27, %v9019_v47  ;;  %v4211_v33 = vmul.f32 %v13264_v62, %v9029_v14  ;;  %v6858_v60 = vpop.xlane.xlu1 %6857 }
 0x3f6   : > { %v6275_v55 = vadd.f32 %v6147_v13, %v5887_v45  ;;  %v5469_v42 = vadd.f32 %v5341_v21, %v5081_v40  ;;  %v4599_v63 = vmul.f32 %v13433_v23, %v9095_v50  ;;  %v4987_v27 = vmul.f32 %v13435_v35, %v9098_v16  ;;  %v13647_v45 = vld [vmem:[#allocation2 + $0x500] sm:$0xff] }
 0x3f7   : > { %v4696_v52 = vadd.f32 %v4568_v17, %v4308_v26  ;;  %v3951_v28 = vadd.f32 %v3823_v25, %v3435_v15  ;;  %v5375_v2 = vmul.f32 %v13437_v32, %v9111_v22  ;;  %v5764_v62 = vmul.f32 %v9122_v59, %v13618_v51  ;;  %15118 = vst [vmem:[#allocation6_spill] sm:$0xff] %v13647_v45  ;;  %v13657_v25 = vld [vmem:[#allocation2 + $0x502] sm:$0xff] }
 0x3f8   : > { %v6663_v13 = vadd.f32 %v13553_v19, %v6275_v55  ;;  %v5858_v21 = vadd.f32 %v5730_v6, %v5469_v42  ;;  %v6152_v23 = vmul.f32 %v9125_v11, %v13620_v4  ;;  %v13639_v17 = vmul.f32 %v13549_v43, %v13626_v54  ;;  %15120 = vst [vmem:[#allocation4_spill] sm:$0xff] %v13657_v25 }
 0x3f9   : > { %v5084_v61 = vadd.f32 %v4956_v56, %v4696_v52  ;;  %v4339_v29 = vadd.f32 %v4211_v33, %v3951_v28  ;;  %v7124_v35 = vadd.f32 %v13215_v38, %v6855_v9  ;;  %v3432_v6 = vmul.f32 %v13219_v37, %v14567_v41  ;;  %v13649_v56 = vld [vmem:[#allocation2 + $0x501] sm:$0xff]  ;;  %v13659_v37 = vpop.xlane.xlu0 %6860  ;;  %v13672_v28 = vpop.xlane.xlu1 %6863 }
 0x3fa   : > { %v7027_v32 = vsel %vm1595_vm0, %v6663_v13, 0.0  ;;  %v6246_v19 = vadd.f32 %v6118_v20, %v5858_v21  ;;  %v3820_v7 = vmul.f32 %v13230_v3, %v9019_v47  ;;  %15119 = vst [vmem:[#allocation100_spill] sm:$0xff] %v13649_v56  ;;  %v4208_v15 = vmul.f32 %v13235_v18, %v9029_v14 }
 0x3fb   : > { %7028 = vadd.xlane.f32.xlu0 %v7027_v32  ;;  %v5472_v40 = vadd.f32 %v5344_v10, %v5084_v61  ;;  %v4727_v26 = vadd.f32 %v4599_v63, %v4339_v29  ;;  %7253 = vst.msk [vmem:[%s11877_s8 + $0x1e0] sm:$0xff] %vm7192_vm2, %v7124_v35  ;;  %v4596_v20 = vmul.f32 %v13399_v34, %v9095_v50  ;;  %v15121_v10 = vld [vmem:[#allocation75_spill] sm:$0xff] }
 0x3fc   : > { %v6634_v3 = vadd.f32 %v13577_v44, %v6246_v19  ;;  %v3948_v55 = vadd.f32 %v3820_v7, %v3432_v6  ;;  %v4984_v42 = vmul.f32 %v13407_v31, %v9098_v16  ;;  %v5372_v33 = vmul.f32 %v15121_v10, %v9111_v22  ;;  %v13687_v19 = vld [vmem:[#allocation2 + $0x509] sm:$0xff] }
 0x3fd   : > { %v5861_v63 = vadd.f32 %v5733_v36, %v5472_v40  ;;  %v5115_v9 = vadd.f32 %v4987_v27, %v4727_v26  ;;  %v5761_v18 = vmul.f32 %v9122_v59, %v13647_v45  ;;  %v13670_v52 = vmul.f32 %v9125_v11, %v13649_v56  ;;  %v13681_v27 = vld [vmem:[#allocation2 + $0x508] sm:$0xff]  ;;  %v13691_v7 = vpop.xlane.xlu0 %6866  ;;  %v15131_v56 = vld [vmem:[#allocation96_spill] sm:$0xff] }
 0x3fe   : > { %v6940_v44 = vsel %vm1595_vm0, %v6634_v3, 0.0  ;;  %v4336_v13 = vadd.f32 %v4208_v15, %v3948_v55  ;;  %v13677_v21 = vmul.f32 %v13549_v43, %v13657_v25  ;;  %v3433_v36 = vmul.f32 %v13313_v48, %v14567_v41  ;;  %v13689_v6 = vld [vmem:[#allocation2 + $0x50a] sm:$0xff]  ;;  %v15122_v48 = vld [vmem:[#allocation5_spill] sm:$0xff]  ;;  %v15123_v15 = vld [vmem:[#allocation86_spill] sm:$0xff] }
 0x3ff   : > { %6941 = vadd.xlane.f32.xlu1 %v6940_v44  ;;  %v6249_v61 = vadd.f32 %v6121_v5, %v5861_v63  ;;  %v5503_v29 = vadd.f32 %v5375_v2, %v5115_v9  ;;  %v3821_v35 = vmul.f32 %v13315_v30, %v9019_v47  ;;  %v4209_v32 = vmul.f32 %v13317_v1, %v9029_v14  ;;  %v15124_v2 = vld [vmem:[#allocation73_spill] sm:$0xff]  ;;  %v3658_v44 = vld [vmem:[#allocation2 + $0x381] sm:$0xff]  ;;  %v13715_v25 = vld [vmem:[#allocation2 + $0x3d1] sm:$0xff] }
 0x400   : > { %v4724_v40 = vadd.f32 %v4596_v20, %v4336_v13  ;;  %v4597_v26 = vmul.f32 %v15122_v48, %v9095_v50  ;;  %v4985_v5 = vmul.f32 %v15123_v15, %v9098_v16  ;;  %v5373_v3 = vmul.f32 %v15124_v2, %v9111_v22  ;;  %v3270_v30 = vld [vmem:[#allocation2 + $0x380] sm:$0xff]  ;;  %v13702_v13 = vpop.xlane.xlu1 %6869  ;;  %15127 = vst [vmem:[#allocation33_spill] sm:$0xff] %v13715_v25 }
 0x401   : > { %v6637_v55 = vadd.f32 %v13612_v49, %v6249_v61  ;;  %v5892_v1 = vadd.f32 %v5764_v62, %v5503_v29  ;;  %v3949_v63 = vadd.f32 %v3821_v35, %v3433_v36  ;;  %v5762_v9 = vmul.f32 %v9122_v59, %v13681_v27  ;;  %v4046_v20 = vld [vmem:[#allocation2 + $0x382] sm:$0xff]  ;;  %15125 = vst [vmem:[#allocation101_spill] sm:$0xff] %v13702_v13  ;;  %v13713_v35 = vld [vmem:[#allocation2 + $0x3d0] sm:$0xff] }
 0x402   : > { %v5112_v54 = vadd.f32 %v4984_v42, %v4724_v40  ;;  %v6150_v4 = vmul.f32 %v9125_v11, %v13687_v19  ;;  %v13708_v51 = vmul.f32 %v13549_v43, %v13689_v6  ;;  %v7125_v49 = vadd.f32 %v13215_v38, %v6858_v60  ;;  %15126 = vst [vmem:[#allocation68_spill] sm:$0xff] %v13713_v35  ;;  %v13717_v42 = vpop.xlane.xlu0 %6872 }
 0x403   : > { %v6949_v62 = vsel %vm1595_vm0, %v6637_v55, 0.0  ;;  %v6280_v36 = vadd.f32 %v6152_v23, %v5892_v1  ;;  %v4337_v61 = vadd.f32 %v4209_v32, %v3949_v63  ;;  %v3402_v29 = vmul.f32 %v14567_v41, %v3270_v30  ;;  %15128 = vst [vmem:[#allocation10_spill] sm:$0xff] %v13717_v42  ;;  %v15129_v55 = vld [vmem:[#allocation44_spill] sm:$0xff]  ;;  %v3271_v30 = vld [vmem:[#allocation2 + $0x388] sm:$0xff] }
 0x404   : > { %6950 = vadd.xlane.f32.xlu0 %v6949_v62  ;;  %v5500_v40 = vadd.f32 %v5372_v33, %v5112_v54  ;;  %7254 = vst.msk [vmem:[%s11877_s8 + $0x1e8] sm:$0xff] %vm7192_vm2, %v7125_v49  ;;  %v3790_v13 = vmul.f32 %v9019_v47, %v3658_v44  ;;  %v4178_v60 = vmul.f32 %v9029_v14, %v4046_v20  ;;  %v13725_v32 = vld [vmem:[#allocation2 + $0x3d2] sm:$0xff]  ;;  %v3659_v49 = vld [vmem:[#allocation2 + $0x389] sm:$0xff]  ;;  %v13732_v44 = vpop.xlane.xlu1 %6875 }
 0x405   : > { %v4566_v23 = vmul.f32 %v15129_v55, %v9095_v50  ;;  %15130 = vst [vmem:[#allocation65_spill] sm:$0xff] %v13725_v32  ;;  %v6668_v1 = vadd.f32 %v13639_v17, %v6280_v36  ;;  %v4725_v63 = vadd.f32 %v4597_v26, %v4337_v61  ;;  %v4954_v42 = vmul.f32 %v15131_v56, %v9098_v16  ;;  %v15132_v54 = vld [vmem:[#allocation97_spill] sm:$0xff]  ;;  %v4047_v62 = vld [vmem:[#allocation2 + $0x38a] sm:$0xff] }
 0x406   : > { %v5342_v33 = vmul.f32 %v15132_v54, %v9111_v22  ;;  %15133 = vst [vmem:[#allocation8_spill] sm:$0xff] %v13732_v44  ;;  %v5889_v20 = vadd.f32 %v5761_v18, %v5500_v40  ;;  %v3918_v45 = vadd.f32 %v3790_v13, %v3402_v29  ;;  %v5731_v55 = vmul.f32 %v9122_v59, %v13713_v35  ;;  %v13746_v61 = vld [vmem:[#allocation2 + $0x3d8] sm:$0xff]  ;;  %v13748_v18 = vpop.xlane.xlu0 %6878  ;;  %v15135_v44 = vld [vmem:[#allocation82_spill] sm:$0xff] }
 0x407   : > { %v13738_v10 = vmul.f32 %v9125_v11, %v13715_v25  ;;  %v7042_v17 = vsel %vm1595_vm0, %v6668_v1, 0.0  ;;  %v5113_v26 = vadd.f32 %v4985_v5, %v4725_v63  ;;  %v13743_v56 = vmul.f32 %v13549_v43, %v13725_v32  ;;  %15134 = vst [vmem:[#allocation24_spill] sm:$0xff] %v13748_v18  ;;  %v13753_v1 = vld [vmem:[#allocation2 + $0x3d9] sm:$0xff] }
 0x408   : > { %v3403_v36 = vmul.f32 %v14567_v41, %v3271_v30  ;;  %7043 = vadd.xlane.f32.xlu1 %v7042_v17  ;;  %v6277_v13 = vadd.f32 %v13670_v52, %v5889_v20  ;;  %v4306_v29 = vadd.f32 %v4178_v60, %v3918_v45  ;;  %v3791_v40 = vmul.f32 %v9019_v47, %v3659_v49  ;;  %v13755_v5 = vld [vmem:[#allocation2 + $0x3da] sm:$0xff]  ;;  %v15137_v17 = vld [vmem:[#allocation99_spill] sm:$0xff]  ;;  %v13763_v52 = vpop.xlane.xlu1 %6881 }
 0x409   : > { %v4179_v54 = vmul.f32 %v9029_v14, %v4047_v62  ;;  %v5501_v63 = vadd.f32 %v5373_v3, %v5113_v26  ;;  %v4567_v30 = vmul.f32 %v15135_v44, %v9095_v50  ;;  %v15136_v32 = vld [vmem:[#allocation45_spill] sm:$0xff]  ;;  %v5343_v18 = vmul.f32 %v15137_v17, %v9111_v22  ;;  %15138 = vst [vmem:[#allocation58_spill] sm:$0xff] %v13763_v52  ;;  %v15146_v52 = vld [vmem:[#allocation63_spill] sm:$0xff] }
 0x40a   : > { %v4955_v25 = vmul.f32 %v15136_v32, %v9098_v16  ;;  %v6665_v45 = vadd.f32 %v13677_v21, %v6277_v13  ;;  %v4694_v60 = vadd.f32 %v4566_v23, %v4306_v29  ;;  %v3919_v49 = vadd.f32 %v3791_v40, %v3403_v36  ;;  %v13778_v26 = vpop.xlane.xlu0 %6884  ;;  %v13783_v13 = vld [vmem:[#allocation2 + $0x510] sm:$0xff] }
 0x40b   : > { %v5732_v62 = vmul.f32 %v9122_v59, %v13746_v61  ;;  %v5890_v3 = vadd.f32 %v5762_v9, %v5501_v63  ;;  %v13770_v44 = vmul.f32 %v9125_v11, %v13753_v1  ;;  %v13774_v32 = vmul.f32 %v13549_v43, %v13755_v5  ;;  %15139 = vst [vmem:[#allocation15_spill] sm:$0xff] %v13778_v26  ;;  %v15140_v40 = vld [vmem:[#allocation47_spill] sm:$0xff] }
 0x40c   : > { %v7126_v20 = vadd.f32 %v13215_v38, %v13659_v37  ;;  %v7033_v21 = vsel %vm1595_vm0, %v6665_v45, 0.0  ;;  %v5082_v23 = vadd.f32 %v4954_v42, %v4694_v60  ;;  %v4307_v36 = vadd.f32 %v4179_v54, %v3919_v49  ;;  %v15141_v37 = vld [vmem:[#allocation98_spill] sm:$0xff]  ;;  %v15142_v45 = vld [vmem:[#allocation80_spill] sm:$0xff] }
 0x40d   : > { %v7127_v9 = vadd.f32 %v13215_v38, %v13672_v28  ;;  %7034 = vadd.xlane.f32.xlu0 %v7033_v21  ;;  %v6278_v29 = vadd.f32 %v6150_v4, %v5890_v3  ;;  %v3434_v63 = vmul.f32 %v15140_v40, %v14567_v41  ;;  %v3822_v17 = vmul.f32 %v15141_v37, %v9019_v47  ;;  %v13793_v42 = vld [vmem:[#allocation2 + $0x511] sm:$0xff]  ;;  %v13797_v38 = vpop.xlane.xlu1 %6887  ;;  %v15144_v4 = vld [vmem:[#allocation34_spill] sm:$0xff] }
 0x40e   : > { %7255 = vst.msk [vmem:[%s11877_s8 + $0x1f0] sm:$0xff] %vm7192_vm2, %v7126_v20  ;;  %v4210_v26 = vmul.f32 %v15142_v45, %v9029_v14  ;;  %v13795_v54 = vld [vmem:[#allocation2 + $0x512] sm:$0xff]  ;;  %15143 = vst [vmem:[#allocation12_spill] sm:$0xff] %v13797_v38  ;;  %v5470_v28 = vadd.f32 %v5342_v33, %v5082_v23  ;;  %v4695_v60 = vadd.f32 %v4567_v30, %v4307_v36  ;;  %v15145_v3 = vld [vmem:[#allocation54_spill] sm:$0xff]  ;;  %v13810_v23 = vpop.xlane.xlu0 %6890 }
 0x40f   : > { %7256 = vst.msk [vmem:[%s11877_s8 + $0x1f8] sm:$0xff] %vm7192_vm2, %v7127_v9  ;;  %v4598_v49 = vmul.f32 %v15144_v4, %v9095_v50  ;;  %v4986_v20 = vmul.f32 %v15145_v3, %v9098_v16  ;;  %v3273_v21 = vld [vmem:[#allocation2 + $0x3a0] sm:$0xff]  ;;  %v6666_v37 = vadd.f32 %v13708_v51, %v6278_v29  ;;  %v3950_v45 = vadd.f32 %v3822_v17, %v3434_v63  ;;  %v13821_v17 = vld [vmem:[#allocation2 + $0x3f0] sm:$0xff] }
 0x410   : > { %v3661_v40 = vld [vmem:[#allocation2 + $0x3a1] sm:$0xff]  ;;  %v5374_v35 = vmul.f32 %v15146_v52, %v9111_v22  ;;  %v5763_v33 = vmul.f32 %v9122_v59, %v13783_v13  ;;  %15147 = vst [vmem:[#allocation55_spill] sm:$0xff] %v13810_v23  ;;  %v5859_v36 = vadd.f32 %v5731_v55, %v5470_v28  ;;  %v5083_v9 = vadd.f32 %v4955_v25, %v4695_v60  ;;  %v13823_v38 = vld [vmem:[#allocation2 + $0x3f1] sm:$0xff] }
 0x411   : > { %v4049_v30 = vld [vmem:[#allocation2 + $0x3a2] sm:$0xff]  ;;  %v6151_v4 = vmul.f32 %v9125_v11, %v13793_v42  ;;  %v13816_v3 = vmul.f32 %v13549_v43, %v13795_v54  ;;  %v7036_v51 = vsel %vm1595_vm0, %v6666_v37, 0.0  ;;  %v4338_v29 = vadd.f32 %v4210_v26, %v3950_v45  ;;  %v13825_v55 = vpop.xlane.xlu1 %6893  ;;  %v13831_v26 = vld [vmem:[#allocation2 + $0x3f2] sm:$0xff] }
 0x412   : > { %v3405_v52 = vmul.f32 %v14567_v41, %v3273_v21  ;;  %v3793_v63 = vmul.f32 %v9019_v47, %v3661_v40  ;;  %15148 = vst [vmem:[#allocation49_spill] sm:$0xff] %v13825_v55  ;;  %7037 = vadd.xlane.f32.xlu1 %v7036_v51  ;;  %v6247_v25 = vadd.f32 %v13738_v10, %v5859_v36  ;;  %v13837_v55 = vpop.xlane.xlu0 %6896 }
 0x413   : > { %v5471_v28 = vadd.f32 %v5343_v18, %v5083_v9  ;;  %v4181_v60 = vmul.f32 %v9029_v14, %v4049_v30  ;;  %v4569_v37 = vmul.f32 %v13557_v58, %v9095_v50  ;;  %v4726_v21 = vadd.f32 %v4598_v49, %v4338_v29  ;;  %15149 = vst [vmem:[#allocation28_spill] sm:$0xff] %v13837_v55 }
 0x414   : > { %v3921_v45 = vadd.f32 %v3793_v63, %v3405_v52  ;;  %v4957_v40 = vmul.f32 %v13559_v24, %v9098_v16  ;;  %v5345_v23 = vmul.f32 %v13561_v39, %v9111_v22  ;;  %v6635_v10 = vadd.f32 %v13743_v56, %v6247_v25  ;;  %v5605_v52 = vld [vmem:[#allocation2 + $0x410] sm:$0xff] }
 0x415   : > { %v5860_v18 = vadd.f32 %v5732_v62, %v5471_v28  ;;  %v5734_v30 = vmul.f32 %v9122_v59, %v13821_v17  ;;  %v6122_v36 = vmul.f32 %v9125_v11, %v13823_v38  ;;  %v5114_v9 = vadd.f32 %v4986_v20, %v4726_v21  ;;  %v13850_v63 = vpop.xlane.xlu1 %6899  ;;  %v5993_v28 = vld [vmem:[#allocation2 + $0x411] sm:$0xff] }
 0x416   : > { %v4309_v49 = vadd.f32 %v4181_v60, %v3921_v45  ;;  %v13846_v51 = vmul.f32 %v13549_v43, %v13831_v26  ;;  %v3408_v29 = vmul.f32 %v13458_v53, %v14567_v41  ;;  %15150 = vst [vmem:[#allocation76_spill] sm:$0xff] %v13850_v63  ;;  %v6943_v56 = vsel %vm1595_vm0, %v6635_v10, 0.0  ;;  %v6381_v60 = vld [vmem:[#allocation2 + $0x412] sm:$0xff]  ;;  %v13862_v10 = vpop.xlane.xlu0 %6902 }
 0x417   : > { %v6248_v62 = vadd.f32 %v13770_v44, %v5860_v18  ;;  %v3796_v25 = vmul.f32 %v13466_v8, %v9019_v47  ;;  %v4184_v20 = vmul.f32 %v13471_v46, %v9029_v14  ;;  %6944 = vadd.xlane.f32.xlu0 %v6943_v56  ;;  %v5502_v21 = vadd.f32 %v5374_v35, %v5114_v9 }
 0x418   : > { %v4697_v45 = vadd.f32 %v4569_v37, %v4309_v49  ;;  %v4572_v53 = vmul.f32 %v13581_v57, %v9095_v50  ;;  %v4960_v63 = vmul.f32 %v13592_v0, %v9098_v16  ;;  %v5348_v8 = vmul.f32 %v13597_v12, %v9111_v22  ;;  %v5634_v49 = vld [vmem:[#allocation2 + $0x530] sm:$0xff] }
 0x419   : > { %v6636_v44 = vadd.f32 %v13774_v32, %v6248_v62  ;;  %v3924_v18 = vadd.f32 %v3796_v25, %v3408_v29  ;;  %v5737_v46 = vmul.f32 %v9122_v59, %v5605_v52  ;;  %v5891_v55 = vadd.f32 %v5763_v33, %v5502_v21  ;;  %v13872_v57 = vpop.xlane.xlu1 %6905  ;;  %v6022_v29 = vld [vmem:[#allocation2 + $0x531] sm:$0xff] }
 0x41a   : > { %v5085_v56 = vadd.f32 %v4957_v40, %v4697_v45  ;;  %v6125_v35 = vmul.f32 %v9125_v11, %v5993_v28  ;;  %v13870_v37 = vmul.f32 %v13549_v43, %v6381_v60  ;;  %v3437_v32 = vmul.f32 %v15122_v48, %v14567_v41  ;;  %v6410_v25 = vld [vmem:[#allocation2 + $0x532] sm:$0xff]  ;;  %v13883_v28 = vpop.xlane.xlu0 %6908 }
 0x41b   : > { %v6946_v0 = vsel %vm1595_vm0, %v6636_v44, 0.0  ;;  %v4312_v9 = vadd.f32 %v4184_v20, %v3924_v18  ;;  %v3825_v12 = vmul.f32 %v15123_v15, %v9019_v47  ;;  %v6279_v33 = vadd.f32 %v6151_v4, %v5891_v55 }
 0x41c   : > { %6947 = vadd.xlane.f32.xlu1 %v6946_v0  ;;  %v5473_v40 = vadd.f32 %v5345_v23, %v5085_v56  ;;  %v4213_v52 = vmul.f32 %v15124_v2, %v9029_v14  ;;  %v4601_v62 = vmul.f32 %v13681_v27, %v9095_v50  ;;  %v4989_v48 = vmul.f32 %v13687_v19, %v9098_v16  ;;  %v13899_v19 = vld [vmem:[#allocation3] ss:$0 sm:$0xff]  ;;  %v5633_v56 = vld [vmem:[#allocation2 + $0x528] sm:$0xff] }
 0x41d   : > { %v4700_v20 = vadd.f32 %v4572_v53, %v4312_v9  ;;  %v3953_v60 = vadd.f32 %v3825_v12, %v3437_v32  ;;  %v5377_v15 = vmul.f32 %v13689_v6, %v9111_v22  ;;  %v6667_v4 = vadd.f32 %v13816_v3, %v6279_v33  ;;  %v13894_v27 = vpop.xlane.xlu1 %6911 }
 0x41e   : > { %v5862_v23 = vadd.f32 %v5734_v30, %v5473_v40  ;;  %v5766_v55 = vmul.f32 %v9122_v59, %v5634_v49  ;;  %v13892_v2 = vmul.f32 %v9125_v11, %v6022_v29  ;;  %v13897_v53 = vmul.f32 %v13549_v43, %v6410_v25  ;;  %v13908_v0 = vpop.xlane.xlu0 %6974  ;;  %v6409_v29 = vld [vmem:[#allocation2 + $0x52a] sm:$0xff] }
 0x41f   : > { %v5088_v21 = vadd.f32 %v4960_v63, %v4700_v20  ;;  %v4341_v45 = vadd.f32 %v4213_v52, %v3953_v60  ;;  %v7128_v6 = vadd.f32 %v13899_v19, %v13691_v7  ;;  %v7039_v3 = vsel %vm1595_vm0, %v6667_v4, 0.0  ;;  %v6021_v63 = vld [vmem:[#allocation2 + $0x529] sm:$0xff]  ;;  %v15153_v40 = vld [vmem:[#allocation100_spill] sm:$0xff] }
 0x420   : > { %v6250_v30 = vadd.f32 %v6122_v36, %v5862_v23  ;;  %v3436_v44 = vmul.f32 %v13399_v34, %v14567_v41  ;;  %v3824_v18 = vmul.f32 %v13407_v31, %v9019_v47  ;;  %7040 = vadd.xlane.f32.xlu0 %v7039_v3  ;;  %v15151_v7 = vld [vmem:[#allocation75_spill] sm:$0xff]  ;;  %v15152_v36 = vld [vmem:[#allocation6_spill] sm:$0xff]  ;;  %v4988_v52 = vmul.f32 %v15153_v40, %v9098_v16  ;;  %v15154_v25 = vld [vmem:[#allocation4_spill] sm:$0xff] }
 0x421   : > { %v5476_v9 = vadd.f32 %v5348_v8, %v5088_v21  ;;  %v4729_v32 = vadd.f32 %v4601_v62, %v4341_v45  ;;  %7257 = vst.msk [vmem:[%s11877_s8 + $0x200] sm:$0xff] %vm7192_vm2, %v7128_v6  ;;  %v4212_v12 = vmul.f32 %v15151_v7, %v9029_v14  ;;  %v4600_v49 = vmul.f32 %v15152_v36, %v9095_v50  ;;  %v3275_v34 = vld [vmem:[#allocation2 + $0x3b0] sm:$0xff]  ;;  %v13921_v60 = vpop.xlane.xlu1 %6983 }
 0x422   : > { %v6638_v33 = vadd.f32 %v13846_v51, %v6250_v30  ;;  %v3952_v31 = vadd.f32 %v3824_v18, %v3436_v44  ;;  %v5376_v8 = vmul.f32 %v15154_v25, %v9111_v22  ;;  %v3663_v62 = vld [vmem:[#allocation2 + $0x3b1] sm:$0xff]  ;;  %15155 = vst [vmem:[#allocation13_spill] sm:$0xff] %v13921_v60  ;;  %v5765_v21 = vmul.f32 %v9122_v59, %v5633_v56  ;;  %v13930_v44 = vld [vmem:[#allocation2 + $0x400] sm:$0xff] }
 0x423   : > { %v4051_v20 = vld [vmem:[#allocation2 + $0x3b2] sm:$0xff]  ;;  %v5865_v4 = vadd.f32 %v5737_v46, %v5476_v9  ;;  %v5117_v23 = vadd.f32 %v4989_v48, %v4729_v32  ;;  %v6153_v45 = vmul.f32 %v9125_v11, %v6021_v63  ;;  %v13927_v3 = vmul.f32 %v13549_v43, %v6409_v29  ;;  %v13934_v56 = vld [vmem:[#allocation2 + $0x401] sm:$0xff]  ;;  %v4050_v40 = vld [vmem:[#allocation2 + $0x3aa] sm:$0xff] }
 0x424   : > { %v6952_v6 = vsel %vm1595_vm0, %v6638_v33, 0.0  ;;  %v4340_v51 = vadd.f32 %v4212_v12, %v3952_v31  ;;  %v3407_v30 = vmul.f32 %v14567_v41, %v3275_v34  ;;  %v3795_v46 = vmul.f32 %v9019_v47, %v3663_v62  ;;  %v13936_v63 = vld [vmem:[#allocation2 + $0x402] sm:$0xff] }
 0x425   : > { %6953 = vadd.xlane.f32.xlu1 %v6952_v6  ;;  %v6253_v18 = vadd.f32 %v6125_v35, %v5865_v4  ;;  %v5505_v7 = vadd.f32 %v5377_v15, %v5117_v23  ;;  %v4183_v48 = vmul.f32 %v9029_v14, %v4051_v20  ;;  %v4571_v32 = vmul.f32 %v13746_v61, %v9095_v50  ;;  %v3274_v35 = vld [vmem:[#allocation2 + $0x3a8] sm:$0xff]  ;;  %v13944_v15 = vpop.xlane.xlu0 %6914  ;;  %v15157_v4 = vld [vmem:[#allocation101_spill] sm:$0xff] }
 0x426   : > { %v4728_v9 = vadd.f32 %v4600_v49, %v4340_v51  ;;  %v4959_v12 = vmul.f32 %v13753_v1, %v9098_v16  ;;  %v5347_v36 = vmul.f32 %v13755_v5, %v9111_v22  ;;  %15156 = vst [vmem:[#allocation17_spill] sm:$0xff] %v13944_v15  ;;  %v3923_v33 = vadd.f32 %v3795_v46, %v3407_v30  ;;  %v3662_v49 = vld [vmem:[#allocation2 + $0x3a9] sm:$0xff]  ;;  %v6379_v15 = vld [vmem:[#allocation2 + $0x3fa] sm:$0xff] }
 0x427   : > { %v6641_v29 = vadd.f32 %v13870_v37, %v6253_v18  ;;  %v5894_v34 = vadd.f32 %v5766_v55, %v5505_v7  ;;  %v5736_v31 = vmul.f32 %v9122_v59, %v13930_v44  ;;  %v6124_v62 = vmul.f32 %v9125_v11, %v13934_v56  ;;  %v13957_v37 = vpop.xlane.xlu1 %6977  ;;  %v5991_v18 = vld [vmem:[#allocation2 + $0x3f9] sm:$0xff] }
 0x428   : > { %v5116_v25 = vadd.f32 %v4988_v52, %v4728_v9  ;;  %v13953_v20 = vmul.f32 %v13549_v43, %v13936_v63  ;;  %v7129_v23 = vadd.f32 %v13899_v19, %v15157_v4  ;;  %15158 = vst [vmem:[#allocation71_spill] sm:$0xff] %v13957_v37  ;;  %v4311_v51 = vadd.f32 %v4183_v48, %v3923_v33  ;;  %v5603_v52 = vld [vmem:[#allocation2 + $0x3f8] sm:$0xff] }
 0x429   : > { %v6961_v55 = vsel %vm1595_vm0, %v6641_v29, 0.0  ;;  %v6282_v6 = vadd.f32 %v13892_v2, %v5894_v34  ;;  %v3406_v30 = vmul.f32 %v14567_v41, %v3274_v35  ;;  %v3794_v46 = vmul.f32 %v9019_v47, %v3662_v49  ;;  %v15159_v4 = vld [vmem:[#allocation68_spill] sm:$0xff]  ;;  %v15160_v48 = vld [vmem:[#allocation33_spill] sm:$0xff] }
 0x42a   : > { %6962 = vadd.xlane.f32.xlu0 %v6961_v55  ;;  %v5504_v7 = vadd.f32 %v5376_v8, %v5116_v25  ;;  %7258 = vst.msk [vmem:[%s11877_s8 + $0x208] sm:$0xff] %vm7192_vm2, %v7129_v23  ;;  %v4182_v9 = vmul.f32 %v9029_v14, %v4050_v40  ;;  %v4570_v37 = vmul.f32 %v15159_v4, %v9095_v50  ;;  %v15161_v34 = vld [vmem:[#allocation65_spill] sm:$0xff]  ;;  %v13975_v40 = vpop.xlane.xlu0 %6980 }
 0x42b   : > { %v6670_v29 = vadd.f32 %v13897_v53, %v6282_v6  ;;  %v4699_v2 = vadd.f32 %v4571_v32, %v4311_v51  ;;  %v4958_v35 = vmul.f32 %v15160_v48, %v9098_v16  ;;  %v5346_v33 = vmul.f32 %v15161_v34, %v9111_v22  ;;  %15162 = vst [vmem:[#allocation14_spill] sm:$0xff] %v13975_v40  ;;  %v5606_v6 = vld [vmem:[#allocation2 + $0x418] sm:$0xff] }
 0x42c   : > { %v5893_v8 = vadd.f32 %v5765_v21, %v5504_v7  ;;  %v3922_v25 = vadd.f32 %v3794_v46, %v3406_v30  ;;  %v5735_v23 = vmul.f32 %v9122_v59, %v5603_v52  ;;  %v6123_v49 = vmul.f32 %v9125_v11, %v5991_v18  ;;  %v5994_v46 = vld [vmem:[#allocation2 + $0x419] sm:$0xff] }
 0x42d   : > { %v7048_v55 = vsel %vm1595_vm0, %v6670_v29, 0.0  ;;  %v5087_v60 = vadd.f32 %v4959_v12, %v4699_v2  ;;  %v13979_v53 = vmul.f32 %v13549_v43, %v6379_v15  ;;  %v3409_v32 = vmul.f32 %v13557_v58, %v14567_v41  ;;  %v6382_v40 = vld [vmem:[#allocation2 + $0x41a] sm:$0xff]  ;;  %v13987_v29 = vpop.xlane.xlu1 %6917 }
 0x42e   : > { %7049 = vadd.xlane.f32.xlu1 %v7048_v55  ;;  %v6281_v51 = vadd.f32 %v6153_v45, %v5893_v8  ;;  %v4310_v21 = vadd.f32 %v4182_v9, %v3922_v25  ;;  %v3797_v30 = vmul.f32 %v13559_v24, %v9019_v47  ;;  %v4185_v7 = vmul.f32 %v13561_v39, %v9029_v14 }
 0x42f   : > { %15163 = vst [vmem:[#allocation61_spill] sm:$0xff] %v13987_v29  ;;  %v5475_v12 = vadd.f32 %v5347_v36, %v5087_v60  ;;  %v4573_v2 = vmul.f32 %v13821_v17, %v9095_v50  ;;  %v4961_v58 = vmul.f32 %v13823_v38, %v9098_v16  ;;  %v5349_v45 = vmul.f32 %v13831_v26, %v9111_v22  ;;  %v15164_v17 = vld [vmem:[#allocation10_spill] sm:$0xff] }
 0x430   : > { %v6669_v9 = vadd.f32 %v13927_v3, %v6281_v51  ;;  %v4698_v24 = vadd.f32 %v4570_v37, %v4310_v21  ;;  %v3925_v8 = vadd.f32 %v3797_v30, %v3409_v32  ;;  %v5738_v39 = vmul.f32 %v9122_v59, %v5606_v6  ;;  %v15165_v3 = vld [vmem:[#allocation8_spill] sm:$0xff]  ;;  %v5607_v32 = vld [vmem:[#allocation2 + $0x420] sm:$0xff]  ;;  %v14006_v51 = vpop.xlane.xlu0 %6986 }
 0x431   : > { %v5864_v25 = vadd.f32 %v5736_v31, %v5475_v12  ;;  %v6126_v55 = vmul.f32 %v9125_v11, %v5994_v46  ;;  %v13999_v60 = vmul.f32 %v13549_v43, %v6382_v40  ;;  %v7130_v36 = vadd.f32 %v13899_v19, %v15164_v17  ;;  %v5995_v21 = vld [vmem:[#allocation2 + $0x421] sm:$0xff]  ;;  %v5996_v17 = vld [vmem:[#allocation2 + $0x429] sm:$0xff] }
 0x432   : > { %v7045_v38 = vsel %vm1595_vm0, %v6669_v9, 0.0  ;;  %v5086_v26 = vadd.f32 %v4958_v35, %v4698_v24  ;;  %v4313_v29 = vadd.f32 %v4185_v7, %v3925_v8  ;;  %v7131_v37 = vadd.f32 %v13899_v19, %v15165_v3  ;;  %v6383_v30 = vld [vmem:[#allocation2 + $0x422] sm:$0xff]  ;;  %v14020_v9 = vpop.xlane.xlu1 %6995 }
 0x433   : > { %7046 = vadd.xlane.f32.xlu0 %v7045_v38  ;;  %v6252_v31 = vadd.f32 %v6124_v62, %v5864_v25  ;;  %7259 = vst.msk [vmem:[%s11877_s8 + $0x210] sm:$0xff] %vm7192_vm2, %v7130_v36  ;;  %v3410_v40 = vmul.f32 %v15159_v4, %v14567_v41  ;;  %v3798_v6 = vmul.f32 %v15160_v48, %v9019_v47  ;;  %v3306_v3 = vld [vmem:[#allocation2 + $0x4e8] sm:$0xff] }
 0x434   : > { %v4186_v35 = vmul.f32 %v15161_v34, %v9029_v14  ;;  %v5474_v7 = vadd.f32 %v5346_v33, %v5086_v26  ;;  %v4701_v46 = vadd.f32 %v4573_v2, %v4313_v29  ;;  %7260 = vst.msk [vmem:[%s11877_s8 + $0x218] sm:$0xff] %vm7192_vm2, %v7131_v37  ;;  %v4574_v12 = vmul.f32 %v5603_v52, %v9095_v50  ;;  %v6384_v26 = vld [vmem:[#allocation2 + $0x42a] sm:$0xff]  ;;  %v14040_v37 = vpop.xlane.xlu0 %6920 }
 0x435   : > { %v4962_v62 = vmul.f32 %v5991_v18, %v9098_v16  ;;  %v6640_v4 = vadd.f32 %v13953_v20, %v6252_v31  ;;  %v3926_v24 = vadd.f32 %v3798_v6, %v3410_v40  ;;  %v5350_v48 = vmul.f32 %v6379_v15, %v9111_v22  ;;  %v5608_v15 = vld [vmem:[#allocation2 + $0x428] sm:$0xff] }
 0x436   : > { %v5739_v8 = vmul.f32 %v9122_v59, %v5607_v32  ;;  %v5863_v34 = vadd.f32 %v5735_v23, %v5474_v7  ;;  %v5089_v25 = vadd.f32 %v4961_v58, %v4701_v46  ;;  %v14026_v33 = vmul.f32 %v9125_v11, %v5995_v21  ;;  %v5635_v46 = vld [vmem:[#allocation2 + $0x538] sm:$0xff] }
 0x437   : > { %v14029_v29 = vmul.f32 %v13549_v43, %v6383_v30  ;;  %v6958_v52 = vsel %vm1595_vm0, %v6640_v4, 0.0  ;;  %v4314_v18 = vadd.f32 %v4186_v35, %v3926_v24  ;;  %v3411_v2 = vmul.f32 %v13746_v61, %v14567_v41  ;;  %v14049_v35 = vpop.xlane.xlu1 %6989  ;;  %v6023_v4 = vld [vmem:[#allocation2 + $0x539] sm:$0xff] }
 0x438   : > { %v3799_v20 = vmul.f32 %v13753_v1, %v9019_v47  ;;  %6959 = vadd.xlane.f32.xlu1 %v6958_v52  ;;  %v6251_v23 = vadd.f32 %v6123_v49, %v5863_v34  ;;  %v5477_v58 = vadd.f32 %v5349_v45, %v5089_v25  ;;  %v4187_v36 = vmul.f32 %v13755_v5, %v9029_v14  ;;  %v3694_v49 = vld [vmem:[#allocation2 + $0x4e9] sm:$0xff]  ;;  %v6411_v24 = vld [vmem:[#allocation2 + $0x53a] sm:$0xff] }
 0x439   : > { %v4575_v38 = vmul.f32 %v13930_v44, %v9095_v50  ;;  %v4702_v32 = vadd.f32 %v4574_v12, %v4314_v18  ;;  %v4963_v1 = vmul.f32 %v13934_v56, %v9098_v16  ;;  %v5351_v31 = vmul.f32 %v13936_v63, %v9111_v22  ;;  %v4082_v45 = vld [vmem:[#allocation2 + $0x4ea] sm:$0xff] }
 0x43a   : > { %v3927_v61 = vadd.f32 %v3799_v20, %v3411_v2  ;;  %v6639_v40 = vadd.f32 %v13979_v53, %v6251_v23  ;;  %v5866_v5 = vadd.f32 %v5738_v39, %v5477_v58  ;;  %v5740_v6 = vmul.f32 %v9122_v59, %v5608_v15  ;;  %v3307_v18 = vld [vmem:[#allocation2 + $0x4f0] sm:$0xff]  ;;  %v14066_v58 = vpop.xlane.xlu0 %6992 }
 0x43b   : > { %v6128_v44 = vmul.f32 %v9125_v11, %v5996_v17  ;;  %v5090_v21 = vadd.f32 %v4962_v62, %v4702_v32  ;;  %v14052_v7 = vmul.f32 %v13549_v43, %v6384_v26  ;;  %v3438_v56 = vmul.f32 %v14567_v41, %v3306_v3  ;;  %v3695_v2 = vld [vmem:[#allocation2 + $0x4f1] sm:$0xff]  ;;  %v6024_v32 = vld [vmem:[#allocation2 + $0x541] sm:$0xff] }
 0x43c   : > { %v4315_v30 = vadd.f32 %v4187_v36, %v3927_v61  ;;  %v6955_v63 = vsel %vm1595_vm0, %v6639_v40, 0.0  ;;  %v6254_v12 = vadd.f32 %v6126_v55, %v5866_v5  ;;  %v3826_v53 = vmul.f32 %v9019_v47, %v3694_v49  ;;  %v4083_v23 = vld [vmem:[#allocation2 + $0x4f2] sm:$0xff]  ;;  %v14075_v61 = vpop.xlane.xlu1 %6923  ;;  %v6412_v5 = vld [vmem:[#allocation2 + $0x542] sm:$0xff] }
 0x43d   : > { %v4214_v39 = vmul.f32 %v9029_v14, %v4082_v45  ;;  %6956 = vadd.xlane.f32.xlu0 %v6955_v63  ;;  %v5478_v34 = vadd.f32 %v5350_v48, %v5090_v21  ;;  %v4602_v62 = vmul.f32 %v13783_v13, %v9095_v50  ;;  %v4990_v52 = vmul.f32 %v13793_v42, %v9098_v16  ;;  %v15166_v45 = vld [vmem:[#allocation48_spill] sm:$0xff] }
 0x43e   : > { %v4703_v25 = vadd.f32 %v4575_v38, %v4315_v30  ;;  %v6642_v20 = vadd.f32 %v13999_v60, %v6254_v12  ;;  %v3954_v55 = vadd.f32 %v3826_v53, %v3438_v56  ;;  %v5378_v15 = vmul.f32 %v13795_v54, %v9111_v22  ;;  %v5636_v54 = vld [vmem:[#allocation2 + $0x540] sm:$0xff] }
 0x43f   : > { %v5767_v17 = vmul.f32 %v9122_v59, %v5635_v46  ;;  %v5867_v48 = vadd.f32 %v5739_v8, %v5478_v34  ;;  %v6155_v13 = vmul.f32 %v9125_v11, %v6023_v4  ;;  %v14070_v38 = vmul.f32 %v13549_v43, %v6411_v24  ;;  %v15171_v24 = vld [vmem:[#allocation15_spill] sm:$0xff] }
 0x440   : > { %v5091_v36 = vadd.f32 %v4963_v1, %v4703_v25  ;;  %v6964_v42 = vsel %vm1595_vm0, %v6642_v20, 0.0  ;;  %v4342_v26 = vadd.f32 %v4214_v39, %v3954_v55  ;;  %v3439_v60 = vmul.f32 %v14567_v41, %v3307_v18  ;;  %v15167_v41 = vld [vmem:[#allocation50_spill] sm:$0xff]  ;;  %v15169_v39 = vld [vmem:[#allocation24_spill] sm:$0xff]  ;;  %v7008_v18 = vpop.xlane.xlu1 %7007  ;;  %v15174_v20 = vld [vmem:[#allocation49_spill] sm:$0xff] }
 0x441   : > { %v3827_v3 = vmul.f32 %v9019_v47, %v3695_v2  ;;  %6965 = vadd.xlane.f32.xlu1 %v6964_v42  ;;  %v6255_v8 = vadd.f32 %v14026_v33, %v5867_v48  ;;  %v4215_v49 = vmul.f32 %v9029_v14, %v4083_v23  ;;  %v4603_v40 = vmul.f32 %v15166_v45, %v9095_v50  ;;  %v15168_v47 = vld [vmem:[#allocation57_spill] sm:$0xff]  ;;  %v15172_v25 = vld [vmem:[#allocation12_spill] sm:$0xff]  ;;  %v15180_v45 = vld [vmem:[#allocation14_spill] sm:$0xff] }
 0x442   : > { %v5479_v1 = vadd.f32 %v5351_v31, %v5091_v36  ;;  %v4730_v21 = vadd.f32 %v4602_v62, %v4342_v26  ;;  %v4991_v56 = vmul.f32 %v15167_v41, %v9098_v16  ;;  %v5379_v46 = vmul.f32 %v15168_v47, %v9111_v22  ;;  %v6999_v22 = vpop.xlane.xlu0 %6998  ;;  %v15176_v48 = vld [vmem:[#allocation76_spill] sm:$0xff] }
 0x443   : > { %v3955_v30 = vadd.f32 %v3827_v3, %v3439_v60  ;;  %v6643_v63 = vadd.f32 %v14029_v29, %v6255_v8  ;;  %v5768_v33 = vmul.f32 %v9122_v59, %v5636_v54  ;;  %v14088_v14 = vmul.f32 %v9125_v11, %v6024_v32  ;;  %v15177_v8 = vld [vmem:[#allocation13_spill] sm:$0xff] }
 0x444   : > { %v5868_v12 = vadd.f32 %v5740_v6, %v5479_v1  ;;  %v5118_v31 = vadd.f32 %v4990_v52, %v4730_v21  ;;  %v14091_v53 = vmul.f32 %v13549_v43, %v6412_v5  ;;  %v7132_v16 = vadd.f32 %v13899_v19, %v15169_v39  ;;  %v15170_v6 = vld [vmem:[#allocation58_spill] sm:$0xff]  ;;  %v15173_v52 = vld [vmem:[#allocation55_spill] sm:$0xff]  ;;  %v15181_v5 = vld [vmem:[#allocation61_spill] sm:$0xff] }
 0x445   : > { %v4343_v50 = vadd.f32 %v4215_v49, %v3955_v30  ;;  %v6967_v29 = vsel %vm1595_vm0, %v6643_v63, 0.0  ;;  %v7133_v59 = vadd.f32 %v13899_v19, %v15170_v6  ;;  %v7134_v11 = vadd.f32 %v13899_v19, %v15171_v24  ;;  %v15178_v49 = vld [vmem:[#allocation17_spill] sm:$0xff] }
 0x446   : > { %v6256_v4 = vadd.f32 %v6128_v44, %v5868_v12  ;;  %6968 = vadd.xlane.f32.xlu0 %v6967_v29  ;;  %v5506_v34 = vadd.f32 %v5378_v15, %v5118_v31  ;;  %7261 = vst.msk [vmem:[%s11877_s8 + $0x220] sm:$0xff] %vm7192_vm2, %v7132_v16  ;;  %v7135_v62 = vadd.f32 %v13899_v19, %v15172_v25  ;;  %v15175_v15 = vld [vmem:[#allocation28_spill] sm:$0xff] }
 0x447   : > { %v4731_v43 = vadd.f32 %v4603_v40, %v4343_v50  ;;  %v7136_v44 = vadd.f32 %v13899_v19, %v15173_v52  ;;  %7262 = vst.msk [vmem:[%s11877_s8 + $0x228] sm:$0xff] %vm7192_vm2, %v7133_v59  ;;  %7263 = vst.msk [vmem:[%s11877_s8 + $0x230] sm:$0xff] %vm7192_vm2, %v7134_v11  ;;  %v7137_v55 = vadd.f32 %v13899_v19, %v15174_v20  ;;  %v7002_v63 = vpop.xlane.xlu1 %7001 }
 0x448   : > { %v6644_v2 = vadd.f32 %v14052_v7, %v6256_v4  ;;  %v7138_v23 = vadd.f32 %v13899_v19, %v15175_v15  ;;  %v7139_v36 = vadd.f32 %v13899_v19, %v15176_v48  ;;  %v5895_v42 = vadd.f32 %v5767_v17, %v5506_v34  ;;  %7264 = vst.msk [vmem:[%s11877_s8 + $0x238] sm:$0xff] %vm7192_vm2, %v7135_v62 }
 0x449   : > { %v5119_v26 = vadd.f32 %v4991_v56, %v4731_v43  ;;  %7265 = vst.msk [vmem:[%s11877_s8 + $0x240] sm:$0xff] %vm7192_vm2, %v7136_v44  ;;  %v7140_v7 = vadd.f32 %v13899_v19, %v13862_v10  ;;  %v7141_v60 = vadd.f32 %v13899_v19, %v13872_v57  ;;  %7266 = vst.msk [vmem:[%s11877_s8 + $0x248] sm:$0xff] %vm7192_vm2, %v7137_v55 }
 0x44a   : > { %v6970_v3 = vsel %vm1595_vm0, %v6644_v2, 0.0  ;;  %7267 = vst.msk [vmem:[%s11877_s8 + $0x250] sm:$0xff] %vm7192_vm2, %v7138_v23  ;;  %7268 = vst.msk [vmem:[%s11877_s8 + $0x258] sm:$0xff] %vm7192_vm2, %v7139_v36  ;;  %v7142_v17 = vadd.f32 %v13899_v19, %v13883_v28  ;;  %v7143_v10 = vadd.f32 %v13899_v19, %v13894_v27  ;;  %v7164_v57 = vadd.f32 %v13899_v19, %v13908_v0  ;;  %v6927_v27 = vpop.xlane.xlu0 %6926  ;;  %v15179_v0 = vld [vmem:[#allocation71_spill] sm:$0xff] }
 0x44b   : > { %6971 = vadd.xlane.f32.xlu1 %v6970_v3  ;;  %v6283_v54 = vadd.f32 %v6155_v13, %v5895_v42  ;;  %v5507_v32 = vadd.f32 %v5379_v46, %v5119_v26  ;;  %7269 = vst.msk [vmem:[%s11877_s8 + $0x260] sm:$0xff] %vm7192_vm2, %v7140_v7  ;;  %7270 = vst.msk [vmem:[%s11877_s8 + $0x268] sm:$0xff] %vm7192_vm2, %v7141_v60  ;;  %v7167_v1 = vadd.f32 %v13899_v19, %v15177_v8 }
 0x44c   : > { %v7144_v28 = vadd.f32 %v13899_v19, %v15178_v49  ;;  %7271 = vst.msk [vmem:[%s11877_s8 + $0x270] sm:$0xff] %vm7192_vm2, %v7142_v17  ;;  %7272 = vst.msk [vmem:[%s11877_s8 + $0x278] sm:$0xff] %vm7192_vm2, %v7143_v10  ;;  %v7165_v13 = vadd.f32 %v13899_v19, %v15179_v0  ;;  %v7166_v40 = vadd.f32 %v13899_v19, %v15180_v45 }
 0x44d   : > { %7293 = vst.msk [vmem:[%s11877_s8 + $0x320] sm:$0xff] %vm7192_vm2, %v7164_v57  ;;  %v7145_v21 = vadd.f32 %v13899_v19, %v15181_v5  ;;  %v7168_v30 = vadd.f32 %v13899_v19, %v14006_v51  ;;  %v6671_v41 = vadd.f32 %v14070_v38, %v6283_v54  ;;  %v5896_v56 = vadd.f32 %v5768_v33, %v5507_v32 }
 0x44e   : > { %7296 = vst.msk [vmem:[%s11877_s8 + $0x338] sm:$0xff] %vm7192_vm2, %v7167_v1  ;;  %7273 = vst.msk [vmem:[%s11877_s8 + $0x280] sm:$0xff] %vm7192_vm2, %v7144_v28  ;;  %v7171_v47 = vadd.f32 %v13899_v19, %v14020_v9  ;;  %v7146_v46 = vadd.f32 %v13899_v19, %v14040_v37  ;;  %v7169_v51 = vadd.f32 %v13899_v19, %v14049_v35  ;;  %v7005_v31 = vpop.xlane.xlu0 %7004 }
 0x44f   : > { %7294 = vst.msk [vmem:[%s11877_s8 + $0x328] sm:$0xff] %vm7192_vm2, %v7165_v13  ;;  %7295 = vst.msk [vmem:[%s11877_s8 + $0x330] sm:$0xff] %vm7192_vm2, %v7166_v40  ;;  %v7170_v9 = vadd.f32 %v13899_v19, %v14066_v58  ;;  %v7147_v37 = vadd.f32 %v13899_v19, %v14075_v61  ;;  %v7172_v38 = vadd.f32 %v13899_v19, %v6999_v22  ;;  %v7051_v12 = vsel %vm1595_vm0, %v6671_v41, 0.0 }
 0x450   : > { %7274 = vst.msk [vmem:[%s11877_s8 + $0x288] sm:$0xff] %vm7192_vm2, %v7145_v21  ;;  %7297 = vst.msk [vmem:[%s11877_s8 + $0x340] sm:$0xff] %vm7192_vm2, %v7168_v30  ;;  %v6284_v33 = vadd.f32 %v14088_v14, %v5896_v56  ;;  %v7175_v35 = vadd.f32 %v13899_v19, %v7008_v18  ;;  %v7148_v58 = vadd.f32 %v13899_v19, %v6927_v27  ;;  %7052 = vadd.xlane.f32.xlu0 %v7051_v12 }
 0x451   : > { %7300 = vst.msk [vmem:[%s11877_s8 + $0x358] sm:$0xff] %vm7192_vm2, %v7171_v47  ;;  %7275 = vst.msk [vmem:[%s11877_s8 + $0x290] sm:$0xff] %vm7192_vm2, %v7146_v46  ;;  %v7173_v61 = vadd.f32 %v13899_v19, %v7002_v63  ;;  %v7174_v50 = vadd.f32 %v13899_v19, %v7005_v31 }
 0x452   : > { %7298 = vst.msk [vmem:[%s11877_s8 + $0x348] sm:$0xff] %vm7192_vm2, %v7169_v51  ;;  %7299 = vst.msk [vmem:[%s11877_s8 + $0x350] sm:$0xff] %vm7192_vm2, %v7170_v9  ;;  %v6672_v14 = vadd.f32 %v14091_v53, %v6284_v33  ;;  %v6930_v16 = vpop.xlane.xlu1 %6929 }
 0x453   : > { %7276 = vst.msk [vmem:[%s11877_s8 + $0x298] sm:$0xff] %vm7192_vm2, %v7147_v37  ;;  %7301 = vst.msk [vmem:[%s11877_s8 + $0x360] sm:$0xff] %vm7192_vm2, %v7172_v38  ;;  %v7149_v53 = vadd.f32 %v13899_v19, %v6930_v16 }
 0x454   : > { %7304 = vst.msk [vmem:[%s11877_s8 + $0x378] sm:$0xff] %vm7192_vm2, %v7175_v35  ;;  %7277 = vst.msk [vmem:[%s11877_s8 + $0x2a0] sm:$0xff] %vm7192_vm2, %v7148_v58  ;;  %v7054_v39 = vsel %vm1595_vm0, %v6672_v14, 0.0 }
 0x455   : > { %7302 = vst.msk [vmem:[%s11877_s8 + $0x368] sm:$0xff] %vm7192_vm2, %v7173_v61  ;;  %7055 = vadd.xlane.f32.xlu1 %v7054_v39  ;;  %7303 = vst.msk [vmem:[%s11877_s8 + $0x370] sm:$0xff] %vm7192_vm2, %v7174_v50 }
 0x456   : > { %7278 = vst.msk [vmem:[%s11877_s8 + $0x2a8] sm:$0xff] %vm7192_vm2, %v7149_v53 }
 0x457   : > { %v7011_v22 = vpop.xlane.xlu0 %7010 }
 0x458   : > { %v7176_v29 = vadd.f32 %v13899_v19, %v7011_v22 }
 0x45a   : > { %7305 = vst.msk [vmem:[%s11877_s8 + $0x380] sm:$0xff] %vm7192_vm2, %v7176_v29 }
 0x45b   : > { %v7020_v4 = vpop.xlane.xlu1 %7019 }
 0x45c   : > { %v7179_v6 = vadd.f32 %v13899_v19, %v7020_v4 }
 0x45e   : > { %7308 = vst.msk [vmem:[%s11877_s8 + $0x398] sm:$0xff] %vm7192_vm2, %v7179_v6 }
 0x461   : > { %v6933_v59 = vpop.xlane.xlu0 %6932 }
 0x462   : > { %v7150_v24 = vadd.f32 %v13899_v19, %v6933_v59 }
 0x464   : > { %7279 = vst.msk [vmem:[%s11877_s8 + $0x2b0] sm:$0xff] %vm7192_vm2, %v7150_v24 }
 0x465   : > { %v7014_v11 = vpop.xlane.xlu1 %7013 }
 0x466   : > { %v7177_v34 = vadd.f32 %v13899_v19, %v7014_v11 }
 0x468   : > { %7306 = vst.msk [vmem:[%s11877_s8 + $0x388] sm:$0xff] %vm7192_vm2, %v7177_v34 }
 0x46a   : > { %v7017_v43 = vpop.xlane.xlu0 %7016 }
 0x46b   : > { %v7178_v25 = vadd.f32 %v13899_v19, %v7017_v43 }
 0x46d   : > { %7307 = vst.msk [vmem:[%s11877_s8 + $0x390] sm:$0xff] %vm7192_vm2, %v7178_v25 }
 0x46e   : > { %v6936_v62 = vpop.xlane.xlu1 %6935 }
 0x46f   : > { %v7151_v52 = vadd.f32 %v13899_v19, %v6936_v62 }
 0x471   : > { %7280 = vst.msk [vmem:[%s11877_s8 + $0x2b8] sm:$0xff] %vm7192_vm2, %v7151_v52 }
 0x474   : > { %v7023_v44 = vpop.xlane.xlu0 %7022 }
 0x475   : > { %v7180_v18 = vadd.f32 %v13899_v19, %v7023_v44 }
 0x477   : > { %7309 = vst.msk [vmem:[%s11877_s8 + $0x3a0] sm:$0xff] %vm7192_vm2, %v7180_v18 }
 0x479   : > { %v7032_v2 = vpop.xlane.xlu1 %7031 }
 0x47a   : > { %v7183_v20 = vadd.f32 %v13899_v19, %v7032_v2 }
 0x47c   : > { %7312 = vst.msk [vmem:[%s11877_s8 + $0x3b8] sm:$0xff] %vm7192_vm2, %v7183_v20 }
 0x47d   : > { %v6939_v55 = vpop.xlane.xlu0 %6938 }
 0x47e   : > { %v7152_v15 = vadd.f32 %v13899_v19, %v6939_v55 }
 0x480   : > { %7281 = vst.msk [vmem:[%s11877_s8 + $0x2c0] sm:$0xff] %vm7192_vm2, %v7152_v15 }
 0x482   : > { %v7026_v23 = vpop.xlane.xlu1 %7025 }
 0x483   : > { %v7181_v48 = vadd.f32 %v13899_v19, %v7026_v23 }
 0x485   : > { %7310 = vst.msk [vmem:[%s11877_s8 + $0x3a8] sm:$0xff] %vm7192_vm2, %v7181_v48 }
 0x488   : > { %v7029_v36 = vpop.xlane.xlu0 %7028 }
 0x489   : > { %v7182_v42 = vadd.f32 %v13899_v19, %v7029_v36 }
 0x48b   : > { %7311 = vst.msk [vmem:[%s11877_s8 + $0x3b0] sm:$0xff] %vm7192_vm2, %v7182_v42 }
 0x48c   : > { %v6942_v26 = vpop.xlane.xlu1 %6941 }
 0x48d   : > { %v7153_v7 = vadd.f32 %v13899_v19, %v6942_v26 }
 0x48f   : > { %7282 = vst.msk [vmem:[%s11877_s8 + $0x2c8] sm:$0xff] %vm7192_vm2, %v7153_v7 }
 0x491   : > { %v6951_v60 = vpop.xlane.xlu0 %6950 }
 0x492   : > { %v7156_v3 = vadd.f32 %v13899_v19, %v6951_v60 }
 0x494   : > { %7285 = vst.msk [vmem:[%s11877_s8 + $0x2e0] sm:$0xff] %vm7192_vm2, %v7156_v3 }
 0x495   : > { %v7044_v17 = vpop.xlane.xlu1 %7043 }
 0x496   : > { %v7187_v10 = vadd.f32 %v13899_v19, %v7044_v17 }
 0x498   : > { %7316 = vst.msk [vmem:[%s11877_s8 + $0x3d8] sm:$0xff] %vm7192_vm2, %v7187_v10 }
 0x49a   : > { %v7035_v57 = vpop.xlane.xlu0 %7034 }
 0x49b   : > { %v7184_v54 = vadd.f32 %v13899_v19, %v7035_v57 }
 0x49d   : > { %7313 = vst.msk [vmem:[%s11877_s8 + $0x3c0] sm:$0xff] %vm7192_vm2, %v7184_v54 }
 0x49f   : > { %v7038_v32 = vpop.xlane.xlu1 %7037 }
 0x4a0   : > { %v7185_v8 = vadd.f32 %v13899_v19, %v7038_v32 }
 0x4a2   : > { %7314 = vst.msk [vmem:[%s11877_s8 + $0x3c8] sm:$0xff] %vm7192_vm2, %v7185_v8 }
 0x4a4   : > { %v6945_v1 = vpop.xlane.xlu0 %6944 }
 0x4a5   : > { %v7154_v49 = vadd.f32 %v13899_v19, %v6945_v1 }
 0x4a7   : > { %7283 = vst.msk [vmem:[%s11877_s8 + $0x2d0] sm:$0xff] %vm7192_vm2, %v7154_v49 }
 0x4a9   : > { %v6948_v28 = vpop.xlane.xlu1 %6947 }
 0x4aa   : > { %v7155_v27 = vadd.f32 %v13899_v19, %v6948_v28 }
 0x4ac   : > { %7284 = vst.msk [vmem:[%s11877_s8 + $0x2d8] sm:$0xff] %vm7192_vm2, %v7155_v27 }
 0x4ad   : > { %v7041_v0 = vpop.xlane.xlu0 %7040 }
 0x4ae   : > { %v7186_v13 = vadd.f32 %v13899_v19, %v7041_v0 }
 0x4b0   : > { %7315 = vst.msk [vmem:[%s11877_s8 + $0x3d0] sm:$0xff] %vm7192_vm2, %v7186_v13 }
 0x4b2   : > { %v6954_v45 = vpop.xlane.xlu1 %6953 }
 0x4b3   : > { %v7157_v40 = vadd.f32 %v13899_v19, %v6954_v45 }
 0x4b5   : > { %7286 = vst.msk [vmem:[%s11877_s8 + $0x2e8] sm:$0xff] %vm7192_vm2, %v7157_v40 }
 0x4b7   : > { %v6963_v5 = vpop.xlane.xlu0 %6962 }
 0x4b8   : > { %v7160_v21 = vadd.f32 %v13899_v19, %v6963_v5 }
 0x4ba   : > { %7289 = vst.msk [vmem:[%s11877_s8 + $0x300] sm:$0xff] %vm7192_vm2, %v7160_v21 }
 0x4bb   : > { %v7050_v30 = vpop.xlane.xlu1 %7049 }
 0x4bc   : > { %v7189_v41 = vadd.f32 %v13899_v19, %v7050_v30 }
 0x4be   : > { %7318 = vst.msk [vmem:[%s11877_s8 + $0x3e8] sm:$0xff] %vm7192_vm2, %v7189_v41 }
 0x4c0   : > { %v7047_v56 = vpop.xlane.xlu0 %7046 }
 0x4c1   : > { %v7188_v47 = vadd.f32 %v13899_v19, %v7047_v56 }
 0x4c3   : > { %7317 = vst.msk [vmem:[%s11877_s8 + $0x3e0] sm:$0xff] %vm7192_vm2, %v7188_v47 }
 0x4c5   : > { %v6960_v46 = vpop.xlane.xlu1 %6959 }
 0x4c6   : > { %v7159_v63 = vadd.f32 %v13899_v19, %v6960_v46 }
 0x4c8   : > { %7288 = vst.msk [vmem:[%s11877_s8 + $0x2f8] sm:$0xff] %vm7192_vm2, %v7159_v63 }
 0x4ca   : > { %v6957_v51 = vpop.xlane.xlu0 %6956 }
 0x4cb   : > { %v7158_v9 = vadd.f32 %v13899_v19, %v6957_v51 }
 0x4cd   : > { %7287 = vst.msk [vmem:[%s11877_s8 + $0x2f0] sm:$0xff] %vm7192_vm2, %v7158_v9 }
 0x4ce   : > { %v6966_v37 = vpop.xlane.xlu1 %6965 }
 0x4cf   : > { %v7161_v38 = vadd.f32 %v13899_v19, %v6966_v37 }
 0x4d1   : > { %7290 = vst.msk [vmem:[%s11877_s8 + $0x308] sm:$0xff] %vm7192_vm2, %v7161_v38 }
 0x4d3   : > { %v6969_v12 = vpop.xlane.xlu0 %6968 }
 0x4d4   : > { %v7162_v33 = vadd.f32 %v13899_v19, %v6969_v12 }
 0x4d6   : > { %7291 = vst.msk [vmem:[%s11877_s8 + $0x310] sm:$0xff] %vm7192_vm2, %v7162_v33 }
 0x4d8   : > { %v6972_v35 = vpop.xlane.xlu1 %6971 }
 0x4d9   : > { %v7163_v58 = vadd.f32 %v13899_v19, %v6972_v35 }
 0x4db   : > { %7292 = vst.msk [vmem:[%s11877_s8 + $0x318] sm:$0xff] %vm7192_vm2, %v7163_v58 }
 0x4dd   : > { %v7053_v61 = vpop.xlane.xlu0 %7052 }
 0x4de   : > { %v7190_v14 = vadd.f32 %v13899_v19, %v7053_v61 }
 0x4e0   : > { %7319 = vst.msk [vmem:[%s11877_s8 + $0x3f0] sm:$0xff] %vm7192_vm2, %v7190_v14 }
 0x4e2   : > { %v7056_v31 = vpop.xlane.xlu1 %7055 }
 0x4e3   : > { %v7191_v50 = vadd.f32 %v13899_v19, %v7056_v31 }
 0x4e5   : > { %7320 = vst.msk [vmem:[%s11877_s8 + $0x3f8] sm:$0xff] %vm7192_vm2, %v7191_v50 }
 0x4e6 PF: > { %s17_s20 = sadd.s32 1, %s8199_s20  }
 0x4e7   : > { %p14_p4 = scmp.ge.s32.totalorder %s17_s20, 4  }
 0x4e9   :  { %16 = sbr.rel (!%p14_p4) target bundleno = 3 (0x3), region = 72 }

</bundles_post_ra>
